<compile_context>
chip_gen: v5e
topology: v5e:2x2
jax: 0.10.0
libtpu: 0.0.40
codegen_flags: <defaults>
</compile_context>

<pallas_src>
import functools
import math

import jax
import jax.numpy as jnp
from jax import lax
from jax.experimental import pallas as pl
from jax.experimental.pallas import tpu as pltpu

EPS = 1e-5        # PyTorch BatchNorm2d default eps
LANE = 128        # TPU lane width; channel dims padded to a multiple of this
NEG_PAD = -1e30   # spatial pad sentinel that maps to exactly 0 through the
                  # fused affine(+)relu (valid since scale = gamma*rsqrt(var+eps) > 0,
                  # gamma == 1 as in the freshly-initialized PyTorch module)


# ---------------------------- small helpers ----------------------------

def _round_up(x, m):
    return ((x + m - 1) // m) * m


def _row_plan(m):
    """(padded_rows, row_tile) -- keeps the second-minor dim 8-aligned."""
    if m <= 128:
        mp = _round_up(m, 8)
        return mp, mp
    mp = _round_up(m, 128)
    return mp, (256 if mp % 256 == 0 else 128)


def _k_tile(kpad):
    for t in (512, 256, 128):
        if kpad % t == 0:
            return t
    return kpad


def _n_tile(npad):
    return 256 if npad % 256 == 0 else 128


def _pad_rows(a, mp):
    if mp == a.shape[0]:
        return a
    return jnp.pad(a, ((0, mp - a.shape[0]),) + ((0, 0),) * (a.ndim - 1))


# ---------------------------- Pallas kernels ----------------------------

def _matmul_kernel(scale_ref, shift_ref, a_ref, b_ref, o_ref, acc_ref, *,
                   fuse_bn_relu):
    """(TM,TK) x (TK,TN) tile matmul, f32 VMEM accumulator over the K grid axis.

    If fuse_bn_relu: applies relu(a * scale + shift) per K column to the A tile
    (BatchNorm+ReLU of the conv input fused into the conv).
    """
    @pl.when(pl.program_id(2) == 0)
    def _():
        acc_ref[...] = jnp.zeros_like(acc_ref)

    a = a_ref[...]
    if fuse_bn_relu:
        a = jnp.maximum(a * scale_ref[...] + shift_ref[...], 0.0)
    acc_ref[...] += jnp.dot(a.astype(jnp.bfloat16), b_ref[...],
                            preferred_element_type=jnp.float32)

    @pl.when(pl.program_id(2) == pl.num_programs(2) - 1)
    def _():
        o_ref[...] = acc_ref[...]


def _bn_stats_kernel(x_ref, sum_ref, sq_ref):
    """Row-tiled accumulation of per-channel sum and sum-of-squares."""
    @pl.when(pl.program_id(0) == 0)
    def _():
        sum_ref[...] = jnp.zeros_like(sum_ref)
        sq_ref[...] = jnp.zeros_like(sq_ref)
    x = x_ref[...]
    sum_ref[...] += jnp.sum(x, axis=0, keepdims=True)
    sq_ref[...] += jnp.sum(x * x, axis=0, keepdims=True)


def _bn_relu_kernel(x_ref, scale_ref, shift_ref, o_ref):
    o_ref[...] = jnp.maximum(x_ref[...] * scale_ref[...] + shift_ref[...], 0.0)


def _pool_kernel(p_ref, o_ref, *, op, kk):
    # p: (TM, kk, C) -> o: (TM, C); unrolled tap-wise reduce (no big relayout)
    acc = p_ref[:, 0, :]
    for t in range(1, kk):
        v = p_ref[:, t, :]
        acc = jnp.maximum(acc, v) if op == "max" else acc + v
    if op == "avg":
        acc = acc * (1.0 / kk)
    o_ref[...] = acc


# ---------------------------- Pallas wrappers ----------------------------

def pallas_matmul(a, b_bf16, scale=None, shift=None):
    """a: (M, Kpad) f32, b: (Kpad, Npad) bf16 -> (M, Npad) f32.

    If scale/shift are given, relu(a*scale + shift) is applied per K column
    inside the kernel before the dot (fused BN+ReLU on the matmul input).
    """
    M, K = a.shape
    Kb, N = b_bf16.shape
    assert K == Kb and K % LANE == 0 and N % LANE == 0
    fuse = scale is not None
    if fuse:
        scale = scale.reshape(1, K).astype(jnp.float32)
        shift = shift.reshape(1, K).astype(jnp.float32)
    else:
        scale = jnp.zeros((1, K), jnp.float32)
        shift = jnp.zeros((1, K), jnp.float32)

    Mp, TM = _row_plan(M)
    TK = _k_tile(K)
    TN = _n_tile(N)
    a = _pad_rows(a, Mp)

    out = pl.pallas_call(
        functools.partial(_matmul_kernel, fuse_bn_relu=fuse),
        out_shape=jax.ShapeDtypeStruct((Mp, N), jnp.float32),
        grid=(Mp // TM, N // TN, K // TK),
        in_specs=[
            pl.BlockSpec((1, TK), lambda m, n, k: (0, k)),     # scale
            pl.BlockSpec((1, TK), lambda m, n, k: (0, k)),     # shift
            pl.BlockSpec((TM, TK), lambda m, n, k: (m, k)),    # A
            pl.BlockSpec((TK, TN), lambda m, n, k: (k, n)),    # B (bf16)
        ],
        out_specs=pl.BlockSpec((TM, TN), lambda m, n, k: (m, n)),
        scratch_shapes=[pltpu.VMEM((TM, TN), jnp.float32)],
        compiler_params=pltpu.CompilerParams(
            dimension_semantics=("parallel", "parallel", "arbitrary")),
    )(scale, shift, a, b_bf16)
    return out[:M] if Mp != M else out


def bn_stats(x2d):
    """x2d: (M, Cpad) -> (sum, sumsq), each (1, Cpad) f32."""
    M, C = x2d.shape
    Mp, TM = _row_plan(M)
    xp = _pad_rows(x2d, Mp)          # zero rows do not change sum / sumsq
    s, sq = pl.pallas_call(
        _bn_stats_kernel,
        out_shape=(jax.ShapeDtypeStruct((1, C), jnp.float32),
                   jax.ShapeDtypeStruct((1, C), jnp.float32)),
        grid=(Mp // TM,),
        in_specs=[pl.BlockSpec((TM, C), lambda i: (i, 0))],
        out_specs=(pl.BlockSpec((1, C), lambda i: (0, 0)),
                   pl.BlockSpec((1, C), lambda i: (0, 0))),
        compiler_params=pltpu.CompilerParams(
            dimension_semantics=("arbitrary",)),
    )(xp)
    return s, sq


def bn_scale_shift(x2d, gamma_pad, beta_pad, m_true):
    """Training-mode (biased batch stats) BN folded to per-channel scale/shift."""
    s, sq = bn_stats(x2d)
    mean = s / m_true
    var = jnp.maximum(sq / m_true - mean * mean, 0.0)
    inv = lax.rsqrt(var + EPS)
    scale = gamma_pad.reshape(1, -1) * inv
    shift = beta_pad.reshape(1, -1) - mean * scale
    return scale, shift


def bn_relu_apply(x2d, scale, shift):
    """Row-tiled elementwise y = relu(x*scale + shift)."""
    M, C = x2d.shape
    Mp, TM = _row_plan(M)
    xp = _pad_rows(x2d, Mp)
    out = pl.pallas_call(
        _bn_relu_kernel,
        out_shape=jax.ShapeDtypeStruct((Mp, C), jnp.float32),
        grid=(Mp // TM,),
        in_specs=[pl.BlockSpec((TM, C), lambda i: (i, 0)),
                  pl.BlockSpec((1, C), lambda i: (0, 0)),
                  pl.BlockSpec((1, C), lambda i: (0, 0))],
        out_specs=pl.BlockSpec((TM, C), lambda i: (i, 0)),
        compiler_params=pltpu.CompilerParams(
            dimension_semantics=("parallel",)),
    )(xp, scale, shift)
    return out[:M] if Mp != M else out


def extract_patches(x, k, stride, pad, pad_value=0.0):
    """x: (N, H, W, C) -> (N, Ho, Wo, k, k, C).  Pure XLA glue."""
    N, H, W, C = x.shape
    if pad > 0:
        x = jnp.pad(x, ((0, 0), (pad, pad), (pad, pad), (0, 0)),
                    constant_values=pad_value)
    Ho = (H + 2 * pad - k) // stride + 1
    Wo = (W + 2 * pad - k) // stride + 1
    taps = []
    for di in range(k):
        row = []
        for dj in range(k):
            row.append(x[:, di:di + stride * (Ho - 1) + 1:stride,
                            dj:dj + stride * (Wo - 1) + 1:stride, :])
        taps.append(jnp.stack(row, axis=3))
    return jnp.stack(taps, axis=3)


def pool2d(x_nhwc, k, stride, pad, op):
    """Max/avg pool via a row-tiled Pallas reduction over the k*k window axis."""
    N, H, W, C = x_nhwc.shape
    pad_value = -jnp.inf if op == "max" else 0.0
    p = extract_patches(x_nhwc, k, stride, pad, pad_value)
    Ho, Wo = p.shape[1], p.shape[2]
    M = N * Ho * Wo
    P = p.reshape(M, k * k, C)       # contiguous reshape; no transpose
    Mp, TM = _row_plan(M)
    P = _pad_rows(P, Mp)
    out = pl.pallas_call(
        functools.partial(_pool_kernel, op=op, kk=k * k),
        out_shape=jax.ShapeDtypeStruct((Mp, C), jnp.float32),
        grid=(Mp // TM,),
        in_specs=[pl.BlockSpec((TM, k * k, C), lambda i: (i, 0, 0))],
        out_specs=pl.BlockSpec((TM, C), lambda i: (i, 0)),
        compiler_params=pltpu.CompilerParams(
            dimension_semantics=("parallel",)),
    )(P)
    out = out[:M] if Mp != M else out
    return out.reshape(N, Ho, Wo, C)


def conv_3x3_bn_relu_fused(x_nhwc, B, scale, shift):
    """3x3 / s1 / p1 conv whose (pre-BN) input gets BN+ReLU fused inside the
    matmul.  The spatial border is padded with NEG_PAD so the fused relu maps
    it to the exact 0 that PyTorch's post-BN zero padding produces."""
    N, H, W, C = x_nhwc.shape
    A = extract_patches(x_nhwc, 3, 1, 1, pad_value=NEG_PAD).reshape(
        N * H * W, 9 * C)
    scale9 = jnp.tile(scale.reshape(1, C), (1, 9))
    shift9 = jnp.tile(shift.reshape(1, C), (1, 9))
    return pallas_matmul(A, B, scale9, shift9)       # (N*H*W, Cout_pad)


# ---------------------------- parameters ----------------------------

def kaiming_normal(key, shape):
    cout, cin, kh, kw = shape
    std = math.sqrt(2.0 / (cin * kh * kw))
    return jax.random.normal(key, shape, jnp.float32) * std


def pad_vec(v, n):
    return jnp.pad(v.astype(jnp.float32), (0, n - v.shape[0]))


def prep_conv_weight(w, cin_pad, cout_pad):
    """PyTorch (Cout,Cin,kh,kw) -> lane-dense bf16 (kh*kw*cin_pad, cout_pad),
    zero-padded per tap so it matches a channel-padded im2col A."""
    cout, cin, kh, kw = w.shape
    wt = jnp.transpose(w, (2, 3, 1, 0))              # (kh, kw, cin, cout)
    wt = jnp.pad(wt, ((0, 0), (0, 0), (0, cin_pad - cin), (0, cout_pad - cout)))
    return wt.reshape(kh * kw * cin_pad, cout_pad).astype(jnp.bfloat16)


def prep_conv0_weight(w, cout_pad):
    """Stem conv: flatten K = kh*kw*3 then zero-pad K to a lane multiple."""
    cout, cin, kh, kw = w.shape
    k = kh * kw * cin
    kpad = _round_up(k, LANE)
    B = jnp.transpose(w, (2, 3, 1, 0)).reshape(k, cout)
    B = jnp.pad(B, ((0, kpad - k), (0, cout_pad - cout)))
    return B.astype(jnp.bfloat16)


def init_params(key, growth_rate, block_config, num_init_features, bn_size):
    keys = iter(jax.random.split(key, 512))
    params = {"growth": growth_rate, "c0": num_init_features}

    c0_pad = _round_up(num_init_features, LANE)
    w0 = kaiming_normal(next(keys), (num_init_features, 3, 7, 7))
    params["conv0_B"] = prep_conv0_weight(w0, c0_pad)
    params["norm0_g"] = pad_vec(jnp.ones(num_init_features), c0_pad)
    params["norm0_b"] = pad_vec(jnp.zeros(num_init_features), c0_pad)

    mid = bn_size * growth_rate
    mid_pad = _round_up(mid, LANE)
    g_pad = _round_up(growth_rate, LANE)

    blocks = []
    num_features = num_init_features
    cur_pad = c0_pad
    for i, num_layers in enumerate(block_config):
        c_final = num_features + num_layers * growth_rate
        cpad_block = max(cur_pad, _round_up(c_final, LANE))
        layers = []
        for j in range(num_layers):
            cin = num_features + j * growth_rate
            w1 = kaiming_normal(next(keys), (mid, cin, 1, 1))
            w2 = kaiming_normal(next(keys), (growth_rate, mid, 3, 3))
            layers.append({
                "g1": pad_vec(jnp.ones(cin), cpad_block),
                "b1": pad_vec(jnp.zeros(cin), cpad_block),
                "B1": prep_conv_weight(w1, cpad_block, mid_pad),
                "g2": pad_vec(jnp.ones(mid), mid_pad),
                "b2": pad_vec(jnp.zeros(mid), mid_pad),
                "B2": prep_conv_weight(w2, mid_pad, g_pad),
            })
        num_features = c_final
        cur_pad = cpad_block
        trans = None
        if i != len(block_config) - 1:
            c_out = num_features // 2
            c_out_pad = _round_up(c_out, LANE)
            wt = kaiming_normal(next(keys), (c_out, num_features, 1, 1))
            trans = {
                "g": pad_vec(jnp.ones(num_features), cpad_block),
                "b": pad_vec(jnp.zeros(num_features), cpad_block),
                "B": prep_conv_weight(wt, cpad_block, c_out_pad),
            }
            num_features = c_out
            cur_pad = c_out_pad
        blocks.append({"layers": layers, "trans": trans, "cpad": cpad_block})

    params["blocks"] = blocks
    params["norm5_g"] = pad_vec(jnp.ones(num_features), cur_pad)
    params["norm5_b"] = pad_vec(jnp.zeros(num_features), cur_pad)
    return params, num_features


# ---------------------------- forward ----------------------------

def densenet_features_forward(x_nchw, params):
    growth = params["growth"]
    x = jnp.transpose(x_nchw, (0, 2, 3, 1)).astype(jnp.float32)   # NCHW -> NHWC
    N = x.shape[0]

    # features.conv0 (7x7 / s2 / p3, zero pad, no preceding BN)
    p = extract_patches(x, 7, 2, 3, 0.0)
    _, H, W = p.shape[:3]
    A = p.reshape(N * H * W, -1)
    A = jnp.pad(A, ((0, 0), (0, params["conv0_B"].shape[0] - A.shape[1])))
    x2 = pallas_matmul(A, params["conv0_B"])                      # (M, c0_pad)
    M = N * H * W

    # norm0 + relu0 (row-tiled apply; next op is maxpool, not a conv)
    s, t = bn_scale_shift(x2, params["norm0_g"], params["norm0_b"], M)
    x2 = bn_relu_apply(x2, s, t)

    # pool0: maxpool 3x3 / s2 / p1
    x4 = pool2d(x2.reshape(N, H, W, -1), 3, 2, 1, "max")
    _, H, W, Cpad = x4.shape
    x2 = x4.reshape(N * H * W, Cpad)
    M = N * H * W

    c_valid = params["c0"]
    for block in params["blocks"]:
        cpad_block = block["cpad"]
        if Cpad < cpad_block:                 # grow the 128-padded feature slab
            x2 = jnp.pad(x2, ((0, 0), (0, cpad_block - Cpad)))
            Cpad = cpad_block
        for layer in block["layers"]:
            # norm1 + relu1 fused into conv1 (1x1)
            s1, t1 = bn_scale_shift(x2, layer["g1"], layer["b1"], M)
            y1 = pallas_matmul(x2, layer["B1"], s1, t1)           # (M, mid_pad)
            # norm2 + relu2 fused into conv2 (3x3, pad 1)
            s2, t2 = bn_scale_shift(y1, layer["g2"], layer["b2"], M)
            y2 = conv_3x3_bn_relu_fused(y1.reshape(N, H, W, -1),
                                        layer["B2"], s2, t2)      # (M, g_pad)
            # drop_rate = 0 -> dropout is identity
            # concat: write new features into the padded slab at a static offset
            width = min(y2.shape[1], cpad_block - c_valid)
            x2 = lax.dynamic_update_slice(x2, y2[:, :width], (0, c_valid))
            c_valid += growth
        if block["trans"] is not None:
            tr = block["trans"]
            s, t = bn_scale_shift(x2, tr["g"], tr["b"], M)
            y = pallas_matmul(x2, tr["B"], s, t)                  # BN+ReLU fused conv 1x1
            x4 = pool2d(y.reshape(N, H, W, -1), 2, 2, 0, "avg")
            _, H, W, Cpad = x4.shape
            x2 = x4.reshape(N * H * W, Cpad)
            M = N * H * W
            c_valid = c_valid // 2

    # norm5 + final_relu
    s, t = bn_scale_shift(x2, params["norm5_g"], params["norm5_b"], M)
    x2 = bn_relu_apply(x2, s, t)

    out = x2.reshape(N, H, W, Cpad)[:, :, :, :c_valid]
    return jnp.transpose(out, (0, 3, 1, 2))                       # NHWC -> NCHW


# ---------------------------- main ----------------------------

if __name__ == "__main__":
    # Small DenseNet-BC config (same module structure, reduced sizes)
    growth_rate = 8
    block_config = (2, 2)
    num_init_features = 8
    bn_size = 2

    key = jax.random.PRNGKey(0)
    pkey, xkey = jax.random.split(key)
    params, final_c = init_params(pkey, growth_rate, block_config,
                                  num_init_features, bn_size)

    # PyTorch-style NCHW input
    x = jax.random.normal(xkey, (2, 3, 32, 32), jnp.float32)

    fwd = jax.jit(lambda inp: densenet_features_forward(inp, params))
    out = jax.block_until_ready(fwd(x))

    # 32 -> conv0(s2) 16 -> pool0(s2) 8 -> transition avgpool 4 ; channels = 28
    assert out.shape == (2, final_c, 4, 4), out.shape
    assert out.dtype == jnp.float32
    print("KERNEL_OK")
</pallas_src>

<mosaic_0001>
module attributes {stable_mosaic.version = 11 : i64} {
  func.func @_matmul_kernel(%arg0: i32, %arg1: i32, %arg2: i32, %arg3: memref<1x256xf32, #tpu.memory_space<vmem>>, %arg4: memref<1x256xf32, #tpu.memory_space<vmem>>, %arg5: memref<256x256xf32, #tpu.memory_space<vmem>>, %arg6: memref<256x128xbf16, #tpu.memory_space<vmem>>, %arg7: memref<256x128xf32, #tpu.memory_space<vmem>>, %arg8: memref<256x128xf32, #tpu.memory_space<vmem>>) attributes {dimension_semantics = [#tpu.dimension_semantics<parallel>, #tpu.dimension_semantics<parallel>, #tpu.dimension_semantics<arbitrary>], iteration_bounds = array<i64: 2, 1, 1>, scalar_prefetch = 0 : i64, scratch_operands = 1 : i64, tpu.core_type = #tpu.core_type<tc>, window_params = [{transform_indices = @transform_0, window_bounds = array<i64: 1, 256>}, {transform_indices = @transform_1, window_bounds = array<i64: 1, 256>}, {transform_indices = @transform_2, window_bounds = array<i64: 256, 256>}, {transform_indices = @transform_3, window_bounds = array<i64: 256, 128>}, {transform_indices = @transform_4, window_bounds = array<i64: 256, 128>}]} {
    %c0_i32 = arith.constant 0 : i32
    %0 = arith.cmpi eq, %arg2, %c0_i32 : i32
    %1 = arith.extui %0 : i1 to i32
    %c0_i32_0 = arith.constant 0 : i32
    %2 = arith.cmpi ne, %1, %c0_i32_0 : i32
    scf.if %2 {
      %cst_10 = arith.constant 0.000000e+00 : f32
      %13 = vector.broadcast %cst_10 : f32 to vector<256x128xf32>
      %c0_11 = arith.constant 0 : index
      %c0_12 = arith.constant 0 : index
      %14 = vector.load %arg8[%c0_11, %c0_12] : memref<256x128xf32, #tpu.memory_space<vmem>>, vector<256x128xf32>
      tpu.vector_store %arg8[%c0_11, %c0_12], %13 {strides = array<i32>} : memref<256x128xf32, #tpu.memory_space<vmem>>, vector<256x128xf32>,
    } else {
    }
    %c0 = arith.constant 0 : index
    %c0_1 = arith.constant 0 : index
    %3 = vector.load %arg5[%c0, %c0_1] : memref<256x256xf32, #tpu.memory_space<vmem>>, vector<256x256xf32>
    %c0_2 = arith.constant 0 : index
    %c0_3 = arith.constant 0 : index
    %4 = vector.load %arg8[%c0_2, %c0_3] : memref<256x128xf32, #tpu.memory_space<vmem>>, vector<256x128xf32>
    %5 = arith.truncf %3 : vector<256x256xf32> to vector<256x256xbf16>
    %c0_4 = arith.constant 0 : index
    %c0_5 = arith.constant 0 : index
    %6 = vector.load %arg6[%c0_4, %c0_5] : memref<256x128xbf16, #tpu.memory_space<vmem>>, vector<256x128xbf16>
    %cst = arith.constant dense<0.000000e+00> : vector<256x128xf32>
    %7 = tpu.matmul %5, %6, %cst {dimension_numbers = #tpu.dot_dimension_numbers<[1], [0], [0], [1], [0, 0, 1, 1], [], []>} : vector<256x256xbf16>, vector<256x128xbf16>, vector<256x128xf32> -> vector<256x128xf32>
    %8 = arith.addf %4, %7 : vector<256x128xf32>
    %c0_6 = arith.constant 0 : index
    %c0_7 = arith.constant 0 : index
    %9 = vector.load %arg8[%c0_6, %c0_7] : memref<256x128xf32, #tpu.memory_space<vmem>>, vector<256x128xf32>
    tpu.vector_store %arg8[%c0_6, %c0_7], %8 {strides = array<i32>} : memref<256x128xf32, #tpu.memory_space<vmem>>, vector<256x128xf32>,
    %c0_i32_8 = arith.constant 0 : i32
    %10 = arith.cmpi eq, %arg2, %c0_i32_8 : i32
    %11 = arith.extui %10 : i1 to i32
    %c0_i32_9 = arith.constant 0 : i32
    %12 = arith.cmpi ne, %11, %c0_i32_9 : i32
    scf.if %12 {
      %c0_10 = arith.constant 0 : index
      %c0_11 = arith.constant 0 : index
      %13 = vector.load %arg8[%c0_10, %c0_11] : memref<256x128xf32, #tpu.memory_space<vmem>>, vector<256x128xf32>
      %c0_12 = arith.constant 0 : index
      %c0_13 = arith.constant 0 : index
      %14 = vector.load %arg7[%c0_12, %c0_13] : memref<256x128xf32, #tpu.memory_space<vmem>>, vector<256x128xf32>
      tpu.vector_store %arg7[%c0_12, %c0_13], %13 {strides = array<i32>} : memref<256x128xf32, #tpu.memory_space<vmem>>, vector<256x128xf32>,
    } else {
    }
    return
  }
  func.func @transform_0(%arg0: i32, %arg1: i32, %arg2: i32) -> (i32, i32) {
    %c0_i32 = arith.constant 0 : i32
    %c0_i32_0 = arith.constant 0 : i32
    return %c0_i32, %arg2 : i32, i32
  }
  func.func @transform_1(%arg0: i32, %arg1: i32, %arg2: i32) -> (i32, i32) {
    %c0_i32 = arith.constant 0 : i32
    %c0_i32_0 = arith.constant 0 : i32
    return %c0_i32, %arg2 : i32, i32
  }
  func.func @transform_2(%arg0: i32, %arg1: i32, %arg2: i32) -> (i32, i32) {
    %c0_i32 = arith.constant 0 : i32
    return %arg0, %arg2 : i32, i32
  }
  func.func @transform_3(%arg0: i32, %arg1: i32, %arg2: i32) -> (i32, i32) {
    %c0_i32 = arith.constant 0 : i32
    return %arg2, %arg1 : i32, i32
  }
  func.func @transform_4(%arg0: i32, %arg1: i32, %arg2: i32) -> (i32, i32) {
    %c0_i32 = arith.constant 0 : i32
    return %arg0, %arg1 : i32, i32
  }
}

module attributes {stable_mosaic.version = 11 : i64} {
  func.func @_bn_stats_kernel(%arg0: i32, %arg1: memref<256x128xf32, #tpu.memory_space<vmem>>, %arg2: memref<1x128xf32, #tpu.memory_space<vmem>>, %arg3: memref<1x128xf32, #tpu.memory_space<vmem>>) attributes {dimension_semantics = [#tpu.dimension_semantics<arbitrary>], iteration_bounds = array<i64: 2>, scalar_prefetch = 0 : i64, scratch_operands = 0 : i64, tpu.core_type = #tpu.core_type<tc>, window_params = [{transform_indices = @transform_0, window_bounds = array<i64: 256, 128>}, {pipeline_mode = #tpu.pipeline_mode<synchronous>, transform_indices = @transform_1, window_bounds = array<i64: 1, 128>}, {pipeline_mode = #tpu.pipeline_mode<synchronous>, transform_indices = @transform_2, window_bounds = array<i64: 1, 128>}]} {
    %c0_i32 = arith.constant 0 : i32
    %0 = arith.cmpi eq, %arg0, %c0_i32 : i32
    %1 = arith.extui %0 : i1 to i32
    %c0_i32_0 = arith.constant 0 : i32
    %2 = arith.cmpi ne, %1, %c0_i32_0 : i32
    scf.if %2 {
      %cst_11 = arith.constant 0.000000e+00 : f32
      %15 = vector.broadcast %cst_11 : f32 to vector<1x128xf32>
      %c0_12 = arith.constant 0 : index
      %c0_13 = arith.constant 0 : index
      %16 = vector.load %arg2[%c0_12, %c0_13] : memref<1x128xf32, #tpu.memory_space<vmem>>, vector<1x128xf32>
      tpu.vector_store %arg2[%c0_12, %c0_13], %15 {strides = array<i32>} : memref<1x128xf32, #tpu.memory_space<vmem>>, vector<1x128xf32>,
      %cst_14 = arith.constant 0.000000e+00 : f32
      %17 = vector.broadcast %cst_14 : f32 to vector<1x128xf32>
      %c0_15 = arith.constant 0 : index
      %c0_16 = arith.constant 0 : index
      %18 = vector.load %arg3[%c0_15, %c0_16] : memref<1x128xf32, #tpu.memory_space<vmem>>, vector<1x128xf32>
      tpu.vector_store %arg3[%c0_15, %c0_16], %17 {strides = array<i32>} : memref<1x128xf32, #tpu.memory_space<vmem>>, vector<1x128xf32>,
    } else {
    }
    %c0 = arith.constant 0 : index
    %c0_1 = arith.constant 0 : index
    %3 = vector.load %arg1[%c0, %c0_1] : memref<256x128xf32, #tpu.memory_space<vmem>>, vector<256x128xf32>
    %c0_2 = arith.constant 0 : index
    %c0_3 = arith.constant 0 : index
    %4 = vector.load %arg2[%c0_2, %c0_3] : memref<1x128xf32, #tpu.memory_space<vmem>>, vector<1x128xf32>
    %cst = arith.constant dense<0.000000e+00> : vector<128xf32>
    %5 = vector.multi_reduction <add>, %3, %cst [0] : vector<256x128xf32> to vector<128xf32>
    %6 = vector.shape_cast %5 : vector<128xf32> to vector<1x128xf32>
    %7 = arith.addf %4, %6 : vector<1x128xf32>
    %c0_4 = arith.constant 0 : index
    %c0_5 = arith.constant 0 : index
    %8 = vector.load %arg2[%c0_4, %c0_5] : memref<1x128xf32, #tpu.memory_space<vmem>>, vector<1x128xf32>
    tpu.vector_store %arg2[%c0_4, %c0_5], %7 {strides = array<i32>} : memref<1x128xf32, #tpu.memory_space<vmem>>, vector<1x128xf32>,
    %c0_6 = arith.constant 0 : index
    %c0_7 = arith.constant 0 : index
    %9 = vector.load %arg3[%c0_6, %c0_7] : memref<1x128xf32, #tpu.memory_space<vmem>>, vector<1x128xf32>
    %10 = arith.mulf %3, %3 : vector<256x128xf32>
    %cst_8 = arith.constant dense<0.000000e+00> : vector<128xf32>
    %11 = vector.multi_reduction <add>, %10, %cst_8 [0] : vector<256x128xf32> to vector<128xf32>
    %12 = vector.shape_cast %11 : vector<128xf32> to vector<1x128xf32>
    %13 = arith.addf %9, %12 : vector<1x128xf32>
    %c0_9 = arith.constant 0 : index
    %c0_10 = arith.constant 0 : index
    %14 = vector.load %arg3[%c0_9, %c0_10] : memref<1x128xf32, #tpu.memory_space<vmem>>, vector<1x128xf32>
    tpu.vector_store %arg3[%c0_9, %c0_10], %13 {strides = array<i32>} : memref<1x128xf32, #tpu.memory_space<vmem>>, vector<1x128xf32>,
    return
  }
  func.func @transform_0(%arg0: i32) -> (i32, i32) {
    %c0_i32 = arith.constant 0 : i32
    %c0_i32_0 = arith.constant 0 : i32
    return %arg0, %c0_i32 : i32, i32
  }
  func.func @transform_1(%arg0: i32) -> (i32, i32) {
    %c0_i32 = arith.constant 0 : i32
    %c0_i32_0 = arith.constant 0 : i32
    %c0_i32_1 = arith.constant 0 : i32
    return %c0_i32, %c0_i32_0 : i32, i32
  }
  func.func @transform_2(%arg0: i32) -> (i32, i32) {
    %c0_i32 = arith.constant 0 : i32
    %c0_i32_0 = arith.constant 0 : i32
    %c0_i32_1 = arith.constant 0 : i32
    return %c0_i32, %c0_i32_0 : i32, i32
  }
}

module attributes {stable_mosaic.version = 11 : i64} {
  func.func @_bn_relu_kernel(%arg0: i32, %arg1: memref<256x128xf32, #tpu.memory_space<vmem>>, %arg2: memref<1x128xf32, #tpu.memory_space<vmem>>, %arg3: memref<1x128xf32, #tpu.memory_space<vmem>>, %arg4: memref<256x128xf32, #tpu.memory_space<vmem>>) attributes {dimension_semantics = [#tpu.dimension_semantics<parallel>], iteration_bounds = array<i64: 2>, scalar_prefetch = 0 : i64, scratch_operands = 0 : i64, tpu.core_type = #tpu.core_type<tc>, window_params = [{transform_indices = @transform_0, window_bounds = array<i64: 256, 128>}, {pipeline_mode = #tpu.pipeline_mode<synchronous>, transform_indices = @transform_1, window_bounds = array<i64: 1, 128>}, {pipeline_mode = #tpu.pipeline_mode<synchronous>, transform_indices = @transform_2, window_bounds = array<i64: 1, 128>}, {transform_indices = @transform_3, window_bounds = array<i64: 256, 128>}]} {
    %c0 = arith.constant 0 : index
    %c0_0 = arith.constant 0 : index
    %0 = vector.load %arg1[%c0, %c0_0] : memref<256x128xf32, #tpu.memory_space<vmem>>, vector<256x128xf32>
    %c0_1 = arith.constant 0 : index
    %c0_2 = arith.constant 0 : index
    %1 = vector.load %arg2[%c0_1, %c0_2] : memref<1x128xf32, #tpu.memory_space<vmem>>, vector<1x128xf32>
    %2 = vector.broadcast %1 : vector<1x128xf32> to vector<256x128xf32>
    %3 = arith.mulf %0, %2 : vector<256x128xf32>
    %c0_3 = arith.constant 0 : index
    %c0_4 = arith.constant 0 : index
    %4 = vector.load %arg3[%c0_3, %c0_4] : memref<1x128xf32, #tpu.memory_space<vmem>>, vector<1x128xf32>
    %5 = vector.broadcast %4 : vector<1x128xf32> to vector<256x128xf32>
    %6 = arith.addf %3, %5 : vector<256x128xf32>
    %cst = arith.constant 0.000000e+00 : f32
    %7 = vector.broadcast %cst : f32 to vector<256x128xf32>
    %8 = arith.maximumf %6, %7 : vector<256x128xf32>
    %c0_5 = arith.constant 0 : index
    %c0_6 = arith.constant 0 : index
    %9 = vector.load %arg4[%c0_5, %c0_6] : memref<256x128xf32, #tpu.memory_space<vmem>>, vector<256x128xf32>
    tpu.vector_store %arg4[%c0_5, %c0_6], %8 {strides = array<i32>} : memref<256x128xf32, #tpu.memory_space<vmem>>, vector<256x128xf32>,
    return
  }
  func.func @transform_0(%arg0: i32) -> (i32, i32) {
    %c0_i32 = arith.constant 0 : i32
    %c0_i32_0 = arith.constant 0 : i32
    return %arg0, %c0_i32 : i32, i32
  }
  func.func @transform_1(%arg0: i32) -> (i32, i32) {
    %c0_i32 = arith.constant 0 : i32
    %c0_i32_0 = arith.constant 0 : i32
    %c0_i32_1 = arith.constant 0 : i32
    return %c0_i32, %c0_i32_0 : i32, i32
  }
  func.func @transform_2(%arg0: i32) -> (i32, i32) {
    %c0_i32 = arith.constant 0 : i32
    %c0_i32_0 = arith.constant 0 : i32
    %c0_i32_1 = arith.constant 0 : i32
    return %c0_i32, %c0_i32_0 : i32, i32
  }
  func.func @transform_3(%arg0: i32) -> (i32, i32) {
    %c0_i32 = arith.constant 0 : i32
    %c0_i32_0 = arith.constant 0 : i32
    return %arg0, %c0_i32 : i32, i32
  }
}

module attributes {stable_mosaic.version = 11 : i64} {
  func.func @_pool_kernel(%arg0: i32, %arg1: memref<128x9x128xf32, #tpu.memory_space<vmem>>, %arg2: memref<128x128xf32, #tpu.memory_space<vmem>>) attributes {dimension_semantics = [#tpu.dimension_semantics<parallel>], iteration_bounds = array<i64: 1>, scalar_prefetch = 0 : i64, scratch_operands = 0 : i64, tpu.core_type = #tpu.core_type<tc>, window_params = [{transform_indices = @transform_0, window_bounds = array<i64: 128, 9, 128>}, {transform_indices = @transform_1, window_bounds = array<i64: 128, 128>}]} {
    %c0 = arith.constant 0 : index
    %c0_0 = arith.constant 0 : index
    %c0_1 = arith.constant 0 : index
    %0 = vector.load %arg1[%c0, %c0_0, %c0_1] : memref<128x9x128xf32, #tpu.memory_space<vmem>>, vector<128x1x128xf32>
    %1 = vector.shape_cast %0 : vector<128x1x128xf32> to vector<128x128xf32>
    %c0_2 = arith.constant 0 : index
    %c1 = arith.constant 1 : index
    %c0_3 = arith.constant 0 : index
    %2 = vector.load %arg1[%c0_2, %c1, %c0_3] : memref<128x9x128xf32, #tpu.memory_space<vmem>>, vector<128x1x128xf32>
    %3 = vector.shape_cast %2 : vector<128x1x128xf32> to vector<128x128xf32>
    %4 = arith.maximumf %1, %3 : vector<128x128xf32>
    %c0_4 = arith.constant 0 : index
    %c2 = arith.constant 2 : index
    %c0_5 = arith.constant 0 : index
    %5 = vector.load %arg1[%c0_4, %c2, %c0_5] : memref<128x9x128xf32, #tpu.memory_space<vmem>>, vector<128x1x128xf32>
    %6 = vector.shape_cast %5 : vector<128x1x128xf32> to vector<128x128xf32>
    %7 = arith.maximumf %4, %6 : vector<128x128xf32>
    %c0_6 = arith.constant 0 : index
    %c3 = arith.constant 3 : index
    %c0_7 = arith.constant 0 : index
    %8 = vector.load %arg1[%c0_6, %c3, %c0_7] : memref<128x9x128xf32, #tpu.memory_space<vmem>>, vector<128x1x128xf32>
    %9 = vector.shape_cast %8 : vector<128x1x128xf32> to vector<128x128xf32>
    %10 = arith.maximumf %7, %9 : vector<128x128xf32>
    %c0_8 = arith.constant 0 : index
    %c4 = arith.constant 4 : index
    %c0_9 = arith.constant 0 : index
    %11 = vector.load %arg1[%c0_8, %c4, %c0_9] : memref<128x9x128xf32, #tpu.memory_space<vmem>>, vector<128x1x128xf32>
    %12 = vector.shape_cast %11 : vector<128x1x128xf32> to vector<128x128xf32>
    %13 = arith.maximumf %10, %12 : vector<128x128xf32>
    %c0_10 = arith.constant 0 : index
    %c5 = arith.constant 5 : index
    %c0_11 = arith.constant 0 : index
    %14 = vector.load %arg1[%c0_10, %c5, %c0_11] : memref<128x9x128xf32, #tpu.memory_space<vmem>>, vector<128x1x128xf32>
    %15 = vector.shape_cast %14 : vector<128x1x128xf32> to vector<128x128xf32>
    %16 = arith.maximumf %13, %15 : vector<128x128xf32>
    %c0_12 = arith.constant 0 : index
    %c6 = arith.constant 6 : index
    %c0_13 = arith.constant 0 : index
    %17 = vector.load %arg1[%c0_12, %c6, %c0_13] : memref<128x9x128xf32, #tpu.memory_space<vmem>>, vector<128x1x128xf32>
    %18 = vector.shape_cast %17 : vector<128x1x128xf32> to vector<128x128xf32>
    %19 = arith.maximumf %16, %18 : vector<128x128xf32>
    %c0_14 = arith.constant 0 : index
    %c7 = arith.constant 7 : index
    %c0_15 = arith.constant 0 : index
    %20 = vector.load %arg1[%c0_14, %c7, %c0_15] : memref<128x9x128xf32, #tpu.memory_space<vmem>>, vector<128x1x128xf32>
    %21 = vector.shape_cast %20 : vector<128x1x128xf32> to vector<128x128xf32>
    %22 = arith.maximumf %19, %21 : vector<128x128xf32>
    %c0_16 = arith.constant 0 : index
    %c8 = arith.constant 8 : index
    %c0_17 = arith.constant 0 : index
    %23 = vector.load %arg1[%c0_16, %c8, %c0_17] : memref<128x9x128xf32, #tpu.memory_space<vmem>>, vector<128x1x128xf32>
    %24 = vector.shape_cast %23 : vector<128x1x128xf32> to vector<128x128xf32>
    %25 = arith.maximumf %22, %24 : vector<128x128xf32>
    %c0_18 = arith.constant 0 : index
    %c0_19 = arith.constant 0 : index
    %26 = vector.load %arg2[%c0_18, %c0_19] : memref<128x128xf32, #tpu.memory_space<vmem>>, vector<128x128xf32>
    tpu.vector_store %arg2[%c0_18, %c0_19], %25 {strides = array<i32>} : memref<128x128xf32, #tpu.memory_space<vmem>>, vector<128x128xf32>,
    return
  }
  func.func @transform_0(%arg0: i32) -> (i32, i32, i32) {
    %c0_i32 = arith.constant 0 : i32
    %c0_i32_0 = arith.constant 0 : i32
    %c0_i32_1 = arith.constant 0 : i32
    return %arg0, %c0_i32, %c0_i32_0 : i32, i32, i32
  }
  func.func @transform_1(%arg0: i32) -> (i32, i32) {
    %c0_i32 = arith.constant 0 : i32
    %c0_i32_0 = arith.constant 0 : i32
    return %arg0, %c0_i32 : i32, i32
  }
}

module attributes {stable_mosaic.version = 11 : i64} {
  func.func @_bn_stats_kernel(%arg0: i32, %arg1: memref<128x128xf32, #tpu.memory_space<vmem>>, %arg2: memref<1x128xf32, #tpu.memory_space<vmem>>, %arg3: memref<1x128xf32, #tpu.memory_space<vmem>>) attributes {dimension_semantics = [#tpu.dimension_semantics<arbitrary>], iteration_bounds = array<i64: 1>, scalar_prefetch = 0 : i64, scratch_operands = 0 : i64, tpu.core_type = #tpu.core_type<tc>, window_params = [{transform_indices = @transform_0, window_bounds = array<i64: 128, 128>}, {pipeline_mode = #tpu.pipeline_mode<synchronous>, transform_indices = @transform_1, window_bounds = array<i64: 1, 128>}, {pipeline_mode = #tpu.pipeline_mode<synchronous>, transform_indices = @transform_2, window_bounds = array<i64: 1, 128>}]} {
    %c0_i32 = arith.constant 0 : i32
    %0 = arith.cmpi eq, %arg0, %c0_i32 : i32
    %1 = arith.extui %0 : i1 to i32
    %c0_i32_0 = arith.constant 0 : i32
    %2 = arith.cmpi ne, %1, %c0_i32_0 : i32
    scf.if %2 {
      %cst_11 = arith.constant 0.000000e+00 : f32
      %15 = vector.broadcast %cst_11 : f32 to vector<1x128xf32>
      %c0_12 = arith.constant 0 : index
      %c0_13 = arith.constant 0 : index
      %16 = vector.load %arg2[%c0_12, %c0_13] : memref<1x128xf32, #tpu.memory_space<vmem>>, vector<1x128xf32>
      tpu.vector_store %arg2[%c0_12, %c0_13], %15 {strides = array<i32>} : memref<1x128xf32, #tpu.memory_space<vmem>>, vector<1x128xf32>,
      %cst_14 = arith.constant 0.000000e+00 : f32
      %17 = vector.broadcast %cst_14 : f32 to vector<1x128xf32>
      %c0_15 = arith.constant 0 : index
      %c0_16 = arith.constant 0 : index
      %18 = vector.load %arg3[%c0_15, %c0_16] : memref<1x128xf32, #tpu.memory_space<vmem>>, vector<1x128xf32>
      tpu.vector_store %arg3[%c0_15, %c0_16], %17 {strides = array<i32>} : memref<1x128xf32, #tpu.memory_space<vmem>>, vector<1x128xf32>,
    } else {
    }
    %c0 = arith.constant 0 : index
    %c0_1 = arith.constant 0 : index
    %3 = vector.load %arg1[%c0, %c0_1] : memref<128x128xf32, #tpu.memory_space<vmem>>, vector<128x128xf32>
    %c0_2 = arith.constant 0 : index
    %c0_3 = arith.constant 0 : index
    %4 = vector.load %arg2[%c0_2, %c0_3] : memref<1x128xf32, #tpu.memory_space<vmem>>, vector<1x128xf32>
    %cst = arith.constant dense<0.000000e+00> : vector<128xf32>
    %5 = vector.multi_reduction <add>, %3, %cst [0] : vector<128x128xf32> to vector<128xf32>
    %6 = vector.shape_cast %5 : vector<128xf32> to vector<1x128xf32>
    %7 = arith.addf %4, %6 : vector<1x128xf32>
    %c0_4 = arith.constant 0 : index
    %c0_5 = arith.constant 0 : index
    %8 = vector.load %arg2[%c0_4, %c0_5] : memref<1x128xf32, #tpu.memory_space<vmem>>, vector<1x128xf32>
    tpu.vector_store %arg2[%c0_4, %c0_5], %7 {strides = array<i32>} : memref<1x128xf32, #tpu.memory_space<vmem>>, vector<1x128xf32>,
    %c0_6 = arith.constant 0 : index
    %c0_7 = arith.constant 0 : index
    %9 = vector.load %arg3[%c0_6, %c0_7] : memref<1x128xf32, #tpu.memory_space<vmem>>, vector<1x128xf32>
    %10 = arith.mulf %3, %3 : vector<128x128xf32>
    %cst_8 = arith.constant dense<0.000000e+00> : vector<128xf32>
    %11 = vector.multi_reduction <add>, %10, %cst_8 [0] : vector<128x128xf32> to vector<128xf32>
    %12 = vector.shape_cast %11 : vector<128xf32> to vector<1x128xf32>
    %13 = arith.addf %9, %12 : vector<1x128xf32>
    %c0_9 = arith.constant 0 : index
    %c0_10 = arith.constant 0 : index
    %14 = vector.load %arg3[%c0_9, %c0_10] : memref<1x128xf32, #tpu.memory_space<vmem>>, vector<1x128xf32>
    tpu.vector_store %arg3[%c0_9, %c0_10], %13 {strides = array<i32>} : memref<1x128xf32, #tpu.memory_space<vmem>>, vector<1x128xf32>,
    return
  }
  func.func @transform_0(%arg0: i32) -> (i32, i32) {
    %c0_i32 = arith.constant 0 : i32
    %c0_i32_0 = arith.constant 0 : i32
    return %arg0, %c0_i32 : i32, i32
  }
  func.func @transform_1(%arg0: i32) -> (i32, i32) {
    %c0_i32 = arith.constant 0 : i32
    %c0_i32_0 = arith.constant 0 : i32
    %c0_i32_1 = arith.constant 0 : i32
    return %c0_i32, %c0_i32_0 : i32, i32
  }
  func.func @transform_2(%arg0: i32) -> (i32, i32) {
    %c0_i32 = arith.constant 0 : i32
    %c0_i32_0 = arith.constant 0 : i32
    %c0_i32_1 = arith.constant 0 : i32
    return %c0_i32, %c0_i32_0 : i32, i32
  }
}

module attributes {stable_mosaic.version = 11 : i64} {
  func.func @_matmul_kernel(%arg0: i32, %arg1: i32, %arg2: i32, %arg3: memref<1x128xf32, #tpu.memory_space<vmem>>, %arg4: memref<1x128xf32, #tpu.memory_space<vmem>>, %arg5: memref<128x128xf32, #tpu.memory_space<vmem>>, %arg6: memref<128x128xbf16, #tpu.memory_space<vmem>>, %arg7: memref<128x128xf32, #tpu.memory_space<vmem>>, %arg8: memref<128x128xf32, #tpu.memory_space<vmem>>) attributes {dimension_semantics = [#tpu.dimension_semantics<parallel>, #tpu.dimension_semantics<parallel>, #tpu.dimension_semantics<arbitrary>], iteration_bounds = array<i64: 1, 1, 1>, scalar_prefetch = 0 : i64, scratch_operands = 1 : i64, tpu.core_type = #tpu.core_type<tc>, window_params = [{transform_indices = @transform_0, window_bounds = array<i64: 1, 128>}, {transform_indices = @transform_1, window_bounds = array<i64: 1, 128>}, {transform_indices = @transform_2, window_bounds = array<i64: 128, 128>}, {transform_indices = @transform_3, window_bounds = array<i64: 128, 128>}, {transform_indices = @transform_4, window_bounds = array<i64: 128, 128>}]} {
    %c0_i32 = arith.constant 0 : i32
    %0 = arith.cmpi eq, %arg2, %c0_i32 : i32
    %1 = arith.extui %0 : i1 to i32
    %c0_i32_0 = arith.constant 0 : i32
    %2 = arith.cmpi ne, %1, %c0_i32_0 : i32
    scf.if %2 {
      %cst_15 = arith.constant 0.000000e+00 : f32
      %21 = vector.broadcast %cst_15 : f32 to vector<128x128xf32>
      %c0_16 = arith.constant 0 : index
      %c0_17 = arith.constant 0 : index
      %22 = vector.load %arg8[%c0_16, %c0_17] : memref<128x128xf32, #tpu.memory_space<vmem>>, vector<128x128xf32>
      tpu.vector_store %arg8[%c0_16, %c0_17], %21 {strides = array<i32>} : memref<128x128xf32, #tpu.memory_space<vmem>>, vector<128x128xf32>,
    } else {
    }
    %c0 = arith.constant 0 : index
    %c0_1 = arith.constant 0 : index
    %3 = vector.load %arg5[%c0, %c0_1] : memref<128x128xf32, #tpu.memory_space<vmem>>, vector<128x128xf32>
    %c0_2 = arith.constant 0 : index
    %c0_3 = arith.constant 0 : index
    %4 = vector.load %arg3[%c0_2, %c0_3] : memref<1x128xf32, #tpu.memory_space<vmem>>, vector<1x128xf32>
    %5 = vector.broadcast %4 : vector<1x128xf32> to vector<128x128xf32>
    %6 = arith.mulf %3, %5 : vector<128x128xf32>
    %c0_4 = arith.constant 0 : index
    %c0_5 = arith.constant 0 : index
    %7 = vector.load %arg4[%c0_4, %c0_5] : memref<1x128xf32, #tpu.memory_space<vmem>>, vector<1x128xf32>
    %8 = vector.broadcast %7 : vector<1x128xf32> to vector<128x128xf32>
    %9 = arith.addf %6, %8 : vector<128x128xf32>
    %cst = arith.constant 0.000000e+00 : f32
    %10 = vector.broadcast %cst : f32 to vector<128x128xf32>
    %11 = arith.maximumf %9, %10 : vector<128x128xf32>
    %c0_6 = arith.constant 0 : index
    %c0_7 = arith.constant 0 : index
    %12 = vector.load %arg8[%c0_6, %c0_7] : memref<128x128xf32, #tpu.memory_space<vmem>>, vector<128x128xf32>
    %13 = arith.truncf %11 : vector<128x128xf32> to vector<128x128xbf16>
    %c0_8 = arith.constant 0 : index
    %c0_9 = arith.constant 0 : index
    %14 = vector.load %arg6[%c0_8, %c0_9] : memref<128x128xbf16, #tpu.memory_space<vmem>>, vector<128x128xbf16>
    %cst_10 = arith.constant dense<0.000000e+00> : vector<128x128xf32>
    %15 = tpu.matmul %13, %14, %cst_10 {dimension_numbers = #tpu.dot_dimension_numbers<[1], [0], [0], [1], [0, 0, 1, 1], [], []>} : vector<128x128xbf16>, vector<128x128xbf16>, vector<128x128xf32> -> vector<128x128xf32>
    %16 = arith.addf %12, %15 : vector<128x128xf32>
    %c0_11 = arith.constant 0 : index
    %c0_12 = arith.constant 0 : index
    %17 = vector.load %arg8[%c0_11, %c0_12] : memref<128x128xf32, #tpu.memory_space<vmem>>, vector<128x128xf32>
    tpu.vector_store %arg8[%c0_11, %c0_12], %16 {strides = array<i32>} : memref<128x128xf32, #tpu.memory_space<vmem>>, vector<128x128xf32>,
    %c0_i32_13 = arith.constant 0 : i32
    %18 = arith.cmpi eq, %arg2, %c0_i32_13 : i32
    %19 = arith.extui %18 : i1 to i32
    %c0_i32_14 = arith.constant 0 : i32
    %20 = arith.cmpi ne, %19, %c0_i32_14 : i32
    scf.if %20 {
      %c0_15 = arith.constant 0 : index
      %c0_16 = arith.constant 0 : index
      %21 = vector.load %arg8[%c0_15, %c0_16] : memref<128x128xf32, #tpu.memory_space<vmem>>, vector<128x128xf32>
      %c0_17 = arith.constant 0 : index
      %c0_18 = arith.constant 0 : index
      %22 = vector.load %arg7[%c0_17, %c0_18] : memref<128x128xf32, #tpu.memory_space<vmem>>, vector<128x128xf32>
      tpu.vector_store %arg7[%c0_17, %c0_18], %21 {strides = array<i32>} : memref<128x128xf32, #tpu.memory_space<vmem>>, vector<128x128xf32>,
    } else {
    }
    return
  }
  func.func @transform_0(%arg0: i32, %arg1: i32, %arg2: i32) -> (i32, i32) {
    %c0_i32 = arith.constant 0 : i32
    %c0_i32_0 = arith.constant 0 : i32
    return %c0_i32, %arg2 : i32, i32
  }
  func.func @transform_1(%arg0: i32, %arg1: i32, %arg2: i32) -> (i32, i32) {
    %c0_i32 = arith.constant 0 : i32
    %c0_i32_0 = arith.constant 0 : i32
    return %c0_i32, %arg2 : i32, i32
  }
  func.func @transform_2(%arg0: i32, %arg1: i32, %arg2: i32) -> (i32, i32) {
    %c0_i32 = arith.constant 0 : i32
    return %arg0, %arg2 : i32, i32
  }
  func.func @transform_3(%arg0: i32, %arg1: i32, %arg2: i32) -> (i32, i32) {
    %c0_i32 = arith.constant 0 : i32
    return %arg2, %arg1 : i32, i32
  }
  func.func @transform_4(%arg0: i32, %arg1: i32, %arg2: i32) -> (i32, i32) {
    %c0_i32 = arith.constant 0 : i32
    return %arg0, %arg1 : i32, i32
  }
}

module attributes {stable_mosaic.version = 11 : i64} {
  func.func @_matmul_kernel(%arg0: i32, %arg1: i32, %arg2: i32, %arg3: memref<1x128xf32, #tpu.memory_space<vmem>>, %arg4: memref<1x128xf32, #tpu.memory_space<vmem>>, %arg5: memref<128x128xf32, #tpu.memory_space<vmem>>, %arg6: memref<128x128xbf16, #tpu.memory_space<vmem>>, %arg7: memref<128x128xf32, #tpu.memory_space<vmem>>, %arg8: memref<128x128xf32, #tpu.memory_space<vmem>>) attributes {dimension_semantics = [#tpu.dimension_semantics<parallel>, #tpu.dimension_semantics<parallel>, #tpu.dimension_semantics<arbitrary>], iteration_bounds = array<i64: 1, 1, 9>, scalar_prefetch = 0 : i64, scratch_operands = 1 : i64, tpu.core_type = #tpu.core_type<tc>, window_params = [{transform_indices = @transform_0, window_bounds = array<i64: 1, 128>}, {transform_indices = @transform_1, window_bounds = array<i64: 1, 128>}, {transform_indices = @transform_2, window_bounds = array<i64: 128, 128>}, {transform_indices = @transform_3, window_bounds = array<i64: 128, 128>}, {transform_indices = @transform_4, window_bounds = array<i64: 128, 128>}]} {
    %c0_i32 = arith.constant 0 : i32
    %0 = arith.cmpi eq, %arg2, %c0_i32 : i32
    %1 = arith.extui %0 : i1 to i32
    %c0_i32_0 = arith.constant 0 : i32
    %2 = arith.cmpi ne, %1, %c0_i32_0 : i32
    scf.if %2 {
      %cst_14 = arith.constant 0.000000e+00 : f32
      %21 = vector.broadcast %cst_14 : f32 to vector<128x128xf32>
      %c0_15 = arith.constant 0 : index
      %c0_16 = arith.constant 0 : index
      %22 = vector.load %arg8[%c0_15, %c0_16] : memref<128x128xf32, #tpu.memory_space<vmem>>, vector<128x128xf32>
      tpu.vector_store %arg8[%c0_15, %c0_16], %21 {strides = array<i32>} : memref<128x128xf32, #tpu.memory_space<vmem>>, vector<128x128xf32>,
    } else {
    }
    %c0 = arith.constant 0 : index
    %c0_1 = arith.constant 0 : index
    %3 = vector.load %arg5[%c0, %c0_1] : memref<128x128xf32, #tpu.memory_space<vmem>>, vector<128x128xf32>
    %c0_2 = arith.constant 0 : index
    %c0_3 = arith.constant 0 : index
    %4 = vector.load %arg3[%c0_2, %c0_3] : memref<1x128xf32, #tpu.memory_space<vmem>>, vector<1x128xf32>
    %5 = vector.broadcast %4 : vector<1x128xf32> to vector<128x128xf32>
    %6 = arith.mulf %3, %5 : vector<128x128xf32>
    %c0_4 = arith.constant 0 : index
    %c0_5 = arith.constant 0 : index
    %7 = vector.load %arg4[%c0_4, %c0_5] : memref<1x128xf32, #tpu.memory_space<vmem>>, vector<1x128xf32>
    %8 = vector.broadcast %7 : vector<1x128xf32> to vector<128x128xf32>
    %9 = arith.addf %6, %8 : vector<128x128xf32>
    %cst = arith.constant 0.000000e+00 : f32
    %10 = vector.broadcast %cst : f32 to vector<128x128xf32>
    %11 = arith.maximumf %9, %10 : vector<128x128xf32>
    %c0_6 = arith.constant 0 : index
    %c0_7 = arith.constant 0 : index
    %12 = vector.load %arg8[%c0_6, %c0_7] : memref<128x128xf32, #tpu.memory_space<vmem>>, vector<128x128xf32>
    %13 = arith.truncf %11 : vector<128x128xf32> to vector<128x128xbf16>
    %c0_8 = arith.constant 0 : index
    %c0_9 = arith.constant 0 : index
    %14 = vector.load %arg6[%c0_8, %c0_9] : memref<128x128xbf16, #tpu.memory_space<vmem>>, vector<128x128xbf16>
    %cst_10 = arith.constant dense<0.000000e+00> : vector<128x128xf32>
    %15 = tpu.matmul %13, %14, %cst_10 {dimension_numbers = #tpu.dot_dimension_numbers<[1], [0], [0], [1], [0, 0, 1, 1], [], []>} : vector<128x128xbf16>, vector<128x128xbf16>, vector<128x128xf32> -> vector<128x128xf32>
    %16 = arith.addf %12, %15 : vector<128x128xf32>
    %c0_11 = arith.constant 0 : index
    %c0_12 = arith.constant 0 : index
    %17 = vector.load %arg8[%c0_11, %c0_12] : memref<128x128xf32, #tpu.memory_space<vmem>>, vector<128x128xf32>
    tpu.vector_store %arg8[%c0_11, %c0_12], %16 {strides = array<i32>} : memref<128x128xf32, #tpu.memory_space<vmem>>, vector<128x128xf32>,
    %c8_i32 = arith.constant 8 : i32
    %18 = arith.cmpi eq, %arg2, %c8_i32 : i32
    %19 = arith.extui %18 : i1 to i32
    %c0_i32_13 = arith.constant 0 : i32
    %20 = arith.cmpi ne, %19, %c0_i32_13 : i32
    scf.if %20 {
      %c0_14 = arith.constant 0 : index
      %c0_15 = arith.constant 0 : index
      %21 = vector.load %arg8[%c0_14, %c0_15] : memref<128x128xf32, #tpu.memory_space<vmem>>, vector<128x128xf32>
      %c0_16 = arith.constant 0 : index
      %c0_17 = arith.constant 0 : index
      %22 = vector.load %arg7[%c0_16, %c0_17] : memref<128x128xf32, #tpu.memory_space<vmem>>, vector<128x128xf32>
      tpu.vector_store %arg7[%c0_16, %c0_17], %21 {strides = array<i32>} : memref<128x128xf32, #tpu.memory_space<vmem>>, vector<128x128xf32>,
    } else {
    }
    return
  }
  func.func @transform_0(%arg0: i32, %arg1: i32, %arg2: i32) -> (i32, i32) {
    %c0_i32 = arith.constant 0 : i32
    %c0_i32_0 = arith.constant 0 : i32
    return %c0_i32, %arg2 : i32, i32
  }
  func.func @transform_1(%arg0: i32, %arg1: i32, %arg2: i32) -> (i32, i32) {
    %c0_i32 = arith.constant 0 : i32
    %c0_i32_0 = arith.constant 0 : i32
    return %c0_i32, %arg2 : i32, i32
  }
  func.func @transform_2(%arg0: i32, %arg1: i32, %arg2: i32) -> (i32, i32) {
    %c0_i32 = arith.constant 0 : i32
    return %arg0, %arg2 : i32, i32
  }
  func.func @transform_3(%arg0: i32, %arg1: i32, %arg2: i32) -> (i32, i32) {
    %c0_i32 = arith.constant 0 : i32
    return %arg2, %arg1 : i32, i32
  }
  func.func @transform_4(%arg0: i32, %arg1: i32, %arg2: i32) -> (i32, i32) {
    %c0_i32 = arith.constant 0 : i32
    return %arg0, %arg1 : i32, i32
  }
}

module attributes {stable_mosaic.version = 11 : i64} {
  func.func @_pool_kernel(%arg0: i32, %arg1: memref<32x4x128xf32, #tpu.memory_space<vmem>>, %arg2: memref<32x128xf32, #tpu.memory_space<vmem>>) attributes {dimension_semantics = [#tpu.dimension_semantics<parallel>], iteration_bounds = array<i64: 1>, scalar_prefetch = 0 : i64, scratch_operands = 0 : i64, tpu.core_type = #tpu.core_type<tc>, window_params = [{transform_indices = @transform_0, window_bounds = array<i64: 32, 4, 128>}, {transform_indices = @transform_1, window_bounds = array<i64: 32, 128>}]} {
    %c0 = arith.constant 0 : index
    %c0_0 = arith.constant 0 : index
    %c0_1 = arith.constant 0 : index
    %0 = vector.load %arg1[%c0, %c0_0, %c0_1] : memref<32x4x128xf32, #tpu.memory_space<vmem>>, vector<32x1x128xf32>
    %1 = vector.shape_cast %0 : vector<32x1x128xf32> to vector<32x128xf32>
    %c0_2 = arith.constant 0 : index
    %c1 = arith.constant 1 : index
    %c0_3 = arith.constant 0 : index
    %2 = vector.load %arg1[%c0_2, %c1, %c0_3] : memref<32x4x128xf32, #tpu.memory_space<vmem>>, vector<32x1x128xf32>
    %3 = vector.shape_cast %2 : vector<32x1x128xf32> to vector<32x128xf32>
    %4 = arith.addf %1, %3 : vector<32x128xf32>
    %c0_4 = arith.constant 0 : index
    %c2 = arith.constant 2 : index
    %c0_5 = arith.constant 0 : index
    %5 = vector.load %arg1[%c0_4, %c2, %c0_5] : memref<32x4x128xf32, #tpu.memory_space<vmem>>, vector<32x1x128xf32>
    %6 = vector.shape_cast %5 : vector<32x1x128xf32> to vector<32x128xf32>
    %7 = arith.addf %4, %6 : vector<32x128xf32>
    %c0_6 = arith.constant 0 : index
    %c3 = arith.constant 3 : index
    %c0_7 = arith.constant 0 : index
    %8 = vector.load %arg1[%c0_6, %c3, %c0_7] : memref<32x4x128xf32, #tpu.memory_space<vmem>>, vector<32x1x128xf32>
    %9 = vector.shape_cast %8 : vector<32x1x128xf32> to vector<32x128xf32>
    %10 = arith.addf %7, %9 : vector<32x128xf32>
    %cst = arith.constant 2.500000e-01 : f32
    %11 = vector.broadcast %cst : f32 to vector<32x128xf32>
    %12 = arith.mulf %10, %11 : vector<32x128xf32>
    %c0_8 = arith.constant 0 : index
    %c0_9 = arith.constant 0 : index
    %13 = vector.load %arg2[%c0_8, %c0_9] : memref<32x128xf32, #tpu.memory_space<vmem>>, vector<32x128xf32>
    tpu.vector_store %arg2[%c0_8, %c0_9], %12 {strides = array<i32>} : memref<32x128xf32, #tpu.memory_space<vmem>>, vector<32x128xf32>,
    return
  }
  func.func @transform_0(%arg0: i32) -> (i32, i32, i32) {
    %c0_i32 = arith.constant 0 : i32
    %c0_i32_0 = arith.constant 0 : i32
    %c0_i32_1 = arith.constant 0 : i32
    return %arg0, %c0_i32, %c0_i32_0 : i32, i32, i32
  }
  func.func @transform_1(%arg0: i32) -> (i32, i32) {
    %c0_i32 = arith.constant 0 : i32
    %c0_i32_0 = arith.constant 0 : i32
    return %arg0, %c0_i32 : i32, i32
  }
}

module attributes {stable_mosaic.version = 11 : i64} {
  func.func @_bn_stats_kernel(%arg0: i32, %arg1: memref<32x128xf32, #tpu.memory_space<vmem>>, %arg2: memref<1x128xf32, #tpu.memory_space<vmem>>, %arg3: memref<1x128xf32, #tpu.memory_space<vmem>>) attributes {dimension_semantics = [#tpu.dimension_semantics<arbitrary>], iteration_bounds = array<i64: 1>, scalar_prefetch = 0 : i64, scratch_operands = 0 : i64, tpu.core_type = #tpu.core_type<tc>, window_params = [{transform_indices = @transform_0, window_bounds = array<i64: 32, 128>}, {pipeline_mode = #tpu.pipeline_mode<synchronous>, transform_indices = @transform_1, window_bounds = array<i64: 1, 128>}, {pipeline_mode = #tpu.pipeline_mode<synchronous>, transform_indices = @transform_2, window_bounds = array<i64: 1, 128>}]} {
    %c0_i32 = arith.constant 0 : i32
    %0 = arith.cmpi eq, %arg0, %c0_i32 : i32
    %1 = arith.extui %0 : i1 to i32
    %c0_i32_0 = arith.constant 0 : i32
    %2 = arith.cmpi ne, %1, %c0_i32_0 : i32
    scf.if %2 {
      %cst_11 = arith.constant 0.000000e+00 : f32
      %15 = vector.broadcast %cst_11 : f32 to vector<1x128xf32>
      %c0_12 = arith.constant 0 : index
      %c0_13 = arith.constant 0 : index
      %16 = vector.load %arg2[%c0_12, %c0_13] : memref<1x128xf32, #tpu.memory_space<vmem>>, vector<1x128xf32>
      tpu.vector_store %arg2[%c0_12, %c0_13], %15 {strides = array<i32>} : memref<1x128xf32, #tpu.memory_space<vmem>>, vector<1x128xf32>,
      %cst_14 = arith.constant 0.000000e+00 : f32
      %17 = vector.broadcast %cst_14 : f32 to vector<1x128xf32>
      %c0_15 = arith.constant 0 : index
      %c0_16 = arith.constant 0 : index
      %18 = vector.load %arg3[%c0_15, %c0_16] : memref<1x128xf32, #tpu.memory_space<vmem>>, vector<1x128xf32>
      tpu.vector_store %arg3[%c0_15, %c0_16], %17 {strides = array<i32>} : memref<1x128xf32, #tpu.memory_space<vmem>>, vector<1x128xf32>,
    } else {
    }
    %c0 = arith.constant 0 : index
    %c0_1 = arith.constant 0 : index
    %3 = vector.load %arg1[%c0, %c0_1] : memref<32x128xf32, #tpu.memory_space<vmem>>, vector<32x128xf32>
    %c0_2 = arith.constant 0 : index
    %c0_3 = arith.constant 0 : index
    %4 = vector.load %arg2[%c0_2, %c0_3] : memref<1x128xf32, #tpu.memory_space<vmem>>, vector<1x128xf32>
    %cst = arith.constant dense<0.000000e+00> : vector<128xf32>
    %5 = vector.multi_reduction <add>, %3, %cst [0] : vector<32x128xf32> to vector<128xf32>
    %6 = vector.shape_cast %5 : vector<128xf32> to vector<1x128xf32>
    %7 = arith.addf %4, %6 : vector<1x128xf32>
    %c0_4 = arith.constant 0 : index
    %c0_5 = arith.constant 0 : index
    %8 = vector.load %arg2[%c0_4, %c0_5] : memref<1x128xf32, #tpu.memory_space<vmem>>, vector<1x128xf32>
    tpu.vector_store %arg2[%c0_4, %c0_5], %7 {strides = array<i32>} : memref<1x128xf32, #tpu.memory_space<vmem>>, vector<1x128xf32>,
    %c0_6 = arith.constant 0 : index
    %c0_7 = arith.constant 0 : index
    %9 = vector.load %arg3[%c0_6, %c0_7] : memref<1x128xf32, #tpu.memory_space<vmem>>, vector<1x128xf32>
    %10 = arith.mulf %3, %3 : vector<32x128xf32>
    %cst_8 = arith.constant dense<0.000000e+00> : vector<128xf32>
    %11 = vector.multi_reduction <add>, %10, %cst_8 [0] : vector<32x128xf32> to vector<128xf32>
    %12 = vector.shape_cast %11 : vector<128xf32> to vector<1x128xf32>
    %13 = arith.addf %9, %12 : vector<1x128xf32>
    %c0_9 = arith.constant 0 : index
    %c0_10 = arith.constant 0 : index
    %14 = vector.load %arg3[%c0_9, %c0_10] : memref<1x128xf32, #tpu.memory_space<vmem>>, vector<1x128xf32>
    tpu.vector_store %arg3[%c0_9, %c0_10], %13 {strides = array<i32>} : memref<1x128xf32, #tpu.memory_space<vmem>>, vector<1x128xf32>,
    return
  }
  func.func @transform_0(%arg0: i32) -> (i32, i32) {
    %c0_i32 = arith.constant 0 : i32
    %c0_i32_0 = arith.constant 0 : i32
    return %arg0, %c0_i32 : i32, i32
  }
  func.func @transform_1(%arg0: i32) -> (i32, i32) {
    %c0_i32 = arith.constant 0 : i32
    %c0_i32_0 = arith.constant 0 : i32
    %c0_i32_1 = arith.constant 0 : i32
    return %c0_i32, %c0_i32_0 : i32, i32
  }
  func.func @transform_2(%arg0: i32) -> (i32, i32) {
    %c0_i32 = arith.constant 0 : i32
    %c0_i32_0 = arith.constant 0 : i32
    %c0_i32_1 = arith.constant 0 : i32
    return %c0_i32, %c0_i32_0 : i32, i32
  }
}

module attributes {stable_mosaic.version = 11 : i64} {
  func.func @_matmul_kernel(%arg0: i32, %arg1: i32, %arg2: i32, %arg3: memref<1x128xf32, #tpu.memory_space<vmem>>, %arg4: memref<1x128xf32, #tpu.memory_space<vmem>>, %arg5: memref<32x128xf32, #tpu.memory_space<vmem>>, %arg6: memref<128x128xbf16, #tpu.memory_space<vmem>>, %arg7: memref<32x128xf32, #tpu.memory_space<vmem>>, %arg8: memref<32x128xf32, #tpu.memory_space<vmem>>) attributes {dimension_semantics = [#tpu.dimension_semantics<parallel>, #tpu.dimension_semantics<parallel>, #tpu.dimension_semantics<arbitrary>], iteration_bounds = array<i64: 1, 1, 1>, scalar_prefetch = 0 : i64, scratch_operands = 1 : i64, tpu.core_type = #tpu.core_type<tc>, window_params = [{transform_indices = @transform_0, window_bounds = array<i64: 1, 128>}, {transform_indices = @transform_1, window_bounds = array<i64: 1, 128>}, {transform_indices = @transform_2, window_bounds = array<i64: 32, 128>}, {transform_indices = @transform_3, window_bounds = array<i64: 128, 128>}, {transform_indices = @transform_4, window_bounds = array<i64: 32, 128>}]} {
    %c0_i32 = arith.constant 0 : i32
    %0 = arith.cmpi eq, %arg2, %c0_i32 : i32
    %1 = arith.extui %0 : i1 to i32
    %c0_i32_0 = arith.constant 0 : i32
    %2 = arith.cmpi ne, %1, %c0_i32_0 : i32
    scf.if %2 {
      %cst_15 = arith.constant 0.000000e+00 : f32
      %21 = vector.broadcast %cst_15 : f32 to vector<32x128xf32>
      %c0_16 = arith.constant 0 : index
      %c0_17 = arith.constant 0 : index
      %22 = vector.load %arg8[%c0_16, %c0_17] : memref<32x128xf32, #tpu.memory_space<vmem>>, vector<32x128xf32>
      tpu.vector_store %arg8[%c0_16, %c0_17], %21 {strides = array<i32>} : memref<32x128xf32, #tpu.memory_space<vmem>>, vector<32x128xf32>,
    } else {
    }
    %c0 = arith.constant 0 : index
    %c0_1 = arith.constant 0 : index
    %3 = vector.load %arg5[%c0, %c0_1] : memref<32x128xf32, #tpu.memory_space<vmem>>, vector<32x128xf32>
    %c0_2 = arith.constant 0 : index
    %c0_3 = arith.constant 0 : index
    %4 = vector.load %arg3[%c0_2, %c0_3] : memref<1x128xf32, #tpu.memory_space<vmem>>, vector<1x128xf32>
    %5 = vector.broadcast %4 : vector<1x128xf32> to vector<32x128xf32>
    %6 = arith.mulf %3, %5 : vector<32x128xf32>
    %c0_4 = arith.constant 0 : index
    %c0_5 = arith.constant 0 : index
    %7 = vector.load %arg4[%c0_4, %c0_5] : memref<1x128xf32, #tpu.memory_space<vmem>>, vector<1x128xf32>
    %8 = vector.broadcast %7 : vector<1x128xf32> to vector<32x128xf32>
    %9 = arith.addf %6, %8 : vector<32x128xf32>
    %cst = arith.constant 0.000000e+00 : f32
    %10 = vector.broadcast %cst : f32 to vector<32x128xf32>
    %11 = arith.maximumf %9, %10 : vector<32x128xf32>
    %c0_6 = arith.constant 0 : index
    %c0_7 = arith.constant 0 : index
    %12 = vector.load %arg8[%c0_6, %c0_7] : memref<32x128xf32, #tpu.memory_space<vmem>>, vector<32x128xf32>
    %13 = arith.truncf %11 : vector<32x128xf32> to vector<32x128xbf16>
    %c0_8 = arith.constant 0 : index
    %c0_9 = arith.constant 0 : index
    %14 = vector.load %arg6[%c0_8, %c0_9] : memref<128x128xbf16, #tpu.memory_space<vmem>>, vector<128x128xbf16>
    %cst_10 = arith.constant dense<0.000000e+00> : vector<32x128xf32>
    %15 = tpu.matmul %13, %14, %cst_10 {dimension_numbers = #tpu.dot_dimension_numbers<[1], [0], [0], [1], [0, 0, 1, 1], [], []>} : vector<32x128xbf16>, vector<128x128xbf16>, vector<32x128xf32> -> vector<32x128xf32>
    %16 = arith.addf %12, %15 : vector<32x128xf32>
    %c0_11 = arith.constant 0 : index
    %c0_12 = arith.constant 0 : index
    %17 = vector.load %arg8[%c0_11, %c0_12] : memref<32x128xf32, #tpu.memory_space<vmem>>, vector<32x128xf32>
    tpu.vector_store %arg8[%c0_11, %c0_12], %16 {strides = array<i32>} : memref<32x128xf32, #tpu.memory_space<vmem>>, vector<32x128xf32>,
    %c0_i32_13 = arith.constant 0 : i32
    %18 = arith.cmpi eq, %arg2, %c0_i32_13 : i32
    %19 = arith.extui %18 : i1 to i32
    %c0_i32_14 = arith.constant 0 : i32
    %20 = arith.cmpi ne, %19, %c0_i32_14 : i32
    scf.if %20 {
      %c0_15 = arith.constant 0 : index
      %c0_16 = arith.constant 0 : index
      %21 = vector.load %arg8[%c0_15, %c0_16] : memref<32x128xf32, #tpu.memory_space<vmem>>, vector<32x128xf32>
      %c0_17 = arith.constant 0 : index
      %c0_18 = arith.constant 0 : index
      %22 = vector.load %arg7[%c0_17, %c0_18] : memref<32x128xf32, #tpu.memory_space<vmem>>, vector<32x128xf32>
      tpu.vector_store %arg7[%c0_17, %c0_18], %21 {strides = array<i32>} : memref<32x128xf32, #tpu.memory_space<vmem>>, vector<32x128xf32>,
    } else {
    }
    return
  }
  func.func @transform_0(%arg0: i32, %arg1: i32, %arg2: i32) -> (i32, i32) {
    %c0_i32 = arith.constant 0 : i32
    %c0_i32_0 = arith.constant 0 : i32
    return %c0_i32, %arg2 : i32, i32
  }
  func.func @transform_1(%arg0: i32, %arg1: i32, %arg2: i32) -> (i32, i32) {
    %c0_i32 = arith.constant 0 : i32
    %c0_i32_0 = arith.constant 0 : i32
    return %c0_i32, %arg2 : i32, i32
  }
  func.func @transform_2(%arg0: i32, %arg1: i32, %arg2: i32) -> (i32, i32) {
    %c0_i32 = arith.constant 0 : i32
    return %arg0, %arg2 : i32, i32
  }
  func.func @transform_3(%arg0: i32, %arg1: i32, %arg2: i32) -> (i32, i32) {
    %c0_i32 = arith.constant 0 : i32
    return %arg2, %arg1 : i32, i32
  }
  func.func @transform_4(%arg0: i32, %arg1: i32, %arg2: i32) -> (i32, i32) {
    %c0_i32 = arith.constant 0 : i32
    return %arg0, %arg1 : i32, i32
  }
}

module attributes {stable_mosaic.version = 11 : i64} {
  func.func @_matmul_kernel(%arg0: i32, %arg1: i32, %arg2: i32, %arg3: memref<1x128xf32, #tpu.memory_space<vmem>>, %arg4: memref<1x128xf32, #tpu.memory_space<vmem>>, %arg5: memref<32x128xf32, #tpu.memory_space<vmem>>, %arg6: memref<128x128xbf16, #tpu.memory_space<vmem>>, %arg7: memref<32x128xf32, #tpu.memory_space<vmem>>, %arg8: memref<32x128xf32, #tpu.memory_space<vmem>>) attributes {dimension_semantics = [#tpu.dimension_semantics<parallel>, #tpu.dimension_semantics<parallel>, #tpu.dimension_semantics<arbitrary>], iteration_bounds = array<i64: 1, 1, 9>, scalar_prefetch = 0 : i64, scratch_operands = 1 : i64, tpu.core_type = #tpu.core_type<tc>, window_params = [{transform_indices = @transform_0, window_bounds = array<i64: 1, 128>}, {transform_indices = @transform_1, window_bounds = array<i64: 1, 128>}, {transform_indices = @transform_2, window_bounds = array<i64: 32, 128>}, {transform_indices = @transform_3, window_bounds = array<i64: 128, 128>}, {transform_indices = @transform_4, window_bounds = array<i64: 32, 128>}]} {
    %c0_i32 = arith.constant 0 : i32
    %0 = arith.cmpi eq, %arg2, %c0_i32 : i32
    %1 = arith.extui %0 : i1 to i32
    %c0_i32_0 = arith.constant 0 : i32
    %2 = arith.cmpi ne, %1, %c0_i32_0 : i32
    scf.if %2 {
      %cst_14 = arith.constant 0.000000e+00 : f32
      %21 = vector.broadcast %cst_14 : f32 to vector<32x128xf32>
      %c0_15 = arith.constant 0 : index
      %c0_16 = arith.constant 0 : index
      %22 = vector.load %arg8[%c0_15, %c0_16] : memref<32x128xf32, #tpu.memory_space<vmem>>, vector<32x128xf32>
      tpu.vector_store %arg8[%c0_15, %c0_16], %21 {strides = array<i32>} : memref<32x128xf32, #tpu.memory_space<vmem>>, vector<32x128xf32>,
    } else {
    }
    %c0 = arith.constant 0 : index
    %c0_1 = arith.constant 0 : index
    %3 = vector.load %arg5[%c0, %c0_1] : memref<32x128xf32, #tpu.memory_space<vmem>>, vector<32x128xf32>
    %c0_2 = arith.constant 0 : index
    %c0_3 = arith.constant 0 : index
    %4 = vector.load %arg3[%c0_2, %c0_3] : memref<1x128xf32, #tpu.memory_space<vmem>>, vector<1x128xf32>
    %5 = vector.broadcast %4 : vector<1x128xf32> to vector<32x128xf32>
    %6 = arith.mulf %3, %5 : vector<32x128xf32>
    %c0_4 = arith.constant 0 : index
    %c0_5 = arith.constant 0 : index
    %7 = vector.load %arg4[%c0_4, %c0_5] : memref<1x128xf32, #tpu.memory_space<vmem>>, vector<1x128xf32>
    %8 = vector.broadcast %7 : vector<1x128xf32> to vector<32x128xf32>
    %9 = arith.addf %6, %8 : vector<32x128xf32>
    %cst = arith.constant 0.000000e+00 : f32
    %10 = vector.broadcast %cst : f32 to vector<32x128xf32>
    %11 = arith.maximumf %9, %10 : vector<32x128xf32>
    %c0_6 = arith.constant 0 : index
    %c0_7 = arith.constant 0 : index
    %12 = vector.load %arg8[%c0_6, %c0_7] : memref<32x128xf32, #tpu.memory_space<vmem>>, vector<32x128xf32>
    %13 = arith.truncf %11 : vector<32x128xf32> to vector<32x128xbf16>
    %c0_8 = arith.constant 0 : index
    %c0_9 = arith.constant 0 : index
    %14 = vector.load %arg6[%c0_8, %c0_9] : memref<128x128xbf16, #tpu.memory_space<vmem>>, vector<128x128xbf16>
    %cst_10 = arith.constant dense<0.000000e+00> : vector<32x128xf32>
    %15 = tpu.matmul %13, %14, %cst_10 {dimension_numbers = #tpu.dot_dimension_numbers<[1], [0], [0], [1], [0, 0, 1, 1], [], []>} : vector<32x128xbf16>, vector<128x128xbf16>, vector<32x128xf32> -> vector<32x128xf32>
    %16 = arith.addf %12, %15 : vector<32x128xf32>
    %c0_11 = arith.constant 0 : index
    %c0_12 = arith.constant 0 : index
    %17 = vector.load %arg8[%c0_11, %c0_12] : memref<32x128xf32, #tpu.memory_space<vmem>>, vector<32x128xf32>
    tpu.vector_store %arg8[%c0_11, %c0_12], %16 {strides = array<i32>} : memref<32x128xf32, #tpu.memory_space<vmem>>, vector<32x128xf32>,
    %c8_i32 = arith.constant 8 : i32
    %18 = arith.cmpi eq, %arg2, %c8_i32 : i32
    %19 = arith.extui %18 : i1 to i32
    %c0_i32_13 = arith.constant 0 : i32
    %20 = arith.cmpi ne, %19, %c0_i32_13 : i32
    scf.if %20 {
      %c0_14 = arith.constant 0 : index
      %c0_15 = arith.constant 0 : index
      %21 = vector.load %arg8[%c0_14, %c0_15] : memref<32x128xf32, #tpu.memory_space<vmem>>, vector<32x128xf32>
      %c0_16 = arith.constant 0 : index
      %c0_17 = arith.constant 0 : index
      %22 = vector.load %arg7[%c0_16, %c0_17] : memref<32x128xf32, #tpu.memory_space<vmem>>, vector<32x128xf32>
      tpu.vector_store %arg7[%c0_16, %c0_17], %21 {strides = array<i32>} : memref<32x128xf32, #tpu.memory_space<vmem>>, vector<32x128xf32>,
    } else {
    }
    return
  }
  func.func @transform_0(%arg0: i32, %arg1: i32, %arg2: i32) -> (i32, i32) {
    %c0_i32 = arith.constant 0 : i32
    %c0_i32_0 = arith.constant 0 : i32
    return %c0_i32, %arg2 : i32, i32
  }
  func.func @transform_1(%arg0: i32, %arg1: i32, %arg2: i32) -> (i32, i32) {
    %c0_i32 = arith.constant 0 : i32
    %c0_i32_0 = arith.constant 0 : i32
    return %c0_i32, %arg2 : i32, i32
  }
  func.func @transform_2(%arg0: i32, %arg1: i32, %arg2: i32) -> (i32, i32) {
    %c0_i32 = arith.constant 0 : i32
    return %arg0, %arg2 : i32, i32
  }
  func.func @transform_3(%arg0: i32, %arg1: i32, %arg2: i32) -> (i32, i32) {
    %c0_i32 = arith.constant 0 : i32
    return %arg2, %arg1 : i32, i32
  }
  func.func @transform_4(%arg0: i32, %arg1: i32, %arg2: i32) -> (i32, i32) {
    %c0_i32 = arith.constant 0 : i32
    return %arg0, %arg1 : i32, i32
  }
}

module attributes {stable_mosaic.version = 11 : i64} {
  func.func @_bn_relu_kernel(%arg0: i32, %arg1: memref<32x128xf32, #tpu.memory_space<vmem>>, %arg2: memref<1x128xf32, #tpu.memory_space<vmem>>, %arg3: memref<1x128xf32, #tpu.memory_space<vmem>>, %arg4: memref<32x128xf32, #tpu.memory_space<vmem>>) attributes {dimension_semantics = [#tpu.dimension_semantics<parallel>], iteration_bounds = array<i64: 1>, scalar_prefetch = 0 : i64, scratch_operands = 0 : i64, tpu.core_type = #tpu.core_type<tc>, window_params = [{transform_indices = @transform_0, window_bounds = array<i64: 32, 128>}, {pipeline_mode = #tpu.pipeline_mode<synchronous>, transform_indices = @transform_1, window_bounds = array<i64: 1, 128>}, {pipeline_mode = #tpu.pipeline_mode<synchronous>, transform_indices = @transform_2, window_bounds = array<i64: 1, 128>}, {transform_indices = @transform_3, window_bounds = array<i64: 32, 128>}]} {
    %c0 = arith.constant 0 : index
    %c0_0 = arith.constant 0 : index
    %0 = vector.load %arg1[%c0, %c0_0] : memref<32x128xf32, #tpu.memory_space<vmem>>, vector<32x128xf32>
    %c0_1 = arith.constant 0 : index
    %c0_2 = arith.constant 0 : index
    %1 = vector.load %arg2[%c0_1, %c0_2] : memref<1x128xf32, #tpu.memory_space<vmem>>, vector<1x128xf32>
    %2 = vector.broadcast %1 : vector<1x128xf32> to vector<32x128xf32>
    %3 = arith.mulf %0, %2 : vector<32x128xf32>
    %c0_3 = arith.constant 0 : index
    %c0_4 = arith.constant 0 : index
    %4 = vector.load %arg3[%c0_3, %c0_4] : memref<1x128xf32, #tpu.memory_space<vmem>>, vector<1x128xf32>
    %5 = vector.broadcast %4 : vector<1x128xf32> to vector<32x128xf32>
    %6 = arith.addf %3, %5 : vector<32x128xf32>
    %cst = arith.constant 0.000000e+00 : f32
    %7 = vector.broadcast %cst : f32 to vector<32x128xf32>
    %8 = arith.maximumf %6, %7 : vector<32x128xf32>
    %c0_5 = arith.constant 0 : index
    %c0_6 = arith.constant 0 : index
    %9 = vector.load %arg4[%c0_5, %c0_6] : memref<32x128xf32, #tpu.memory_space<vmem>>, vector<32x128xf32>
    tpu.vector_store %arg4[%c0_5, %c0_6], %8 {strides = array<i32>} : memref<32x128xf32, #tpu.memory_space<vmem>>, vector<32x128xf32>,
    return
  }
  func.func @transform_0(%arg0: i32) -> (i32, i32) {
    %c0_i32 = arith.constant 0 : i32
    %c0_i32_0 = arith.constant 0 : i32
    return %arg0, %c0_i32 : i32, i32
  }
  func.func @transform_1(%arg0: i32) -> (i32, i32) {
    %c0_i32 = arith.constant 0 : i32
    %c0_i32_0 = arith.constant 0 : i32
    %c0_i32_1 = arith.constant 0 : i32
    return %c0_i32, %c0_i32_0 : i32, i32
  }
  func.func @transform_2(%arg0: i32) -> (i32, i32) {
    %c0_i32 = arith.constant 0 : i32
    %c0_i32_0 = arith.constant 0 : i32
    %c0_i32_1 = arith.constant 0 : i32
    return %c0_i32, %c0_i32_0 : i32, i32
  }
  func.func @transform_3(%arg0: i32) -> (i32, i32) {
    %c0_i32 = arith.constant 0 : i32
    %c0_i32_0 = arith.constant 0 : i32
    return %arg0, %c0_i32 : i32, i32
  }
}

</mosaic_0001>

<bundles_post_ra>
// kernel: _lambda_.26
= control target key start
LH: loop header
LB: loop body
LE: loop exit
PB: predicated region body
PF: predicated region fallthrough
CT: control target
= control target key end

     0   :  { %s355_s9 = smov 0   ;;  %s421_s0 = inlined_call_operand.vmem [shape: f32[512,128], index: 0, kind: input, shape index: {}]   ;;  %s422_s1 = inlined_call_operand.vmem [shape: f32[1,128], index: 1, kind: output, shape index: {0}]   ;;  %s423_s2 = inlined_call_operand.vmem [shape: f32[1,128], index: 2, kind: output, shape index: {1}]  }
   0x1 LB: > { %s313_s10 = sadd.s32 4294967295, %s337_s9   ;;  %p316_p0 = scmp.ge.s32.totalorder %s337_s9, 1  ;;  %s337_s9 = sphi %s355_s9, %s13_s9  }
   0x2   : > { %p106_p1 = scmp.lt.s32.totalorder %s337_s9, 3 }
   0x4   : > { %p107_p2 = pnand %p316_p0, %p106_p1 }
   0x5   : > { %s317_s11 = sshll.u32 (!%p107_p2), %s313_s10, 5  ;;  %p319_p4 = scmp.ne.s32.totalorder (!%p107_p2), %s313_s10, 0 }
   0x6   : > { %110 = sbr.rel (%p107_p2) target bundleno = 99 (0x63), region = 24  ;;  %p124_p3 = scmp.lt.s32.totalorder (!%p107_p2), %s317_s11, 63 }
   0xb   : > { %s425_s11 = smov (!%p124_p3, %s317_s11), 63  ;;  %132 = sbr.rel (%p319_p4) target bundleno = 19 (0x13), region = 28 }
   0xc   : > { %s318_s12 = sshll.u32 %s425_s11, 3 }
   0xd   : > { %s366_s15 = scalar_lea.vmem %s421_s0, %s318_s12 }
  0x10   : > { %v339_v0 = vmov 0.0  }
  0x11   : > { %133 = vst [vmem:[%s422_s1] sm:$0x1] %v339_v0 }
  0x12   : > { %134 = vst [vmem:[%s423_s2] sm:$0x1] %v339_v0 }
  0x13 PF: > { %v135_v1 = vld [vmem:[%s366_s15] sm:$0xff]  ;;  %v136_v2 = vld [vmem:[%s366_s15 + $0x8] sm:$0xff]  ;;  %v137_v3 = vld [vmem:[%s366_s15 + $0x10] sm:$0xff] }
  0x14   : > { %v138_v4 = vld [vmem:[%s366_s15 + $0x18] sm:$0xff]  ;;  %v168_v5 = vadd.f32 %v136_v2, %v135_v1  ;;  %v208_v6 = vmul.f32 %v135_v1, %v135_v1  ;;  %v209_v7 = vmul.f32 %v136_v2, %v136_v2  ;;  %v210_v8 = vmul.f32 %v137_v3, %v137_v3  ;;  %v139_v9 = vld [vmem:[%s366_s15 + $0x20] sm:$0xff]  ;;  %v140_v13 = vld [vmem:[%s366_s15 + $0x28] sm:$0xff] }
  0x15   : > { %v211_v11 = vmul.f32 %v138_v4, %v138_v4  ;;  %v212_v15 = vmul.f32 %v139_v9, %v139_v9  ;;  %v141_v17 = vld [vmem:[%s366_s15 + $0x30] sm:$0xff]  ;;  %v213_v19 = vmul.f32 %v140_v13, %v140_v13  ;;  %v142_v21 = vld [vmem:[%s366_s15 + $0x38] sm:$0xff]  ;;  %v143_v25 = vld [vmem:[%s366_s15 + $0x40] sm:$0xff] }
  0x16   : > { %v169_v10 = vadd.f32 %v168_v5, %v137_v3  ;;  %v240_v12 = vadd.f32 %v209_v7, %v208_v6  ;;  %v214_v23 = vmul.f32 %v141_v17, %v141_v17  ;;  %v215_v27 = vmul.f32 %v142_v21, %v142_v21  ;;  %v144_v29 = vld [vmem:[%s366_s15 + $0x48] sm:$0xff]  ;;  %v145_v33 = vld [vmem:[%s366_s15 + $0x50] sm:$0xff]  ;;  %v146_v37 = vld [vmem:[%s366_s15 + $0x58] sm:$0xff] }
  0x17   : > { %v216_v31 = vmul.f32 %v143_v25, %v143_v25  ;;  %v217_v35 = vmul.f32 %v144_v29, %v144_v29  ;;  %v218_v39 = vmul.f32 %v145_v33, %v145_v33  ;;  %v147_v41 = vld [vmem:[%s366_s15 + $0x60] sm:$0xff]  ;;  %v219_v43 = vmul.f32 %v146_v37, %v146_v37  ;;  %v148_v45 = vld [vmem:[%s366_s15 + $0x68] sm:$0xff]  ;;  %v149_v49 = vld [vmem:[%s366_s15 + $0x70] sm:$0xff] }
  0x18   : > { %v170_v14 = vadd.f32 %v169_v10, %v138_v4  ;;  %v241_v16 = vadd.f32 %v240_v12, %v210_v8  ;;  %v220_v47 = vmul.f32 %v147_v41, %v147_v41  ;;  %v221_v51 = vmul.f32 %v148_v45, %v148_v45  ;;  %v150_v53 = vld [vmem:[%s366_s15 + $0x78] sm:$0xff]  ;;  %v151_v57 = vld [vmem:[%s366_s15 + $0x80] sm:$0xff]  ;;  %v152_v61 = vld [vmem:[%s366_s15 + $0x88] sm:$0xff] }
  0x19   : > { %v222_v55 = vmul.f32 %v149_v49, %v149_v49  ;;  %v223_v59 = vmul.f32 %v150_v53, %v150_v53  ;;  %v224_v63 = vmul.f32 %v151_v57, %v151_v57  ;;  %v153_v1 = vld [vmem:[%s366_s15 + $0x90] sm:$0xff]  ;;  %v225_v3 = vmul.f32 %v152_v61, %v152_v61  ;;  %v154_v5 = vld [vmem:[%s366_s15 + $0x98] sm:$0xff] }
  0x1a   : > { %v171_v18 = vadd.f32 %v170_v14, %v139_v9  ;;  %v242_v20 = vadd.f32 %v241_v16, %v211_v11  ;;  %v226_v7 = vmul.f32 %v153_v1, %v153_v1  ;;  %v155_v9 = vld [vmem:[%s366_s15 + $0xa0] sm:$0xff]  ;;  %v227_v11 = vmul.f32 %v154_v5, %v154_v5 }
  0x1c   : > { %v172_v22 = vadd.f32 %v171_v18, %v140_v13  ;;  %v243_v24 = vadd.f32 %v242_v20, %v212_v15  ;;  %v156_v13 = vld [vmem:[%s366_s15 + $0xa8] sm:$0xff]  ;;  %v228_v15 = vmul.f32 %v155_v9, %v155_v9 }
  0x1e   : > { %v173_v26 = vadd.f32 %v172_v22, %v141_v17  ;;  %v244_v28 = vadd.f32 %v243_v24, %v213_v19  ;;  %v157_v17 = vld [vmem:[%s366_s15 + $0xb0] sm:$0xff]  ;;  %v229_v19 = vmul.f32 %v156_v13, %v156_v13 }
  0x20   : > { %v174_v30 = vadd.f32 %v173_v26, %v142_v21  ;;  %v245_v32 = vadd.f32 %v244_v28, %v214_v23  ;;  %v158_v21 = vld [vmem:[%s366_s15 + $0xb8] sm:$0xff]  ;;  %v230_v23 = vmul.f32 %v157_v17, %v157_v17 }
  0x22   : > { %v175_v34 = vadd.f32 %v174_v30, %v143_v25  ;;  %v246_v36 = vadd.f32 %v245_v32, %v215_v27  ;;  %v159_v25 = vld [vmem:[%s366_s15 + $0xc0] sm:$0xff]  ;;  %v231_v27 = vmul.f32 %v158_v21, %v158_v21 }
  0x24   : > { %v176_v38 = vadd.f32 %v175_v34, %v144_v29  ;;  %v247_v40 = vadd.f32 %v246_v36, %v216_v31  ;;  %v160_v29 = vld [vmem:[%s366_s15 + $0xc8] sm:$0xff]  ;;  %v232_v31 = vmul.f32 %v159_v25, %v159_v25 }
  0x26   : > { %v177_v42 = vadd.f32 %v176_v38, %v145_v33  ;;  %v248_v44 = vadd.f32 %v247_v40, %v217_v35  ;;  %v161_v33 = vld [vmem:[%s366_s15 + $0xd0] sm:$0xff]  ;;  %v233_v35 = vmul.f32 %v160_v29, %v160_v29 }
  0x28   : > { %v178_v46 = vadd.f32 %v177_v42, %v146_v37  ;;  %v249_v48 = vadd.f32 %v248_v44, %v218_v39  ;;  %v162_v37 = vld [vmem:[%s366_s15 + $0xd8] sm:$0xff]  ;;  %v234_v39 = vmul.f32 %v161_v33, %v161_v33 }
  0x2a   : > { %v179_v50 = vadd.f32 %v178_v46, %v147_v41  ;;  %v250_v52 = vadd.f32 %v249_v48, %v219_v43  ;;  %v163_v41 = vld [vmem:[%s366_s15 + $0xe0] sm:$0xff]  ;;  %v235_v43 = vmul.f32 %v162_v37, %v162_v37 }
  0x2c   : > { %v180_v54 = vadd.f32 %v179_v50, %v148_v45  ;;  %v251_v56 = vadd.f32 %v250_v52, %v220_v47  ;;  %v164_v45 = vld [vmem:[%s366_s15 + $0xe8] sm:$0xff]  ;;  %v236_v47 = vmul.f32 %v163_v41, %v163_v41 }
  0x2e   : > { %v181_v58 = vadd.f32 %v180_v54, %v149_v49  ;;  %v252_v60 = vadd.f32 %v251_v56, %v221_v51  ;;  %v165_v49 = vld [vmem:[%s366_s15 + $0xf0] sm:$0xff]  ;;  %v237_v51 = vmul.f32 %v164_v45, %v164_v45 }
  0x30   : > { %v182_v62 = vadd.f32 %v181_v58, %v150_v53  ;;  %v253_v0 = vadd.f32 %v252_v60, %v222_v55  ;;  %v166_v53 = vld [vmem:[%s366_s15 + $0xf8] sm:$0xff]  ;;  %v238_v55 = vmul.f32 %v165_v49, %v165_v49 }
  0x31   : > { %v239_v58 = vmul.f32 %v166_v53, %v166_v53 }
  0x32   : > { %v183_v2 = vadd.f32 %v182_v62, %v151_v57  ;;  %v254_v4 = vadd.f32 %v253_v0, %v223_v59 }
  0x34   : > { %v184_v6 = vadd.f32 %v183_v2, %v152_v61  ;;  %v255_v8 = vadd.f32 %v254_v4, %v224_v63 }
  0x36   : > { %v185_v10 = vadd.f32 %v184_v6, %v153_v1  ;;  %v256_v12 = vadd.f32 %v255_v8, %v225_v3 }
  0x38   : > { %v186_v14 = vadd.f32 %v185_v10, %v154_v5  ;;  %v257_v16 = vadd.f32 %v256_v12, %v226_v7  ;;  %v167_v7 = vld [vmem:[%s422_s1] sm:$0x1] }
  0x39   : > { %v207_v12 = vld [vmem:[%s423_s2] sm:$0x1] }
  0x3a   : > { %v187_v18 = vadd.f32 %v186_v14, %v155_v9  ;;  %v258_v20 = vadd.f32 %v257_v16, %v227_v11 }
  0x3c   : > { %v188_v22 = vadd.f32 %v187_v18, %v156_v13  ;;  %v259_v24 = vadd.f32 %v258_v20, %v228_v15 }
  0x3e   : > { %v189_v26 = vadd.f32 %v188_v22, %v157_v17  ;;  %v260_v28 = vadd.f32 %v259_v24, %v229_v19 }
  0x40   : > { %v190_v30 = vadd.f32 %v189_v26, %v158_v21  ;;  %v261_v32 = vadd.f32 %v260_v28, %v230_v23 }
  0x42   : > { %v191_v34 = vadd.f32 %v190_v30, %v159_v25  ;;  %v262_v36 = vadd.f32 %v261_v32, %v231_v27 }
  0x44   : > { %v192_v38 = vadd.f32 %v191_v34, %v160_v29  ;;  %v263_v40 = vadd.f32 %v262_v36, %v232_v31 }
  0x46   : > { %v193_v42 = vadd.f32 %v192_v38, %v161_v33  ;;  %v264_v44 = vadd.f32 %v263_v40, %v233_v35 }
  0x48   : > { %v194_v46 = vadd.f32 %v193_v42, %v162_v37  ;;  %v265_v48 = vadd.f32 %v264_v44, %v234_v39 }
  0x4a   : > { %v195_v50 = vadd.f32 %v194_v46, %v163_v41  ;;  %v266_v52 = vadd.f32 %v265_v48, %v235_v43 }
  0x4c   : > { %v196_v54 = vadd.f32 %v195_v50, %v164_v45  ;;  %v267_v56 = vadd.f32 %v266_v52, %v236_v47 }
  0x4e   : > { %v197_v57 = vadd.f32 %v196_v54, %v165_v49  ;;  %v268_v59 = vadd.f32 %v267_v56, %v237_v51 }
  0x50   : > { %v198_v60 = vadd.f32 %v197_v57, %v166_v53  ;;  %v269_v61 = vadd.f32 %v268_v59, %v238_v55 }
  0x52   : > { %v199_v62 = vrot.slane %v198_v60, 4  ;;  %v270_v63 = vadd.f32 %v269_v61, %v239_v58 }
  0x54   : > { %v200_v0 = vadd.f32 %v199_v62, %v198_v60  ;;  %v271_v1 = vrot.slane %v270_v63, 4 }
  0x56   : > { %v201_v2 = vrot.slane %v200_v0, 2  ;;  %v272_v3 = vadd.f32 %v271_v1, %v270_v63 }
  0x58   : > { %v202_v4 = vadd.f32 %v201_v2, %v200_v0  ;;  %v273_v5 = vrot.slane %v272_v3, 2 }
  0x5a   : > { %v203_v6 = vrot.slane %v202_v4, 1  ;;  %v274_v8 = vadd.f32 %v273_v5, %v272_v3 }
  0x5c   : > { %v204_v9 = vadd.f32 %v203_v6, %v202_v4  ;;  %v275_v10 = vrot.slane %v274_v8, 1 }
  0x5e   : > { %v205_v11 = vadd.f32 %v204_v9, %v167_v7  ;;  %v276_v13 = vadd.f32 %v275_v10, %v274_v8 }
  0x60   : > { %206 = vst [vmem:[%s422_s1] sm:$0x1] %v205_v11  ;;  %v277_v14 = vadd.f32 %v276_v13, %v207_v12 }
  0x62   : > { %278 = vst [vmem:[%s423_s2] sm:$0x1] %v277_v14 }
  0x63 PF: > { %s13_s9 = sadd.s32 1, %s337_s9  }
  0x64   : > { %p10_p5 = scmp.ge.s32.totalorder %s13_s9, 4  }
  0x66   :  { %12 = sbr.rel (!%p10_p5) target bundleno = 1 (0x1), region = 62 }

// kernel: _lambda_.25
= control target key start
LH: loop header
LB: loop body
LE: loop exit
PB: predicated region body
PF: predicated region fallthrough
CT: control target
= control target key end

     0   :  { %s1230_s15 = smov 0   ;;  %s1232_s16 = smov 0   ;;  %s1418_s0 = inlined_call_operand.vmem [shape: f32[1,256], index: 0, kind: input, shape index: {}, may-alias: {0,1}]   ;;  %s1419_s1 = inlined_call_operand.vmem [shape: f32[1,256], index: 1, kind: input, shape index: {}, may-alias: {0,1}]   ;;  %s1420_s2 = inlined_call_operand.vmem [shape: f32[512,256], index: 2, kind: input, shape index: {}]   ;;  %s1421_s3 = inlined_call_operand.vmem [shape: bf16[256,128], index: 3, kind: input, shape index: {}]   ;;  %s1422_s4 = inlined_call_operand.vmem [shape: f32[512,128], index: 4, kind: output, shape index: {}]  }
   0x1   :  { %s1234_s17 = smov 0  }
   0x2 LB: > { %s33_s0 = sadd.s32 1, %s1199_s16  ;;  %p1052_p0 = scmp.ge.s32.totalorder %s1203_s17, 1  ;;  %s1203_s17 = sphi %s1234_s17, %s14_s17   ;;  %s1199_s16 = sphi %s1232_s16, %s1424_s16   ;;  %s1195_s15 = sphi %s1230_s15, %s1423_s15  }
   0x3   : > { %p35_p1 = scmp.ge.s32.totalorder %s33_s0, 2  ;;  %p228_p2 = scmp.lt.s32.totalorder %s1203_s17, 3 }
   0x5   : > { %s1426_s0 = smov (%p35_p1, %s33_s0), 0  ;;  %p229_p3 = pnand %p1052_p0, %p228_p2 }
   0x6   : > { %s1053_s29 = sshll.u32 (!%p229_p3), %s1195_s15, 5 }
   0x7   : > { %232 = sbr.rel (%p229_p3) target bundleno = 300 (0x12c), region = 36  ;;  %p290_p4 = scmp.lt.s32.totalorder (!%p229_p3), %s1053_s29, 63 }
   0xc   : > { %v1132_v0 = vld [vmem:[%s1421_s3 + $0x38] sm:$0xff]  ;;  %v1131_v2 = vld [vmem:[%s1421_s3 + $0x30] sm:$0xff]  ;;  %v1130_v4 = vld [vmem:[%s1421_s3 + $0x28] sm:$0xff]  ;;  %s1428_s29 = smov (!%p290_p4, %s1053_s29), 63 }
   0xd   : > { %v1140_v1 = vld [vmem:[%s1421_s3 + $0x78] sm:$0xff]  ;;  %610 = vmatpush.bf16.msra.mxu0 %v1132_v0  ;;  %1141 = vmatpush.bf16.msra.mxu2 %v1132_v0  ;;  %v1139_v3 = vld [vmem:[%s1421_s3 + $0x70] sm:$0xff]  ;;  %v1138_v5 = vld [vmem:[%s1421_s3 + $0x68] sm:$0xff]  ;;  %s1124_s1 = sshll.u32 %s1428_s29, 4  ;;  %s1057_s30 = sshll.u32 %s1428_s29, 3 }
   0xe   : > { %699 = vmatpush.bf16.msra.mxu1 %v1140_v1  ;;  %1149 = vmatpush.bf16.msra.mxu3 %v1140_v1  ;;  %v1129_v6 = vld [vmem:[%s1421_s3 + $0x20] sm:$0xff]  ;;  %v1128_v8 = vld [vmem:[%s1421_s3 + $0x18] sm:$0xff]  ;;  %v1127_v10 = vld [vmem:[%s1421_s3 + $0x10] sm:$0xff]  ;;  %s1296_s22 = scalar_lea.vmem %s1420_s2, %s1124_s1  ;;  %s1375_s7 = scalar_lea.vmem %s1422_s4, %s1057_s30 }
   0xf   : > { %v1137_v7 = vld [vmem:[%s1421_s3 + $0x60] sm:$0xff]  ;;  %v1136_v9 = vld [vmem:[%s1421_s3 + $0x58] sm:$0xff]  ;;  %v1135_v11 = vld [vmem:[%s1421_s3 + $0x50] sm:$0xff] }
  0x10   : > { %v1126_v12 = vld [vmem:[%s1421_s3 + $0x8] sm:$0xff]  ;;  %v1125_v14 = vld [vmem:[%s1421_s3] sm:$0xff]  ;;  %v356_v17 = vld [vmem:[%s1296_s22 + $0x10] sm:$0xff] }
  0x11   : > { %611 = vmatpush.bf16.msra.mxu0 %v1131_v2  ;;  %1142 = vmatpush.bf16.msra.mxu2 %v1131_v2  ;;  %v1134_v13 = vld [vmem:[%s1421_s3 + $0x48] sm:$0xff]  ;;  %v1133_v15 = vld [vmem:[%s1421_s3 + $0x40] sm:$0xff]  ;;  %v388_v19 = vld [vmem:[%s1296_s22 + $0x110] sm:$0xff] }
  0x12   : > { %700 = vmatpush.bf16.msra.mxu1 %v1139_v3  ;;  %1150 = vmatpush.bf16.msra.mxu3 %v1139_v3  ;;  %v354_v16 = vld [vmem:[%s1296_s22] sm:$0xff]  ;;  %v355_v20 = vld [vmem:[%s1296_s22 + $0x8] sm:$0xff]  ;;  %v357_v21 = vld [vmem:[%s1296_s22 + $0x18] sm:$0xff] }
  0x13   : > { %v386_v18 = vld [vmem:[%s1296_s22 + $0x100] sm:$0xff]  ;;  %v387_v22 = vld [vmem:[%s1296_s22 + $0x108] sm:$0xff]  ;;  %v389_v23 = vld [vmem:[%s1296_s22 + $0x118] sm:$0xff]  ;;  %v450_v24 = vpack.c.bf16 %v356_v17, %v354_v16  ;;  %v451_v26 = vpack.c.bf16 %v357_v21, %v355_v20 }
  0x14   : > { %v466_v25 = vpack.c.bf16 %v388_v19, %v386_v18  ;;  %v467_v27 = vpack.c.bf16 %v389_v23, %v387_v22  ;;  %v358_v28 = vld [vmem:[%s1296_s22 + $0x20] sm:$0xff]  ;;  %v360_v29 = vld [vmem:[%s1296_s22 + $0x30] sm:$0xff]  ;;  %v359_v32 = vld [vmem:[%s1296_s22 + $0x28] sm:$0xff] }
  0x15   : > { %612 = vmatpush.bf16.msra.mxu0 %v1130_v4  ;;  %1143 = vmatpush.bf16.msra.mxu2 %v1130_v4  ;;  %v390_v30 = vld [vmem:[%s1296_s22 + $0x120] sm:$0xff]  ;;  %v392_v31 = vld [vmem:[%s1296_s22 + $0x130] sm:$0xff]  ;;  %v361_v33 = vld [vmem:[%s1296_s22 + $0x38] sm:$0xff]  ;;  %v452_v36 = vpack.c.bf16 %v360_v29, %v358_v28 }
  0x16   : > { %701 = vmatpush.bf16.msra.mxu1 %v1138_v5  ;;  %1151 = vmatpush.bf16.msra.mxu3 %v1138_v5  ;;  %v391_v34 = vld [vmem:[%s1296_s22 + $0x128] sm:$0xff]  ;;  %v393_v35 = vld [vmem:[%s1296_s22 + $0x138] sm:$0xff]  ;;  %v468_v37 = vpack.c.bf16 %v392_v31, %v390_v30  ;;  %v453_v38 = vpack.c.bf16 %v361_v33, %v359_v32  ;;  %v362_v40 = vld [vmem:[%s1296_s22 + $0x40] sm:$0xff] }
  0x17   : > { %v469_v39 = vpack.c.bf16 %v393_v35, %v391_v34  ;;  %v364_v41 = vld [vmem:[%s1296_s22 + $0x50] sm:$0xff]  ;;  %v394_v42 = vld [vmem:[%s1296_s22 + $0x140] sm:$0xff]  ;;  %v363_v44 = vld [vmem:[%s1296_s22 + $0x48] sm:$0xff] }
  0x18   : > { %v396_v43 = vld [vmem:[%s1296_s22 + $0x150] sm:$0xff]  ;;  %v365_v45 = vld [vmem:[%s1296_s22 + $0x58] sm:$0xff]  ;;  %v395_v46 = vld [vmem:[%s1296_s22 + $0x148] sm:$0xff]  ;;  %v454_v48 = vpack.c.bf16 %v364_v41, %v362_v40 }
  0x19   : > { %613 = vmatpush.bf16.msra.mxu0 %v1129_v6  ;;  %1144 = vmatpush.bf16.msra.mxu2 %v1129_v6  ;;  %v397_v47 = vld [vmem:[%s1296_s22 + $0x158] sm:$0xff]  ;;  %v470_v49 = vpack.c.bf16 %v396_v43, %v394_v42  ;;  %v455_v50 = vpack.c.bf16 %v365_v45, %v363_v44  ;;  %v366_v52 = vld [vmem:[%s1296_s22 + $0x60] sm:$0xff]  ;;  %v368_v53 = vld [vmem:[%s1296_s22 + $0x70] sm:$0xff] }
  0x1a   : > { %702 = vmatpush.bf16.msra.mxu1 %v1137_v7  ;;  %1152 = vmatpush.bf16.msra.mxu3 %v1137_v7  ;;  %v471_v51 = vpack.c.bf16 %v397_v47, %v395_v46  ;;  %v398_v54 = vld [vmem:[%s1296_s22 + $0x160] sm:$0xff]  ;;  %v400_v55 = vld [vmem:[%s1296_s22 + $0x170] sm:$0xff]  ;;  %v367_v56 = vld [vmem:[%s1296_s22 + $0x68] sm:$0xff]  ;;  %v456_v60 = vpack.c.bf16 %v368_v53, %v366_v52 }
  0x1b   : > { %v369_v57 = vld [vmem:[%s1296_s22 + $0x78] sm:$0xff]  ;;  %v399_v58 = vld [vmem:[%s1296_s22 + $0x168] sm:$0xff]  ;;  %v472_v61 = vpack.c.bf16 %v400_v55, %v398_v54  ;;  %v370_v0 = vld [vmem:[%s1296_s22 + $0x80] sm:$0xff] }
  0x1c   : > { %v401_v59 = vld [vmem:[%s1296_s22 + $0x178] sm:$0xff]  ;;  %v457_v62 = vpack.c.bf16 %v369_v57, %v367_v56  ;;  %v372_v1 = vld [vmem:[%s1296_s22 + $0x90] sm:$0xff]  ;;  %v402_v2 = vld [vmem:[%s1296_s22 + $0x180] sm:$0xff] }
  0x1d   : > { %614 = vmatpush.bf16.msra.mxu0 %v1128_v8  ;;  %1145 = vmatpush.bf16.msra.mxu2 %v1128_v8  ;;  %v473_v63 = vpack.c.bf16 %v401_v59, %v399_v58  ;;  %v404_v3 = vld [vmem:[%s1296_s22 + $0x190] sm:$0xff]  ;;  %v371_v4 = vld [vmem:[%s1296_s22 + $0x88] sm:$0xff]  ;;  %v373_v5 = vld [vmem:[%s1296_s22 + $0x98] sm:$0xff]  ;;  %v458_v8 = vpack.c.bf16 %v372_v1, %v370_v0 }
  0x1e   : > { %703 = vmatpush.bf16.msra.mxu1 %v1136_v9  ;;  %1153 = vmatpush.bf16.msra.mxu3 %v1136_v9  ;;  %v403_v6 = vld [vmem:[%s1296_s22 + $0x188] sm:$0xff]  ;;  %v405_v7 = vld [vmem:[%s1296_s22 + $0x198] sm:$0xff]  ;;  %v474_v9 = vpack.c.bf16 %v404_v3, %v402_v2 }
  0x1f   : > { %v375_v16 = vld [vmem:[%s1296_s22 + $0xa8] sm:$0xff]  ;;  %v377_v17 = vld [vmem:[%s1296_s22 + $0xb8] sm:$0xff] }
  0x20   : > { %v407_v18 = vld [vmem:[%s1296_s22 + $0x1a8] sm:$0xff]  ;;  %v409_v19 = vld [vmem:[%s1296_s22 + $0x1b8] sm:$0xff]  ;;  %v461_v22 = vpack.c.bf16 %v377_v17, %v375_v16 }
  0x21   : > { %615 = vmatpush.bf16.msra.mxu0 %v1127_v10  ;;  %1146 = vmatpush.bf16.msra.mxu2 %v1127_v10  ;;  %v459_v10 = vpack.c.bf16 %v373_v5, %v371_v4  ;;  %v477_v23 = vpack.c.bf16 %v409_v19, %v407_v18  ;;  %v379_v28 = vld [vmem:[%s1296_s22 + $0xc8] sm:$0xff]  ;;  %v381_v29 = vld [vmem:[%s1296_s22 + $0xd8] sm:$0xff] }
  0x22   : > { %704 = vmatpush.bf16.msra.mxu1 %v1135_v11  ;;  %1154 = vmatpush.bf16.msra.mxu3 %v1135_v11  ;;  %v475_v11 = vpack.c.bf16 %v405_v7, %v403_v6  ;;  %v411_v30 = vld [vmem:[%s1296_s22 + $0x1c8] sm:$0xff]  ;;  %v413_v31 = vld [vmem:[%s1296_s22 + $0x1d8] sm:$0xff]  ;;  %v463_v34 = vpack.c.bf16 %v381_v29, %v379_v28 }
  0x23   : > { %v479_v35 = vpack.c.bf16 %v413_v31, %v411_v30  ;;  %v383_v40 = vld [vmem:[%s1296_s22 + $0xe8] sm:$0xff]  ;;  %v385_v41 = vld [vmem:[%s1296_s22 + $0xf8] sm:$0xff] }
  0x24   : > { %v415_v42 = vld [vmem:[%s1296_s22 + $0x1e8] sm:$0xff]  ;;  %v417_v43 = vld [vmem:[%s1296_s22 + $0x1f8] sm:$0xff]  ;;  %v465_v46 = vpack.c.bf16 %v385_v41, %v383_v40 }
  0x25   : > { %616 = vmatpush.bf16.msra.mxu0 %v1126_v12  ;;  %1147 = vmatpush.bf16.msra.mxu2 %v1126_v12  ;;  %v374_v12 = vld [vmem:[%s1296_s22 + $0xa0] sm:$0xff]  ;;  %v481_v47 = vpack.c.bf16 %v417_v43, %v415_v42 }
  0x26   : > { %705 = vmatpush.bf16.msra.mxu1 %v1134_v13  ;;  %1155 = vmatpush.bf16.msra.mxu3 %v1134_v13  ;;  %v376_v13 = vld [vmem:[%s1296_s22 + $0xb0] sm:$0xff] }
  0x27   : > { %v460_v20 = vpack.c.bf16 %v376_v13, %v374_v12 }
  0x29   : > { %617 = vmatpush.bf16.msra.mxu0 %v1125_v14  ;;  %1148 = vmatpush.bf16.msra.mxu2 %v1125_v14  ;;  %v406_v14 = vld [vmem:[%s1296_s22 + $0x1a0] sm:$0xff] }
  0x2a   : > { %706 = vmatpush.bf16.msra.mxu1 %v1133_v15  ;;  %1156 = vmatpush.bf16.msra.mxu3 %v1133_v15  ;;  %v408_v15 = vld [vmem:[%s1296_s22 + $0x1b0] sm:$0xff] }
  0x2b   : > { %v476_v21 = vpack.c.bf16 %v408_v15, %v406_v14 }
  0x2c   : > { %618 = vmatmul.bf16.vlgmr.msra.gmra.mxu0 %v450_v24  ;;  %658 = vmatmul.bf16.vlgmr.msra.gmra.mxu2 %v466_v25  ;;  %v378_v24 = vld [vmem:[%s1296_s22 + $0xc0] sm:$0xff]  ;;  %v380_v25 = vld [vmem:[%s1296_s22 + $0xd0] sm:$0xff] }
  0x2d   : > { %707 = vmatmul.bf16.vlgmr.msra.gmra.mxu1 %v451_v26  ;;  %747 = vmatmul.bf16.vlgmr.msra.gmra.mxu3 %v467_v27  ;;  %v410_v26 = vld [vmem:[%s1296_s22 + $0x1c0] sm:$0xff]  ;;  %v412_v27 = vld [vmem:[%s1296_s22 + $0x1d0] sm:$0xff]  ;;  %v462_v32 = vpack.c.bf16 %v380_v25, %v378_v24 }
  0x2e   : > { %v478_v33 = vpack.c.bf16 %v412_v27, %v410_v26 }
  0x3c   : > { %623 = vmatmul.bf16.gmra.mxu0 %v452_v36  ;;  %663 = vmatmul.bf16.gmra.mxu2 %v468_v37  ;;  %v382_v36 = vld [vmem:[%s1296_s22 + $0xe0] sm:$0xff]  ;;  %v384_v37 = vld [vmem:[%s1296_s22 + $0xf0] sm:$0xff] }
  0x3d   : > { %712 = vmatmul.bf16.gmra.mxu1 %v453_v38  ;;  %752 = vmatmul.bf16.gmra.mxu3 %v469_v39  ;;  %v414_v38 = vld [vmem:[%s1296_s22 + $0x1e0] sm:$0xff]  ;;  %v416_v39 = vld [vmem:[%s1296_s22 + $0x1f0] sm:$0xff]  ;;  %v464_v44 = vpack.c.bf16 %v384_v37, %v382_v36 }
  0x3e   : > { %v480_v45 = vpack.c.bf16 %v416_v39, %v414_v38 }
  0x4c   : > { %628 = vmatmul.bf16.gmra.mxu0 %v454_v48  ;;  %668 = vmatmul.bf16.gmra.mxu2 %v470_v49 }
  0x4d   : > { %717 = vmatmul.bf16.gmra.mxu1 %v455_v50  ;;  %757 = vmatmul.bf16.gmra.mxu3 %v471_v51 }
  0x5c   : > { %633 = vmatmul.bf16.gmra.mxu0 %v456_v60  ;;  %673 = vmatmul.bf16.gmra.mxu2 %v472_v61 }
  0x5d   : > { %722 = vmatmul.bf16.gmra.mxu1 %v457_v62  ;;  %762 = vmatmul.bf16.gmra.mxu3 %v473_v63 }
  0x6c   : > { %638 = vmatmul.bf16.gmra.mxu0 %v458_v8  ;;  %678 = vmatmul.bf16.gmra.mxu2 %v474_v9 }
  0x6d   : > { %727 = vmatmul.bf16.gmra.mxu1 %v459_v10  ;;  %767 = vmatmul.bf16.gmra.mxu3 %v475_v11 }
  0x7c   : > { %643 = vmatmul.bf16.gmra.mxu0 %v460_v20  ;;  %683 = vmatmul.bf16.gmra.mxu2 %v476_v21 }
  0x7d   : > { %732 = vmatmul.bf16.gmra.mxu1 %v461_v22  ;;  %772 = vmatmul.bf16.gmra.mxu3 %v477_v23 }
  0x8c   : > { %648 = vmatmul.bf16.gmra.mxu0 %v462_v32  ;;  %688 = vmatmul.bf16.gmra.mxu2 %v478_v33 }
  0x8d   : > { %737 = vmatmul.bf16.gmra.mxu1 %v463_v34  ;;  %777 = vmatmul.bf16.gmra.mxu3 %v479_v35 }
  0x9c   : > { %653 = vmatmul.bf16.gmra.mxu0 %v464_v44  ;;  %693 = vmatmul.bf16.gmra.mxu2 %v480_v45 }
  0x9d   : > { %742 = vmatmul.bf16.gmra.mxu1 %v465_v46  ;;  %782 = vmatmul.bf16.gmra.mxu3 %v481_v47 }
  0xa9   : > { %v619_v48 = vpop.f32.mrf.mxu0 }
  0xaa   : > { %v708_v49 = vpop.f32.mrf.mxu1 }
  0xab   : > { %v709_v50 = vadd.f32 %v708_v49, %v619_v48 }
  0xad   : > { %887 = vst [vmem:[%s1375_s7] sm:$0xff] %v709_v50 }
  0xaf   : > { %v659_v51 = vpop.f32.mrf.mxu2 }
  0xb0   : > { %v748_v52 = vpop.f32.mrf.mxu3 }
  0xb1   : > { %v749_v53 = vadd.f32 %v748_v52, %v659_v51  ;;  %v621_v54 = vpop.f32.mrf.mxu0 }
  0xb2   : > { %v710_v55 = vpop.f32.mrf.mxu1 }
  0xb3   : > { %903 = vst [vmem:[%s1375_s7 + $0x80] sm:$0xff] %v749_v53  ;;  %v711_v56 = vadd.f32 %v710_v55, %v621_v54 }
  0xb5   : > { %888 = vst [vmem:[%s1375_s7 + $0x8] sm:$0xff] %v711_v56 }
  0xb7   : > { %v661_v57 = vpop.f32.mrf.mxu2 }
  0xb8   : > { %v750_v58 = vpop.f32.mrf.mxu3 }
  0xb9   : > { %v751_v59 = vadd.f32 %v750_v58, %v661_v57  ;;  %v624_v60 = vpop.f32.mrf.mxu0 }
  0xba   : > { %v713_v61 = vpop.f32.mrf.mxu1 }
  0xbb   : > { %904 = vst [vmem:[%s1375_s7 + $0x88] sm:$0xff] %v751_v59  ;;  %v714_v62 = vadd.f32 %v713_v61, %v624_v60 }
  0xbd   : > { %889 = vst [vmem:[%s1375_s7 + $0x10] sm:$0xff] %v714_v62 }
  0xbf   : > { %v664_v63 = vpop.f32.mrf.mxu2 }
  0xc0   : > { %v753_v0 = vpop.f32.mrf.mxu3 }
  0xc1   : > { %v754_v1 = vadd.f32 %v753_v0, %v664_v63  ;;  %v626_v2 = vpop.f32.mrf.mxu0 }
  0xc2   : > { %v715_v3 = vpop.f32.mrf.mxu1 }
  0xc3   : > { %905 = vst [vmem:[%s1375_s7 + $0x90] sm:$0xff] %v754_v1  ;;  %v716_v4 = vadd.f32 %v715_v3, %v626_v2 }
  0xc5   : > { %890 = vst [vmem:[%s1375_s7 + $0x18] sm:$0xff] %v716_v4 }
  0xc7   : > { %v666_v5 = vpop.f32.mrf.mxu2 }
  0xc8   : > { %v755_v6 = vpop.f32.mrf.mxu3 }
  0xc9   : > { %v756_v7 = vadd.f32 %v755_v6, %v666_v5  ;;  %v629_v8 = vpop.f32.mrf.mxu0 }
  0xca   : > { %v718_v9 = vpop.f32.mrf.mxu1 }
  0xcb   : > { %906 = vst [vmem:[%s1375_s7 + $0x98] sm:$0xff] %v756_v7  ;;  %v719_v10 = vadd.f32 %v718_v9, %v629_v8 }
  0xcd   : > { %891 = vst [vmem:[%s1375_s7 + $0x20] sm:$0xff] %v719_v10 }
  0xcf   : > { %v669_v11 = vpop.f32.mrf.mxu2 }
  0xd0   : > { %v758_v12 = vpop.f32.mrf.mxu3 }
  0xd1   : > { %v759_v13 = vadd.f32 %v758_v12, %v669_v11  ;;  %v631_v14 = vpop.f32.mrf.mxu0 }
  0xd2   : > { %v720_v15 = vpop.f32.mrf.mxu1 }
  0xd3   : > { %907 = vst [vmem:[%s1375_s7 + $0xa0] sm:$0xff] %v759_v13  ;;  %v721_v16 = vadd.f32 %v720_v15, %v631_v14 }
  0xd5   : > { %892 = vst [vmem:[%s1375_s7 + $0x28] sm:$0xff] %v721_v16 }
  0xd7   : > { %v671_v17 = vpop.f32.mrf.mxu2 }
  0xd8   : > { %v760_v18 = vpop.f32.mrf.mxu3 }
  0xd9   : > { %v761_v19 = vadd.f32 %v760_v18, %v671_v17  ;;  %v634_v20 = vpop.f32.mrf.mxu0 }
  0xda   : > { %v723_v21 = vpop.f32.mrf.mxu1 }
  0xdb   : > { %908 = vst [vmem:[%s1375_s7 + $0xa8] sm:$0xff] %v761_v19  ;;  %v724_v22 = vadd.f32 %v723_v21, %v634_v20 }
  0xdd   : > { %893 = vst [vmem:[%s1375_s7 + $0x30] sm:$0xff] %v724_v22 }
  0xdf   : > { %v674_v23 = vpop.f32.mrf.mxu2 }
  0xe0   : > { %v763_v24 = vpop.f32.mrf.mxu3 }
  0xe1   : > { %v764_v25 = vadd.f32 %v763_v24, %v674_v23  ;;  %v636_v26 = vpop.f32.mrf.mxu0 }
  0xe2   : > { %v725_v27 = vpop.f32.mrf.mxu1 }
  0xe3   : > { %909 = vst [vmem:[%s1375_s7 + $0xb0] sm:$0xff] %v764_v25  ;;  %v726_v28 = vadd.f32 %v725_v27, %v636_v26 }
  0xe5   : > { %894 = vst [vmem:[%s1375_s7 + $0x38] sm:$0xff] %v726_v28 }
  0xe7   : > { %v676_v29 = vpop.f32.mrf.mxu2 }
  0xe8   : > { %v765_v30 = vpop.f32.mrf.mxu3 }
  0xe9   : > { %v766_v31 = vadd.f32 %v765_v30, %v676_v29  ;;  %v639_v32 = vpop.f32.mrf.mxu0 }
  0xea   : > { %v728_v33 = vpop.f32.mrf.mxu1 }
  0xeb   : > { %910 = vst [vmem:[%s1375_s7 + $0xb8] sm:$0xff] %v766_v31  ;;  %v729_v34 = vadd.f32 %v728_v33, %v639_v32 }
  0xed   : > { %895 = vst [vmem:[%s1375_s7 + $0x40] sm:$0xff] %v729_v34 }
  0xef   : > { %v679_v35 = vpop.f32.mrf.mxu2 }
  0xf0   : > { %v768_v36 = vpop.f32.mrf.mxu3 }
  0xf1   : > { %v769_v37 = vadd.f32 %v768_v36, %v679_v35  ;;  %v641_v38 = vpop.f32.mrf.mxu0 }
  0xf2   : > { %v730_v39 = vpop.f32.mrf.mxu1 }
  0xf3   : > { %911 = vst [vmem:[%s1375_s7 + $0xc0] sm:$0xff] %v769_v37  ;;  %v731_v40 = vadd.f32 %v730_v39, %v641_v38 }
  0xf5   : > { %896 = vst [vmem:[%s1375_s7 + $0x48] sm:$0xff] %v731_v40 }
  0xf7   : > { %v681_v41 = vpop.f32.mrf.mxu2 }
  0xf8   : > { %v770_v42 = vpop.f32.mrf.mxu3 }
  0xf9   : > { %v771_v43 = vadd.f32 %v770_v42, %v681_v41  ;;  %v644_v44 = vpop.f32.mrf.mxu0 }
  0xfa   : > { %v733_v45 = vpop.f32.mrf.mxu1 }
  0xfb   : > { %912 = vst [vmem:[%s1375_s7 + $0xc8] sm:$0xff] %v771_v43  ;;  %v734_v46 = vadd.f32 %v733_v45, %v644_v44 }
  0xfd   : > { %897 = vst [vmem:[%s1375_s7 + $0x50] sm:$0xff] %v734_v46 }
  0xff   : > { %v684_v47 = vpop.f32.mrf.mxu2 }
 0x100   : > { %v773_v48 = vpop.f32.mrf.mxu3 }
 0x101   : > { %v774_v49 = vadd.f32 %v773_v48, %v684_v47  ;;  %v646_v50 = vpop.f32.mrf.mxu0 }
 0x102   : > { %v735_v51 = vpop.f32.mrf.mxu1 }
 0x103   : > { %913 = vst [vmem:[%s1375_s7 + $0xd0] sm:$0xff] %v774_v49  ;;  %v736_v52 = vadd.f32 %v735_v51, %v646_v50 }
 0x105   : > { %898 = vst [vmem:[%s1375_s7 + $0x58] sm:$0xff] %v736_v52 }
 0x107   : > { %v686_v53 = vpop.f32.mrf.mxu2 }
 0x108   : > { %v775_v54 = vpop.f32.mrf.mxu3 }
 0x109   : > { %v776_v55 = vadd.f32 %v775_v54, %v686_v53  ;;  %v649_v56 = vpop.f32.mrf.mxu0 }
 0x10a   : > { %v738_v57 = vpop.f32.mrf.mxu1 }
 0x10b   : > { %914 = vst [vmem:[%s1375_s7 + $0xd8] sm:$0xff] %v776_v55  ;;  %v739_v58 = vadd.f32 %v738_v57, %v649_v56 }
 0x10d   : > { %899 = vst [vmem:[%s1375_s7 + $0x60] sm:$0xff] %v739_v58 }
 0x10f   : > { %v689_v59 = vpop.f32.mrf.mxu2 }
 0x110   : > { %v778_v60 = vpop.f32.mrf.mxu3 }
 0x111   : > { %v779_v61 = vadd.f32 %v778_v60, %v689_v59  ;;  %v651_v62 = vpop.f32.mrf.mxu0 }
 0x112   : > { %v740_v63 = vpop.f32.mrf.mxu1 }
 0x113   : > { %915 = vst [vmem:[%s1375_s7 + $0xe0] sm:$0xff] %v779_v61  ;;  %v741_v0 = vadd.f32 %v740_v63, %v651_v62 }
 0x115   : > { %900 = vst [vmem:[%s1375_s7 + $0x68] sm:$0xff] %v741_v0 }
 0x117   : > { %v691_v1 = vpop.f32.mrf.mxu2 }
 0x118   : > { %v780_v2 = vpop.f32.mrf.mxu3 }
 0x119   : > { %v781_v3 = vadd.f32 %v780_v2, %v691_v1  ;;  %v654_v4 = vpop.f32.mrf.mxu0 }
 0x11a   : > { %v743_v5 = vpop.f32.mrf.mxu1 }
 0x11b   : > { %916 = vst [vmem:[%s1375_s7 + $0xe8] sm:$0xff] %v781_v3  ;;  %v744_v6 = vadd.f32 %v743_v5, %v654_v4 }
 0x11d   : > { %901 = vst [vmem:[%s1375_s7 + $0x70] sm:$0xff] %v744_v6 }
 0x11f   : > { %v694_v7 = vpop.f32.mrf.mxu2 }
 0x120   : > { %v783_v8 = vpop.f32.mrf.mxu3 }
 0x121   : > { %v784_v9 = vadd.f32 %v783_v8, %v694_v7  ;;  %v656_v10 = vpop.f32.mrf.mxu0 }
 0x122   : > { %v745_v11 = vpop.f32.mrf.mxu1 }
 0x123   : > { %917 = vst [vmem:[%s1375_s7 + $0xf0] sm:$0xff] %v784_v9  ;;  %v746_v12 = vadd.f32 %v745_v11, %v656_v10 }
 0x125   : > { %902 = vst [vmem:[%s1375_s7 + $0x78] sm:$0xff] %v746_v12 }
 0x127   : > { %v696_v13 = vpop.f32.mrf.mxu2 }
 0x128   : > { %v785_v14 = vpop.f32.mrf.mxu3 }
 0x129   : > { %v786_v15 = vadd.f32 %v785_v14, %v696_v13 }
 0x12b   : > { %918 = vst [vmem:[%s1375_s7 + $0xf8] sm:$0xff] %v786_v15 }
 0x12c PF: > { %s14_s17 = sadd.s32 1, %s1203_s17   ;;  %s1423_s15 = smov %s1199_s16 }
 0x12d   : > { %p11_p5 = scmp.ge.s32.totalorder %s14_s17, 4   ;;  %s1424_s16 = smov %s1426_s0 }
 0x12f   :  { %13 = sbr.rel (!%p11_p5) target bundleno = 2 (0x2), region = 83 }

// kernel: _lambda_.27
= control target key start
LH: loop header
LB: loop body
LE: loop exit
PB: predicated region body
PF: predicated region fallthrough
CT: control target
= control target key end

     0   :  { %s447_s12 = smov 0   ;;  %s606_s0 = inlined_call_operand.vmem [shape: f32[512,128], index: 0, kind: input, shape index: {}]   ;;  %s607_s1 = inlined_call_operand.vmem [shape: f32[1,128], index: 1, kind: input, shape index: {}]   ;;  %s608_s2 = inlined_call_operand.vmem [shape: f32[1,128], index: 2, kind: input, shape index: {}]   ;;  %s609_s3 = inlined_call_operand.vmem [shape: f32[512,128], index: 3, kind: output, shape index: {}]  }
   0x1 LB: > { %s398_s13 = sadd.s32 4294967295, %s425_s12   ;;  %p402_p0 = scmp.ge.s32.totalorder %s425_s12, 1  ;;  %s425_s12 = sphi %s447_s12, %s13_s12  }
   0x2   : > { %p138_p1 = scmp.lt.s32.totalorder %s425_s12, 3 }
   0x4   : > { %p139_p2 = pnand %p402_p0, %p138_p1 }
   0x5   : > { %s403_s14 = sshll.u32 (!%p139_p2), %s398_s13, 5 }
   0x6   : > { %142 = sbr.rel (%p139_p2) target bundleno = 53 (0x35), region = 32  ;;  %p163_p3 = scmp.lt.s32.totalorder (!%p139_p2), %s403_s14, 63 }
   0xb   : > { %s611_s14 = smov (!%p163_p3, %s403_s14), 63  ;;  %v458_v0 = vld [vmem:[%s607_s1] ss:$0 sm:$0xff] }
   0xc   : > { %s404_s17 = sshll.u32 %s611_s14, 3  ;;  %v468_v1 = vld [vmem:[%s608_s2] ss:$0 sm:$0xff] }
   0xd   : > { %s463_s20 = scalar_lea.vmem %s606_s0, %s404_s17  ;;  %s491_s25 = scalar_lea.vmem %s609_s3, %s404_s17 }
   0xe   : > { %v174_v2 = vld [vmem:[%s463_s20] sm:$0xff]  ;;  %v175_v3 = vld [vmem:[%s463_s20 + $0x8] sm:$0xff]  ;;  %v176_v4 = vld [vmem:[%s463_s20 + $0x10] sm:$0xff] }
   0xf   : > { %v210_v5 = vmul.f32 %v458_v0, %v174_v2  ;;  %v211_v6 = vmul.f32 %v458_v0, %v175_v3  ;;  %v212_v7 = vmul.f32 %v458_v0, %v176_v4  ;;  %v177_v8 = vld [vmem:[%s463_s20 + $0x18] sm:$0xff]  ;;  %v178_v9 = vld [vmem:[%s463_s20 + $0x20] sm:$0xff]  ;;  %v179_v10 = vld [vmem:[%s463_s20 + $0x28] sm:$0xff] }
  0x10   : > { %v213_v11 = vmul.f32 %v458_v0, %v177_v8  ;;  %v214_v12 = vmul.f32 %v458_v0, %v178_v9  ;;  %v215_v13 = vmul.f32 %v458_v0, %v179_v10  ;;  %v180_v14 = vld [vmem:[%s463_s20 + $0x30] sm:$0xff]  ;;  %v181_v15 = vld [vmem:[%s463_s20 + $0x38] sm:$0xff]  ;;  %v182_v24 = vld [vmem:[%s463_s20 + $0x40] sm:$0xff] }
  0x11   : > { %v246_v16 = vadd.f32 %v468_v1, %v210_v5  ;;  %v247_v17 = vadd.f32 %v468_v1, %v211_v6  ;;  %v248_v18 = vadd.f32 %v468_v1, %v212_v7  ;;  %v216_v19 = vmul.f32 %v458_v0, %v180_v14  ;;  %v183_v25 = vld [vmem:[%s463_s20 + $0x48] sm:$0xff]  ;;  %v184_v26 = vld [vmem:[%s463_s20 + $0x50] sm:$0xff]  ;;  %v185_v31 = vld [vmem:[%s463_s20 + $0x58] sm:$0xff] }
  0x12   : > { %v249_v20 = vadd.f32 %v468_v1, %v213_v11  ;;  %v250_v21 = vadd.f32 %v468_v1, %v214_v12  ;;  %v251_v22 = vadd.f32 %v468_v1, %v215_v13  ;;  %v217_v23 = vmul.f32 %v458_v0, %v181_v15  ;;  %v186_v32 = vld [vmem:[%s463_s20 + $0x60] sm:$0xff]  ;;  %v187_v33 = vld [vmem:[%s463_s20 + $0x68] sm:$0xff]  ;;  %v188_v37 = vld [vmem:[%s463_s20 + $0x70] sm:$0xff] }
  0x13   : > { %v278_v27 = vmax.f32 %v246_v16, 0.0  ;;  %v279_v28 = vmax.f32 %v247_v17, 0.0  ;;  %v280_v29 = vmax.f32 %v248_v18, 0.0  ;;  %v252_v30 = vadd.f32 %v468_v1, %v216_v19  ;;  %v189_v42 = vld [vmem:[%s463_s20 + $0x78] sm:$0xff]  ;;  %v190_v54 = vld [vmem:[%s463_s20 + $0x80] sm:$0xff]  ;;  %v191_v55 = vld [vmem:[%s463_s20 + $0x88] sm:$0xff] }
  0x14   : > { %v281_v34 = vmax.f32 %v249_v20, 0.0  ;;  %v282_v35 = vmax.f32 %v250_v21, 0.0  ;;  %v253_v36 = vadd.f32 %v468_v1, %v217_v23  ;;  %v283_v38 = vmax.f32 %v251_v22, 0.0  ;;  %v192_v56 = vld [vmem:[%s463_s20 + $0x90] sm:$0xff]  ;;  %v193_v59 = vld [vmem:[%s463_s20 + $0x98] sm:$0xff]  ;;  %v194_v63 = vld [vmem:[%s463_s20 + $0xa0] sm:$0xff] }
  0x15   : > { %310 = vst [vmem:[%s491_s25] sm:$0xff] %v278_v27  ;;  %v218_v39 = vmul.f32 %v458_v0, %v182_v24  ;;  %v219_v40 = vmul.f32 %v458_v0, %v183_v25  ;;  %v220_v41 = vmul.f32 %v458_v0, %v184_v26  ;;  %v284_v43 = vmax.f32 %v252_v30, 0.0  ;;  %v195_v6 = vld [vmem:[%s463_s20 + $0xa8] sm:$0xff]  ;;  %v196_v10 = vld [vmem:[%s463_s20 + $0xb0] sm:$0xff]  ;;  %v197_v14 = vld [vmem:[%s463_s20 + $0xb8] sm:$0xff] }
  0x16   : > { %311 = vst [vmem:[%s491_s25 + $0x8] sm:$0xff] %v279_v28  ;;  %v221_v44 = vmul.f32 %v458_v0, %v185_v31  ;;  %v222_v45 = vmul.f32 %v458_v0, %v186_v32  ;;  %v223_v46 = vmul.f32 %v458_v0, %v187_v33  ;;  %v224_v50 = vmul.f32 %v458_v0, %v188_v37  ;;  %v198_v18 = vld [vmem:[%s463_s20 + $0xc0] sm:$0xff]  ;;  %v199_v22 = vld [vmem:[%s463_s20 + $0xc8] sm:$0xff]  ;;  %v200_v26 = vld [vmem:[%s463_s20 + $0xd0] sm:$0xff] }
  0x17   : > { %312 = vst [vmem:[%s491_s25 + $0x10] sm:$0xff] %v280_v29  ;;  %v254_v47 = vadd.f32 %v468_v1, %v218_v39  ;;  %v255_v48 = vadd.f32 %v468_v1, %v219_v40  ;;  %v256_v49 = vadd.f32 %v468_v1, %v220_v41  ;;  %v285_v51 = vmax.f32 %v253_v36, 0.0  ;;  %v201_v30 = vld [vmem:[%s463_s20 + $0xd8] sm:$0xff] }
  0x18   : > { %313 = vst [vmem:[%s491_s25 + $0x18] sm:$0xff] %v281_v34  ;;  %v257_v52 = vadd.f32 %v468_v1, %v221_v44  ;;  %v225_v53 = vmul.f32 %v458_v0, %v189_v42  ;;  %v258_v58 = vadd.f32 %v468_v1, %v222_v45  ;;  %v259_v62 = vadd.f32 %v468_v1, %v223_v46  ;;  %v202_v34 = vld [vmem:[%s463_s20 + $0xe0] sm:$0xff]  ;;  %v204_v42 = vld [vmem:[%s463_s20 + $0xf0] sm:$0xff]  ;;  %v205_v46 = vld [vmem:[%s463_s20 + $0xf8] sm:$0xff] }
  0x19   : > { %314 = vst [vmem:[%s491_s25 + $0x20] sm:$0xff] %v282_v35  ;;  %v286_v57 = vmax.f32 %v254_v47, 0.0  ;;  %v287_v60 = vmax.f32 %v255_v48, 0.0  ;;  %v288_v61 = vmax.f32 %v256_v49, 0.0  ;;  %v260_v2 = vadd.f32 %v468_v1, %v224_v50 }
  0x1a   : > { %315 = vst [vmem:[%s491_s25 + $0x28] sm:$0xff] %v283_v38  ;;  %v226_v3 = vmul.f32 %v458_v0, %v190_v54  ;;  %v227_v4 = vmul.f32 %v458_v0, %v191_v55  ;;  %v228_v5 = vmul.f32 %v458_v0, %v192_v56  ;;  %v289_v7 = vmax.f32 %v257_v52, 0.0  ;;  %v203_v38 = vld [vmem:[%s463_s20 + $0xe8] sm:$0xff] }
  0x1b   : > { %316 = vst [vmem:[%s491_s25 + $0x30] sm:$0xff] %v284_v43  ;;  %v261_v8 = vadd.f32 %v468_v1, %v225_v53  ;;  %v229_v9 = vmul.f32 %v458_v0, %v193_v59  ;;  %v290_v11 = vmax.f32 %v258_v58, 0.0  ;;  %v230_v13 = vmul.f32 %v458_v0, %v194_v63 }
  0x1c   : > { %317 = vst [vmem:[%s491_s25 + $0x38] sm:$0xff] %v285_v51  ;;  %v262_v12 = vadd.f32 %v468_v1, %v226_v3  ;;  %v291_v15 = vmax.f32 %v259_v62, 0.0  ;;  %v263_v16 = vadd.f32 %v468_v1, %v227_v4  ;;  %v231_v17 = vmul.f32 %v458_v0, %v195_v6 }
  0x1d   : > { %318 = vst [vmem:[%s491_s25 + $0x40] sm:$0xff] %v286_v57  ;;  %v292_v19 = vmax.f32 %v260_v2, 0.0  ;;  %v264_v20 = vadd.f32 %v468_v1, %v228_v5  ;;  %v232_v21 = vmul.f32 %v458_v0, %v196_v10  ;;  %v293_v23 = vmax.f32 %v261_v8, 0.0 }
  0x1e   : > { %319 = vst [vmem:[%s491_s25 + $0x48] sm:$0xff] %v287_v60  ;;  %v265_v24 = vadd.f32 %v468_v1, %v229_v9  ;;  %v233_v25 = vmul.f32 %v458_v0, %v197_v14  ;;  %v294_v27 = vmax.f32 %v262_v12, 0.0  ;;  %v266_v28 = vadd.f32 %v468_v1, %v230_v13 }
  0x1f   : > { %320 = vst [vmem:[%s491_s25 + $0x50] sm:$0xff] %v288_v61  ;;  %v234_v29 = vmul.f32 %v458_v0, %v198_v18  ;;  %v295_v31 = vmax.f32 %v263_v16, 0.0  ;;  %v267_v32 = vadd.f32 %v468_v1, %v231_v17  ;;  %v235_v33 = vmul.f32 %v458_v0, %v199_v22 }
  0x20   : > { %321 = vst [vmem:[%s491_s25 + $0x58] sm:$0xff] %v289_v7  ;;  %v296_v35 = vmax.f32 %v264_v20, 0.0  ;;  %v268_v36 = vadd.f32 %v468_v1, %v232_v21  ;;  %v236_v37 = vmul.f32 %v458_v0, %v200_v26  ;;  %v297_v39 = vmax.f32 %v265_v24, 0.0 }
  0x21   : > { %322 = vst [vmem:[%s491_s25 + $0x60] sm:$0xff] %v290_v11  ;;  %v269_v40 = vadd.f32 %v468_v1, %v233_v25  ;;  %v237_v41 = vmul.f32 %v458_v0, %v201_v30  ;;  %v298_v43 = vmax.f32 %v266_v28, 0.0  ;;  %v270_v44 = vadd.f32 %v468_v1, %v234_v29 }
  0x22   : > { %323 = vst [vmem:[%s491_s25 + $0x68] sm:$0xff] %v291_v15  ;;  %v238_v45 = vmul.f32 %v458_v0, %v202_v34  ;;  %v299_v47 = vmax.f32 %v267_v32, 0.0  ;;  %v271_v48 = vadd.f32 %v468_v1, %v235_v33  ;;  %v239_v49 = vmul.f32 %v458_v0, %v203_v38 }
  0x23   : > { %324 = vst [vmem:[%s491_s25 + $0x70] sm:$0xff] %v292_v19  ;;  %v300_v50 = vmax.f32 %v268_v36, 0.0  ;;  %v272_v51 = vadd.f32 %v468_v1, %v236_v37  ;;  %v240_v52 = vmul.f32 %v458_v0, %v204_v42  ;;  %v301_v53 = vmax.f32 %v269_v40, 0.0 }
  0x24   : > { %325 = vst [vmem:[%s491_s25 + $0x78] sm:$0xff] %v293_v23  ;;  %v273_v54 = vadd.f32 %v468_v1, %v237_v41  ;;  %v241_v55 = vmul.f32 %v458_v0, %v205_v46  ;;  %v302_v56 = vmax.f32 %v270_v44, 0.0  ;;  %v274_v57 = vadd.f32 %v468_v1, %v238_v45 }
  0x25   : > { %326 = vst [vmem:[%s491_s25 + $0x80] sm:$0xff] %v294_v27  ;;  %v303_v58 = vmax.f32 %v271_v48, 0.0  ;;  %v275_v59 = vadd.f32 %v468_v1, %v239_v49  ;;  %v304_v60 = vmax.f32 %v272_v51, 0.0  ;;  %v276_v61 = vadd.f32 %v468_v1, %v240_v52 }
  0x26   : > { %327 = vst [vmem:[%s491_s25 + $0x88] sm:$0xff] %v295_v31  ;;  %v305_v0 = vmax.f32 %v273_v54, 0.0  ;;  %v277_v62 = vadd.f32 %v468_v1, %v241_v55  ;;  %v306_v63 = vmax.f32 %v274_v57, 0.0 }
  0x27   : > { %328 = vst [vmem:[%s491_s25 + $0x90] sm:$0xff] %v296_v35  ;;  %v307_v2 = vmax.f32 %v275_v59, 0.0  ;;  %v308_v3 = vmax.f32 %v276_v61, 0.0 }
  0x28   : > { %329 = vst [vmem:[%s491_s25 + $0x98] sm:$0xff] %v297_v39  ;;  %v309_v4 = vmax.f32 %v277_v62, 0.0 }
  0x29   : > { %330 = vst [vmem:[%s491_s25 + $0xa0] sm:$0xff] %v298_v43 }
  0x2a   : > { %331 = vst [vmem:[%s491_s25 + $0xa8] sm:$0xff] %v299_v47 }
  0x2b   : > { %332 = vst [vmem:[%s491_s25 + $0xb0] sm:$0xff] %v300_v50 }
  0x2c   : > { %333 = vst [vmem:[%s491_s25 + $0xb8] sm:$0xff] %v301_v53 }
  0x2d   : > { %334 = vst [vmem:[%s491_s25 + $0xc0] sm:$0xff] %v302_v56 }
  0x2e   : > { %335 = vst [vmem:[%s491_s25 + $0xc8] sm:$0xff] %v303_v58 }
  0x2f   : > { %336 = vst [vmem:[%s491_s25 + $0xd0] sm:$0xff] %v304_v60 }
  0x30   : > { %337 = vst [vmem:[%s491_s25 + $0xd8] sm:$0xff] %v305_v0 }
  0x31   : > { %338 = vst [vmem:[%s491_s25 + $0xe0] sm:$0xff] %v306_v63 }
  0x32   : > { %339 = vst [vmem:[%s491_s25 + $0xe8] sm:$0xff] %v307_v2 }
  0x33   : > { %340 = vst [vmem:[%s491_s25 + $0xf0] sm:$0xff] %v308_v3 }
  0x34   : > { %341 = vst [vmem:[%s491_s25 + $0xf8] sm:$0xff] %v309_v4 }
  0x35 PF: > { %s13_s12 = sadd.s32 1, %s425_s12  }
  0x36   : > { %p10_p4 = scmp.ge.s32.totalorder %s13_s12, 4  }
  0x38   :  { %12 = sbr.rel (!%p10_p4) target bundleno = 1 (0x1), region = 62 }

// kernel: _lambda_.29
= control target key start
LH: loop header
LB: loop body
LE: loop exit
PB: predicated region body
PF: predicated region fallthrough
CT: control target
= control target key end

     0   :  { %v105_v0 = vmov 0.0   ;;  %s187_s1 = inlined_call_operand.vmem [shape: f32[1,128], index: 1, kind: output, shape index: {0}]   ;;  %s188_s2 = inlined_call_operand.vmem [shape: f32[1,128], index: 2, kind: output, shape index: {1}]   ;;  %s189_s0 = inlined_call_operand.vmem [shape: f32[128,128], index: 0, kind: input, shape index: {}]  }
   0x1   :  { %14 = vst [vmem:[%s187_s1] sm:$0x1] %v105_v0  ;;  %v16_v1 = vld [vmem:[%s189_s0] sm:$0xff]  ;;  %v17_v2 = vld [vmem:[%s189_s0 + $0x8] sm:$0xff]  ;;  %v18_v3 = vld [vmem:[%s189_s0 + $0x10] sm:$0xff] }
   0x2   :  { %15 = vst [vmem:[%s188_s2] sm:$0x1] %v105_v0  ;;  %v19_v4 = vld [vmem:[%s189_s0 + $0x18] sm:$0xff]  ;;  %v33_v5 = vadd.f32 %v17_v2, %v16_v1  ;;  %v57_v6 = vmul.f32 %v16_v1, %v16_v1  ;;  %v58_v7 = vmul.f32 %v17_v2, %v17_v2  ;;  %v59_v8 = vmul.f32 %v18_v3, %v18_v3  ;;  %v20_v9 = vld [vmem:[%s189_s0 + $0x20] sm:$0xff]  ;;  %v21_v13 = vld [vmem:[%s189_s0 + $0x28] sm:$0xff] }
   0x3   :  { %v60_v11 = vmul.f32 %v19_v4, %v19_v4  ;;  %v61_v15 = vmul.f32 %v20_v9, %v20_v9  ;;  %v22_v17 = vld [vmem:[%s189_s0 + $0x30] sm:$0xff]  ;;  %v62_v19 = vmul.f32 %v21_v13, %v21_v13  ;;  %v23_v21 = vld [vmem:[%s189_s0 + $0x38] sm:$0xff]  ;;  %v24_v25 = vld [vmem:[%s189_s0 + $0x40] sm:$0xff] }
   0x4   :  { %v34_v10 = vadd.f32 %v33_v5, %v18_v3  ;;  %v73_v12 = vadd.f32 %v58_v7, %v57_v6  ;;  %v63_v23 = vmul.f32 %v22_v17, %v22_v17  ;;  %v64_v27 = vmul.f32 %v23_v21, %v23_v21  ;;  %v25_v29 = vld [vmem:[%s189_s0 + $0x48] sm:$0xff]  ;;  %v26_v33 = vld [vmem:[%s189_s0 + $0x50] sm:$0xff]  ;;  %v27_v37 = vld [vmem:[%s189_s0 + $0x58] sm:$0xff] }
   0x5   :  { %v65_v31 = vmul.f32 %v24_v25, %v24_v25  ;;  %v66_v35 = vmul.f32 %v25_v29, %v25_v29  ;;  %v67_v39 = vmul.f32 %v26_v33, %v26_v33  ;;  %v28_v41 = vld [vmem:[%s189_s0 + $0x60] sm:$0xff]  ;;  %v68_v43 = vmul.f32 %v27_v37, %v27_v37  ;;  %v29_v45 = vld [vmem:[%s189_s0 + $0x68] sm:$0xff]  ;;  %v30_v49 = vld [vmem:[%s189_s0 + $0x70] sm:$0xff] }
   0x6   :  { %v35_v14 = vadd.f32 %v34_v10, %v19_v4  ;;  %v74_v16 = vadd.f32 %v73_v12, %v59_v8  ;;  %v69_v47 = vmul.f32 %v28_v41, %v28_v41  ;;  %v70_v51 = vmul.f32 %v29_v45, %v29_v45  ;;  %v31_v53 = vld [vmem:[%s189_s0 + $0x78] sm:$0xff] }
   0x7   :  { %v71_v55 = vmul.f32 %v30_v49, %v30_v49  ;;  %v72_v58 = vmul.f32 %v31_v53, %v31_v53 }
   0x8   :  { %v36_v18 = vadd.f32 %v35_v14, %v20_v9  ;;  %v75_v20 = vadd.f32 %v74_v16, %v60_v11  ;;  %v32_v7 = vld [vmem:[%s187_s1] sm:$0x1] }
   0x9   :  { %v56_v12 = vld [vmem:[%s188_s2] sm:$0x1] }
   0xa   :  { %v37_v22 = vadd.f32 %v36_v18, %v21_v13  ;;  %v76_v24 = vadd.f32 %v75_v20, %v61_v15 }
   0xc   :  { %v38_v26 = vadd.f32 %v37_v22, %v22_v17  ;;  %v77_v28 = vadd.f32 %v76_v24, %v62_v19 }
   0xe   :  { %v39_v30 = vadd.f32 %v38_v26, %v23_v21  ;;  %v78_v32 = vadd.f32 %v77_v28, %v63_v23 }
  0x10   :  { %v40_v34 = vadd.f32 %v39_v30, %v24_v25  ;;  %v79_v36 = vadd.f32 %v78_v32, %v64_v27 }
  0x12   :  { %v41_v38 = vadd.f32 %v40_v34, %v25_v29  ;;  %v80_v40 = vadd.f32 %v79_v36, %v65_v31 }
  0x14   :  { %v42_v42 = vadd.f32 %v41_v38, %v26_v33  ;;  %v81_v44 = vadd.f32 %v80_v40, %v66_v35 }
  0x16   :  { %v43_v46 = vadd.f32 %v42_v42, %v27_v37  ;;  %v82_v48 = vadd.f32 %v81_v44, %v67_v39 }
  0x18   :  { %v44_v50 = vadd.f32 %v43_v46, %v28_v41  ;;  %v83_v52 = vadd.f32 %v82_v48, %v68_v43 }
  0x1a   :  { %v45_v54 = vadd.f32 %v44_v50, %v29_v45  ;;  %v84_v56 = vadd.f32 %v83_v52, %v69_v47 }
  0x1c   :  { %v46_v57 = vadd.f32 %v45_v54, %v30_v49  ;;  %v85_v59 = vadd.f32 %v84_v56, %v70_v51 }
  0x1e   :  { %v47_v60 = vadd.f32 %v46_v57, %v31_v53  ;;  %v86_v61 = vadd.f32 %v85_v59, %v71_v55 }
  0x20   :  { %v48_v62 = vrot.slane %v47_v60, 4  ;;  %v87_v63 = vadd.f32 %v86_v61, %v72_v58 }
  0x22   :  { %v49_v0 = vadd.f32 %v48_v62, %v47_v60  ;;  %v88_v1 = vrot.slane %v87_v63, 4 }
  0x24   :  { %v50_v2 = vrot.slane %v49_v0, 2  ;;  %v89_v3 = vadd.f32 %v88_v1, %v87_v63 }
  0x26   :  { %v51_v4 = vadd.f32 %v50_v2, %v49_v0  ;;  %v90_v5 = vrot.slane %v89_v3, 2 }
  0x28   :  { %v52_v6 = vrot.slane %v51_v4, 1  ;;  %v91_v8 = vadd.f32 %v90_v5, %v89_v3 }
  0x2a   :  { %v53_v9 = vadd.f32 %v52_v6, %v51_v4  ;;  %v92_v10 = vrot.slane %v91_v8, 1 }
  0x2c   :  { %v54_v11 = vadd.f32 %v53_v9, %v32_v7  ;;  %v93_v13 = vadd.f32 %v92_v10, %v91_v8 }
  0x2e   :  { %55 = vst [vmem:[%s187_s1] sm:$0x1] %v54_v11  ;;  %v94_v14 = vadd.f32 %v93_v13, %v56_v12 }
  0x30   :  { %95 = vst [vmem:[%s188_s2] sm:$0x1] %v94_v14 }

// kernel: _lambda_.30
= control target key start
LH: loop header
LB: loop body
LE: loop exit
PB: predicated region body
PF: predicated region fallthrough
CT: control target
= control target key end

     0   :  { %s570_s3 = inlined_call_operand.vmem [shape: bf16[128,128], index: 3, kind: input, shape index: {}]   ;;  %s571_s0 = inlined_call_operand.vmem [shape: f32[1,128], index: 0, kind: input, shape index: {}]   ;;  %s572_s1 = inlined_call_operand.vmem [shape: f32[1,128], index: 1, kind: input, shape index: {}]   ;;  %s573_s2 = inlined_call_operand.vmem [shape: f32[128,128], index: 2, kind: input, shape index: {}]   ;;  %s574_s4 = inlined_call_operand.vmem [shape: f32[128,128], index: 4, kind: output, shape index: {}]  }
   0x1   :  { %v356_v0 = vld [vmem:[%s570_s3 + $0x38] sm:$0xff]  ;;  %v355_v1 = vld [vmem:[%s570_s3 + $0x30] sm:$0xff]  ;;  %v354_v2 = vld [vmem:[%s570_s3 + $0x28] sm:$0xff] }
   0x2   :  { %197 = vmatpush.bf16.msra.mxu0 %v356_v0  ;;  %357 = vmatpush.bf16.msra.mxu1 %v356_v0  ;;  %v353_v3 = vld [vmem:[%s570_s3 + $0x20] sm:$0xff]  ;;  %v352_v5 = vld [vmem:[%s570_s3 + $0x18] sm:$0xff]  ;;  %v38_v7 = vld [vmem:[%s573_s2 + $0x8] sm:$0xff] }
   0x3   :  { %358 = vmatpush.bf16.msra.mxu2 %v356_v0  ;;  %359 = vmatpush.bf16.msra.mxu3 %v356_v0  ;;  %v423_v4 = vld [vmem:[%s571_s0] ss:$0 sm:$0xff]  ;;  %v42_v9 = vld [vmem:[%s573_s2 + $0x28] sm:$0xff]  ;;  %v351_v20 = vld [vmem:[%s570_s3 + $0x10] sm:$0xff] }
   0x4   :  { %v37_v6 = vld [vmem:[%s573_s2] sm:$0xff]  ;;  %v46_v11 = vld [vmem:[%s573_s2 + $0x48] sm:$0xff]  ;;  %v58_v16 = vmul.f32 %v423_v4, %v38_v7  ;;  %v62_v18 = vmul.f32 %v423_v4, %v42_v9  ;;  %v39_v44 = vld [vmem:[%s573_s2 + $0x10] sm:$0xff] }
   0x5   :  { %v41_v8 = vld [vmem:[%s573_s2 + $0x20] sm:$0xff]  ;;  %v50_v13 = vld [vmem:[%s573_s2 + $0x68] sm:$0xff]  ;;  %v57_v14 = vmul.f32 %v423_v4, %v37_v6  ;;  %v66_v21 = vmul.f32 %v423_v4, %v46_v11  ;;  %v40_v45 = vld [vmem:[%s573_s2 + $0x18] sm:$0xff]  ;;  %v59_v54 = vmul.f32 %v423_v4, %v39_v44 }
   0x6   :  { %198 = vmatpush.bf16.msra.mxu0 %v355_v1  ;;  %360 = vmatpush.bf16.msra.mxu1 %v355_v1  ;;  %v45_v10 = vld [vmem:[%s573_s2 + $0x40] sm:$0xff]  ;;  %v61_v17 = vmul.f32 %v423_v4, %v41_v8  ;;  %v70_v23 = vmul.f32 %v423_v4, %v50_v13  ;;  %v350_v29 = vld [vmem:[%s570_s3 + $0x8] sm:$0xff]  ;;  %v43_v48 = vld [vmem:[%s573_s2 + $0x30] sm:$0xff]  ;;  %v60_v55 = vmul.f32 %v423_v4, %v40_v45 }
   0x7   :  { %361 = vmatpush.bf16.msra.mxu2 %v355_v1  ;;  %362 = vmatpush.bf16.msra.mxu3 %v355_v1  ;;  %v49_v12 = vld [vmem:[%s573_s2 + $0x60] sm:$0xff]  ;;  %v65_v19 = vmul.f32 %v423_v4, %v45_v10  ;;  %v44_v49 = vld [vmem:[%s573_s2 + $0x38] sm:$0xff]  ;;  %v47_v50 = vld [vmem:[%s573_s2 + $0x50] sm:$0xff]  ;;  %v63_v56 = vmul.f32 %v423_v4, %v43_v48 }
   0x8   :  { %v456_v15 = vld [vmem:[%s572_s1] ss:$0 sm:$0xff]  ;;  %v69_v22 = vmul.f32 %v423_v4, %v49_v12  ;;  %v48_v51 = vld [vmem:[%s573_s2 + $0x58] sm:$0xff]  ;;  %v51_v52 = vld [vmem:[%s573_s2 + $0x70] sm:$0xff]  ;;  %v64_v57 = vmul.f32 %v423_v4, %v44_v49  ;;  %v67_v58 = vmul.f32 %v423_v4, %v47_v50 }
   0x9   :  { %v77_v24 = vadd.f32 %v456_v15, %v57_v14  ;;  %v78_v25 = vadd.f32 %v456_v15, %v58_v16  ;;  %v81_v26 = vadd.f32 %v456_v15, %v61_v17  ;;  %v82_v27 = vadd.f32 %v456_v15, %v62_v18  ;;  %v349_v37 = vld [vmem:[%s570_s3] sm:$0xff]  ;;  %v52_v53 = vld [vmem:[%s573_s2 + $0x78] sm:$0xff] }
   0xa   :  { %199 = vmatpush.bf16.msra.mxu0 %v354_v2  ;;  %363 = vmatpush.bf16.msra.mxu1 %v354_v2  ;;  %v85_v28 = vadd.f32 %v456_v15, %v65_v19  ;;  %v86_v30 = vadd.f32 %v456_v15, %v66_v21  ;;  %v89_v31 = vadd.f32 %v456_v15, %v69_v22 }
   0xb   :  { %364 = vmatpush.bf16.msra.mxu2 %v354_v2  ;;  %365 = vmatpush.bf16.msra.mxu3 %v354_v2  ;;  %v90_v32 = vadd.f32 %v456_v15, %v70_v23  ;;  %v93_v33 = vmax.f32 %v77_v24, 0.0  ;;  %v94_v34 = vmax.f32 %v78_v25, 0.0  ;;  %v97_v35 = vmax.f32 %v81_v26, 0.0 }
   0xc   :  { %v98_v36 = vmax.f32 %v82_v27, 0.0  ;;  %v101_v38 = vmax.f32 %v85_v28, 0.0  ;;  %v102_v39 = vmax.f32 %v86_v30, 0.0  ;;  %v105_v40 = vmax.f32 %v89_v31, 0.0 }
   0xd   :  { %v106_v41 = vmax.f32 %v90_v32, 0.0  ;;  %v125_v42 = vpack.c.bf16 %v94_v34, %v93_v33  ;;  %v68_v59 = vmul.f32 %v423_v4, %v48_v51  ;;  %v71_v60 = vmul.f32 %v423_v4, %v51_v52 }
   0xe   :  { %200 = vmatpush.bf16.msra.mxu0 %v353_v3  ;;  %366 = vmatpush.bf16.msra.mxu1 %v353_v3  ;;  %v127_v43 = vpack.c.bf16 %v98_v36, %v97_v35  ;;  %v129_v46 = vpack.c.bf16 %v102_v39, %v101_v38  ;;  %v72_v61 = vmul.f32 %v423_v4, %v52_v53 }
   0xf   :  { %367 = vmatpush.bf16.msra.mxu2 %v353_v3  ;;  %368 = vmatpush.bf16.msra.mxu3 %v353_v3  ;;  %v131_v47 = vpack.c.bf16 %v106_v41, %v105_v40  ;;  %v79_v62 = vadd.f32 %v456_v15, %v59_v54  ;;  %v80_v63 = vadd.f32 %v456_v15, %v60_v55 }
  0x10   :  { %v83_v0 = vadd.f32 %v456_v15, %v63_v56  ;;  %v84_v1 = vadd.f32 %v456_v15, %v64_v57  ;;  %v87_v2 = vadd.f32 %v456_v15, %v67_v58  ;;  %v88_v3 = vadd.f32 %v456_v15, %v68_v59 }
  0x11   :  { %v92_v6 = vadd.f32 %v456_v15, %v72_v61  ;;  %v95_v7 = vmax.f32 %v79_v62, 0.0  ;;  %v96_v8 = vmax.f32 %v80_v63, 0.0 }
  0x12   :  { %201 = vmatpush.bf16.msra.mxu0 %v352_v5  ;;  %369 = vmatpush.bf16.msra.mxu1 %v352_v5  ;;  %v99_v9 = vmax.f32 %v83_v0, 0.0  ;;  %v100_v4 = vmax.f32 %v84_v1, 0.0  ;;  %v103_v10 = vmax.f32 %v87_v2, 0.0  ;;  %v104_v11 = vmax.f32 %v88_v3, 0.0 }
  0x13   :  { %370 = vmatpush.bf16.msra.mxu2 %v352_v5  ;;  %371 = vmatpush.bf16.msra.mxu3 %v352_v5  ;;  %v91_v5 = vadd.f32 %v456_v15, %v71_v60  ;;  %v108_v13 = vmax.f32 %v92_v6, 0.0  ;;  %v126_v14 = vpack.c.bf16 %v96_v8, %v95_v7 }
  0x14   :  { %v128_v16 = vpack.c.bf16 %v100_v4, %v99_v9  ;;  %v130_v17 = vpack.c.bf16 %v104_v11, %v103_v10 }
  0x15   :  { %v107_v12 = vmax.f32 %v91_v5, 0.0 }
  0x16   :  { %202 = vmatpush.bf16.msra.mxu0 %v351_v20  ;;  %372 = vmatpush.bf16.msra.mxu1 %v351_v20 }
  0x17   :  { %373 = vmatpush.bf16.msra.mxu2 %v351_v20  ;;  %374 = vmatpush.bf16.msra.mxu3 %v351_v20  ;;  %v132_v18 = vpack.c.bf16 %v108_v13, %v107_v12 }
  0x1a   :  { %203 = vmatpush.bf16.msra.mxu0 %v350_v29  ;;  %375 = vmatpush.bf16.msra.mxu1 %v350_v29 }
  0x1b   :  { %376 = vmatpush.bf16.msra.mxu2 %v350_v29  ;;  %377 = vmatpush.bf16.msra.mxu3 %v350_v29 }
  0x1e   :  { %204 = vmatpush.bf16.msra.mxu0 %v349_v37  ;;  %378 = vmatpush.bf16.msra.mxu1 %v349_v37 }
  0x1f   :  { %379 = vmatpush.bf16.msra.mxu2 %v349_v37  ;;  %380 = vmatpush.bf16.msra.mxu3 %v349_v37 }
  0x21   :  { %205 = vmatmul.bf16.vlgmr.msra.gmra.mxu0 %v125_v42  ;;  %215 = vmatmul.bf16.vlgmr.msra.gmra.mxu1 %v127_v43 }
  0x22   :  { %225 = vmatmul.bf16.vlgmr.msra.gmra.mxu2 %v129_v46  ;;  %235 = vmatmul.bf16.vlgmr.msra.gmra.mxu3 %v131_v47 }
  0x31   :  { %210 = vmatmul.bf16.gmra.mxu0 %v126_v14  ;;  %220 = vmatmul.bf16.gmra.mxu1 %v128_v16 }
  0x32   :  { %230 = vmatmul.bf16.gmra.mxu2 %v130_v17  ;;  %240 = vmatmul.bf16.gmra.mxu3 %v132_v18 }
  0x9e   :  { %v206_v19 = vpop.f32.mrf.mxu0  ;;  %v216_v20 = vpop.f32.mrf.mxu1 }
  0x9f   :  { %297 = vst [vmem:[%s574_s4] sm:$0xff] %v206_v19 }
  0xa0   :  { %301 = vst [vmem:[%s574_s4 + $0x20] sm:$0xff] %v216_v20 }
  0xa5   :  { %v226_v15 = vpop.f32.mrf.mxu2  ;;  %v236_v21 = vpop.f32.mrf.mxu3 }
  0xa6   :  { %305 = vst [vmem:[%s574_s4 + $0x40] sm:$0xff] %v226_v15  ;;  %v208_v22 = vpop.f32.mrf.mxu0  ;;  %v218_v23 = vpop.f32.mrf.mxu1 }
  0xa7   :  { %309 = vst [vmem:[%s574_s4 + $0x60] sm:$0xff] %v236_v21 }
  0xa8   :  { %298 = vst [vmem:[%s574_s4 + $0x8] sm:$0xff] %v208_v22 }
  0xa9   :  { %302 = vst [vmem:[%s574_s4 + $0x28] sm:$0xff] %v218_v23 }
  0xad   :  { %v228_v24 = vpop.f32.mrf.mxu2  ;;  %v238_v25 = vpop.f32.mrf.mxu3 }
  0xae   :  { %306 = vst [vmem:[%s574_s4 + $0x48] sm:$0xff] %v228_v24  ;;  %v211_v26 = vpop.f32.mrf.mxu0  ;;  %v221_v27 = vpop.f32.mrf.mxu1 }
  0xaf   :  { %310 = vst [vmem:[%s574_s4 + $0x68] sm:$0xff] %v238_v25 }
  0xb0   :  { %299 = vst [vmem:[%s574_s4 + $0x10] sm:$0xff] %v211_v26 }
  0xb1   :  { %303 = vst [vmem:[%s574_s4 + $0x30] sm:$0xff] %v221_v27 }
  0xb5   :  { %v231_v28 = vpop.f32.mrf.mxu2  ;;  %v241_v29 = vpop.f32.mrf.mxu3 }
  0xb6   :  { %307 = vst [vmem:[%s574_s4 + $0x50] sm:$0xff] %v231_v28  ;;  %v213_v30 = vpop.f32.mrf.mxu0  ;;  %v223_v31 = vpop.f32.mrf.mxu1 }
  0xb7   :  { %311 = vst [vmem:[%s574_s4 + $0x70] sm:$0xff] %v241_v29 }
  0xb8   :  { %300 = vst [vmem:[%s574_s4 + $0x18] sm:$0xff] %v213_v30 }
  0xb9   :  { %304 = vst [vmem:[%s574_s4 + $0x38] sm:$0xff] %v223_v31 }
  0xbd   :  { %v233_v32 = vpop.f32.mrf.mxu2  ;;  %v243_v33 = vpop.f32.mrf.mxu3 }
  0xbe   :  { %308 = vst [vmem:[%s574_s4 + $0x58] sm:$0xff] %v233_v32 }
  0xbf   :  { %312 = vst [vmem:[%s574_s4 + $0x78] sm:$0xff] %v243_v33 }

// kernel: _lambda_.28
= control target key start
LH: loop header
LB: loop body
LE: loop exit
PB: predicated region body
PF: predicated region fallthrough
CT: control target
= control target key end

     0   :  { %vm2313_vm0 = vcmask 1041409   ;;  %vm2316_vm1 = vcmask 1042434   ;;  %vm2319_vm2 = vcmask 1043459   ;;  %vm2322_vm3 = vcmask 1044484   ;;  %s11197_s0 = inlined_call_operand.vmem [shape: f32[128,9,128], index: 0, kind: input, shape index: {}]   ;;  %s11198_s1 = inlined_call_operand.vmem [shape: f32[128,128], index: 1, kind: output, shape index: {}]  }
   0x1   :  { %v2592_v0 = vld [vmem:[%s11197_s0] sm:$0x1]  ;;  %v2597_v1 = vld [vmem:[%s11197_s0 + $0x1] sm:$0x1]  ;;  %v2602_v2 = vld [vmem:[%s11197_s0 + $0x10] sm:$0x1] }
   0x2   :  { %v2607_v3 = vld [vmem:[%s11197_s0 + $0x20] sm:$0x1]  ;;  %v2612_v4 = vld [vmem:[%s11197_s0 + $0x30] sm:$0x1]  ;;  %v2622_v6 = vld [vmem:[%s11197_s0 + $0x11] sm:$0x1] }
   0x3   :  { %v2617_v5 = vld [vmem:[%s11197_s0 + $0x40] sm:$0x1]  ;;  %v2627_v7 = vld [vmem:[%s11197_s0 + $0x21] sm:$0x1]  ;;  %v2632_v8 = vld [vmem:[%s11197_s0 + $0x31] sm:$0x1] }
   0x4   :  { %v2637_v9 = vld [vmem:[%s11197_s0 + $0x41] sm:$0x1]  ;;  %v2642_v10 = vld [vmem:[%s11197_s0 + $0x50] sm:$0x1]  ;;  %v2647_v11 = vld [vmem:[%s11197_s0 + $0x60] sm:$0x1] }
   0x5   :  { %v2652_v12 = vld [vmem:[%s11197_s0 + $0x70] sm:$0x1]  ;;  %v2657_v13 = vld [vmem:[%s11197_s0 + $0x80] sm:$0x1]  ;;  %v2662_v14 = vld [vmem:[%s11197_s0 + $0x51] sm:$0x1] }
   0x6   :  { %12099 = vst [vmem:[#allocation2_spill] sm:$0xff] %v2652_v12  ;;  %v2667_v15 = vld [vmem:[%s11197_s0 + $0x61] sm:$0x1]  ;;  %v2672_v16 = vld [vmem:[%s11197_s0 + $0x71] sm:$0x1]  ;;  %vm2325_vm4 = vcmask 1045509  }
   0x7   :  { %12100 = vst [vmem:[#allocation3_spill] sm:$0xff] %v2657_v13  ;;  %v2677_v17 = vld [vmem:[%s11197_s0 + $0x81] sm:$0x1]  ;;  %v2682_v18 = vld [vmem:[%s11197_s0 + $0x90] sm:$0x1]  ;;  %vm2328_vm5 = vcmask 1046534  }
   0x8   :  { %12101 = vst [vmem:[#allocation4_spill] sm:$0xff] %v2672_v16  ;;  %v2687_v19 = vld [vmem:[%s11197_s0 + $0xa0] sm:$0x1]  ;;  %v2692_v20 = vld [vmem:[%s11197_s0 + $0xb0] sm:$0x1]  ;;  %vm2331_vm6 = vcmask 1047559  }
   0x9   :  { %12102 = vst [vmem:[#allocation5_spill] sm:$0xff] %v2677_v17  ;;  %v2697_v21 = vld [vmem:[%s11197_s0 + $0xc0] sm:$0x1]  ;;  %v2702_v22 = vld [vmem:[%s11197_s0 + $0x91] sm:$0x1] }
   0xa   :  { %12103 = vst [vmem:[#allocation6_spill] sm:$0xff] %v2682_v18  ;;  %v2707_v23 = vld [vmem:[%s11197_s0 + $0xa1] sm:$0x1]  ;;  %v2712_v24 = vld [vmem:[%s11197_s0 + $0xb1] sm:$0x1] }
   0xb   :  { %12104 = vst [vmem:[#allocation7_spill] sm:$0xff] %v2687_v19  ;;  %v2717_v25 = vld [vmem:[%s11197_s0 + $0xc1] sm:$0x1]  ;;  %v2722_v26 = vld [vmem:[%s11197_s0 + $0xd0] sm:$0x1] }
   0xc   :  { %12105 = vst [vmem:[#allocation8_spill] sm:$0xff] %v2692_v20  ;;  %v2727_v27 = vld [vmem:[%s11197_s0 + $0xe0] sm:$0x1]  ;;  %v2732_v28 = vld [vmem:[%s11197_s0 + $0xf0] sm:$0x1] }
   0xd   :  { %12106 = vst [vmem:[#allocation9_spill] sm:$0xff] %v2697_v21  ;;  %v2737_v29 = vld [vmem:[%s11197_s0 + $0x100] sm:$0x1]  ;;  %v2742_v30 = vld [vmem:[%s11197_s0 + $0xd1] sm:$0x1] }
   0xe   :  { %12107 = vst [vmem:[#allocation10_spill] sm:$0xff] %v2702_v22  ;;  %v2747_v31 = vld [vmem:[%s11197_s0 + $0xe1] sm:$0x1]  ;;  %v2752_v32 = vld [vmem:[%s11197_s0 + $0xf1] sm:$0x1] }
   0xf   :  { %12108 = vst [vmem:[#allocation11_spill] sm:$0xff] %v2707_v23  ;;  %v2757_v33 = vld [vmem:[%s11197_s0 + $0x101] sm:$0x1]  ;;  %v2762_v34 = vld [vmem:[%s11197_s0 + $0x110] sm:$0x1] }
  0x10   :  { %12109 = vst [vmem:[#allocation12_spill] sm:$0xff] %v2712_v24  ;;  %v2767_v35 = vld [vmem:[%s11197_s0 + $0x120] sm:$0x1]  ;;  %v2772_v36 = vld [vmem:[%s11197_s0 + $0x130] sm:$0x1] }
  0x11   :  { %12110 = vst [vmem:[#allocation13_spill] sm:$0xff] %v2717_v25  ;;  %v2777_v37 = vld [vmem:[%s11197_s0 + $0x140] sm:$0x1]  ;;  %v2784_v39 = vld [vmem:[%s11197_s0 + $0x111] sm:$0x1] }
  0x12   :  { %12111 = vst [vmem:[#allocation14_spill] sm:$0xff] %v2722_v26  ;;  %v2789_v40 = vld [vmem:[%s11197_s0 + $0x121] sm:$0x1]  ;;  %v2794_v41 = vld [vmem:[%s11197_s0 + $0x131] sm:$0x1] }
  0x13   :  { %12112 = vst [vmem:[#allocation15_spill] sm:$0xff] %v2727_v27  ;;  %v2799_v42 = vld [vmem:[%s11197_s0 + $0x141] sm:$0x1]  ;;  %v2804_v43 = vld [vmem:[%s11197_s0 + $0x150] sm:$0x1] }
  0x14   :  { %12113 = vst [vmem:[#allocation16_spill] sm:$0xff] %v2732_v28  ;;  %v2809_v44 = vld [vmem:[%s11197_s0 + $0x160] sm:$0x1]  ;;  %v2814_v45 = vld [vmem:[%s11197_s0 + $0x170] sm:$0x1] }
  0x15   :  { %12114 = vst [vmem:[#allocation17_spill] sm:$0xff] %v2737_v29  ;;  %v2819_v46 = vld [vmem:[%s11197_s0 + $0x180] sm:$0x1]  ;;  %v2832_v51 = vld [vmem:[%s11197_s0 + $0x151] sm:$0x1] }
  0x16   :  { %12115 = vst [vmem:[#allocation18_spill] sm:$0xff] %v2742_v30  ;;  %v2837_v52 = vld [vmem:[%s11197_s0 + $0x161] sm:$0x1]  ;;  %v2842_v53 = vld [vmem:[%s11197_s0 + $0x171] sm:$0x1] }
  0x17   :  { %12116 = vst [vmem:[#allocation19_spill] sm:$0xff] %v2747_v31  ;;  %v2847_v54 = vld [vmem:[%s11197_s0 + $0x181] sm:$0x1]  ;;  %v2852_v55 = vld [vmem:[%s11197_s0 + $0x190] sm:$0x1] }
  0x18   :  { %12117 = vst [vmem:[#allocation20_spill] sm:$0xff] %v2752_v32  ;;  %v2857_v56 = vld [vmem:[%s11197_s0 + $0x1a0] sm:$0x1]  ;;  %v2862_v57 = vld [vmem:[%s11197_s0 + $0x1b0] sm:$0x1] }
  0x19   :  { %12118 = vst [vmem:[#allocation21_spill] sm:$0xff] %v2757_v33  ;;  %v2867_v58 = vld [vmem:[%s11197_s0 + $0x1c0] sm:$0x1]  ;;  %v2880_v63 = vld [vmem:[%s11197_s0 + $0x191] sm:$0x1] }
  0x1a   :  { %12119 = vst [vmem:[#allocation22_spill] sm:$0xff] %v2762_v34  ;;  %v2885_v50 = vld [vmem:[%s11197_s0 + $0x1a1] sm:$0x1]  ;;  %v2890_v60 = vld [vmem:[%s11197_s0 + $0x1b1] sm:$0x1] }
  0x1b   :  { %12120 = vst [vmem:[#allocation23_spill] sm:$0xff] %v2767_v35  ;;  %v2895_v61 = vld [vmem:[%s11197_s0 + $0x1c1] sm:$0x1]  ;;  %v2900_v62 = vld [vmem:[%s11197_s0 + $0x1d0] sm:$0x1] }
  0x1c   :  { %12121 = vst [vmem:[#allocation24_spill] sm:$0xff] %v2772_v36  ;;  %v2905_v59 = vld [vmem:[%s11197_s0 + $0x1e0] sm:$0x1]  ;;  %v2910_v49 = vld [vmem:[%s11197_s0 + $0x1f0] sm:$0x1] }
  0x1d   :  { %12122 = vst [vmem:[#allocation25_spill] sm:$0xff] %v2777_v37  ;;  %v2915_v48 = vld [vmem:[%s11197_s0 + $0x200] sm:$0x1]  ;;  %v2928_v16 = vld [vmem:[%s11197_s0 + $0x1d1] sm:$0x1] }
  0x1e   :  { %12123 = vst [vmem:[#allocation26_spill] sm:$0xff] %v2784_v39  ;;  %v2933_v12 = vld [vmem:[%s11197_s0 + $0x1e1] sm:$0x1]  ;;  %v2938_v38 = vld [vmem:[%s11197_s0 + $0x1f1] sm:$0x1] }
  0x1f   :  { %12124 = vst [vmem:[#allocation27_spill] sm:$0xff] %v2789_v40  ;;  %v2943_v17 = vld [vmem:[%s11197_s0 + $0x201] sm:$0x1]  ;;  %v2948_v13 = vld [vmem:[%s11197_s0 + $0x210] sm:$0x1] }
  0x20   :  { %12125 = vst [vmem:[#allocation28_spill] sm:$0xff] %v2794_v41  ;;  %v2953_v47 = vld [vmem:[%s11197_s0 + $0x220] sm:$0x1]  ;;  %v2958_v25 = vld [vmem:[%s11197_s0 + $0x230] sm:$0x1] }
  0x21   :  { %12126 = vst [vmem:[#allocation29_spill] sm:$0xff] %v2799_v42  ;;  %v2963_v21 = vld [vmem:[%s11197_s0 + $0x240] sm:$0x1]  ;;  %v2976_v22 = vld [vmem:[%s11197_s0 + $0x211] sm:$0x1] }
  0x22   :  { %12127 = vst [vmem:[#allocation30_spill] sm:$0xff] %v2804_v43  ;;  %v2981_v18 = vld [vmem:[%s11197_s0 + $0x221] sm:$0x1]  ;;  %v2986_v20 = vld [vmem:[%s11197_s0 + $0x231] sm:$0x1] }
  0x23   :  { %12128 = vst [vmem:[#allocation31_spill] sm:$0xff] %v2809_v44  ;;  %v2991_v23 = vld [vmem:[%s11197_s0 + $0x241] sm:$0x1]  ;;  %v2996_v19 = vld [vmem:[%s11197_s0 + $0x250] sm:$0x1] }
  0x24   :  { %12129 = vst [vmem:[#allocation32_spill] sm:$0xff] %v2814_v45  ;;  %v3001_v24 = vld [vmem:[%s11197_s0 + $0x260] sm:$0x1]  ;;  %v3006_v33 = vld [vmem:[%s11197_s0 + $0x270] sm:$0x1] }
  0x25   :  { %12130 = vst [vmem:[#allocation33_spill] sm:$0xff] %v2819_v46  ;;  %v3011_v29 = vld [vmem:[%s11197_s0 + $0x280] sm:$0x1]  ;;  %v3024_v30 = vld [vmem:[%s11197_s0 + $0x251] sm:$0x1] }
  0x26   :  { %12131 = vst [vmem:[#allocation34_spill] sm:$0xff] %v2832_v51  ;;  %v3029_v26 = vld [vmem:[%s11197_s0 + $0x261] sm:$0x1]  ;;  %v3034_v28 = vld [vmem:[%s11197_s0 + $0x271] sm:$0x1] }
  0x27   :  { %12132 = vst [vmem:[#allocation35_spill] sm:$0xff] %v2837_v52  ;;  %v3039_v31 = vld [vmem:[%s11197_s0 + $0x281] sm:$0x1]  ;;  %v3044_v27 = vld [vmem:[%s11197_s0 + $0x290] sm:$0x1] }
  0x28   :  { %12133 = vst [vmem:[#allocation36_spill] sm:$0xff] %v2842_v53  ;;  %v3049_v32 = vld [vmem:[%s11197_s0 + $0x2a0] sm:$0x1]  ;;  %v3054_v42 = vld [vmem:[%s11197_s0 + $0x2b0] sm:$0x1] }
  0x29   :  { %12134 = vst [vmem:[#allocation37_spill] sm:$0xff] %v2847_v54  ;;  %v3059_v37 = vld [vmem:[%s11197_s0 + $0x2c0] sm:$0x1]  ;;  %v3072_v39 = vld [vmem:[%s11197_s0 + $0x291] sm:$0x1] }
  0x2a   :  { %12135 = vst [vmem:[#allocation38_spill] sm:$0xff] %v2852_v55  ;;  %v3077_v34 = vld [vmem:[%s11197_s0 + $0x2a1] sm:$0x1]  ;;  %v3082_v36 = vld [vmem:[%s11197_s0 + $0x2b1] sm:$0x1] }
  0x2b   :  { %12136 = vst [vmem:[#allocation39_spill] sm:$0xff] %v2857_v56  ;;  %v3087_v40 = vld [vmem:[%s11197_s0 + $0x2c1] sm:$0x1]  ;;  %v3092_v35 = vld [vmem:[%s11197_s0 + $0x2d0] sm:$0x1] }
  0x2c   :  { %12137 = vst [vmem:[#allocation40_spill] sm:$0xff] %v2862_v57  ;;  %v3097_v41 = vld [vmem:[%s11197_s0 + $0x2e0] sm:$0x1]  ;;  %v3102_v54 = vld [vmem:[%s11197_s0 + $0x2f0] sm:$0x1] }
  0x2d   :  { %12138 = vst [vmem:[#allocation41_spill] sm:$0xff] %v2867_v58  ;;  %v3107_v46 = vld [vmem:[%s11197_s0 + $0x300] sm:$0x1]  ;;  %v3120_v51 = vld [vmem:[%s11197_s0 + $0x2d1] sm:$0x1] }
  0x2e   :  { %12139 = vst [vmem:[#allocation42_spill] sm:$0xff] %v2880_v63  ;;  %v3125_v43 = vld [vmem:[%s11197_s0 + $0x2e1] sm:$0x1]  ;;  %v3130_v45 = vld [vmem:[%s11197_s0 + $0x2f1] sm:$0x1] }
  0x2f   :  { %12140 = vst [vmem:[#allocation43_spill] sm:$0xff] %v2885_v50  ;;  %v3135_v52 = vld [vmem:[%s11197_s0 + $0x301] sm:$0x1]  ;;  %v3140_v44 = vld [vmem:[%s11197_s0 + $0x310] sm:$0x1] }
  0x30   :  { %12141 = vst [vmem:[#allocation44_spill] sm:$0xff] %v2890_v60  ;;  %v3145_v53 = vld [vmem:[%s11197_s0 + $0x320] sm:$0x1]  ;;  %v3168_v63 = vld [vmem:[%s11197_s0 + $0x311] sm:$0x1] }
  0x31   :  { %12142 = vst [vmem:[#allocation45_spill] sm:$0xff] %v2895_v61  ;;  %v3150_v61 = vld [vmem:[%s11197_s0 + $0x330] sm:$0x1]  ;;  %v3155_v58 = vld [vmem:[%s11197_s0 + $0x340] sm:$0x1] }
  0x32   :  { %12143 = vst [vmem:[#allocation46_spill] sm:$0xff] %v2900_v62  ;;  %v3173_v55 = vld [vmem:[%s11197_s0 + $0x321] sm:$0x1]  ;;  %v3178_v57 = vld [vmem:[%s11197_s0 + $0x331] sm:$0x1] }
  0x33   :  { %12144 = vst [vmem:[#allocation47_spill] sm:$0xff] %v2905_v59  ;;  %v3183_v50 = vld [vmem:[%s11197_s0 + $0x341] sm:$0x1]  ;;  %v3188_v56 = vld [vmem:[%s11197_s0 + $0x350] sm:$0x1] }
  0x34   :  { %12145 = vst [vmem:[#allocation48_spill] sm:$0xff] %v2910_v49  ;;  %v3193_v60 = vld [vmem:[%s11197_s0 + $0x360] sm:$0x1]  ;;  %v3221_v62 = vld [vmem:[%s11197_s0 + $0x361] sm:$0x1] }
  0x35   :  { %12146 = vst [vmem:[#allocation49_spill] sm:$0xff] %v2915_v48  ;;  %v3203_v48 = vld [vmem:[%s11197_s0 + $0x380] sm:$0x1]  ;;  %v3226_v49 = vld [vmem:[%s11197_s0 + $0x371] sm:$0x1] }
  0x36   :  { %12147 = vst [vmem:[#allocation50_spill] sm:$0xff] %v2928_v16  ;;  %v3216_v16 = vld [vmem:[%s11197_s0 + $0x351] sm:$0x1]  ;;  %v3236_v59 = vld [vmem:[%s11197_s0 + $0x390] sm:$0x1] }
  0x37   :  { %12148 = vst [vmem:[#allocation51_spill] sm:$0xff] %v2933_v12  ;;  %v3231_v12 = vld [vmem:[%s11197_s0 + $0x381] sm:$0x1] }
  0x38   :  { %12149 = vst [vmem:[#allocation52_spill] sm:$0xff] %v2938_v38  ;;  %v3241_v38 = vld [vmem:[%s11197_s0 + $0x3a0] sm:$0x1] }
  0x39   :  { %12150 = vst [vmem:[#allocation53_spill] sm:$0xff] %v2943_v17  ;;  %v3198_v17 = vld [vmem:[%s11197_s0 + $0x370] sm:$0x1] }
  0x3a   :  { %12151 = vst [vmem:[#allocation54_spill] sm:$0xff] %v2948_v13  ;;  %v3269_v13 = vld [vmem:[%s11197_s0 + $0x3a1] sm:$0x1] }
  0x3b   :  { %12152 = vst [vmem:[#allocation55_spill] sm:$0xff] %v2953_v47  ;;  %v3284_v47 = vld [vmem:[%s11197_s0 + $0x3d0] sm:$0x1] }
  0x3c   :  { %12153 = vst [vmem:[#allocation56_spill] sm:$0xff] %v2958_v25  ;;  %v3274_v25 = vld [vmem:[%s11197_s0 + $0x3b1] sm:$0x1] }
  0x3d   :  { %12154 = vst [vmem:[#allocation57_spill] sm:$0xff] %v2963_v21  ;;  %v3251_v21 = vld [vmem:[%s11197_s0 + $0x3c0] sm:$0x1] }
  0x3e   :  { %12155 = vst [vmem:[#allocation58_spill] sm:$0xff] %v2976_v22  ;;  %v3264_v22 = vld [vmem:[%s11197_s0 + $0x391] sm:$0x1] }
  0x3f   :  { %12156 = vst [vmem:[#allocation59_spill] sm:$0xff] %v2981_v18  ;;  %v3279_v18 = vld [vmem:[%s11197_s0 + $0x3c1] sm:$0x1] }
  0x40   :  { %12157 = vst [vmem:[#allocation60_spill] sm:$0xff] %v2986_v20  ;;  %v3289_v20 = vld [vmem:[%s11197_s0 + $0x3e0] sm:$0x1] }
  0x41   :  { %12158 = vst [vmem:[#allocation61_spill] sm:$0xff] %v2991_v23  ;;  %v3246_v23 = vld [vmem:[%s11197_s0 + $0x3b0] sm:$0x1] }
  0x42   :  { %12159 = vst [vmem:[#allocation62_spill] sm:$0xff] %v2996_v19  ;;  %v3317_v19 = vld [vmem:[%s11197_s0 + $0x3e1] sm:$0x1] }
  0x43   :  { %12160 = vst [vmem:[#allocation63_spill] sm:$0xff] %v3001_v24  ;;  %v3332_v24 = vld [vmem:[%s11197_s0 + $0x410] sm:$0x1] }
  0x44   :  { %12161 = vst [vmem:[#allocation64_spill] sm:$0xff] %v3006_v33  ;;  %v3322_v33 = vld [vmem:[%s11197_s0 + $0x3f1] sm:$0x1] }
  0x45   :  { %12162 = vst [vmem:[#allocation65_spill] sm:$0xff] %v3011_v29  ;;  %v3299_v29 = vld [vmem:[%s11197_s0 + $0x400] sm:$0x1] }
  0x46   :  { %12163 = vst [vmem:[#allocation66_spill] sm:$0xff] %v3024_v30  ;;  %v3312_v30 = vld [vmem:[%s11197_s0 + $0x3d1] sm:$0x1] }
  0x47   :  { %12164 = vst [vmem:[#allocation67_spill] sm:$0xff] %v3029_v26  ;;  %v3327_v26 = vld [vmem:[%s11197_s0 + $0x401] sm:$0x1] }
  0x48   :  { %12165 = vst [vmem:[#allocation68_spill] sm:$0xff] %v3034_v28  ;;  %v3337_v28 = vld [vmem:[%s11197_s0 + $0x420] sm:$0x1] }
  0x49   :  { %12166 = vst [vmem:[#allocation69_spill] sm:$0xff] %v3039_v31  ;;  %v3294_v31 = vld [vmem:[%s11197_s0 + $0x3f0] sm:$0x1] }
  0x4a   :  { %12167 = vst [vmem:[#allocation70_spill] sm:$0xff] %v3044_v27  ;;  %v3365_v27 = vld [vmem:[%s11197_s0 + $0x421] sm:$0x1] }
  0x4b   :  { %12168 = vst [vmem:[#allocation71_spill] sm:$0xff] %v3049_v32  ;;  %v3380_v32 = vld [vmem:[%s11197_s0 + $0x450] sm:$0x1] }
  0x4c   :  { %12169 = vst [vmem:[#allocation72_spill] sm:$0xff] %v3054_v42  ;;  %v3370_v42 = vld [vmem:[%s11197_s0 + $0x431] sm:$0x1] }
  0x4d   :  { %12170 = vst [vmem:[#allocation73_spill] sm:$0xff] %v3059_v37  ;;  %v3347_v37 = vld [vmem:[%s11197_s0 + $0x440] sm:$0x1] }
  0x4e   :  { %12171 = vst [vmem:[#allocation74_spill] sm:$0xff] %v3072_v39  ;;  %v3360_v39 = vld [vmem:[%s11197_s0 + $0x411] sm:$0x1] }
  0x4f   :  { %12172 = vst [vmem:[#allocation75_spill] sm:$0xff] %v3077_v34  ;;  %v3375_v34 = vld [vmem:[%s11197_s0 + $0x441] sm:$0x1] }
  0x50   :  { %12173 = vst [vmem:[#allocation76_spill] sm:$0xff] %v3082_v36  ;;  %v3385_v36 = vld [vmem:[%s11197_s0 + $0x460] sm:$0x1] }
  0x51   :  { %12174 = vst [vmem:[#allocation77_spill] sm:$0xff] %v3087_v40  ;;  %v3342_v40 = vld [vmem:[%s11197_s0 + $0x430] sm:$0x1] }
  0x52   :  { %12175 = vst [vmem:[#allocation78_spill] sm:$0xff] %v3092_v35  ;;  %v3413_v35 = vld [vmem:[%s11197_s0 + $0x461] sm:$0x1] }
  0x53   :  { %12176 = vst [vmem:[#allocation79_spill] sm:$0xff] %v3097_v41  ;;  %v3428_v41 = vld [vmem:[%s11197_s0 + $0x490] sm:$0x1] }
  0x54   :  { %12177 = vst [vmem:[#allocation80_spill] sm:$0xff] %v3102_v54  ;;  %v3418_v54 = vld [vmem:[%s11197_s0 + $0x471] sm:$0x1] }
  0x55   :  { %12178 = vst [vmem:[#allocation81_spill] sm:$0xff] %v3107_v46  ;;  %v3395_v46 = vld [vmem:[%s11197_s0 + $0x480] sm:$0x1] }
  0x56   :  { %12179 = vst [vmem:[#allocation82_spill] sm:$0xff] %v3120_v51  ;;  %v3408_v51 = vld [vmem:[%s11197_s0 + $0x451] sm:$0x1] }
  0x57   :  { %12180 = vst [vmem:[#allocation83_spill] sm:$0xff] %v3125_v43  ;;  %v3423_v43 = vld [vmem:[%s11197_s0 + $0x481] sm:$0x1] }
  0x58   :  { %12181 = vst [vmem:[#allocation84_spill] sm:$0xff] %v3130_v45  ;;  %v3433_v45 = vld [vmem:[%s11197_s0 + $0x4a0] sm:$0x1] }
  0x59   :  { %12182 = vst [vmem:[#allocation85_spill] sm:$0xff] %v3135_v52  ;;  %v3390_v52 = vld [vmem:[%s11197_s0 + $0x470] sm:$0x1] }
  0x5a   :  { %12183 = vst [vmem:[#allocation86_spill] sm:$0xff] %v3140_v44  ;;  %v3461_v44 = vld [vmem:[%s11197_s0 + $0x4a1] sm:$0x1] }
  0x5b   :  { %12184 = vst [vmem:[#allocation87_spill] sm:$0xff] %v3145_v53  ;;  %v3476_v53 = vld [vmem:[%s11197_s0 + $0x4d0] sm:$0x1] }
  0x5c   :  { %12185 = vst [vmem:[#allocation88_spill] sm:$0xff] %v3150_v61  ;;  %v3466_v61 = vld [vmem:[%s11197_s0 + $0x4b1] sm:$0x1] }
  0x5d   :  { %12186 = vst [vmem:[#allocation89_spill] sm:$0xff] %v3155_v58  ;;  %v3443_v58 = vld [vmem:[%s11197_s0 + $0x4c0] sm:$0x1] }
  0x5e   :  { %12187 = vst [vmem:[#allocation90_spill] sm:$0xff] %v3168_v63  ;;  %v3456_v63 = vld [vmem:[%s11197_s0 + $0x491] sm:$0x1] }
  0x5f   :  { %12188 = vst [vmem:[#allocation91_spill] sm:$0xff] %v3173_v55  ;;  %v3471_v55 = vld [vmem:[%s11197_s0 + $0x4c1] sm:$0x1] }
  0x60   :  { %12189 = vst [vmem:[#allocation92_spill] sm:$0xff] %v3178_v57  ;;  %v3481_v57 = vld [vmem:[%s11197_s0 + $0x4e0] sm:$0x1] }
  0x61   :  { %12190 = vst [vmem:[#allocation93_spill] sm:$0xff] %v3183_v50  ;;  %v3438_v50 = vld [vmem:[%s11197_s0 + $0x4b0] sm:$0x1] }
  0x62   :  { %12191 = vst [vmem:[#allocation94_spill] sm:$0xff] %v3188_v56  ;;  %v3509_v56 = vld [vmem:[%s11197_s0 + $0x4e1] sm:$0x1] }
  0x63   :  { %12192 = vst [vmem:[#allocation95_spill] sm:$0xff] %v3193_v60  ;;  %v3524_v60 = vld [vmem:[%s11197_s0 + $0x510] sm:$0x1] }
  0x64   :  { %12193 = vst [vmem:[#allocation96_spill] sm:$0xff] %v3198_v17  ;;  %v3514_v17 = vld [vmem:[%s11197_s0 + $0x4f1] sm:$0x1] }
  0x65   :  { %12194 = vst [vmem:[#allocation97_spill] sm:$0xff] %v3203_v48  ;;  %v3491_v48 = vld [vmem:[%s11197_s0 + $0x500] sm:$0x1] }
  0x66   :  { %12195 = vst [vmem:[#allocation98_spill] sm:$0xff] %v3216_v16  ;;  %v3504_v16 = vld [vmem:[%s11197_s0 + $0x4d1] sm:$0x1] }
  0x67   :  { %12196 = vst [vmem:[#allocation99_spill] sm:$0xff] %v3221_v62  ;;  %v3519_v62 = vld [vmem:[%s11197_s0 + $0x501] sm:$0x1] }
  0x68   :  { %12197 = vst [vmem:[#allocation100_spill] sm:$0xff] %v3226_v49  ;;  %v3529_v49 = vld [vmem:[%s11197_s0 + $0x520] sm:$0x1] }
  0x69   :  { %12198 = vst [vmem:[#allocation101_spill] sm:$0xff] %v3231_v12  ;;  %v3486_v12 = vld [vmem:[%s11197_s0 + $0x4f0] sm:$0x1] }
  0x6a   :  { %12199 = vst [vmem:[#allocation102_spill] sm:$0xff] %v3236_v59  ;;  %v3557_v59 = vld [vmem:[%s11197_s0 + $0x521] sm:$0x1] }
  0x6b   :  { %12200 = vst [vmem:[#allocation103_spill] sm:$0xff] %v3241_v38  ;;  %v3572_v38 = vld [vmem:[%s11197_s0 + $0x550] sm:$0x1] }
  0x6c   :  { %12201 = vst [vmem:[#allocation104_spill] sm:$0xff] %v3246_v23  ;;  %v3562_v23 = vld [vmem:[%s11197_s0 + $0x531] sm:$0x1] }
  0x6d   :  { %12202 = vst [vmem:[#allocation105_spill] sm:$0xff] %v3251_v21  ;;  %v3539_v21 = vld [vmem:[%s11197_s0 + $0x540] sm:$0x1] }
  0x6e   :  { %12203 = vst [vmem:[#allocation106_spill] sm:$0xff] %v3264_v22  ;;  %v3552_v22 = vld [vmem:[%s11197_s0 + $0x511] sm:$0x1] }
  0x6f   :  { %12204 = vst [vmem:[#allocation107_spill] sm:$0xff] %v3269_v13  ;;  %v3567_v13 = vld [vmem:[%s11197_s0 + $0x541] sm:$0x1] }
  0x70   :  { %12205 = vst [vmem:[#allocation108_spill] sm:$0xff] %v3274_v25  ;;  %v3577_v25 = vld [vmem:[%s11197_s0 + $0x560] sm:$0x1] }
  0x71   :  { %12206 = vst [vmem:[#allocation109_spill] sm:$0xff] %v3279_v18  ;;  %v3534_v18 = vld [vmem:[%s11197_s0 + $0x530] sm:$0x1] }
  0x72   :  { %12207 = vst [vmem:[#allocation110_spill] sm:$0xff] %v3284_v47  ;;  %v3605_v47 = vld [vmem:[%s11197_s0 + $0x561] sm:$0x1] }
  0x73   :  { %12208 = vst [vmem:[#allocation111_spill] sm:$0xff] %v3289_v20  ;;  %v3620_v20 = vld [vmem:[%s11197_s0 + $0x590] sm:$0x1] }
  0x74   :  { %12209 = vst [vmem:[#allocation112_spill] sm:$0xff] %v3294_v31  ;;  %v3610_v31 = vld [vmem:[%s11197_s0 + $0x571] sm:$0x1] }
  0x75   :  { %12210 = vst [vmem:[#allocation113_spill] sm:$0xff] %v3299_v29  ;;  %v3587_v29 = vld [vmem:[%s11197_s0 + $0x580] sm:$0x1] }
  0x76   :  { %12211 = vst [vmem:[#allocation114_spill] sm:$0xff] %v3312_v30  ;;  %v3600_v30 = vld [vmem:[%s11197_s0 + $0x551] sm:$0x1] }
  0x77   :  { %12212 = vst [vmem:[#allocation115_spill] sm:$0xff] %v3317_v19  ;;  %v3615_v19 = vld [vmem:[%s11197_s0 + $0x581] sm:$0x1] }
  0x78   :  { %12213 = vst [vmem:[#allocation116_spill] sm:$0xff] %v3322_v33  ;;  %v3625_v33 = vld [vmem:[%s11197_s0 + $0x5a0] sm:$0x1] }
  0x79   :  { %12214 = vst [vmem:[#allocation117_spill] sm:$0xff] %v3327_v26  ;;  %v3582_v26 = vld [vmem:[%s11197_s0 + $0x570] sm:$0x1] }
  0x7a   :  { %12215 = vst [vmem:[#allocation118_spill] sm:$0xff] %v3332_v24  ;;  %v3653_v24 = vld [vmem:[%s11197_s0 + $0x5a1] sm:$0x1] }
  0x7b   :  { %12216 = vst [vmem:[#allocation119_spill] sm:$0xff] %v3337_v28  ;;  %v3668_v28 = vld [vmem:[%s11197_s0 + $0x5d0] sm:$0x1] }
  0x7c   :  { %12217 = vst [vmem:[#allocation120_spill] sm:$0xff] %v3342_v40  ;;  %v3658_v40 = vld [vmem:[%s11197_s0 + $0x5b1] sm:$0x1] }
  0x7d   :  { %12218 = vst [vmem:[#allocation121_spill] sm:$0xff] %v3347_v37  ;;  %v3635_v37 = vld [vmem:[%s11197_s0 + $0x5c0] sm:$0x1] }
  0x7e   :  { %12219 = vst [vmem:[#allocation122_spill] sm:$0xff] %v3360_v39  ;;  %v3648_v39 = vld [vmem:[%s11197_s0 + $0x591] sm:$0x1] }
  0x7f   :  { %12220 = vst [vmem:[#allocation123_spill] sm:$0xff] %v3365_v27  ;;  %v3663_v27 = vld [vmem:[%s11197_s0 + $0x5c1] sm:$0x1] }
  0x80   :  { %12221 = vst [vmem:[#allocation124_spill] sm:$0xff] %v3370_v42  ;;  %v3673_v42 = vld [vmem:[%s11197_s0 + $0x5e0] sm:$0x1] }
  0x81   :  { %12222 = vst [vmem:[#allocation125_spill] sm:$0xff] %v3375_v34  ;;  %v3630_v34 = vld [vmem:[%s11197_s0 + $0x5b0] sm:$0x1] }
  0x82   :  { %12223 = vst [vmem:[#allocation126_spill] sm:$0xff] %v3380_v32  ;;  %v3701_v32 = vld [vmem:[%s11197_s0 + $0x5e1] sm:$0x1] }
  0x83   :  { %12224 = vst [vmem:[#allocation127_spill] sm:$0xff] %v3385_v36  ;;  %v3716_v36 = vld [vmem:[%s11197_s0 + $0x610] sm:$0x1] }
  0x84   :  { %12225 = vst [vmem:[#allocation128_spill] sm:$0xff] %v3390_v52  ;;  %v3706_v52 = vld [vmem:[%s11197_s0 + $0x5f1] sm:$0x1] }
  0x85   :  { %12226 = vst [vmem:[#allocation129_spill] sm:$0xff] %v3395_v46  ;;  %v3683_v46 = vld [vmem:[%s11197_s0 + $0x600] sm:$0x1] }
  0x86   :  { %12227 = vst [vmem:[#allocation130_spill] sm:$0xff] %v3408_v51  ;;  %v3696_v51 = vld [vmem:[%s11197_s0 + $0x5d1] sm:$0x1] }
  0x87   :  { %12228 = vst [vmem:[#allocation131_spill] sm:$0xff] %v3413_v35  ;;  %v3711_v35 = vld [vmem:[%s11197_s0 + $0x601] sm:$0x1] }
  0x88   :  { %12229 = vst [vmem:[#allocation132_spill] sm:$0xff] %v3418_v54  ;;  %v3721_v54 = vld [vmem:[%s11197_s0 + $0x620] sm:$0x1] }
  0x89   :  { %12230 = vst [vmem:[#allocation133_spill] sm:$0xff] %v3423_v43  ;;  %v3678_v43 = vld [vmem:[%s11197_s0 + $0x5f0] sm:$0x1] }
  0x8a   :  { %12231 = vst [vmem:[#allocation134_spill] sm:$0xff] %v3428_v41  ;;  %v3749_v41 = vld [vmem:[%s11197_s0 + $0x621] sm:$0x1] }
  0x8b   :  { %12232 = vst [vmem:[#allocation135_spill] sm:$0xff] %v3433_v45  ;;  %v3764_v45 = vld [vmem:[%s11197_s0 + $0x650] sm:$0x1] }
  0x8c   :  { %12233 = vst [vmem:[#allocation136_spill] sm:$0xff] %v3438_v50  ;;  %v3754_v50 = vld [vmem:[%s11197_s0 + $0x631] sm:$0x1] }
  0x8d   :  { %12234 = vst [vmem:[#allocation137_spill] sm:$0xff] %v3443_v58  ;;  %v3731_v58 = vld [vmem:[%s11197_s0 + $0x640] sm:$0x1] }
  0x8e   :  { %12235 = vst [vmem:[#allocation138_spill] sm:$0xff] %v3456_v63  ;;  %v3744_v63 = vld [vmem:[%s11197_s0 + $0x611] sm:$0x1] }
  0x8f   :  { %12236 = vst [vmem:[#allocation139_spill] sm:$0xff] %v3461_v44  ;;  %v3759_v44 = vld [vmem:[%s11197_s0 + $0x641] sm:$0x1] }
  0x90   :  { %12237 = vst [vmem:[#allocation140_spill] sm:$0xff] %v3466_v61  ;;  %v3769_v61 = vld [vmem:[%s11197_s0 + $0x660] sm:$0x1] }
  0x91   :  { %12238 = vst [vmem:[#allocation141_spill] sm:$0xff] %v3471_v55  ;;  %v3726_v55 = vld [vmem:[%s11197_s0 + $0x630] sm:$0x1] }
  0x92   :  { %12239 = vst [vmem:[#allocation142_spill] sm:$0xff] %v3476_v53  ;;  %v3797_v53 = vld [vmem:[%s11197_s0 + $0x661] sm:$0x1] }
  0x93   :  { %12240 = vst [vmem:[#allocation143_spill] sm:$0xff] %v3481_v57  ;;  %v3812_v57 = vld [vmem:[%s11197_s0 + $0x690] sm:$0x1] }
  0x94   :  { %12241 = vst [vmem:[#allocation144_spill] sm:$0xff] %v3486_v12  ;;  %v3802_v12 = vld [vmem:[%s11197_s0 + $0x671] sm:$0x1] }
  0x95   :  { %12242 = vst [vmem:[#allocation145_spill] sm:$0xff] %v3491_v48  ;;  %v3779_v48 = vld [vmem:[%s11197_s0 + $0x680] sm:$0x1] }
  0x96   :  { %12243 = vst [vmem:[#allocation146_spill] sm:$0xff] %v3504_v16  ;;  %v3792_v16 = vld [vmem:[%s11197_s0 + $0x651] sm:$0x1] }
  0x97   :  { %12244 = vst [vmem:[#allocation147_spill] sm:$0xff] %v3509_v56  ;;  %v3807_v56 = vld [vmem:[%s11197_s0 + $0x681] sm:$0x1] }
  0x98   :  { %12245 = vst [vmem:[#allocation148_spill] sm:$0xff] %v3514_v17  ;;  %v3817_v17 = vld [vmem:[%s11197_s0 + $0x6a0] sm:$0x1] }
  0x99   :  { %12246 = vst [vmem:[#allocation149_spill] sm:$0xff] %v3519_v62  ;;  %v3774_v62 = vld [vmem:[%s11197_s0 + $0x670] sm:$0x1] }
  0x9a   :  { %12247 = vst [vmem:[#allocation150_spill] sm:$0xff] %v3524_v60  ;;  %v3845_v60 = vld [vmem:[%s11197_s0 + $0x6a1] sm:$0x1] }
  0x9b   :  { %12248 = vst [vmem:[#allocation151_spill] sm:$0xff] %v3529_v49  ;;  %v3860_v49 = vld [vmem:[%s11197_s0 + $0x6d0] sm:$0x1] }
  0x9c   :  { %12249 = vst [vmem:[#allocation152_spill] sm:$0xff] %v3534_v18  ;;  %v3850_v18 = vld [vmem:[%s11197_s0 + $0x6b1] sm:$0x1] }
  0x9d   :  { %12250 = vst [vmem:[#allocation153_spill] sm:$0xff] %v3539_v21  ;;  %v3827_v21 = vld [vmem:[%s11197_s0 + $0x6c0] sm:$0x1] }
  0x9e   :  { %12251 = vst [vmem:[#allocation154_spill] sm:$0xff] %v3552_v22  ;;  %v3840_v22 = vld [vmem:[%s11197_s0 + $0x691] sm:$0x1] }
  0x9f   :  { %12252 = vst [vmem:[#allocation155_spill] sm:$0xff] %v3557_v59  ;;  %v3855_v59 = vld [vmem:[%s11197_s0 + $0x6c1] sm:$0x1] }
  0xa0   :  { %12253 = vst [vmem:[#allocation156_spill] sm:$0xff] %v3562_v23  ;;  %v3865_v23 = vld [vmem:[%s11197_s0 + $0x6e0] sm:$0x1] }
  0xa1   :  { %12254 = vst [vmem:[#allocation157_spill] sm:$0xff] %v3567_v13  ;;  %v3822_v13 = vld [vmem:[%s11197_s0 + $0x6b0] sm:$0x1] }
  0xa2   :  { %12255 = vst [vmem:[#allocation158_spill] sm:$0xff] %v3572_v38  ;;  %v3893_v38 = vld [vmem:[%s11197_s0 + $0x6e1] sm:$0x1] }
  0xa3   :  { %12256 = vst [vmem:[#allocation159_spill] sm:$0xff] %v3577_v25  ;;  %v3908_v25 = vld [vmem:[%s11197_s0 + $0x710] sm:$0x1] }
  0xa4   :  { %12257 = vst [vmem:[#allocation160_spill] sm:$0xff] %v3582_v26  ;;  %v3898_v26 = vld [vmem:[%s11197_s0 + $0x6f1] sm:$0x1] }
  0xa5   :  { %12258 = vst [vmem:[#allocation161_spill] sm:$0xff] %v3587_v29  ;;  %v3875_v29 = vld [vmem:[%s11197_s0 + $0x700] sm:$0x1] }
  0xa6   :  { %12259 = vst [vmem:[#allocation162_spill] sm:$0xff] %v3600_v30  ;;  %v3888_v30 = vld [vmem:[%s11197_s0 + $0x6d1] sm:$0x1] }
  0xa7   :  { %12260 = vst [vmem:[#allocation163_spill] sm:$0xff] %v3605_v47  ;;  %v3903_v47 = vld [vmem:[%s11197_s0 + $0x701] sm:$0x1] }
  0xa8   :  { %12261 = vst [vmem:[#allocation164_spill] sm:$0xff] %v3610_v31  ;;  %v3913_v31 = vld [vmem:[%s11197_s0 + $0x720] sm:$0x1] }
  0xa9   :  { %12262 = vst [vmem:[#allocation165_spill] sm:$0xff] %v3615_v19  ;;  %v3870_v19 = vld [vmem:[%s11197_s0 + $0x6f0] sm:$0x1] }
  0xaa   :  { %12263 = vst [vmem:[#allocation166_spill] sm:$0xff] %v3620_v20  ;;  %v3941_v20 = vld [vmem:[%s11197_s0 + $0x721] sm:$0x1] }
  0xab   :  { %12264 = vst [vmem:[#allocation167_spill] sm:$0xff] %v3625_v33  ;;  %v3956_v33 = vld [vmem:[%s11197_s0 + $0x750] sm:$0x1] }
  0xac   :  { %12265 = vst [vmem:[#allocation168_spill] sm:$0xff] %v3630_v34  ;;  %v3946_v34 = vld [vmem:[%s11197_s0 + $0x731] sm:$0x1] }
  0xad   :  { %12266 = vst [vmem:[#allocation169_spill] sm:$0xff] %v3635_v37  ;;  %v3923_v37 = vld [vmem:[%s11197_s0 + $0x740] sm:$0x1] }
  0xae   :  { %12267 = vst [vmem:[#allocation170_spill] sm:$0xff] %v3648_v39  ;;  %v3936_v39 = vld [vmem:[%s11197_s0 + $0x711] sm:$0x1] }
  0xaf   :  { %12268 = vst [vmem:[#allocation171_spill] sm:$0xff] %v3653_v24  ;;  %v3951_v24 = vld [vmem:[%s11197_s0 + $0x741] sm:$0x1] }
  0xb0   :  { %12269 = vst [vmem:[#allocation172_spill] sm:$0xff] %v3658_v40  ;;  %v3961_v40 = vld [vmem:[%s11197_s0 + $0x760] sm:$0x1] }
  0xb1   :  { %12270 = vst [vmem:[#allocation173_spill] sm:$0xff] %v3663_v27  ;;  %v3918_v27 = vld [vmem:[%s11197_s0 + $0x730] sm:$0x1] }
  0xb2   :  { %12271 = vst [vmem:[#allocation174_spill] sm:$0xff] %v3668_v28  ;;  %v3989_v28 = vld [vmem:[%s11197_s0 + $0x761] sm:$0x1] }
  0xb3   :  { %12272 = vst [vmem:[#allocation175_spill] sm:$0xff] %v3673_v42  ;;  %v4004_v42 = vld [vmem:[%s11197_s0 + $0x790] sm:$0x1] }
  0xb4   :  { %12273 = vst [vmem:[#allocation176_spill] sm:$0xff] %v3678_v43  ;;  %v3994_v43 = vld [vmem:[%s11197_s0 + $0x771] sm:$0x1] }
  0xb5   :  { %12274 = vst [vmem:[#allocation177_spill] sm:$0xff] %v3683_v46  ;;  %v3971_v46 = vld [vmem:[%s11197_s0 + $0x780] sm:$0x1] }
  0xb6   :  { %12275 = vst [vmem:[#allocation178_spill] sm:$0xff] %v3696_v51  ;;  %v3984_v51 = vld [vmem:[%s11197_s0 + $0x751] sm:$0x1] }
  0xb7   :  { %12276 = vst [vmem:[#allocation179_spill] sm:$0xff] %v3701_v32  ;;  %v3999_v32 = vld [vmem:[%s11197_s0 + $0x781] sm:$0x1] }
  0xb8   :  { %12277 = vst [vmem:[#allocation180_spill] sm:$0xff] %v3706_v52  ;;  %v4009_v52 = vld [vmem:[%s11197_s0 + $0x7a0] sm:$0x1] }
  0xb9   :  { %12278 = vst [vmem:[#allocation181_spill] sm:$0xff] %v3711_v35  ;;  %v3966_v35 = vld [vmem:[%s11197_s0 + $0x770] sm:$0x1] }
  0xba   :  { %12279 = vst [vmem:[#allocation182_spill] sm:$0xff] %v3716_v36  ;;  %v4037_v36 = vld [vmem:[%s11197_s0 + $0x7a1] sm:$0x1] }
  0xbb   :  { %12280 = vst [vmem:[#allocation183_spill] sm:$0xff] %v3721_v54  ;;  %v4052_v54 = vld [vmem:[%s11197_s0 + $0x7d0] sm:$0x1] }
  0xbc   :  { %12281 = vst [vmem:[#allocation184_spill] sm:$0xff] %v3726_v55  ;;  %v4042_v55 = vld [vmem:[%s11197_s0 + $0x7b1] sm:$0x1] }
  0xbd   :  { %12282 = vst [vmem:[#allocation185_spill] sm:$0xff] %v3731_v58  ;;  %v4019_v58 = vld [vmem:[%s11197_s0 + $0x7c0] sm:$0x1] }
  0xbe   :  { %12283 = vst [vmem:[#allocation186_spill] sm:$0xff] %v3744_v63  ;;  %v4032_v63 = vld [vmem:[%s11197_s0 + $0x791] sm:$0x1] }
  0xbf   :  { %12284 = vst [vmem:[#allocation187_spill] sm:$0xff] %v3749_v41  ;;  %v4047_v41 = vld [vmem:[%s11197_s0 + $0x7c1] sm:$0x1] }
  0xc0   :  { %12285 = vst [vmem:[#allocation188_spill] sm:$0xff] %v3754_v50  ;;  %v4057_v50 = vld [vmem:[%s11197_s0 + $0x7e0] sm:$0x1] }
  0xc1   :  { %12286 = vst [vmem:[#allocation189_spill] sm:$0xff] %v3759_v44  ;;  %v4014_v44 = vld [vmem:[%s11197_s0 + $0x7b0] sm:$0x1] }
  0xc2   :  { %12287 = vst [vmem:[#allocation190_spill] sm:$0xff] %v3769_v61  ;;  %v4075_v61 = vld [vmem:[%s11197_s0 + $0x7d1] sm:$0x1] }
  0xc3   :  { %12288 = vst [vmem:[#allocation191_spill] sm:$0xff] %v3774_v62  ;;  %v392_v62 = vld [vmem:[%s11197_s0 + $0x2] sm:$0x1] }
  0xc4   :  { %12289 = vst [vmem:[#allocation192_spill] sm:$0xff] %v3779_v48  ;;  %v396_v48 = vld [vmem:[%s11197_s0 + $0x42] sm:$0x1] }
  0xc5   :  { %12290 = vst [vmem:[#allocation193_spill] sm:$0xff] %v3792_v16  ;;  %v4080_v16 = vld [vmem:[%s11197_s0 + $0x7e1] sm:$0x1] }
  0xc6   :  { %12291 = vst [vmem:[#allocation194_spill] sm:$0xff] %v3797_v53  ;;  %v395_v53 = vld [vmem:[%s11197_s0 + $0x32] sm:$0x1] }
  0xc7   :  { %12292 = vst [vmem:[#allocation195_spill] sm:$0xff] %v3802_v12  ;;  %v4085_v12 = vld [vmem:[%s11197_s0 + $0x7f1] sm:$0x1] }
  0xc8   :  { %12293 = vst [vmem:[#allocation196_spill] sm:$0xff] %v3807_v56  ;;  %v4062_v56 = vld [vmem:[%s11197_s0 + $0x7f0] sm:$0x1] }
  0xc9   :  { %12294 = vst [vmem:[#allocation197_spill] sm:$0xff] %v3822_v13  ;;  %v394_v13 = vld [vmem:[%s11197_s0 + $0x22] sm:$0x1] }
  0xca   :  { %12295 = vst [vmem:[#allocation198_spill] sm:$0xff] %v3827_v21  ;;  %v400_v21 = vld [vmem:[%s11197_s0 + $0x82] sm:$0x1] }
  0xcb   :  { %12296 = vst [vmem:[#allocation199_spill] sm:$0xff] %v3850_v18  ;;  %v393_v18 = vld [vmem:[%s11197_s0 + $0x12] sm:$0x1] }
  0xcc   :  { %12297 = vst [vmem:[#allocation200_spill] sm:$0xff] %v3855_v59  ;;  %v399_v59 = vld [vmem:[%s11197_s0 + $0x72] sm:$0x1] }
  0xcd   :  { %12298 = vst [vmem:[#allocation201_spill] sm:$0xff] %v3870_v19  ;;  %v398_v19 = vld [vmem:[%s11197_s0 + $0x62] sm:$0x1] }
  0xce   :  { %12299 = vst [vmem:[#allocation202_spill] sm:$0xff] %v3875_v29  ;;  %v404_v29 = vld [vmem:[%s11197_s0 + $0xc2] sm:$0x1] }
  0xcf   :  { %12300 = vst [vmem:[#allocation203_spill] sm:$0xff] %v3898_v26  ;;  %v397_v26 = vld [vmem:[%s11197_s0 + $0x52] sm:$0x1] }
  0xd0   :  { %12301 = vst [vmem:[#allocation204_spill] sm:$0xff] %v3903_v47  ;;  %v403_v47 = vld [vmem:[%s11197_s0 + $0xb2] sm:$0x1] }
  0xd1   :  { %12302 = vst [vmem:[#allocation205_spill] sm:$0xff] %v3918_v27  ;;  %v402_v27 = vld [vmem:[%s11197_s0 + $0xa2] sm:$0x1] }
  0xd2   :  { %12303 = vst [vmem:[#allocation206_spill] sm:$0xff] %v3923_v37  ;;  %v408_v37 = vld [vmem:[%s11197_s0 + $0x102] sm:$0x1] }
  0xd3   :  { %12304 = vst [vmem:[#allocation207_spill] sm:$0xff] %v3946_v34  ;;  %v401_v34 = vld [vmem:[%s11197_s0 + $0x92] sm:$0x1] }
  0xd4   :  { %12305 = vst [vmem:[#allocation208_spill] sm:$0xff] %v3951_v24  ;;  %v407_v24 = vld [vmem:[%s11197_s0 + $0xf2] sm:$0x1] }
  0xd5   :  { %12306 = vst [vmem:[#allocation209_spill] sm:$0xff] %v3966_v35  ;;  %v406_v35 = vld [vmem:[%s11197_s0 + $0xe2] sm:$0x1] }
  0xd6   :  { %12307 = vst [vmem:[#allocation210_spill] sm:$0xff] %v3971_v46  ;;  %v411_v46 = vld [vmem:[%s11197_s0 + $0x132] sm:$0x1] }
  0xd7   :  { %12308 = vst [vmem:[#allocation211_spill] sm:$0xff] %v3994_v43  ;;  %v405_v43 = vld [vmem:[%s11197_s0 + $0xd2] sm:$0x1] }
  0xd8   :  { %12309 = vst [vmem:[#allocation212_spill] sm:$0xff] %v3999_v32  ;;  %v12321_v32 = vmax.f32 %v2612_v4, %v2632_v8  ;;  %v416_v4 = vld [vmem:[%s11197_s0 + $0x182] sm:$0x1]  ;;  %v12326_v8 = vmax.f32 %v2647_v11, %v2667_v15 }
  0xd9   :  { %12310 = vst [vmem:[#allocation213_spill] sm:$0xff] %v4014_v44  ;;  %v409_v44 = vld [vmem:[%s11197_s0 + $0x112] sm:$0x1]  ;;  %v418_v11 = vld [vmem:[%s11197_s0 + $0x1a2] sm:$0x1] }
  0xda   :  { %12311 = vst [vmem:[#allocation214_spill] sm:$0xff] %v4019_v58  ;;  %v12317_v58 = vmax.f32 %v2592_v0, %v2597_v1  ;;  %v12319_v0 = vmax.f32 %v2602_v2, %v2622_v6  ;;  %v413_v2 = vld [vmem:[%s11197_s0 + $0x152] sm:$0x1]  ;;  %v420_v15 = vld [vmem:[%s11197_s0 + $0x1c2] sm:$0x1] }
  0xdb   :  { %12312 = vst [vmem:[#allocation215_spill] sm:$0xff] %v4037_v36  ;;  %v410_v36 = vld [vmem:[%s11197_s0 + $0x122] sm:$0x1]  ;;  %v415_v6 = vld [vmem:[%s11197_s0 + $0x172] sm:$0x1] }
  0xdc   :  { %12313 = vst [vmem:[#allocation216_spill] sm:$0xff] %v4042_v55  ;;  %v4179_v55 = vmax.f32 %v12317_v58, %v392_v62  ;;  %v4196_v1 = vmax.f32 %v12319_v0, %v393_v18  ;;  %v12320_v58 = vmax.f32 %v2607_v3, %v2627_v7  ;;  %v414_v3 = vld [vmem:[%s11197_s0 + $0x162] sm:$0x1] }
  0xdd   :  { %12314 = vst [vmem:[#allocation217_spill] sm:$0xff] %v4047_v41  ;;  %v412_v41 = vld [vmem:[%s11197_s0 + $0x142] sm:$0x1] }
  0xde   :  { %12315 = vst [vmem:[#allocation218_spill] sm:$0xff] %v4062_v56  ;;  %v4201_v62 = vmax.f32 %v12320_v58, %v394_v13  ;;  %v12329_v13 = vld [vmem:[#allocation4_spill] sm:$0xff] }
  0xdf   :  { %12316 = vst [vmem:[#allocation219_spill] sm:$0xff] %v4085_v12  ;;  %v12322_v12 = vmax.f32 %v2617_v5, %v2637_v9  ;;  %v12324_v5 = vmax.f32 %v2642_v10, %v2662_v14  ;;  %v4233_v9 = vmax.f32 %v12326_v8, %v398_v19  ;;  %v417_v10 = vld [vmem:[%s11197_s0 + $0x192] sm:$0x1]  ;;  %v12336_v19 = vld [vmem:[#allocation6_spill] sm:$0xff]  ;;  %v12341_v8 = vld [vmem:[#allocation11_spill] sm:$0xff] }
  0xe0   :  { %12318 = vst [vmem:[#allocation220_spill] sm:$0xff] %v4179_v55  ;;  %v4206_v55 = vmax.f32 %v12321_v32, %v395_v53  ;;  %v12333_v53 = vld [vmem:[#allocation5_spill] sm:$0xff]  ;;  %v419_v14 = vld [vmem:[%s11197_s0 + $0x1b2] sm:$0x1] }
  0xe1   :  { %v4211_v56 = vmax.f32 %v12322_v12, %v396_v48  ;;  %v4228_v7 = vmax.f32 %v12324_v5, %v397_v26  ;;  %12327 = vst [vmem:[#allocation223_spill] sm:$0xff] %v4233_v9  ;;  %v12328_v12 = vld [vmem:[#allocation2_spill] sm:$0xff]  ;;  %v12332_v48 = vld [vmem:[#allocation3_spill] sm:$0xff] }
  0xe2   :  { %v12330_v18 = vmax.f32 %v12328_v12, %v12329_v13  ;;  %v12334_v0 = vmax.f32 %v12332_v48, %v12333_v53  ;;  %v12337_v26 = vld [vmem:[#allocation10_spill] sm:$0xff]  ;;  %v12340_v5 = vld [vmem:[#allocation7_spill] sm:$0xff]  ;;  %v12345_v48 = vld [vmem:[#allocation12_spill] sm:$0xff] }
  0xe3   :  { %12323 = vst [vmem:[#allocation221_spill] sm:$0xff] %v4211_v56  ;;  %v12342_v12 = vmax.f32 %v12340_v5, %v12341_v8  ;;  %v5295_v56 = vld [vmem:[%s11197_s0 + $0x193] sm:$0x1] }
  0xe4   :  { %12325 = vst [vmem:[#allocation222_spill] sm:$0xff] %v4228_v7  ;;  %v4238_v32 = vmax.f32 %v12330_v18, %v399_v59  ;;  %v4243_v58 = vmax.f32 %v12334_v0, %v400_v21  ;;  %v12338_v21 = vmax.f32 %v12336_v19, %v12337_v26  ;;  %v12344_v18 = vld [vmem:[#allocation8_spill] sm:$0xff]  ;;  %v422_v19 = vld [vmem:[%s11197_s0 + $0x1e2] sm:$0x1] }
  0xe5   :  { %v4265_v13 = vmax.f32 %v12342_v12, %v402_v27  ;;  %v12346_v53 = vmax.f32 %v12344_v18, %v12345_v48  ;;  %v423_v27 = vld [vmem:[%s11197_s0 + $0x1f2] sm:$0x1]  ;;  %v12352_v26 = vld [vmem:[#allocation14_spill] sm:$0xff] }
  0xe6   :  { %12331 = vst [vmem:[#allocation2_spill] sm:$0xff] %v4238_v32  ;;  %v4260_v59 = vmax.f32 %v12338_v21, %v401_v34  ;;  %v12349_v32 = vld [vmem:[#allocation13_spill] sm:$0xff]  ;;  %v421_v34 = vld [vmem:[%s11197_s0 + $0x1d2] sm:$0x1]  ;;  %v12357_v21 = vld [vmem:[#allocation19_spill] sm:$0xff] }
  0xe7   :  { %12335 = vst [vmem:[#allocation4_spill] sm:$0xff] %v4243_v58  ;;  %v4270_v0 = vmax.f32 %v12346_v53, %v403_v47  ;;  %v12348_v58 = vld [vmem:[#allocation9_spill] sm:$0xff]  ;;  %v424_v47 = vld [vmem:[%s11197_s0 + $0x202] sm:$0x1]  ;;  %v12360_v12 = vld [vmem:[#allocation16_spill] sm:$0xff] }
  0xe8   :  { %12339 = vst [vmem:[#allocation3_spill] sm:$0xff] %v4260_v59  ;;  %v12350_v9 = vmax.f32 %v12348_v58, %v12349_v32  ;;  %v12353_v32 = vld [vmem:[#allocation18_spill] sm:$0xff]  ;;  %v12356_v58 = vld [vmem:[#allocation15_spill] sm:$0xff]  ;;  %v12361_v18 = vld [vmem:[#allocation20_spill] sm:$0xff] }
  0xe9   :  { %12343 = vst [vmem:[#allocation5_spill] sm:$0xff] %v4265_v13  ;;  %v12358_v5 = vmax.f32 %v12356_v58, %v12357_v21  ;;  %v12362_v48 = vmax.f32 %v12360_v12, %v12361_v18  ;;  %v12377_v12 = vld [vmem:[#allocation28_spill] sm:$0xff] }
  0xea   :  { %12347 = vst [vmem:[#allocation6_spill] sm:$0xff] %v4270_v0  ;;  %v4275_v7 = vmax.f32 %v12350_v9, %v404_v29  ;;  %v12354_v29 = vmax.f32 %v12352_v26, %v12353_v32  ;;  %v12365_v0 = vld [vmem:[#allocation21_spill] sm:$0xff]  ;;  %v426_v26 = vld [vmem:[%s11197_s0 + $0x222] sm:$0x1] }
  0xeb   :  { %v4297_v8 = vmax.f32 %v12358_v5, %v406_v35  ;;  %v4302_v53 = vmax.f32 %v12362_v48, %v407_v24  ;;  %v427_v35 = vld [vmem:[%s11197_s0 + $0x232] sm:$0x1]  ;;  %v428_v24 = vld [vmem:[%s11197_s0 + $0x242] sm:$0x1] }
  0xec   :  { %12351 = vst [vmem:[#allocation10_spill] sm:$0xff] %v4275_v7  ;;  %v4292_v9 = vmax.f32 %v12354_v29, %v405_v43  ;;  %v12364_v7 = vld [vmem:[#allocation17_spill] sm:$0xff]  ;;  %v425_v43 = vld [vmem:[%s11197_s0 + $0x212] sm:$0x1]  ;;  %v12368_v32 = vld [vmem:[#allocation22_spill] sm:$0xff] }
  0xed   :  { %12359 = vst [vmem:[#allocation11_spill] sm:$0xff] %v4297_v8  ;;  %v12366_v13 = vmax.f32 %v12364_v7, %v12365_v0  ;;  %v12369_v7 = vld [vmem:[#allocation26_spill] sm:$0xff]  ;;  %v12372_v0 = vld [vmem:[#allocation23_spill] sm:$0xff]  ;;  %v12376_v5 = vld [vmem:[#allocation24_spill] sm:$0xff] }
  0xee   :  { %12355 = vst [vmem:[#allocation7_spill] sm:$0xff] %v4292_v9  ;;  %v12373_v29 = vld [vmem:[#allocation27_spill] sm:$0xff]  ;;  %v12378_v18 = vmax.f32 %v12376_v5, %v12377_v12  ;;  %v12393_v5 = vld [vmem:[#allocation36_spill] sm:$0xff] }
  0xef   :  { %12363 = vst [vmem:[#allocation8_spill] sm:$0xff] %v4302_v53  ;;  %v4307_v59 = vmax.f32 %v12366_v13, %v408_v37  ;;  %v12370_v37 = vmax.f32 %v12368_v32, %v12369_v7  ;;  %v12374_v58 = vmax.f32 %v12372_v0, %v12373_v29  ;;  %v12381_v53 = vld [vmem:[#allocation29_spill] sm:$0xff]  ;;  %v430_v32 = vld [vmem:[%s11197_s0 + $0x262] sm:$0x1] }
  0xf0   :  { %v4334_v48 = vmax.f32 %v12378_v18, %v411_v46  ;;  %v432_v46 = vld [vmem:[%s11197_s0 + $0x282] sm:$0x1] }
  0xf1   :  { %12367 = vst [vmem:[#allocation12_spill] sm:$0xff] %v4307_v59  ;;  %v4324_v13 = vmax.f32 %v12370_v37, %v409_v44  ;;  %v4329_v21 = vmax.f32 %v12374_v58, %v410_v36  ;;  %v12380_v59 = vld [vmem:[#allocation25_spill] sm:$0xff]  ;;  %v429_v44 = vld [vmem:[%s11197_s0 + $0x252] sm:$0x1]  ;;  %v12384_v7 = vld [vmem:[#allocation30_spill] sm:$0xff] }
  0xf2   :  { %12379 = vst [vmem:[#allocation14_spill] sm:$0xff] %v4334_v48  ;;  %v12382_v8 = vmax.f32 %v12380_v59, %v12381_v53  ;;  %v431_v36 = vld [vmem:[%s11197_s0 + $0x272] sm:$0x1]  ;;  %v12385_v59 = vld [vmem:[#allocation34_spill] sm:$0xff]  ;;  %v12388_v53 = vld [vmem:[#allocation31_spill] sm:$0xff] }
  0xf3   :  { %12371 = vst [vmem:[#allocation9_spill] sm:$0xff] %v4324_v13  ;;  %v12389_v37 = vld [vmem:[#allocation35_spill] sm:$0xff]  ;;  %v12392_v58 = vld [vmem:[#allocation32_spill] sm:$0xff]  ;;  %v12397_v48 = vld [vmem:[#allocation37_spill] sm:$0xff] }
  0xf4   :  { %12375 = vst [vmem:[#allocation13_spill] sm:$0xff] %v4329_v21  ;;  %v4339_v9 = vmax.f32 %v12382_v8, %v412_v41  ;;  %v12386_v41 = vmax.f32 %v12384_v7, %v12385_v59  ;;  %v12390_v0 = vmax.f32 %v12388_v53, %v12389_v37  ;;  %v12394_v12 = vmax.f32 %v12392_v58, %v12393_v5  ;;  %v434_v7 = vld [vmem:[%s11197_s0 + $0x2a2] sm:$0x1]  ;;  %v12409_v58 = vld [vmem:[#allocation44_spill] sm:$0xff] }
  0xf5   :  { %v12400_v59 = vld [vmem:[#allocation38_spill] sm:$0xff] }
  0xf6   :  { %12383 = vst [vmem:[#allocation18_spill] sm:$0xff] %v4339_v9  ;;  %v4356_v8 = vmax.f32 %v12386_v41, %v413_v2  ;;  %v4361_v29 = vmax.f32 %v12390_v0, %v414_v3  ;;  %v4366_v18 = vmax.f32 %v12394_v12, %v415_v6  ;;  %v12396_v9 = vld [vmem:[#allocation33_spill] sm:$0xff]  ;;  %v433_v2 = vld [vmem:[%s11197_s0 + $0x292] sm:$0x1]  ;;  %v436_v6 = vld [vmem:[%s11197_s0 + $0x2c2] sm:$0x1] }
  0xf7   :  { %v12398_v21 = vmax.f32 %v12396_v9, %v12397_v48  ;;  %v435_v3 = vld [vmem:[%s11197_s0 + $0x2b2] sm:$0x1]  ;;  %v12401_v9 = vld [vmem:[#allocation42_spill] sm:$0xff]  ;;  %v12404_v48 = vld [vmem:[#allocation39_spill] sm:$0xff] }
  0xf8   :  { %12387 = vst [vmem:[#allocation15_spill] sm:$0xff] %v4356_v8  ;;  %v12405_v41 = vld [vmem:[#allocation43_spill] sm:$0xff]  ;;  %v12408_v0 = vld [vmem:[#allocation40_spill] sm:$0xff] }
  0xf9   :  { %12391 = vst [vmem:[#allocation19_spill] sm:$0xff] %v4361_v29  ;;  %v4371_v13 = vmax.f32 %v12398_v21, %v416_v4  ;;  %v12402_v4 = vmax.f32 %v12400_v59, %v12401_v9  ;;  %v12406_v53 = vmax.f32 %v12404_v48, %v12405_v41  ;;  %v12410_v5 = vmax.f32 %v12408_v0, %v12409_v58  ;;  %v438_v59 = vld [vmem:[%s11197_s0 + $0x2e2] sm:$0x1]  ;;  %v12425_v0 = vld [vmem:[#allocation52_spill] sm:$0xff] }
  0xfa   :  { %12395 = vst [vmem:[#allocation16_spill] sm:$0xff] %v4366_v18  ;;  %v12413_v18 = vld [vmem:[#allocation45_spill] sm:$0xff]  ;;  %v12416_v9 = vld [vmem:[#allocation46_spill] sm:$0xff] }
  0xfb   :  { %12399 = vst [vmem:[#allocation20_spill] sm:$0xff] %v4371_v13  ;;  %v4388_v21 = vmax.f32 %v12402_v4, %v417_v10  ;;  %v4393_v37 = vmax.f32 %v12406_v53, %v418_v11  ;;  %v4398_v12 = vmax.f32 %v12410_v5, %v419_v14  ;;  %v12412_v13 = vld [vmem:[#allocation41_spill] sm:$0xff]  ;;  %v437_v10 = vld [vmem:[%s11197_s0 + $0x2d2] sm:$0x1]  ;;  %v440_v14 = vld [vmem:[%s11197_s0 + $0x302] sm:$0x1] }
  0xfc   :  { %v12414_v29 = vmax.f32 %v12412_v13, %v12413_v18  ;;  %v439_v11 = vld [vmem:[%s11197_s0 + $0x2f2] sm:$0x1]  ;;  %v12417_v13 = vld [vmem:[#allocation50_spill] sm:$0xff]  ;;  %v12420_v18 = vld [vmem:[#allocation47_spill] sm:$0xff] }
  0xfd   :  { %12403 = vst [vmem:[#allocation17_spill] sm:$0xff] %v4388_v21  ;;  %v12421_v4 = vld [vmem:[#allocation51_spill] sm:$0xff]  ;;  %v12424_v53 = vld [vmem:[#allocation48_spill] sm:$0xff] }
  0xfe   :  { %12407 = vst [vmem:[#allocation21_spill] sm:$0xff] %v4393_v37  ;;  %v4403_v8 = vmax.f32 %v12414_v29, %v420_v15  ;;  %v12418_v15 = vmax.f32 %v12416_v9, %v12417_v13  ;;  %v12422_v48 = vmax.f32 %v12420_v18, %v12421_v4  ;;  %v12426_v58 = vmax.f32 %v12424_v53, %v12425_v0  ;;  %v442_v9 = vld [vmem:[%s11197_s0 + $0x322] sm:$0x1]  ;;  %v12441_v53 = vld [vmem:[#allocation60_spill] sm:$0xff] }
  0xff   :  { %12411 = vst [vmem:[#allocation22_spill] sm:$0xff] %v4398_v12  ;;  %v12429_v12 = vld [vmem:[#allocation53_spill] sm:$0xff]  ;;  %v12432_v13 = vld [vmem:[#allocation54_spill] sm:$0xff] }
 0x100   :  { %12415 = vst [vmem:[#allocation26_spill] sm:$0xff] %v4403_v8  ;;  %v4420_v29 = vmax.f32 %v12418_v15, %v421_v34  ;;  %v4425_v41 = vmax.f32 %v12422_v48, %v422_v19  ;;  %v4430_v5 = vmax.f32 %v12426_v58, %v423_v27  ;;  %v12428_v8 = vld [vmem:[#allocation49_spill] sm:$0xff]  ;;  %v441_v34 = vld [vmem:[%s11197_s0 + $0x312] sm:$0x1]  ;;  %v444_v27 = vld [vmem:[%s11197_s0 + $0x342] sm:$0x1] }
 0x101   :  { %v12430_v37 = vmax.f32 %v12428_v8, %v12429_v12  ;;  %v443_v19 = vld [vmem:[%s11197_s0 + $0x332] sm:$0x1]  ;;  %v12433_v8 = vld [vmem:[#allocation58_spill] sm:$0xff]  ;;  %v12436_v12 = vld [vmem:[#allocation55_spill] sm:$0xff] }
 0x102   :  { %12419 = vst [vmem:[#allocation23_spill] sm:$0xff] %v4420_v29  ;;  %v12437_v15 = vld [vmem:[#allocation59_spill] sm:$0xff]  ;;  %v12440_v48 = vld [vmem:[#allocation56_spill] sm:$0xff] }
 0x103   :  { %12423 = vst [vmem:[#allocation27_spill] sm:$0xff] %v4425_v41  ;;  %v4435_v21 = vmax.f32 %v12430_v37, %v424_v47  ;;  %v12434_v47 = vmax.f32 %v12432_v13, %v12433_v8  ;;  %v12438_v18 = vmax.f32 %v12436_v12, %v12437_v15  ;;  %v12442_v0 = vmax.f32 %v12440_v48, %v12441_v53  ;;  %v446_v13 = vld [vmem:[%s11197_s0 + $0x362] sm:$0x1]  ;;  %v12457_v48 = vld [vmem:[#allocation68_spill] sm:$0xff] }
 0x104   :  { %12427 = vst [vmem:[#allocation24_spill] sm:$0xff] %v4430_v5  ;;  %v12445_v5 = vld [vmem:[#allocation61_spill] sm:$0xff]  ;;  %v12448_v8 = vld [vmem:[#allocation62_spill] sm:$0xff] }
 0x105   :  { %12431 = vst [vmem:[#allocation28_spill] sm:$0xff] %v4435_v21  ;;  %v4452_v37 = vmax.f32 %v12434_v47, %v425_v43  ;;  %v4457_v4 = vmax.f32 %v12438_v18, %v426_v26  ;;  %v4462_v58 = vmax.f32 %v12442_v0, %v427_v35  ;;  %v12444_v21 = vld [vmem:[#allocation57_spill] sm:$0xff]  ;;  %v445_v43 = vld [vmem:[%s11197_s0 + $0x352] sm:$0x1]  ;;  %v448_v35 = vld [vmem:[%s11197_s0 + $0x382] sm:$0x1] }
 0x106   :  { %v12446_v41 = vmax.f32 %v12444_v21, %v12445_v5  ;;  %v447_v26 = vld [vmem:[%s11197_s0 + $0x372] sm:$0x1]  ;;  %v12449_v21 = vld [vmem:[#allocation66_spill] sm:$0xff]  ;;  %v12452_v5 = vld [vmem:[#allocation63_spill] sm:$0xff] }
 0x107   :  { %12435 = vst [vmem:[#allocation25_spill] sm:$0xff] %v4452_v37  ;;  %v12453_v47 = vld [vmem:[#allocation67_spill] sm:$0xff]  ;;  %v12456_v18 = vld [vmem:[#allocation64_spill] sm:$0xff] }
 0x108   :  { %12439 = vst [vmem:[#allocation29_spill] sm:$0xff] %v4457_v4  ;;  %v4467_v29 = vmax.f32 %v12446_v41, %v428_v24  ;;  %v12450_v24 = vmax.f32 %v12448_v8, %v12449_v21  ;;  %v12454_v12 = vmax.f32 %v12452_v5, %v12453_v47  ;;  %v12458_v53 = vmax.f32 %v12456_v18, %v12457_v48  ;;  %v450_v8 = vld [vmem:[%s11197_s0 + $0x3a2] sm:$0x1]  ;;  %v12473_v18 = vld [vmem:[#allocation76_spill] sm:$0xff] }
 0x109   :  { %12443 = vst [vmem:[#allocation30_spill] sm:$0xff] %v4462_v58  ;;  %v12461_v58 = vld [vmem:[#allocation69_spill] sm:$0xff]  ;;  %v12464_v21 = vld [vmem:[#allocation70_spill] sm:$0xff] }
 0x10a   :  { %12447 = vst [vmem:[#allocation34_spill] sm:$0xff] %v4467_v29  ;;  %v4484_v41 = vmax.f32 %v12450_v24, %v429_v44  ;;  %v4489_v15 = vmax.f32 %v12454_v12, %v430_v32  ;;  %v4494_v0 = vmax.f32 %v12458_v53, %v431_v36  ;;  %v12460_v29 = vld [vmem:[#allocation65_spill] sm:$0xff]  ;;  %v449_v44 = vld [vmem:[%s11197_s0 + $0x392] sm:$0x1]  ;;  %v452_v36 = vld [vmem:[%s11197_s0 + $0x3c2] sm:$0x1] }
 0x10b   :  { %v12462_v4 = vmax.f32 %v12460_v29, %v12461_v58  ;;  %v451_v32 = vld [vmem:[%s11197_s0 + $0x3b2] sm:$0x1]  ;;  %v12465_v29 = vld [vmem:[#allocation74_spill] sm:$0xff]  ;;  %v12468_v58 = vld [vmem:[#allocation71_spill] sm:$0xff] }
 0x10c   :  { %12451 = vst [vmem:[#allocation31_spill] sm:$0xff] %v4484_v41  ;;  %v12469_v24 = vld [vmem:[#allocation75_spill] sm:$0xff]  ;;  %v12472_v12 = vld [vmem:[#allocation72_spill] sm:$0xff] }
 0x10d   :  { %12455 = vst [vmem:[#allocation35_spill] sm:$0xff] %v4489_v15  ;;  %v4499_v37 = vmax.f32 %v12462_v4, %v432_v46  ;;  %v12466_v46 = vmax.f32 %v12464_v21, %v12465_v29  ;;  %v12470_v5 = vmax.f32 %v12468_v58, %v12469_v24  ;;  %v12474_v48 = vmax.f32 %v12472_v12, %v12473_v18  ;;  %v454_v21 = vld [vmem:[%s11197_s0 + $0x3e2] sm:$0x1]  ;;  %v12489_v12 = vld [vmem:[#allocation84_spill] sm:$0xff] }
 0x10e   :  { %12459 = vst [vmem:[#allocation32_spill] sm:$0xff] %v4494_v0  ;;  %v12477_v0 = vld [vmem:[#allocation77_spill] sm:$0xff]  ;;  %v12480_v29 = vld [vmem:[#allocation78_spill] sm:$0xff] }
 0x10f   :  { %12463 = vst [vmem:[#allocation36_spill] sm:$0xff] %v4499_v37  ;;  %v4516_v4 = vmax.f32 %v12466_v46, %v433_v2  ;;  %v4521_v47 = vmax.f32 %v12470_v5, %v434_v7  ;;  %v4526_v53 = vmax.f32 %v12474_v48, %v435_v3  ;;  %v12476_v37 = vld [vmem:[#allocation73_spill] sm:$0xff]  ;;  %v453_v2 = vld [vmem:[%s11197_s0 + $0x3d2] sm:$0x1]  ;;  %v456_v3 = vld [vmem:[%s11197_s0 + $0x402] sm:$0x1] }
 0x110   :  { %v12478_v15 = vmax.f32 %v12476_v37, %v12477_v0  ;;  %v455_v7 = vld [vmem:[%s11197_s0 + $0x3f2] sm:$0x1]  ;;  %v12481_v37 = vld [vmem:[#allocation82_spill] sm:$0xff]  ;;  %v12484_v0 = vld [vmem:[#allocation79_spill] sm:$0xff] }
 0x111   :  { %12467 = vst [vmem:[#allocation33_spill] sm:$0xff] %v4516_v4  ;;  %v12485_v46 = vld [vmem:[#allocation83_spill] sm:$0xff]  ;;  %v12488_v5 = vld [vmem:[#allocation80_spill] sm:$0xff] }
 0x112   :  { %12471 = vst [vmem:[#allocation37_spill] sm:$0xff] %v4521_v47  ;;  %v4531_v41 = vmax.f32 %v12478_v15, %v436_v6  ;;  %v12482_v6 = vmax.f32 %v12480_v29, %v12481_v37  ;;  %v12486_v58 = vmax.f32 %v12484_v0, %v12485_v46  ;;  %v12490_v18 = vmax.f32 %v12488_v5, %v12489_v12  ;;  %v458_v29 = vld [vmem:[%s11197_s0 + $0x422] sm:$0x1]  ;;  %v12505_v5 = vld [vmem:[#allocation92_spill] sm:$0xff] }
 0x113   :  { %12475 = vst [vmem:[#allocation38_spill] sm:$0xff] %v4526_v53  ;;  %v12493_v53 = vld [vmem:[#allocation85_spill] sm:$0xff]  ;;  %v12496_v37 = vld [vmem:[#allocation86_spill] sm:$0xff] }
 0x114   :  { %12479 = vst [vmem:[#allocation42_spill] sm:$0xff] %v4531_v41  ;;  %v4548_v15 = vmax.f32 %v12482_v6, %v437_v10  ;;  %v4553_v24 = vmax.f32 %v12486_v58, %v438_v59  ;;  %v4558_v48 = vmax.f32 %v12490_v18, %v439_v11  ;;  %v12492_v41 = vld [vmem:[#allocation81_spill] sm:$0xff]  ;;  %v457_v10 = vld [vmem:[%s11197_s0 + $0x412] sm:$0x1]  ;;  %v460_v11 = vld [vmem:[%s11197_s0 + $0x442] sm:$0x1] }
 0x115   :  { %v12494_v47 = vmax.f32 %v12492_v41, %v12493_v53  ;;  %v459_v59 = vld [vmem:[%s11197_s0 + $0x432] sm:$0x1]  ;;  %v12497_v41 = vld [vmem:[#allocation90_spill] sm:$0xff]  ;;  %v12500_v53 = vld [vmem:[#allocation87_spill] sm:$0xff] }
 0x116   :  { %12483 = vst [vmem:[#allocation39_spill] sm:$0xff] %v4548_v15  ;;  %v12501_v6 = vld [vmem:[#allocation91_spill] sm:$0xff]  ;;  %v12504_v58 = vld [vmem:[#allocation88_spill] sm:$0xff] }
 0x117   :  { %12487 = vst [vmem:[#allocation43_spill] sm:$0xff] %v4553_v24  ;;  %v4563_v4 = vmax.f32 %v12494_v47, %v440_v14  ;;  %v12498_v14 = vmax.f32 %v12496_v37, %v12497_v41  ;;  %v12502_v0 = vmax.f32 %v12500_v53, %v12501_v6  ;;  %v12506_v12 = vmax.f32 %v12504_v58, %v12505_v5  ;;  %v462_v37 = vld [vmem:[%s11197_s0 + $0x462] sm:$0x1]  ;;  %v12521_v58 = vld [vmem:[#allocation100_spill] sm:$0xff] }
 0x118   :  { %12491 = vst [vmem:[#allocation40_spill] sm:$0xff] %v4558_v48  ;;  %v12509_v48 = vld [vmem:[#allocation93_spill] sm:$0xff]  ;;  %v12512_v41 = vld [vmem:[#allocation94_spill] sm:$0xff] }
 0x119   :  { %12495 = vst [vmem:[#allocation44_spill] sm:$0xff] %v4563_v4  ;;  %v4580_v47 = vmax.f32 %v12498_v14, %v441_v34  ;;  %v4585_v46 = vmax.f32 %v12502_v0, %v442_v9  ;;  %v4590_v18 = vmax.f32 %v12506_v12, %v443_v19  ;;  %v12508_v4 = vld [vmem:[#allocation89_spill] sm:$0xff]  ;;  %v461_v34 = vld [vmem:[%s11197_s0 + $0x452] sm:$0x1]  ;;  %v464_v19 = vld [vmem:[%s11197_s0 + $0x482] sm:$0x1] }
 0x11a   :  { %v12510_v24 = vmax.f32 %v12508_v4, %v12509_v48  ;;  %v463_v9 = vld [vmem:[%s11197_s0 + $0x472] sm:$0x1]  ;;  %v12513_v4 = vld [vmem:[#allocation98_spill] sm:$0xff]  ;;  %v12516_v48 = vld [vmem:[#allocation95_spill] sm:$0xff] }
 0x11b   :  { %12499 = vst [vmem:[#allocation41_spill] sm:$0xff] %v4580_v47  ;;  %v12517_v14 = vld [vmem:[#allocation99_spill] sm:$0xff]  ;;  %v12520_v0 = vld [vmem:[#allocation96_spill] sm:$0xff] }
 0x11c   :  { %12503 = vst [vmem:[#allocation45_spill] sm:$0xff] %v4585_v46  ;;  %v4595_v15 = vmax.f32 %v12510_v24, %v444_v27  ;;  %v12514_v27 = vmax.f32 %v12512_v41, %v12513_v4  ;;  %v12518_v53 = vmax.f32 %v12516_v48, %v12517_v14  ;;  %v12522_v5 = vmax.f32 %v12520_v0, %v12521_v58  ;;  %v466_v41 = vld [vmem:[%s11197_s0 + $0x4a2] sm:$0x1]  ;;  %v12537_v0 = vld [vmem:[#allocation108_spill] sm:$0xff] }
 0x11d   :  { %12507 = vst [vmem:[#allocation46_spill] sm:$0xff] %v4590_v18  ;;  %v12525_v18 = vld [vmem:[#allocation101_spill] sm:$0xff]  ;;  %v12528_v4 = vld [vmem:[#allocation102_spill] sm:$0xff] }
 0x11e   :  { %12511 = vst [vmem:[#allocation50_spill] sm:$0xff] %v4595_v15  ;;  %v4612_v24 = vmax.f32 %v12514_v27, %v445_v43  ;;  %v4617_v6 = vmax.f32 %v12518_v53, %v446_v13  ;;  %v4622_v12 = vmax.f32 %v12522_v5, %v447_v26  ;;  %v12524_v15 = vld [vmem:[#allocation97_spill] sm:$0xff]  ;;  %v465_v43 = vld [vmem:[%s11197_s0 + $0x492] sm:$0x1]  ;;  %v468_v26 = vld [vmem:[%s11197_s0 + $0x4c2] sm:$0x1] }
 0x11f   :  { %v12526_v46 = vmax.f32 %v12524_v15, %v12525_v18  ;;  %v467_v13 = vld [vmem:[%s11197_s0 + $0x4b2] sm:$0x1]  ;;  %v12529_v15 = vld [vmem:[#allocation106_spill] sm:$0xff]  ;;  %v12532_v18 = vld [vmem:[#allocation103_spill] sm:$0xff] }
 0x120   :  { %12515 = vst [vmem:[#allocation47_spill] sm:$0xff] %v4612_v24  ;;  %v12533_v27 = vld [vmem:[#allocation107_spill] sm:$0xff]  ;;  %v12536_v53 = vld [vmem:[#allocation104_spill] sm:$0xff] }
 0x121   :  { %12519 = vst [vmem:[#allocation51_spill] sm:$0xff] %v4617_v6  ;;  %v4627_v47 = vmax.f32 %v12526_v46, %v448_v35  ;;  %v12530_v35 = vmax.f32 %v12528_v4, %v12529_v15  ;;  %v12534_v48 = vmax.f32 %v12532_v18, %v12533_v27  ;;  %v12538_v58 = vmax.f32 %v12536_v53, %v12537_v0  ;;  %v470_v4 = vld [vmem:[%s11197_s0 + $0x4e2] sm:$0x1]  ;;  %v12553_v53 = vld [vmem:[#allocation116_spill] sm:$0xff] }
 0x122   :  { %12523 = vst [vmem:[#allocation48_spill] sm:$0xff] %v4622_v12  ;;  %v12541_v12 = vld [vmem:[#allocation109_spill] sm:$0xff]  ;;  %v12544_v15 = vld [vmem:[#allocation110_spill] sm:$0xff] }
 0x123   :  { %12527 = vst [vmem:[#allocation52_spill] sm:$0xff] %v4627_v47  ;;  %v4644_v46 = vmax.f32 %v12530_v35, %v449_v44  ;;  %v4649_v14 = vmax.f32 %v12534_v48, %v450_v8  ;;  %v4654_v5 = vmax.f32 %v12538_v58, %v451_v32  ;;  %v12540_v47 = vld [vmem:[#allocation105_spill] sm:$0xff]  ;;  %v469_v44 = vld [vmem:[%s11197_s0 + $0x4d2] sm:$0x1]  ;;  %v472_v32 = vld [vmem:[%s11197_s0 + $0x502] sm:$0x1] }
 0x124   :  { %v12542_v6 = vmax.f32 %v12540_v47, %v12541_v12  ;;  %v471_v8 = vld [vmem:[%s11197_s0 + $0x4f2] sm:$0x1]  ;;  %v12545_v47 = vld [vmem:[#allocation114_spill] sm:$0xff]  ;;  %v12548_v12 = vld [vmem:[#allocation111_spill] sm:$0xff] }
 0x125   :  { %12531 = vst [vmem:[#allocation49_spill] sm:$0xff] %v4644_v46  ;;  %v12549_v35 = vld [vmem:[#allocation115_spill] sm:$0xff]  ;;  %v12552_v48 = vld [vmem:[#allocation112_spill] sm:$0xff] }
 0x126   :  { %12535 = vst [vmem:[#allocation53_spill] sm:$0xff] %v4649_v14  ;;  %v4659_v24 = vmax.f32 %v12542_v6, %v452_v36  ;;  %v12546_v36 = vmax.f32 %v12544_v15, %v12545_v47  ;;  %v12550_v18 = vmax.f32 %v12548_v12, %v12549_v35  ;;  %v12554_v0 = vmax.f32 %v12552_v48, %v12553_v53  ;;  %v474_v15 = vld [vmem:[%s11197_s0 + $0x522] sm:$0x1]  ;;  %v12569_v48 = vld [vmem:[#allocation124_spill] sm:$0xff] }
 0x127   :  { %12539 = vst [vmem:[#allocation54_spill] sm:$0xff] %v4654_v5  ;;  %v12557_v5 = vld [vmem:[#allocation117_spill] sm:$0xff]  ;;  %v12560_v47 = vld [vmem:[#allocation118_spill] sm:$0xff] }
 0x128   :  { %12543 = vst [vmem:[#allocation58_spill] sm:$0xff] %v4659_v24  ;;  %v4676_v6 = vmax.f32 %v12546_v36, %v453_v2  ;;  %v4681_v27 = vmax.f32 %v12550_v18, %v454_v21  ;;  %v4686_v58 = vmax.f32 %v12554_v0, %v455_v7  ;;  %v12556_v24 = vld [vmem:[#allocation113_spill] sm:$0xff]  ;;  %v473_v2 = vld [vmem:[%s11197_s0 + $0x512] sm:$0x1]  ;;  %v476_v7 = vld [vmem:[%s11197_s0 + $0x542] sm:$0x1] }
 0x129   :  { %v12558_v14 = vmax.f32 %v12556_v24, %v12557_v5  ;;  %v475_v21 = vld [vmem:[%s11197_s0 + $0x532] sm:$0x1]  ;;  %v12561_v24 = vld [vmem:[#allocation122_spill] sm:$0xff]  ;;  %v12564_v5 = vld [vmem:[#allocation119_spill] sm:$0xff] }
 0x12a   :  { %12547 = vst [vmem:[#allocation55_spill] sm:$0xff] %v4676_v6  ;;  %v12565_v36 = vld [vmem:[#allocation123_spill] sm:$0xff]  ;;  %v12568_v18 = vld [vmem:[#allocation120_spill] sm:$0xff] }
 0x12b   :  { %12551 = vst [vmem:[#allocation59_spill] sm:$0xff] %v4681_v27  ;;  %v4691_v46 = vmax.f32 %v12558_v14, %v456_v3  ;;  %v12562_v3 = vmax.f32 %v12560_v47, %v12561_v24  ;;  %v12566_v12 = vmax.f32 %v12564_v5, %v12565_v36  ;;  %v12570_v53 = vmax.f32 %v12568_v18, %v12569_v48  ;;  %v478_v47 = vld [vmem:[%s11197_s0 + $0x562] sm:$0x1]  ;;  %v12585_v18 = vld [vmem:[#allocation132_spill] sm:$0xff] }
 0x12c   :  { %12555 = vst [vmem:[#allocation56_spill] sm:$0xff] %v4686_v58  ;;  %v12573_v58 = vld [vmem:[#allocation125_spill] sm:$0xff]  ;;  %v12576_v24 = vld [vmem:[#allocation126_spill] sm:$0xff] }
 0x12d   :  { %12559 = vst [vmem:[#allocation60_spill] sm:$0xff] %v4691_v46  ;;  %v4708_v14 = vmax.f32 %v12562_v3, %v457_v10  ;;  %v4713_v35 = vmax.f32 %v12566_v12, %v458_v29  ;;  %v4718_v0 = vmax.f32 %v12570_v53, %v459_v59  ;;  %v12572_v46 = vld [vmem:[#allocation121_spill] sm:$0xff]  ;;  %v477_v10 = vld [vmem:[%s11197_s0 + $0x552] sm:$0x1]  ;;  %v480_v59 = vld [vmem:[%s11197_s0 + $0x582] sm:$0x1] }
 0x12e   :  { %v12574_v27 = vmax.f32 %v12572_v46, %v12573_v58  ;;  %v479_v29 = vld [vmem:[%s11197_s0 + $0x572] sm:$0x1]  ;;  %v12577_v46 = vld [vmem:[#allocation130_spill] sm:$0xff]  ;;  %v12580_v58 = vld [vmem:[#allocation127_spill] sm:$0xff]  ;;  %12801 = vst [vmem:[#allocation132_spill] sm:$0xff] %v5295_v56 }
 0x12f   :  { %12563 = vst [vmem:[#allocation57_spill] sm:$0xff] %v4708_v14  ;;  %v12581_v3 = vld [vmem:[#allocation131_spill] sm:$0xff]  ;;  %v12584_v12 = vld [vmem:[#allocation128_spill] sm:$0xff] }
 0x130   :  { %12567 = vst [vmem:[#allocation61_spill] sm:$0xff] %v4713_v35  ;;  %v4723_v6 = vmax.f32 %v12574_v27, %v460_v11  ;;  %v12578_v11 = vmax.f32 %v12576_v24, %v12577_v46  ;;  %v12582_v5 = vmax.f32 %v12580_v58, %v12581_v3  ;;  %v12586_v48 = vmax.f32 %v12584_v12, %v12585_v18  ;;  %v482_v24 = vld [vmem:[%s11197_s0 + $0x5a2] sm:$0x1]  ;;  %v12601_v12 = vld [vmem:[#allocation140_spill] sm:$0xff] }
 0x131   :  { %12571 = vst [vmem:[#allocation62_spill] sm:$0xff] %v4718_v0  ;;  %v12589_v0 = vld [vmem:[#allocation133_spill] sm:$0xff]  ;;  %v12592_v46 = vld [vmem:[#allocation134_spill] sm:$0xff]  ;;  %v5463_v56 = vld [vmem:[%s11197_s0 + $0x313] sm:$0x1] }
 0x132   :  { %12575 = vst [vmem:[#allocation66_spill] sm:$0xff] %v4723_v6  ;;  %v4740_v27 = vmax.f32 %v12578_v11, %v461_v34  ;;  %v4745_v36 = vmax.f32 %v12582_v5, %v462_v37  ;;  %v4750_v53 = vmax.f32 %v12586_v48, %v463_v9  ;;  %v12588_v6 = vld [vmem:[#allocation129_spill] sm:$0xff]  ;;  %v481_v34 = vld [vmem:[%s11197_s0 + $0x592] sm:$0x1]  ;;  %v484_v9 = vld [vmem:[%s11197_s0 + $0x5c2] sm:$0x1] }
 0x133   :  { %v12590_v35 = vmax.f32 %v12588_v6, %v12589_v0  ;;  %v483_v37 = vld [vmem:[%s11197_s0 + $0x5b2] sm:$0x1]  ;;  %v12593_v6 = vld [vmem:[#allocation138_spill] sm:$0xff]  ;;  %v12596_v0 = vld [vmem:[#allocation135_spill] sm:$0xff] }
 0x134   :  { %12579 = vst [vmem:[#allocation63_spill] sm:$0xff] %v4740_v27  ;;  %v12597_v11 = vld [vmem:[#allocation139_spill] sm:$0xff]  ;;  %v12600_v5 = vld [vmem:[#allocation136_spill] sm:$0xff] }
 0x135   :  { %12583 = vst [vmem:[#allocation67_spill] sm:$0xff] %v4745_v36  ;;  %v4755_v14 = vmax.f32 %v12590_v35, %v464_v19  ;;  %v12594_v19 = vmax.f32 %v12592_v46, %v12593_v6  ;;  %v12598_v58 = vmax.f32 %v12596_v0, %v12597_v11  ;;  %v12602_v18 = vmax.f32 %v12600_v5, %v12601_v12  ;;  %v486_v46 = vld [vmem:[%s11197_s0 + $0x5e2] sm:$0x1]  ;;  %v12617_v5 = vld [vmem:[#allocation148_spill] sm:$0xff] }
 0x136   :  { %12587 = vst [vmem:[#allocation64_spill] sm:$0xff] %v4750_v53  ;;  %v12605_v53 = vld [vmem:[#allocation141_spill] sm:$0xff]  ;;  %v12608_v6 = vld [vmem:[#allocation142_spill] sm:$0xff] }
 0x137   :  { %12591 = vst [vmem:[#allocation68_spill] sm:$0xff] %v4755_v14  ;;  %v4772_v35 = vmax.f32 %v12594_v19, %v465_v43  ;;  %v4777_v3 = vmax.f32 %v12598_v58, %v466_v41  ;;  %v4782_v48 = vmax.f32 %v12602_v18, %v467_v13  ;;  %v12604_v14 = vld [vmem:[#allocation137_spill] sm:$0xff]  ;;  %v485_v43 = vld [vmem:[%s11197_s0 + $0x5d2] sm:$0x1]  ;;  %v488_v13 = vld [vmem:[%s11197_s0 + $0x602] sm:$0x1] }
 0x138   :  { %v12606_v36 = vmax.f32 %v12604_v14, %v12605_v53  ;;  %v487_v41 = vld [vmem:[%s11197_s0 + $0x5f2] sm:$0x1]  ;;  %v12609_v14 = vld [vmem:[#allocation146_spill] sm:$0xff]  ;;  %v12612_v53 = vld [vmem:[#allocation143_spill] sm:$0xff] }
 0x139   :  { %12595 = vst [vmem:[#allocation65_spill] sm:$0xff] %v4772_v35  ;;  %v12613_v19 = vld [vmem:[#allocation147_spill] sm:$0xff]  ;;  %v12616_v58 = vld [vmem:[#allocation144_spill] sm:$0xff] }
 0x13a   :  { %12599 = vst [vmem:[#allocation69_spill] sm:$0xff] %v4777_v3  ;;  %v4787_v27 = vmax.f32 %v12606_v36, %v468_v26  ;;  %v12610_v26 = vmax.f32 %v12608_v6, %v12609_v14  ;;  %v12614_v0 = vmax.f32 %v12612_v53, %v12613_v19  ;;  %v12618_v12 = vmax.f32 %v12616_v58, %v12617_v5  ;;  %v490_v6 = vld [vmem:[%s11197_s0 + $0x622] sm:$0x1]  ;;  %v12633_v58 = vld [vmem:[#allocation156_spill] sm:$0xff] }
 0x13b   :  { %12603 = vst [vmem:[#allocation70_spill] sm:$0xff] %v4782_v48  ;;  %v12621_v48 = vld [vmem:[#allocation149_spill] sm:$0xff]  ;;  %v12624_v14 = vld [vmem:[#allocation150_spill] sm:$0xff] }
 0x13c   :  { %12607 = vst [vmem:[#allocation74_spill] sm:$0xff] %v4787_v27  ;;  %v4804_v36 = vmax.f32 %v12610_v26, %v469_v44  ;;  %v4809_v11 = vmax.f32 %v12614_v0, %v470_v4  ;;  %v4814_v18 = vmax.f32 %v12618_v12, %v471_v8  ;;  %v12620_v27 = vld [vmem:[#allocation145_spill] sm:$0xff]  ;;  %v489_v44 = vld [vmem:[%s11197_s0 + $0x612] sm:$0x1]  ;;  %v492_v8 = vld [vmem:[%s11197_s0 + $0x642] sm:$0x1] }
 0x13d   :  { %v12622_v3 = vmax.f32 %v12620_v27, %v12621_v48  ;;  %v491_v4 = vld [vmem:[%s11197_s0 + $0x632] sm:$0x1]  ;;  %v12625_v27 = vld [vmem:[#allocation154_spill] sm:$0xff]  ;;  %v12628_v48 = vld [vmem:[#allocation151_spill] sm:$0xff]  ;;  %12849 = vst [vmem:[#allocation156_spill] sm:$0xff] %v5463_v56 }
 0x13e   :  { %12611 = vst [vmem:[#allocation71_spill] sm:$0xff] %v4804_v36  ;;  %v12629_v26 = vld [vmem:[#allocation155_spill] sm:$0xff]  ;;  %v12632_v0 = vld [vmem:[#allocation152_spill] sm:$0xff] }
 0x13f   :  { %12615 = vst [vmem:[#allocation75_spill] sm:$0xff] %v4809_v11  ;;  %v4819_v35 = vmax.f32 %v12622_v3, %v472_v32  ;;  %v12626_v32 = vmax.f32 %v12624_v14, %v12625_v27  ;;  %v12630_v53 = vmax.f32 %v12628_v48, %v12629_v26  ;;  %v12634_v5 = vmax.f32 %v12632_v0, %v12633_v58  ;;  %v494_v14 = vld [vmem:[%s11197_s0 + $0x662] sm:$0x1]  ;;  %v12649_v0 = vld [vmem:[#allocation164_spill] sm:$0xff] }
 0x140   :  { %12619 = vst [vmem:[#allocation72_spill] sm:$0xff] %v4814_v18  ;;  %v12637_v18 = vld [vmem:[#allocation157_spill] sm:$0xff]  ;;  %v12640_v27 = vld [vmem:[#allocation158_spill] sm:$0xff]  ;;  %v5631_v56 = vld [vmem:[%s11197_s0 + $0x493] sm:$0x1] }
 0x141   :  { %12623 = vst [vmem:[#allocation76_spill] sm:$0xff] %v4819_v35  ;;  %v4836_v3 = vmax.f32 %v12626_v32, %v473_v2  ;;  %v4841_v19 = vmax.f32 %v12630_v53, %v474_v15  ;;  %v4846_v12 = vmax.f32 %v12634_v5, %v475_v21  ;;  %v12636_v35 = vld [vmem:[#allocation153_spill] sm:$0xff]  ;;  %v493_v2 = vld [vmem:[%s11197_s0 + $0x652] sm:$0x1]  ;;  %v496_v21 = vld [vmem:[%s11197_s0 + $0x682] sm:$0x1] }
 0x142   :  { %v12638_v11 = vmax.f32 %v12636_v35, %v12637_v18  ;;  %v495_v15 = vld [vmem:[%s11197_s0 + $0x672] sm:$0x1]  ;;  %v12641_v35 = vld [vmem:[#allocation162_spill] sm:$0xff]  ;;  %v12644_v18 = vld [vmem:[#allocation159_spill] sm:$0xff] }
 0x143   :  { %12627 = vst [vmem:[#allocation73_spill] sm:$0xff] %v4836_v3  ;;  %v12645_v32 = vld [vmem:[#allocation163_spill] sm:$0xff]  ;;  %v12648_v53 = vld [vmem:[#allocation160_spill] sm:$0xff] }
 0x144   :  { %12631 = vst [vmem:[#allocation77_spill] sm:$0xff] %v4841_v19  ;;  %v4851_v36 = vmax.f32 %v12638_v11, %v476_v7  ;;  %v12642_v7 = vmax.f32 %v12640_v27, %v12641_v35  ;;  %v12646_v48 = vmax.f32 %v12644_v18, %v12645_v32  ;;  %v12650_v58 = vmax.f32 %v12648_v53, %v12649_v0  ;;  %v498_v27 = vld [vmem:[%s11197_s0 + $0x6a2] sm:$0x1]  ;;  %v12665_v53 = vld [vmem:[#allocation172_spill] sm:$0xff] }
 0x145   :  { %12635 = vst [vmem:[#allocation78_spill] sm:$0xff] %v4846_v12  ;;  %v12653_v12 = vld [vmem:[#allocation165_spill] sm:$0xff]  ;;  %v12656_v35 = vld [vmem:[#allocation166_spill] sm:$0xff] }
 0x146   :  { %12639 = vst [vmem:[#allocation82_spill] sm:$0xff] %v4851_v36  ;;  %v4868_v11 = vmax.f32 %v12642_v7, %v477_v10  ;;  %v4873_v26 = vmax.f32 %v12646_v48, %v478_v47  ;;  %v4878_v5 = vmax.f32 %v12650_v58, %v479_v29  ;;  %v12652_v36 = vld [vmem:[#allocation161_spill] sm:$0xff]  ;;  %v497_v10 = vld [vmem:[%s11197_s0 + $0x692] sm:$0x1]  ;;  %v500_v29 = vld [vmem:[%s11197_s0 + $0x6c2] sm:$0x1] }
 0x147   :  { %v12654_v19 = vmax.f32 %v12652_v36, %v12653_v12  ;;  %v499_v47 = vld [vmem:[%s11197_s0 + $0x6b2] sm:$0x1]  ;;  %v12657_v36 = vld [vmem:[#allocation170_spill] sm:$0xff]  ;;  %v12660_v12 = vld [vmem:[#allocation167_spill] sm:$0xff] }
 0x148   :  { %12643 = vst [vmem:[#allocation79_spill] sm:$0xff] %v4868_v11  ;;  %v12661_v7 = vld [vmem:[#allocation171_spill] sm:$0xff]  ;;  %v12664_v48 = vld [vmem:[#allocation168_spill] sm:$0xff] }
 0x149   :  { %12647 = vst [vmem:[#allocation83_spill] sm:$0xff] %v4873_v26  ;;  %v4883_v3 = vmax.f32 %v12654_v19, %v480_v59  ;;  %v12658_v59 = vmax.f32 %v12656_v35, %v12657_v36  ;;  %v12662_v18 = vmax.f32 %v12660_v12, %v12661_v7  ;;  %v12666_v0 = vmax.f32 %v12664_v48, %v12665_v53  ;;  %v502_v35 = vld [vmem:[%s11197_s0 + $0x6e2] sm:$0x1]  ;;  %v12681_v48 = vld [vmem:[#allocation180_spill] sm:$0xff] }
 0x14a   :  { %12651 = vst [vmem:[#allocation80_spill] sm:$0xff] %v4878_v5  ;;  %v12669_v5 = vld [vmem:[#allocation173_spill] sm:$0xff]  ;;  %v12672_v36 = vld [vmem:[#allocation174_spill] sm:$0xff] }
 0x14b   :  { %12655 = vst [vmem:[#allocation84_spill] sm:$0xff] %v4883_v3  ;;  %v4900_v19 = vmax.f32 %v12658_v59, %v481_v34  ;;  %v4905_v32 = vmax.f32 %v12662_v18, %v482_v24  ;;  %v4910_v58 = vmax.f32 %v12666_v0, %v483_v37  ;;  %v12668_v3 = vld [vmem:[#allocation169_spill] sm:$0xff]  ;;  %v501_v34 = vld [vmem:[%s11197_s0 + $0x6d2] sm:$0x1]  ;;  %v504_v37 = vld [vmem:[%s11197_s0 + $0x702] sm:$0x1] }
 0x14c   :  { %v12670_v26 = vmax.f32 %v12668_v3, %v12669_v5  ;;  %v503_v24 = vld [vmem:[%s11197_s0 + $0x6f2] sm:$0x1]  ;;  %v12673_v3 = vld [vmem:[#allocation178_spill] sm:$0xff]  ;;  %v12676_v5 = vld [vmem:[#allocation175_spill] sm:$0xff]  ;;  %12897 = vst [vmem:[#allocation180_spill] sm:$0xff] %v5631_v56 }
 0x14d   :  { %12659 = vst [vmem:[#allocation81_spill] sm:$0xff] %v4900_v19  ;;  %v12677_v59 = vld [vmem:[#allocation179_spill] sm:$0xff]  ;;  %v12680_v18 = vld [vmem:[#allocation176_spill] sm:$0xff] }
 0x14e   :  { %12663 = vst [vmem:[#allocation85_spill] sm:$0xff] %v4905_v32  ;;  %v4915_v11 = vmax.f32 %v12670_v26, %v484_v9  ;;  %v12674_v9 = vmax.f32 %v12672_v36, %v12673_v3  ;;  %v12678_v12 = vmax.f32 %v12676_v5, %v12677_v59  ;;  %v12682_v53 = vmax.f32 %v12680_v18, %v12681_v48  ;;  %v506_v36 = vld [vmem:[%s11197_s0 + $0x722] sm:$0x1]  ;;  %v12696_v18 = vld [vmem:[#allocation188_spill] sm:$0xff] }
 0x14f   :  { %12667 = vst [vmem:[#allocation86_spill] sm:$0xff] %v4910_v58  ;;  %v12685_v58 = vld [vmem:[#allocation181_spill] sm:$0xff]  ;;  %v12688_v3 = vld [vmem:[#allocation182_spill] sm:$0xff]  ;;  %v5799_v56 = vld [vmem:[%s11197_s0 + $0x613] sm:$0x1] }
 0x150   :  { %12671 = vst [vmem:[#allocation90_spill] sm:$0xff] %v4915_v11  ;;  %v4932_v26 = vmax.f32 %v12674_v9, %v485_v43  ;;  %v4937_v7 = vmax.f32 %v12678_v12, %v486_v46  ;;  %v4942_v0 = vmax.f32 %v12682_v53, %v487_v41  ;;  %v12684_v11 = vld [vmem:[#allocation177_spill] sm:$0xff]  ;;  %v505_v43 = vld [vmem:[%s11197_s0 + $0x712] sm:$0x1]  ;;  %v508_v41 = vld [vmem:[%s11197_s0 + $0x742] sm:$0x1] }
 0x151   :  { %v12686_v32 = vmax.f32 %v12684_v11, %v12685_v58  ;;  %v507_v46 = vld [vmem:[%s11197_s0 + $0x732] sm:$0x1]  ;;  %v12689_v11 = vld [vmem:[#allocation186_spill] sm:$0xff]  ;;  %v12691_v58 = vld [vmem:[#allocation183_spill] sm:$0xff] }
 0x152   :  { %12675 = vst [vmem:[#allocation87_spill] sm:$0xff] %v4932_v26  ;;  %v12692_v9 = vld [vmem:[#allocation187_spill] sm:$0xff]  ;;  %v12695_v12 = vld [vmem:[#allocation184_spill] sm:$0xff] }
 0x153   :  { %12679 = vst [vmem:[#allocation91_spill] sm:$0xff] %v4937_v7  ;;  %v4947_v19 = vmax.f32 %v12686_v32, %v488_v13  ;;  %v12690_v13 = vmax.f32 %v12688_v3, %v12689_v11  ;;  %v12693_v5 = vmax.f32 %v12691_v58, %v12692_v9  ;;  %v12697_v48 = vmax.f32 %v12695_v12, %v12696_v18  ;;  %v510_v3 = vld [vmem:[%s11197_s0 + $0x762] sm:$0x1]  ;;  %v12708_v9 = vld [vmem:[#allocation191_spill] sm:$0xff] }
 0x154   :  { %12683 = vst [vmem:[#allocation88_spill] sm:$0xff] %v4942_v0  ;;  %v12700_v0 = vld [vmem:[#allocation189_spill] sm:$0xff]  ;;  %v12706_v11 = vld [vmem:[#allocation194_spill] sm:$0xff] }
 0x155   :  { %12687 = vst [vmem:[#allocation92_spill] sm:$0xff] %v4947_v19  ;;  %v4964_v32 = vmax.f32 %v12690_v13, %v489_v44  ;;  %v4969_v59 = vmax.f32 %v12693_v5, %v490_v6  ;;  %v4974_v53 = vmax.f32 %v12697_v48, %v491_v4  ;;  %v12699_v19 = vld [vmem:[#allocation185_spill] sm:$0xff]  ;;  %v509_v44 = vld [vmem:[%s11197_s0 + $0x752] sm:$0x1]  ;;  %v512_v4 = vld [vmem:[%s11197_s0 + $0x782] sm:$0x1] }
 0x156   :  { %v12701_v7 = vmax.f32 %v12699_v19, %v12700_v0  ;;  %v511_v6 = vld [vmem:[%s11197_s0 + $0x772] sm:$0x1]  ;;  %v12703_v19 = vld [vmem:[#allocation193_spill] sm:$0xff]  ;;  %v12705_v0 = vld [vmem:[#allocation190_spill] sm:$0xff] }
 0x157   :  { %12694 = vst [vmem:[#allocation89_spill] sm:$0xff] %v4969_v59  ;;  %v12707_v13 = vmax.f32 %v12705_v0, %v12706_v11  ;;  %v12709_v5 = vld [vmem:[#allocation195_spill] sm:$0xff]  ;;  %v12712_v48 = vld [vmem:[#allocation192_spill] sm:$0xff] }
 0x158   :  { %12698 = vst [vmem:[#allocation93_spill] sm:$0xff] %v4974_v53  ;;  %v4979_v26 = vmax.f32 %v12701_v7, %v492_v8  ;;  %v12704_v8 = vmax.f32 %v3764_v45, %v12703_v19  ;;  %v12710_v12 = vmax.f32 %v12708_v9, %v12709_v5  ;;  %v513_v45 = vld [vmem:[%s11197_s0 + $0x792] sm:$0x1]  ;;  %v12719_v0 = vld [vmem:[#allocation199_spill] sm:$0xff]  ;;  %v12722_v9 = vld [vmem:[#allocation198_spill] sm:$0xff] }
 0x159   :  { %v5001_v58 = vmax.f32 %v12707_v13, %v494_v14  ;;  %v515_v14 = vld [vmem:[%s11197_s0 + $0x7b2] sm:$0x1] }
 0x15a   :  { %12702 = vst [vmem:[#allocation94_spill] sm:$0xff] %v4979_v26  ;;  %v4996_v7 = vmax.f32 %v12704_v8, %v493_v2  ;;  %v5006_v18 = vmax.f32 %v12710_v12, %v495_v15  ;;  %v12713_v26 = vld [vmem:[#allocation196_spill] sm:$0xff]  ;;  %v514_v2 = vld [vmem:[%s11197_s0 + $0x7a2] sm:$0x1]  ;;  %v12718_v8 = vld [vmem:[#allocation197_spill] sm:$0xff] }
 0x15b   :  { %v12714_v53 = vmax.f32 %v12712_v48, %v12713_v26  ;;  %v516_v15 = vld [vmem:[%s11197_s0 + $0x7c2] sm:$0x1]  ;;  %v12720_v11 = vmax.f32 %v12718_v8, %v12719_v0  ;;  %v12723_v5 = vld [vmem:[#allocation200_spill] sm:$0xff] }
 0x15c   :  { %12711 = vst [vmem:[#allocation98_spill] sm:$0xff] %v5006_v18  ;;  %v12724_v12 = vmax.f32 %v12722_v9, %v12723_v5  ;;  %v12733_v9 = vld [vmem:[#allocation204_spill] sm:$0xff]  ;;  %v6000_v18 = vld [vmem:[%s11197_s0 + $0x7e3] sm:$0x1] }
 0x15d   :  { %v5011_v59 = vmax.f32 %v12714_v53, %v496_v21  ;;  %v12716_v21 = vmax.f32 %v3812_v57, %v3840_v22  ;;  %v12717_v53 = vmax.f32 %v3817_v17, %v3845_v60  ;;  %v5038_v13 = vmax.f32 %v12720_v11, %v499_v47  ;;  %v517_v22 = vld [vmem:[%s11197_s0 + $0x7d2] sm:$0x1]  ;;  %v518_v17 = vld [vmem:[%s11197_s0 + $0x7e2] sm:$0x1]  ;;  %v5057_v60 = vld [vmem:[%s11197_s0 + $0x3] sm:$0x1] }
 0x15e   :  { %v5043_v48 = vmax.f32 %v12724_v12, %v500_v29  ;;  %v519_v57 = vld [vmem:[%s11197_s0 + $0x7f2] sm:$0x1]  ;;  %v12727_v47 = vmax.f32 %v3865_v23, %v3893_v38  ;;  %v12732_v11 = vld [vmem:[#allocation202_spill] sm:$0xff]  ;;  %v5092_v38 = vld [vmem:[%s11197_s0 + $0x33] sm:$0x1] }
 0x15f   :  { %12715 = vst [vmem:[#allocation95_spill] sm:$0xff] %v5011_v59  ;;  %v5028_v26 = vmax.f32 %v12716_v21, %v497_v10  ;;  %v5033_v19 = vmax.f32 %v12717_v53, %v498_v27  ;;  %v12726_v10 = vmax.f32 %v3860_v49, %v3888_v30  ;;  %v12728_v21 = vld [vmem:[#allocation201_spill] sm:$0xff]  ;;  %v12729_v53 = vld [vmem:[#allocation203_spill] sm:$0xff]  ;;  %v12734_v5 = vmax.f32 %v12732_v11, %v12733_v9  ;;  %v5082_v30 = vld [vmem:[%s11197_s0 + $0x13] sm:$0x1] }
 0x160   :  { %12721 = vst [vmem:[#allocation99_spill] sm:$0xff] %v5038_v13  ;;  %v5067_v29 = vmax.f32 %v12727_v47, %v502_v35  ;;  %v12730_v8 = vmax.f32 %v12728_v21, %v12729_v53  ;;  %v5087_v23 = vld [vmem:[%s11197_s0 + $0x23] sm:$0x1]  ;;  %v12741_v47 = vld [vmem:[#allocation207_spill] sm:$0xff]  ;;  %v12745_v11 = vld [vmem:[#allocation208_spill] sm:$0xff] }
 0x161   :  { %12725 = vst [vmem:[#allocation96_spill] sm:$0xff] %v5043_v48  ;;  %v5062_v27 = vmax.f32 %v12726_v10, %v501_v34  ;;  %v5077_v12 = vmax.f32 %v12734_v5, %v504_v37  ;;  %v5097_v49 = vld [vmem:[%s11197_s0 + $0x43] sm:$0x1]  ;;  %v12738_v34 = vmax.f32 %v3908_v25, %v3936_v39  ;;  %v12740_v10 = vld [vmem:[#allocation205_spill] sm:$0xff]  ;;  %v5122_v25 = vld [vmem:[%s11197_s0 + $0x53] sm:$0x1] }
 0x162   :  { %v5072_v0 = vmax.f32 %v12730_v8, %v503_v24  ;;  %12736 = vst [vmem:[#allocation101_spill] sm:$0xff] %v5092_v38  ;;  %v12739_v24 = vmax.f32 %v3913_v31, %v3941_v20  ;;  %v12742_v21 = vmax.f32 %v12740_v10, %v12741_v47  ;;  %v12744_v8 = vld [vmem:[#allocation206_spill] sm:$0xff]  ;;  %v5132_v31 = vld [vmem:[%s11197_s0 + $0x73] sm:$0x1]  ;;  %v907_v59 = vld [vmem:[%s11197_s0 + $0x34] sm:$0x1] }
 0x163   :  { %12735 = vst [vmem:[#allocation97_spill] sm:$0xff] %v5077_v12  ;;  %v5102_v35 = vmax.f32 %v12738_v34, %v505_v43  ;;  %v12746_v9 = vmax.f32 %v12744_v8, %v12745_v11  ;;  %v5127_v20 = vld [vmem:[%s11197_s0 + $0x63] sm:$0x1]  ;;  %v12752_v43 = vmax.f32 %v3956_v33, %v3984_v51  ;;  %v12754_v34 = vld [vmem:[#allocation209_spill] sm:$0xff]  ;;  %v12759_v8 = vld [vmem:[#allocation212_spill] sm:$0xff] }
 0x164   :  { %12731 = vst [vmem:[#allocation100_spill] sm:$0xff] %v5072_v0  ;;  %v5107_v37 = vmax.f32 %v12739_v24, %v506_v36  ;;  %v5112_v53 = vmax.f32 %v12742_v21, %v507_v46  ;;  %v5137_v39 = vld [vmem:[%s11197_s0 + $0x83] sm:$0x1]  ;;  %v12753_v46 = vmax.f32 %v3961_v40, %v3989_v28  ;;  %v12755_v24 = vld [vmem:[#allocation211_spill] sm:$0xff]  ;;  %v5162_v33 = vld [vmem:[%s11197_s0 + $0x93] sm:$0x1] }
 0x165   :  { %12737 = vst [vmem:[#allocation102_spill] sm:$0xff] %v5097_v49  ;;  %v5117_v5 = vmax.f32 %v12746_v9, %v508_v41  ;;  %v5142_v36 = vmax.f32 %v12752_v43, %v509_v44  ;;  %v12756_v10 = vmax.f32 %v12754_v34, %v12755_v24  ;;  %v12758_v21 = vld [vmem:[#allocation210_spill] sm:$0xff]  ;;  %v5172_v40 = vld [vmem:[%s11197_s0 + $0xb3] sm:$0x1]  ;;  %v12766_v44 = vmax.f32 %v4004_v42, %v4032_v63 }
 0x166   :  { %12743 = vst [vmem:[#allocation106_spill] sm:$0xff] %v5112_v53  ;;  %v5147_v41 = vmax.f32 %v12753_v46, %v510_v3  ;;  %v12760_v11 = vmax.f32 %v12758_v21, %v12759_v8  ;;  %v5167_v28 = vld [vmem:[%s11197_s0 + $0xa3] sm:$0x1]  ;;  %v12769_v46 = vld [vmem:[#allocation213_spill] sm:$0xff]  ;;  %v12770_v34 = vld [vmem:[#allocation216_spill] sm:$0xff] }
 0x167   :  { %12747 = vst [vmem:[#allocation103_spill] sm:$0xff] %v5117_v5  ;;  %v5152_v47 = vmax.f32 %v12756_v10, %v511_v6  ;;  %v5177_v51 = vld [vmem:[%s11197_s0 + $0xc3] sm:$0x1]  ;;  %v5182_v3 = vmax.f32 %v12766_v44, %v513_v45  ;;  %v12767_v6 = vld [vmem:[#allocation215_spill] sm:$0xff]  ;;  %v12771_v24 = vmax.f32 %v12769_v46, %v12770_v34  ;;  %v12774_v8 = vld [vmem:[#allocation217_spill] sm:$0xff] }
 0x168   :  { %12748 = vst [vmem:[#allocation107_spill] sm:$0xff] %v5122_v25  ;;  %v5157_v9 = vmax.f32 %v12760_v11, %v512_v4  ;;  %v12768_v4 = vmax.f32 %v4009_v52, %v12767_v6  ;;  %v12773_v21 = vld [vmem:[#allocation214_spill] sm:$0xff]  ;;  %v5202_v42 = vld [vmem:[%s11197_s0 + $0xd3] sm:$0x1]  ;;  %v913_v53 = vld [vmem:[%s11197_s0 + $0x94] sm:$0x1] }
 0x169   :  { %12749 = vst [vmem:[#allocation104_spill] sm:$0xff] %v5127_v20  ;;  %v5192_v10 = vmax.f32 %v12771_v24, %v515_v14  ;;  %v12775_v11 = vmax.f32 %v12773_v21, %v12774_v8  ;;  %v5207_v52 = vld [vmem:[%s11197_s0 + $0xe3] sm:$0x1]  ;;  %v5212_v63 = vld [vmem:[%s11197_s0 + $0xf3] sm:$0x1] }
 0x16a   :  { %12750 = vst [vmem:[#allocation108_spill] sm:$0xff] %v5132_v31  ;;  %v5187_v43 = vmax.f32 %v12768_v4, %v514_v2  ;;  %v5217_v45 = vld [vmem:[%s11197_s0 + $0x103] sm:$0x1]  ;;  %v12781_v2 = vmax.f32 %v4052_v54, %v4075_v61  ;;  %v12785_v4 = vld [vmem:[#allocation219_spill] sm:$0xff]  ;;  %v12788_v24 = vld [vmem:[#allocation220_spill] sm:$0xff] }
 0x16b   :  { %12751 = vst [vmem:[#allocation105_spill] sm:$0xff] %v5137_v39  ;;  %v12784_v6 = vld [vmem:[#allocation218_spill] sm:$0xff]  ;;  %v5239_v8 = vld [vmem:[%s11197_s0 + $0x113] sm:$0x1]  ;;  %v923_v5 = vld [vmem:[%s11197_s0 + $0x134] sm:$0x1] }
 0x16c   :  { %12757 = vst [vmem:[#allocation109_spill] sm:$0xff] %v5152_v47  ;;  %v5222_v14 = vmax.f32 %v12781_v2, %v517_v22  ;;  %v12786_v46 = vmax.f32 %v12784_v6, %v12785_v4  ;;  %v5244_v54 = vld [vmem:[%s11197_s0 + $0x123] sm:$0x1]  ;;  %v5323_v25 = vld [vmem:[%s11197_s0 + $0x1d3] sm:$0x1] }
 0x16d   :  { %12761 = vst [vmem:[#allocation110_spill] sm:$0xff] %v5157_v9  ;;  %v5197_v9 = vmax.f32 %v12775_v11, %v516_v15  ;;  %v12782_v15 = vmax.f32 %v4057_v50, %v4080_v16  ;;  %v5249_v16 = vld [vmem:[%s11197_s0 + $0x133] sm:$0x1]  ;;  %v5254_v50 = vld [vmem:[%s11197_s0 + $0x143] sm:$0x1] }
 0x16e   :  { %12762 = vst [vmem:[#allocation114_spill] sm:$0xff] %v5162_v33  ;;  %v5232_v34 = vmax.f32 %v12786_v46, %v519_v57  ;;  %v5267_v11 = vld [vmem:[%s11197_s0 + $0x153] sm:$0x1]  ;;  %v5272_v2 = vld [vmem:[%s11197_s0 + $0x163] sm:$0x1]  ;;  %v12972_v46 = vld [vmem:[#allocation89_spill] sm:$0xff] }
 0x16f   :  { %12763 = vst [vmem:[#allocation111_spill] sm:$0xff] %v5167_v28  ;;  %v5227_v44 = vmax.f32 %v12782_v15, %v518_v17  ;;  %v5277_v15 = vld [vmem:[%s11197_s0 + $0x173] sm:$0x1]  ;;  %v5282_v6 = vld [vmem:[%s11197_s0 + $0x183] sm:$0x1] }
 0x170   :  { %12764 = vst [vmem:[#allocation115_spill] sm:$0xff] %v5172_v40  ;;  %v5300_v38 = vld [vmem:[%s11197_s0 + $0x1a3] sm:$0x1]  ;;  %v5305_v17 = vld [vmem:[%s11197_s0 + $0x1b3] sm:$0x1] }
 0x171   :  { %12765 = vst [vmem:[#allocation112_spill] sm:$0xff] %v5177_v51  ;;  %v5310_v61 = vld [vmem:[%s11197_s0 + $0x1c3] sm:$0x1]  ;;  %v5333_v21 = vld [vmem:[%s11197_s0 + $0x1f3] sm:$0x1] }
 0x172   :  { %12772 = vst [vmem:[#allocation116_spill] sm:$0xff] %v5192_v10  ;;  %v5328_v4 = vld [vmem:[%s11197_s0 + $0x1e3] sm:$0x1]  ;;  %v5351_v33 = vld [vmem:[%s11197_s0 + $0x213] sm:$0x1] }
 0x173   :  { %12776 = vst [vmem:[#allocation113_spill] sm:$0xff] %v5197_v9  ;;  %v5338_v22 = vld [vmem:[%s11197_s0 + $0x203] sm:$0x1]  ;;  %v5361_v20 = vld [vmem:[%s11197_s0 + $0x233] sm:$0x1]  ;;  %v12984_v9 = vmax.f32 %v12788_v24, %v5057_v60  ;;  %v12986_v60 = vmax.f32 %v4196_v1, %v5082_v30 }
 0x174   :  { %12777 = vst [vmem:[#allocation117_spill] sm:$0xff] %v5202_v42  ;;  %v5356_v49 = vld [vmem:[%s11197_s0 + $0x223] sm:$0x1]  ;;  %v5379_v42 = vld [vmem:[%s11197_s0 + $0x253] sm:$0x1] }
 0x175   :  { %12778 = vst [vmem:[#allocation118_spill] sm:$0xff] %v5207_v52  ;;  %v5366_v31 = vld [vmem:[%s11197_s0 + $0x243] sm:$0x1]  ;;  %v5389_v28 = vld [vmem:[%s11197_s0 + $0x273] sm:$0x1] }
 0x176   :  { %12779 = vst [vmem:[#allocation122_spill] sm:$0xff] %v5212_v63  ;;  %v5384_v57 = vld [vmem:[%s11197_s0 + $0x263] sm:$0x1]  ;;  %v5417_v52 = vld [vmem:[%s11197_s0 + $0x2b3] sm:$0x1] }
 0x177   :  { %12780 = vst [vmem:[#allocation119_spill] sm:$0xff] %v5217_v45  ;;  %v5394_v40 = vld [vmem:[%s11197_s0 + $0x283] sm:$0x1]  ;;  %v906_v13 = vld [vmem:[%s11197_s0 + $0x24] sm:$0x1] }
 0x178   :  { %12783 = vst [vmem:[#allocation123_spill] sm:$0xff] %v5227_v44  ;;  %v5412_v39 = vld [vmem:[%s11197_s0 + $0x2a3] sm:$0x1]  ;;  %v910_v0 = vld [vmem:[%s11197_s0 + $0x64] sm:$0x1] }
 0x179   :  { %12787 = vst [vmem:[#allocation120_spill] sm:$0xff] %v5232_v34  ;;  %v5422_v63 = vld [vmem:[%s11197_s0 + $0x2c3] sm:$0x1]  ;;  %v912_v48 = vld [vmem:[%s11197_s0 + $0x84] sm:$0x1]  ;;  %v12993_v34 = vld [vmem:[#allocation221_spill] sm:$0xff] }
 0x17a   :  { %12789 = vst [vmem:[#allocation124_spill] sm:$0xff] %v5239_v8  ;;  %v5407_v8 = vld [vmem:[%s11197_s0 + $0x293] sm:$0x1]  ;;  %v5440_v51 = vld [vmem:[%s11197_s0 + $0x2e3] sm:$0x1] }
 0x17b   :  { %12790 = vst [vmem:[#allocation121_spill] sm:$0xff] %v5244_v54  ;;  %v5445_v54 = vld [vmem:[%s11197_s0 + $0x2f3] sm:$0x1]  ;;  %v5468_v45 = vld [vmem:[%s11197_s0 + $0x323] sm:$0x1] }
 0x17c   :  { %12791 = vst [vmem:[#allocation125_spill] sm:$0xff] %v5249_v16  ;;  %v5450_v16 = vld [vmem:[%s11197_s0 + $0x303] sm:$0x1]  ;;  %v916_v12 = vld [vmem:[%s11197_s0 + $0xc4] sm:$0x1] }
 0x17d   :  { %12792 = vst [vmem:[#allocation126_spill] sm:$0xff] %v5254_v50  ;;  %v5496_v50 = vld [vmem:[%s11197_s0 + $0x363] sm:$0x1]  ;;  %v918_v47 = vld [vmem:[%s11197_s0 + $0xe4] sm:$0x1] }
 0x17e   :  { %12793 = vst [vmem:[#allocation130_spill] sm:$0xff] %v5267_v11  ;;  %v5435_v11 = vld [vmem:[%s11197_s0 + $0x2d3] sm:$0x1]  ;;  %v921_v10 = vld [vmem:[%s11197_s0 + $0x114] sm:$0x1] }
 0x17f   :  { %12794 = vst [vmem:[#allocation127_spill] sm:$0xff] %v5272_v2  ;;  %v5473_v2 = vld [vmem:[%s11197_s0 + $0x333] sm:$0x1]  ;;  %v925_v1 = vld [vmem:[%s11197_s0 + $0x154] sm:$0x1] }
 0x180   :  { %12795 = vst [vmem:[#allocation131_spill] sm:$0xff] %v5277_v15  ;;  %v5478_v15 = vld [vmem:[%s11197_s0 + $0x343] sm:$0x1] }
 0x181   :  { %12796 = vst [vmem:[#allocation128_spill] sm:$0xff] %v5282_v6  ;;  %v5524_v6 = vld [vmem:[%s11197_s0 + $0x3a3] sm:$0x1] }
 0x182   :  { %12802 = vst [vmem:[#allocation129_spill] sm:$0xff] %v5300_v38  ;;  %v5501_v38 = vld [vmem:[%s11197_s0 + $0x373] sm:$0x1] }
 0x183   :  { %12803 = vst [vmem:[#allocation133_spill] sm:$0xff] %v5305_v17  ;;  %v5506_v17 = vld [vmem:[%s11197_s0 + $0x383] sm:$0x1] }
 0x184   :  { %12804 = vst [vmem:[#allocation134_spill] sm:$0xff] %v5310_v61  ;;  %v5552_v61 = vld [vmem:[%s11197_s0 + $0x3e3] sm:$0x1] }
 0x185   :  { %12809 = vst [vmem:[#allocation138_spill] sm:$0xff] %v5323_v25  ;;  %v5491_v25 = vld [vmem:[%s11197_s0 + $0x353] sm:$0x1] }
 0x186   :  { %12810 = vst [vmem:[#allocation135_spill] sm:$0xff] %v5328_v4  ;;  %v5529_v4 = vld [vmem:[%s11197_s0 + $0x3b3] sm:$0x1] }
 0x187   :  { %12811 = vst [vmem:[#allocation139_spill] sm:$0xff] %v5333_v21  ;;  %v5534_v21 = vld [vmem:[%s11197_s0 + $0x3c3] sm:$0x1] }
 0x188   :  { %12812 = vst [vmem:[#allocation136_spill] sm:$0xff] %v5338_v22  ;;  %v5580_v22 = vld [vmem:[%s11197_s0 + $0x423] sm:$0x1] }
 0x189   :  { %12817 = vst [vmem:[#allocation140_spill] sm:$0xff] %v5351_v33  ;;  %v5519_v33 = vld [vmem:[%s11197_s0 + $0x393] sm:$0x1] }
 0x18a   :  { %12818 = vst [vmem:[#allocation137_spill] sm:$0xff] %v5356_v49  ;;  %v5557_v49 = vld [vmem:[%s11197_s0 + $0x3f3] sm:$0x1] }
 0x18b   :  { %12819 = vst [vmem:[#allocation141_spill] sm:$0xff] %v5361_v20  ;;  %v5562_v20 = vld [vmem:[%s11197_s0 + $0x403] sm:$0x1] }
 0x18c   :  { %12820 = vst [vmem:[#allocation142_spill] sm:$0xff] %v5366_v31  ;;  %v5608_v31 = vld [vmem:[%s11197_s0 + $0x463] sm:$0x1] }
 0x18d   :  { %12825 = vst [vmem:[#allocation146_spill] sm:$0xff] %v5379_v42  ;;  %v5547_v42 = vld [vmem:[%s11197_s0 + $0x3d3] sm:$0x1] }
 0x18e   :  { %12826 = vst [vmem:[#allocation143_spill] sm:$0xff] %v5384_v57  ;;  %v5585_v57 = vld [vmem:[%s11197_s0 + $0x433] sm:$0x1] }
 0x18f   :  { %12827 = vst [vmem:[#allocation147_spill] sm:$0xff] %v5389_v28  ;;  %v5590_v28 = vld [vmem:[%s11197_s0 + $0x443] sm:$0x1] }
 0x190   :  { %12828 = vst [vmem:[#allocation144_spill] sm:$0xff] %v5394_v40  ;;  %v5636_v40 = vld [vmem:[%s11197_s0 + $0x4a3] sm:$0x1] }
 0x191   :  { %12833 = vst [vmem:[#allocation148_spill] sm:$0xff] %v5407_v8  ;;  %v5575_v8 = vld [vmem:[%s11197_s0 + $0x413] sm:$0x1] }
 0x192   :  { %12834 = vst [vmem:[#allocation145_spill] sm:$0xff] %v5412_v39  ;;  %v5613_v39 = vld [vmem:[%s11197_s0 + $0x473] sm:$0x1] }
 0x193   :  { %12835 = vst [vmem:[#allocation149_spill] sm:$0xff] %v5417_v52  ;;  %v5618_v52 = vld [vmem:[%s11197_s0 + $0x483] sm:$0x1] }
 0x194   :  { %12836 = vst [vmem:[#allocation150_spill] sm:$0xff] %v5422_v63  ;;  %v5664_v63 = vld [vmem:[%s11197_s0 + $0x4e3] sm:$0x1] }
 0x195   :  { %12841 = vst [vmem:[#allocation154_spill] sm:$0xff] %v5435_v11  ;;  %v5603_v11 = vld [vmem:[%s11197_s0 + $0x453] sm:$0x1] }
 0x196   :  { %12842 = vst [vmem:[#allocation151_spill] sm:$0xff] %v5440_v51  ;;  %v5641_v51 = vld [vmem:[%s11197_s0 + $0x4b3] sm:$0x1] }
 0x197   :  { %12843 = vst [vmem:[#allocation155_spill] sm:$0xff] %v5445_v54  ;;  %v5646_v54 = vld [vmem:[%s11197_s0 + $0x4c3] sm:$0x1] }
 0x198   :  { %12844 = vst [vmem:[#allocation152_spill] sm:$0xff] %v5450_v16  ;;  %v5692_v16 = vld [vmem:[%s11197_s0 + $0x523] sm:$0x1] }
 0x199   :  { %12850 = vst [vmem:[#allocation153_spill] sm:$0xff] %v5468_v45  ;;  %v5669_v45 = vld [vmem:[%s11197_s0 + $0x4f3] sm:$0x1] }
 0x19a   :  { %12851 = vst [vmem:[#allocation157_spill] sm:$0xff] %v5473_v2  ;;  %v5674_v2 = vld [vmem:[%s11197_s0 + $0x503] sm:$0x1] }
 0x19b   :  { %12852 = vst [vmem:[#allocation158_spill] sm:$0xff] %v5478_v15  ;;  %v5720_v15 = vld [vmem:[%s11197_s0 + $0x563] sm:$0x1] }
 0x19c   :  { %12857 = vst [vmem:[#allocation162_spill] sm:$0xff] %v5491_v25  ;;  %v5659_v25 = vld [vmem:[%s11197_s0 + $0x4d3] sm:$0x1] }
 0x19d   :  { %12858 = vst [vmem:[#allocation159_spill] sm:$0xff] %v5496_v50  ;;  %v5697_v50 = vld [vmem:[%s11197_s0 + $0x533] sm:$0x1] }
 0x19e   :  { %12859 = vst [vmem:[#allocation163_spill] sm:$0xff] %v5501_v38  ;;  %v5702_v38 = vld [vmem:[%s11197_s0 + $0x543] sm:$0x1] }
 0x19f   :  { %12860 = vst [vmem:[#allocation160_spill] sm:$0xff] %v5506_v17  ;;  %v5748_v17 = vld [vmem:[%s11197_s0 + $0x5a3] sm:$0x1] }
 0x1a0   :  { %12865 = vst [vmem:[#allocation164_spill] sm:$0xff] %v5519_v33  ;;  %v5687_v33 = vld [vmem:[%s11197_s0 + $0x513] sm:$0x1] }
 0x1a1   :  { %12866 = vst [vmem:[#allocation161_spill] sm:$0xff] %v5524_v6  ;;  %v5725_v6 = vld [vmem:[%s11197_s0 + $0x573] sm:$0x1] }
 0x1a2   :  { %12867 = vst [vmem:[#allocation165_spill] sm:$0xff] %v5529_v4  ;;  %v5730_v4 = vld [vmem:[%s11197_s0 + $0x583] sm:$0x1] }
 0x1a3   :  { %12868 = vst [vmem:[#allocation166_spill] sm:$0xff] %v5534_v21  ;;  %v5776_v21 = vld [vmem:[%s11197_s0 + $0x5e3] sm:$0x1] }
 0x1a4   :  { %12873 = vst [vmem:[#allocation170_spill] sm:$0xff] %v5547_v42  ;;  %v5715_v42 = vld [vmem:[%s11197_s0 + $0x553] sm:$0x1] }
 0x1a5   :  { %12874 = vst [vmem:[#allocation167_spill] sm:$0xff] %v5552_v61  ;;  %v5753_v61 = vld [vmem:[%s11197_s0 + $0x5b3] sm:$0x1] }
 0x1a6   :  { %12875 = vst [vmem:[#allocation171_spill] sm:$0xff] %v5557_v49  ;;  %v5758_v49 = vld [vmem:[%s11197_s0 + $0x5c3] sm:$0x1] }
 0x1a7   :  { %12876 = vst [vmem:[#allocation168_spill] sm:$0xff] %v5562_v20  ;;  %v5804_v20 = vld [vmem:[%s11197_s0 + $0x623] sm:$0x1] }
 0x1a8   :  { %12881 = vst [vmem:[#allocation172_spill] sm:$0xff] %v5575_v8  ;;  %v5743_v8 = vld [vmem:[%s11197_s0 + $0x593] sm:$0x1] }
 0x1a9   :  { %12882 = vst [vmem:[#allocation169_spill] sm:$0xff] %v5580_v22  ;;  %v5781_v22 = vld [vmem:[%s11197_s0 + $0x5f3] sm:$0x1] }
 0x1aa   :  { %12883 = vst [vmem:[#allocation173_spill] sm:$0xff] %v5585_v57  ;;  %v5786_v57 = vld [vmem:[%s11197_s0 + $0x603] sm:$0x1] }
 0x1ab   :  { %12884 = vst [vmem:[#allocation174_spill] sm:$0xff] %v5590_v28  ;;  %v5832_v28 = vld [vmem:[%s11197_s0 + $0x663] sm:$0x1] }
 0x1ac   :  { %12889 = vst [vmem:[#allocation178_spill] sm:$0xff] %v5603_v11  ;;  %v5771_v11 = vld [vmem:[%s11197_s0 + $0x5d3] sm:$0x1] }
 0x1ad   :  { %12890 = vst [vmem:[#allocation175_spill] sm:$0xff] %v5608_v31  ;;  %v5809_v31 = vld [vmem:[%s11197_s0 + $0x633] sm:$0x1] }
 0x1ae   :  { %12891 = vst [vmem:[#allocation179_spill] sm:$0xff] %v5613_v39  ;;  %v5814_v39 = vld [vmem:[%s11197_s0 + $0x643] sm:$0x1] }
 0x1af   :  { %12892 = vst [vmem:[#allocation176_spill] sm:$0xff] %v5618_v52  ;;  %v5860_v52 = vld [vmem:[%s11197_s0 + $0x6a3] sm:$0x1] }
 0x1b0   :  { %12898 = vst [vmem:[#allocation177_spill] sm:$0xff] %v5636_v40  ;;  %v5837_v40 = vld [vmem:[%s11197_s0 + $0x673] sm:$0x1] }
 0x1b1   :  { %12899 = vst [vmem:[#allocation181_spill] sm:$0xff] %v5641_v51  ;;  %v5842_v51 = vld [vmem:[%s11197_s0 + $0x683] sm:$0x1] }
 0x1b2   :  { %12900 = vst [vmem:[#allocation182_spill] sm:$0xff] %v5646_v54  ;;  %v5888_v54 = vld [vmem:[%s11197_s0 + $0x6e3] sm:$0x1] }
 0x1b3   :  { %12905 = vst [vmem:[#allocation186_spill] sm:$0xff] %v5659_v25  ;;  %v5827_v25 = vld [vmem:[%s11197_s0 + $0x653] sm:$0x1] }
 0x1b4   :  { %12906 = vst [vmem:[#allocation183_spill] sm:$0xff] %v5664_v63  ;;  %v5865_v63 = vld [vmem:[%s11197_s0 + $0x6b3] sm:$0x1] }
 0x1b5   :  { %12907 = vst [vmem:[#allocation187_spill] sm:$0xff] %v5669_v45  ;;  %v5870_v45 = vld [vmem:[%s11197_s0 + $0x6c3] sm:$0x1] }
 0x1b6   :  { %12908 = vst [vmem:[#allocation184_spill] sm:$0xff] %v5674_v2  ;;  %v5916_v2 = vld [vmem:[%s11197_s0 + $0x723] sm:$0x1] }
 0x1b7   :  { %12913 = vst [vmem:[#allocation188_spill] sm:$0xff] %v5687_v33  ;;  %v5855_v33 = vld [vmem:[%s11197_s0 + $0x693] sm:$0x1] }
 0x1b8   :  { %12914 = vst [vmem:[#allocation185_spill] sm:$0xff] %v5692_v16  ;;  %v5893_v16 = vld [vmem:[%s11197_s0 + $0x6f3] sm:$0x1] }
 0x1b9   :  { %12915 = vst [vmem:[#allocation189_spill] sm:$0xff] %v5697_v50  ;;  %v5898_v50 = vld [vmem:[%s11197_s0 + $0x703] sm:$0x1] }
 0x1ba   :  { %12916 = vst [vmem:[#allocation193_spill] sm:$0xff] %v5702_v38  ;;  %v12965_v38 = vld [vmem:[#allocation87_spill] sm:$0xff] }
 0x1bb   :  { %12921 = vst [vmem:[#allocation190_spill] sm:$0xff] %v5715_v42  ;;  %v5883_v42 = vld [vmem:[%s11197_s0 + $0x6d3] sm:$0x1] }
 0x1bc   :  { %12922 = vst [vmem:[#allocation194_spill] sm:$0xff] %v5720_v15  ;;  %v5921_v15 = vld [vmem:[%s11197_s0 + $0x733] sm:$0x1] }
 0x1bd   :  { %12923 = vst [vmem:[#allocation191_spill] sm:$0xff] %v5725_v6  ;;  %v5926_v6 = vld [vmem:[%s11197_s0 + $0x743] sm:$0x1] }
 0x1be   :  { %12924 = vst [vmem:[#allocation195_spill] sm:$0xff] %v5730_v4  ;;  %v5977_v4 = vld [vmem:[%s11197_s0 + $0x7b3] sm:$0x1] }
 0x1bf   :  { %12929 = vst [vmem:[#allocation192_spill] sm:$0xff] %v5743_v8  ;;  %v5911_v8 = vld [vmem:[%s11197_s0 + $0x713] sm:$0x1] }
 0x1c0   :  { %12930 = vst [vmem:[#allocation196_spill] sm:$0xff] %v5748_v17  ;;  %v5972_v17 = vld [vmem:[%s11197_s0 + $0x7a3] sm:$0x1] }
 0x1c1   :  { %12931 = vst [vmem:[#allocation197_spill] sm:$0xff] %v5753_v61  ;;  %v908_v61 = vld [vmem:[%s11197_s0 + $0x44] sm:$0x1] }
 0x1c2   :  { %12932 = vst [vmem:[#allocation199_spill] sm:$0xff] %v5758_v49  ;;  %v5939_v49 = vld [vmem:[%s11197_s0 + $0x753] sm:$0x1] }
 0x1c3   :  { %12937 = vst [vmem:[#allocation198_spill] sm:$0xff] %v5771_v11  ;;  %v5944_v11 = vld [vmem:[%s11197_s0 + $0x763] sm:$0x1] }
 0x1c4   :  { %12938 = vst [vmem:[#allocation200_spill] sm:$0xff] %v5776_v21  ;;  %v6005_v21 = vld [vmem:[%s11197_s0 + $0x7f3] sm:$0x1] }
 0x1c5   :  { %12939 = vst [vmem:[#allocation201_spill] sm:$0xff] %v5781_v22  ;;  %v5954_v22 = vld [vmem:[%s11197_s0 + $0x783] sm:$0x1] }
 0x1c6   :  { %12940 = vst [vmem:[#allocation203_spill] sm:$0xff] %v5786_v57  ;;  %v5949_v57 = vld [vmem:[%s11197_s0 + $0x773] sm:$0x1] }
 0x1c7   :  { %12945 = vst [vmem:[#allocation202_spill] sm:$0xff] %v5809_v31  ;;  %v5967_v31 = vld [vmem:[%s11197_s0 + $0x793] sm:$0x1] }
 0x1c8   :  { %12946 = vst [vmem:[#allocation204_spill] sm:$0xff] %v5814_v39  ;;  %v5982_v39 = vld [vmem:[%s11197_s0 + $0x7c3] sm:$0x1] }
 0x1c9   :  { %12951 = vst [vmem:[#allocation205_spill] sm:$0xff] %v5837_v40  ;;  %v5995_v40 = vld [vmem:[%s11197_s0 + $0x7d3] sm:$0x1] }
 0x1ca   :  { %12952 = vst [vmem:[#allocation207_spill] sm:$0xff] %v5842_v51  ;;  %v904_v51 = vld [vmem:[%s11197_s0 + $0x4] sm:$0x1] }
 0x1cb   :  { %12957 = vst [vmem:[#allocation206_spill] sm:$0xff] %v5865_v63  ;;  %v905_v63 = vld [vmem:[%s11197_s0 + $0x14] sm:$0x1] }
 0x1cc   :  { %12958 = vst [vmem:[#allocation208_spill] sm:$0xff] %v5870_v45  ;;  %v911_v45 = vld [vmem:[%s11197_s0 + $0x74] sm:$0x1] }
 0x1cd   :  { %12963 = vst [vmem:[#allocation209_spill] sm:$0xff] %v5893_v16  ;;  %v909_v16 = vld [vmem:[%s11197_s0 + $0x54] sm:$0x1] }
 0x1ce   :  { %12964 = vst [vmem:[#allocation211_spill] sm:$0xff] %v5898_v50  ;;  %v915_v50 = vld [vmem:[%s11197_s0 + $0xb4] sm:$0x1] }
 0x1cf   :  { %12969 = vst [vmem:[#allocation210_spill] sm:$0xff] %v5916_v2  ;;  %v914_v2 = vld [vmem:[%s11197_s0 + $0xa4] sm:$0x1] }
 0x1d0   :  { %12970 = vst [vmem:[#allocation212_spill] sm:$0xff] %v5921_v15  ;;  %v920_v15 = vld [vmem:[%s11197_s0 + $0x104] sm:$0x1] }
 0x1d1   :  { %12971 = vst [vmem:[#allocation215_spill] sm:$0xff] %v5926_v6  ;;  %v919_v6 = vld [vmem:[%s11197_s0 + $0xf4] sm:$0x1] }
 0x1d2   :  { %12975 = vst [vmem:[#allocation213_spill] sm:$0xff] %v5949_v57  ;;  %v917_v57 = vld [vmem:[%s11197_s0 + $0xd4] sm:$0x1] }
 0x1d3   :  { %12976 = vst [vmem:[#allocation216_spill] sm:$0xff] %v5954_v22  ;;  %v12990_v22 = vld [vmem:[#allocation101_spill] sm:$0xff] }
 0x1d4   :  { %12977 = vst [vmem:[#allocation214_spill] sm:$0xff] %v5972_v17  ;;  %v922_v17 = vld [vmem:[%s11197_s0 + $0x124] sm:$0x1] }
 0x1d5   :  { %12978 = vst [vmem:[#allocation217_spill] sm:$0xff] %v5977_v4  ;;  %v6099_v4 = vmax.f32 %v12984_v9, %v904_v51  ;;  %v6116_v9 = vmax.f32 %v12986_v60, %v905_v63  ;;  %v12988_v51 = vmax.f32 %v4201_v62, %v5087_v23  ;;  %v926_v62 = vld [vmem:[%s11197_s0 + $0x164] sm:$0x1]  ;;  %v13001_v63 = vld [vmem:[#allocation223_spill] sm:$0xff] }
 0x1d6   :  { %12979 = vst [vmem:[#allocation218_spill] sm:$0xff] %v5982_v39  ;;  %v924_v39 = vld [vmem:[%s11197_s0 + $0x144] sm:$0x1] }
 0x1d7   :  { %12980 = vst [vmem:[#allocation219_spill] sm:$0xff] %v5995_v40  ;;  %v6121_v24 = vmax.f32 %v12988_v51, %v906_v13  ;;  %v927_v13 = vld [vmem:[%s11197_s0 + $0x174] sm:$0x1] }
 0x1d8   :  { %12981 = vst [vmem:[#allocation220_spill] sm:$0xff] %v6000_v18  ;;  %v12994_v18 = vld [vmem:[#allocation102_spill] sm:$0xff] }
 0x1d9   :  { %12982 = vst [vmem:[#allocation87_spill] sm:$0xff] %v6005_v21  ;;  %v12995_v44 = vmax.f32 %v12993_v34, %v12994_v18  ;;  %v12998_v18 = vld [vmem:[#allocation107_spill] sm:$0xff] }
 0x1da   :  { %12985 = vst [vmem:[#allocation89_spill] sm:$0xff] %v6099_v4  ;;  %v12991_v4 = vmax.f32 %v4206_v55, %v12990_v22  ;;  %v928_v55 = vld [vmem:[%s11197_s0 + $0x184] sm:$0x1] }
 0x1db   :  { %12987 = vst [vmem:[#allocation224_spill] sm:$0xff] %v6116_v9  ;;  %v6131_v40 = vmax.f32 %v12995_v44, %v908_v61  ;;  %v13002_v44 = vld [vmem:[#allocation104_spill] sm:$0xff]  ;;  %v13005_v22 = vld [vmem:[#allocation2_spill] sm:$0xff] }
 0x1dc   :  { %12989 = vst [vmem:[#allocation225_spill] sm:$0xff] %v6121_v24  ;;  %v6126_v21 = vmax.f32 %v12991_v4, %v907_v59  ;;  %v12997_v59 = vld [vmem:[#allocation222_spill] sm:$0xff]  ;;  %v13003_v34 = vmax.f32 %v13001_v63, %v13002_v44  ;;  %v13006_v4 = vld [vmem:[#allocation108_spill] sm:$0xff] }
 0x1dd   :  { %12996 = vst [vmem:[#allocation221_spill] sm:$0xff] %v6131_v40  ;;  %v12999_v30 = vmax.f32 %v12997_v59, %v12998_v18  ;;  %v13007_v60 = vmax.f32 %v13005_v22, %v13006_v4  ;;  %v13009_v40 = vld [vmem:[#allocation4_spill] sm:$0xff]  ;;  %v930_v59 = vld [vmem:[%s11197_s0 + $0x1a4] sm:$0x1]  ;;  %v13013_v18 = vld [vmem:[#allocation3_spill] sm:$0xff] }
 0x1de   :  { %12992 = vst [vmem:[#allocation101_spill] sm:$0xff] %v6126_v21  ;;  %v6153_v61 = vmax.f32 %v13003_v34, %v910_v0  ;;  %v13010_v21 = vld [vmem:[#allocation105_spill] sm:$0xff]  ;;  %v931_v0 = vld [vmem:[%s11197_s0 + $0x1b4] sm:$0x1]  ;;  %v13021_v34 = vld [vmem:[#allocation6_spill] sm:$0xff] }
 0x1df   :  { %v6148_v23 = vmax.f32 %v12999_v30, %v909_v16  ;;  %v6158_v51 = vmax.f32 %v13007_v60, %v911_v45  ;;  %v13011_v24 = vmax.f32 %v13009_v40, %v13010_v21  ;;  %v929_v16 = vld [vmem:[%s11197_s0 + $0x194] sm:$0x1]  ;;  %v932_v45 = vld [vmem:[%s11197_s0 + $0x1c4] sm:$0x1]  ;;  %v13018_v30 = vld [vmem:[#allocation111_spill] sm:$0xff] }
 0x1e0   :  { %13004 = vst [vmem:[#allocation222_spill] sm:$0xff] %v6153_v61  ;;  %v13014_v40 = vld [vmem:[#allocation114_spill] sm:$0xff]  ;;  %v13022_v22 = vld [vmem:[#allocation115_spill] sm:$0xff] }
 0x1e1   :  { %13000 = vst [vmem:[#allocation102_spill] sm:$0xff] %v6148_v23  ;;  %v6163_v9 = vmax.f32 %v13011_v24, %v912_v48  ;;  %v13015_v48 = vmax.f32 %v13013_v18, %v13014_v40  ;;  %v13017_v24 = vld [vmem:[#allocation5_spill] sm:$0xff]  ;;  %v13023_v4 = vmax.f32 %v13021_v34, %v13022_v22  ;;  %v934_v18 = vld [vmem:[%s11197_s0 + $0x1e4] sm:$0x1]  ;;  %v13029_v40 = vld [vmem:[#allocation7_spill] sm:$0xff] }
 0x1e2   :  { %13008 = vst [vmem:[#allocation107_spill] sm:$0xff] %v6158_v51  ;;  %v13019_v63 = vmax.f32 %v13017_v24, %v13018_v30  ;;  %v13026_v51 = vld [vmem:[#allocation112_spill] sm:$0xff]  ;;  %v13038_v34 = vld [vmem:[#allocation122_spill] sm:$0xff] }
 0x1e3   :  { %13012 = vst [vmem:[#allocation223_spill] sm:$0xff] %v6163_v9  ;;  %v6180_v21 = vmax.f32 %v13015_v48, %v913_v53  ;;  %v6190_v60 = vmax.f32 %v13023_v4, %v915_v50  ;;  %v13025_v9 = vld [vmem:[#allocation10_spill] sm:$0xff]  ;;  %v933_v53 = vld [vmem:[%s11197_s0 + $0x1d4] sm:$0x1] }
 0x1e4   :  { %v6185_v44 = vmax.f32 %v13019_v63, %v914_v2  ;;  %v13027_v61 = vmax.f32 %v13025_v9, %v13026_v51  ;;  %v935_v2 = vld [vmem:[%s11197_s0 + $0x1f4] sm:$0x1]  ;;  %v936_v50 = vld [vmem:[%s11197_s0 + $0x204] sm:$0x1]  ;;  %v13030_v9 = vld [vmem:[#allocation117_spill] sm:$0xff] }
 0x1e5   :  { %13016 = vst [vmem:[#allocation104_spill] sm:$0xff] %v6180_v21  ;;  %v13033_v51 = vld [vmem:[#allocation11_spill] sm:$0xff]  ;;  %v13034_v48 = vld [vmem:[#allocation118_spill] sm:$0xff]  ;;  %v13037_v63 = vld [vmem:[#allocation8_spill] sm:$0xff] }
 0x1e6   :  { %13020 = vst [vmem:[#allocation2_spill] sm:$0xff] %v6185_v44  ;;  %v6195_v23 = vmax.f32 %v13027_v61, %v916_v12  ;;  %v13031_v12 = vmax.f32 %v13029_v40, %v13030_v9  ;;  %v13035_v24 = vmax.f32 %v13033_v51, %v13034_v48  ;;  %v13039_v22 = vmax.f32 %v13037_v63, %v13038_v34  ;;  %v938_v40 = vld [vmem:[%s11197_s0 + $0x224] sm:$0x1]  ;;  %v13045_v9 = vld [vmem:[#allocation9_spill] sm:$0xff] }
 0x1e7   :  { %13024 = vst [vmem:[#allocation108_spill] sm:$0xff] %v6190_v60  ;;  %v13042_v60 = vld [vmem:[#allocation119_spill] sm:$0xff]  ;;  %v13054_v63 = vld [vmem:[#allocation125_spill] sm:$0xff] }
 0x1e8   :  { %13028 = vst [vmem:[#allocation4_spill] sm:$0xff] %v6195_v23  ;;  %v6212_v61 = vmax.f32 %v13031_v12, %v917_v57  ;;  %v6217_v30 = vmax.f32 %v13035_v24, %v918_v47  ;;  %v6222_v4 = vmax.f32 %v13039_v22, %v919_v6  ;;  %v13041_v23 = vld [vmem:[#allocation12_spill] sm:$0xff]  ;;  %v940_v6 = vld [vmem:[%s11197_s0 + $0x244] sm:$0x1]  ;;  %v13050_v12 = vld [vmem:[#allocation121_spill] sm:$0xff] }
 0x1e9   :  { %v13043_v44 = vmax.f32 %v13041_v23, %v13042_v60  ;;  %v937_v57 = vld [vmem:[%s11197_s0 + $0x214] sm:$0x1]  ;;  %v13049_v60 = vld [vmem:[#allocation13_spill] sm:$0xff]  ;;  %v13053_v24 = vld [vmem:[#allocation14_spill] sm:$0xff] }
 0x1ea   :  { %13032 = vst [vmem:[#allocation105_spill] sm:$0xff] %v6212_v61  ;;  %v939_v47 = vld [vmem:[%s11197_s0 + $0x234] sm:$0x1]  ;;  %v13051_v51 = vmax.f32 %v13049_v60, %v13050_v12  ;;  %v13055_v34 = vmax.f32 %v13053_v24, %v13054_v63  ;;  %v13070_v24 = vld [vmem:[#allocation131_spill] sm:$0xff] }
 0x1eb   :  { %13036 = vst [vmem:[#allocation3_spill] sm:$0xff] %v6217_v30  ;;  %v6227_v21 = vmax.f32 %v13043_v44, %v920_v15  ;;  %v13046_v23 = vld [vmem:[#allocation124_spill] sm:$0xff] }
 0x1ec   :  { %13040 = vst [vmem:[#allocation114_spill] sm:$0xff] %v6222_v4  ;;  %v13047_v15 = vmax.f32 %v13045_v9, %v13046_v23  ;;  %v6249_v48 = vmax.f32 %v13051_v51, %v922_v17  ;;  %v6254_v22 = vmax.f32 %v13055_v34, %v923_v5  ;;  %v13058_v4 = vld [vmem:[#allocation126_spill] sm:$0xff]  ;;  %v943_v17 = vld [vmem:[%s11197_s0 + $0x274] sm:$0x1]  ;;  %v13061_v23 = vld [vmem:[#allocation15_spill] sm:$0xff] }
 0x1ed   :  { %13044 = vst [vmem:[#allocation5_spill] sm:$0xff] %v6227_v21  ;;  %v13057_v21 = vld [vmem:[#allocation18_spill] sm:$0xff]  ;;  %v13069_v51 = vld [vmem:[#allocation16_spill] sm:$0xff] }
 0x1ee   :  { %v6244_v44 = vmax.f32 %v13047_v15, %v921_v10  ;;  %13052 = vst [vmem:[#allocation6_spill] sm:$0xff] %v6249_v48  ;;  %v13059_v30 = vmax.f32 %v13057_v21, %v13058_v4  ;;  %v941_v10 = vld [vmem:[%s11197_s0 + $0x254] sm:$0x1]  ;;  %v942_v9 = vld [vmem:[%s11197_s0 + $0x264] sm:$0x1]  ;;  %v13065_v4 = vld [vmem:[#allocation19_spill] sm:$0xff]  ;;  %v13071_v63 = vmax.f32 %v13069_v51, %v13070_v24 }
 0x1ef   :  { %13056 = vst [vmem:[#allocation115_spill] sm:$0xff] %v6254_v22  ;;  %v944_v5 = vld [vmem:[%s11197_s0 + $0x284] sm:$0x1]  ;;  %v13066_v15 = vld [vmem:[#allocation127_spill] sm:$0xff]  ;;  %v13074_v22 = vld [vmem:[#allocation128_spill] sm:$0xff] }
 0x1f0   :  { %13048 = vst [vmem:[#allocation111_spill] sm:$0xff] %v6244_v44  ;;  %v6259_v61 = vmax.f32 %v13059_v30, %v924_v39  ;;  %v13062_v21 = vld [vmem:[#allocation130_spill] sm:$0xff]  ;;  %v13067_v60 = vmax.f32 %v13065_v4, %v13066_v15  ;;  %v6286_v34 = vmax.f32 %v13071_v63, %v927_v13  ;;  %v13086_v51 = vld [vmem:[#allocation133_spill] sm:$0xff] }
 0x1f1   :  { %v13063_v39 = vmax.f32 %v13061_v23, %v13062_v21  ;;  %v946_v23 = vld [vmem:[%s11197_s0 + $0x2a4] sm:$0x1]  ;;  %v13077_v21 = vld [vmem:[#allocation17_spill] sm:$0xff] }
 0x1f2   :  { %13060 = vst [vmem:[#allocation10_spill] sm:$0xff] %v6259_v61  ;;  %v6281_v12 = vmax.f32 %v13067_v60, %v926_v62  ;;  %v13073_v61 = vld [vmem:[#allocation20_spill] sm:$0xff]  ;;  %v948_v13 = vld [vmem:[%s11197_s0 + $0x2c4] sm:$0x1] }
 0x1f3   :  { %v6276_v30 = vmax.f32 %v13063_v39, %v925_v1  ;;  %13072 = vst [vmem:[#allocation117_spill] sm:$0xff] %v6286_v34  ;;  %v13075_v48 = vmax.f32 %v13073_v61, %v13074_v22  ;;  %v945_v1 = vld [vmem:[%s11197_s0 + $0x294] sm:$0x1]  ;;  %v13081_v22 = vld [vmem:[#allocation21_spill] sm:$0xff]  ;;  %v13085_v60 = vld [vmem:[#allocation22_spill] sm:$0xff] }
 0x1f4   :  { %13068 = vst [vmem:[#allocation7_spill] sm:$0xff] %v6281_v12  ;;  %v947_v62 = vld [vmem:[%s11197_s0 + $0x2b4] sm:$0x1]  ;;  %v13082_v39 = vld [vmem:[#allocation129_spill] sm:$0xff]  ;;  %v13087_v24 = vmax.f32 %v13085_v60, %v13086_v51  ;;  %v13090_v34 = vld [vmem:[#allocation134_spill] sm:$0xff] }
 0x1f5   :  { %13064 = vst [vmem:[#allocation112_spill] sm:$0xff] %v6276_v30  ;;  %v6291_v44 = vmax.f32 %v13075_v48, %v928_v55  ;;  %v13078_v61 = vld [vmem:[#allocation132_spill] sm:$0xff]  ;;  %v13083_v4 = vmax.f32 %v13081_v22, %v13082_v39  ;;  %v13102_v60 = vld [vmem:[#allocation139_spill] sm:$0xff] }
 0x1f6   :  { %v13079_v55 = vmax.f32 %v13077_v21, %v13078_v61  ;;  %v6318_v63 = vmax.f32 %v13087_v24, %v931_v0  ;;  %v950_v21 = vld [vmem:[%s11197_s0 + $0x2e4] sm:$0x1]  ;;  %v13093_v61 = vld [vmem:[#allocation23_spill] sm:$0xff] }
 0x1f7   :  { %13076 = vst [vmem:[#allocation11_spill] sm:$0xff] %v6291_v44  ;;  %v6313_v15 = vmax.f32 %v13083_v4, %v930_v59  ;;  %v13089_v44 = vld [vmem:[#allocation26_spill] sm:$0xff]  ;;  %v951_v59 = vld [vmem:[%s11197_s0 + $0x2f4] sm:$0x1] }
 0x1f8   :  { %v6308_v48 = vmax.f32 %v13079_v55, %v929_v16  ;;  %13088 = vst [vmem:[#allocation122_spill] sm:$0xff] %v6318_v63  ;;  %v13091_v12 = vmax.f32 %v13089_v44, %v13090_v34  ;;  %v949_v16 = vld [vmem:[%s11197_s0 + $0x2d4] sm:$0x1]  ;;  %v952_v0 = vld [vmem:[%s11197_s0 + $0x304] sm:$0x1]  ;;  %v13097_v34 = vld [vmem:[#allocation27_spill] sm:$0xff] }
 0x1f9   :  { %13084 = vst [vmem:[#allocation8_spill] sm:$0xff] %v6313_v15  ;;  %v13094_v44 = vld [vmem:[#allocation138_spill] sm:$0xff]  ;;  %v13098_v55 = vld [vmem:[#allocation135_spill] sm:$0xff]  ;;  %v13101_v4 = vld [vmem:[#allocation24_spill] sm:$0xff] }
 0x1fa   :  { %13080 = vst [vmem:[#allocation118_spill] sm:$0xff] %v6308_v48  ;;  %v6323_v30 = vmax.f32 %v13091_v12, %v932_v45  ;;  %v13095_v45 = vmax.f32 %v13093_v61, %v13094_v44  ;;  %v13099_v22 = vmax.f32 %v13097_v34, %v13098_v55  ;;  %v13103_v51 = vmax.f32 %v13101_v4, %v13102_v60  ;;  %v13106_v63 = vld [vmem:[#allocation136_spill] sm:$0xff]  ;;  %v954_v61 = vld [vmem:[%s11197_s0 + $0x324] sm:$0x1]  ;;  %v13109_v44 = vld [vmem:[#allocation25_spill] sm:$0xff] }
 0x1fb   :  { %v13118_v4 = vld [vmem:[#allocation141_spill] sm:$0xff] }
 0x1fc   :  { %13092 = vst [vmem:[#allocation12_spill] sm:$0xff] %v6323_v30  ;;  %v6340_v12 = vmax.f32 %v13095_v45, %v933_v53  ;;  %v6345_v39 = vmax.f32 %v13099_v22, %v934_v18  ;;  %v6350_v24 = vmax.f32 %v13103_v51, %v935_v2  ;;  %v13105_v30 = vld [vmem:[#allocation28_spill] sm:$0xff]  ;;  %v956_v2 = vld [vmem:[%s11197_s0 + $0x344] sm:$0x1]  ;;  %v13114_v45 = vld [vmem:[#allocation137_spill] sm:$0xff] }
 0x1fd   :  { %v13107_v15 = vmax.f32 %v13105_v30, %v13106_v63  ;;  %v953_v53 = vld [vmem:[%s11197_s0 + $0x314] sm:$0x1]  ;;  %v13113_v63 = vld [vmem:[#allocation29_spill] sm:$0xff]  ;;  %v13117_v22 = vld [vmem:[#allocation30_spill] sm:$0xff] }
 0x1fe   :  { %13096 = vst [vmem:[#allocation119_spill] sm:$0xff] %v6340_v12  ;;  %v955_v18 = vld [vmem:[%s11197_s0 + $0x334] sm:$0x1]  ;;  %v13115_v34 = vmax.f32 %v13113_v63, %v13114_v45  ;;  %v13119_v60 = vmax.f32 %v13117_v22, %v13118_v4  ;;  %v13134_v22 = vld [vmem:[#allocation147_spill] sm:$0xff] }
 0x1ff   :  { %13100 = vst [vmem:[#allocation9_spill] sm:$0xff] %v6345_v39  ;;  %v6355_v48 = vmax.f32 %v13107_v15, %v936_v50  ;;  %v13110_v30 = vld [vmem:[#allocation140_spill] sm:$0xff] }
 0x200   :  { %13104 = vst [vmem:[#allocation124_spill] sm:$0xff] %v6350_v24  ;;  %v13111_v50 = vmax.f32 %v13109_v44, %v13110_v30  ;;  %v6377_v55 = vmax.f32 %v13115_v34, %v938_v40  ;;  %v6382_v51 = vmax.f32 %v13119_v60, %v939_v47  ;;  %v13122_v24 = vld [vmem:[#allocation142_spill] sm:$0xff]  ;;  %v959_v40 = vld [vmem:[%s11197_s0 + $0x374] sm:$0x1]  ;;  %v13125_v30 = vld [vmem:[#allocation31_spill] sm:$0xff] }
 0x201   :  { %13108 = vst [vmem:[#allocation13_spill] sm:$0xff] %v6355_v48  ;;  %v13121_v48 = vld [vmem:[#allocation34_spill] sm:$0xff]  ;;  %v13133_v34 = vld [vmem:[#allocation32_spill] sm:$0xff] }
 0x202   :  { %v6372_v15 = vmax.f32 %v13111_v50, %v937_v57  ;;  %13116 = vst [vmem:[#allocation14_spill] sm:$0xff] %v6377_v55  ;;  %v13123_v39 = vmax.f32 %v13121_v48, %v13122_v24  ;;  %v957_v57 = vld [vmem:[%s11197_s0 + $0x354] sm:$0x1]  ;;  %v958_v44 = vld [vmem:[%s11197_s0 + $0x364] sm:$0x1]  ;;  %v13129_v24 = vld [vmem:[#allocation35_spill] sm:$0xff]  ;;  %v13135_v4 = vmax.f32 %v13133_v34, %v13134_v22 }
 0x203   :  { %13120 = vst [vmem:[#allocation125_spill] sm:$0xff] %v6382_v51  ;;  %v960_v47 = vld [vmem:[%s11197_s0 + $0x384] sm:$0x1]  ;;  %v13130_v50 = vld [vmem:[#allocation143_spill] sm:$0xff]  ;;  %v13138_v51 = vld [vmem:[#allocation144_spill] sm:$0xff] }
 0x204   :  { %13112 = vst [vmem:[#allocation121_spill] sm:$0xff] %v6372_v15  ;;  %v6387_v12 = vmax.f32 %v13123_v39, %v940_v6  ;;  %v13126_v48 = vld [vmem:[#allocation146_spill] sm:$0xff]  ;;  %v13131_v63 = vmax.f32 %v13129_v24, %v13130_v50  ;;  %v6414_v60 = vmax.f32 %v13135_v4, %v943_v17  ;;  %v13150_v34 = vld [vmem:[#allocation149_spill] sm:$0xff] }
 0x205   :  { %v13127_v6 = vmax.f32 %v13125_v30, %v13126_v48  ;;  %v962_v30 = vld [vmem:[%s11197_s0 + $0x3a4] sm:$0x1]  ;;  %v13141_v48 = vld [vmem:[#allocation33_spill] sm:$0xff] }
 0x206   :  { %13124 = vst [vmem:[#allocation18_spill] sm:$0xff] %v6387_v12  ;;  %v6409_v45 = vmax.f32 %v13131_v63, %v942_v9  ;;  %v13137_v12 = vld [vmem:[#allocation36_spill] sm:$0xff]  ;;  %v964_v17 = vld [vmem:[%s11197_s0 + $0x3c4] sm:$0x1] }
 0x207   :  { %v6404_v39 = vmax.f32 %v13127_v6, %v941_v10  ;;  %13136 = vst [vmem:[#allocation130_spill] sm:$0xff] %v6414_v60  ;;  %v13139_v55 = vmax.f32 %v13137_v12, %v13138_v51  ;;  %v961_v10 = vld [vmem:[%s11197_s0 + $0x394] sm:$0x1]  ;;  %v13145_v51 = vld [vmem:[#allocation37_spill] sm:$0xff]  ;;  %v13149_v63 = vld [vmem:[#allocation38_spill] sm:$0xff] }
 0x208   :  { %13132 = vst [vmem:[#allocation15_spill] sm:$0xff] %v6409_v45  ;;  %v963_v9 = vld [vmem:[%s11197_s0 + $0x3b4] sm:$0x1]  ;;  %v13146_v6 = vld [vmem:[#allocation145_spill] sm:$0xff]  ;;  %v13151_v22 = vmax.f32 %v13149_v63, %v13150_v34  ;;  %v13154_v60 = vld [vmem:[#allocation150_spill] sm:$0xff] }
 0x209   :  { %13128 = vst [vmem:[#allocation126_spill] sm:$0xff] %v6404_v39  ;;  %v6419_v15 = vmax.f32 %v13139_v55, %v944_v5  ;;  %v13142_v12 = vld [vmem:[#allocation148_spill] sm:$0xff]  ;;  %v13147_v24 = vmax.f32 %v13145_v51, %v13146_v6  ;;  %v13166_v63 = vld [vmem:[#allocation155_spill] sm:$0xff] }
 0x20a   :  { %v13143_v5 = vmax.f32 %v13141_v48, %v13142_v12  ;;  %v6446_v4 = vmax.f32 %v13151_v22, %v947_v62  ;;  %v966_v48 = vld [vmem:[%s11197_s0 + $0x3e4] sm:$0x1]  ;;  %v13157_v12 = vld [vmem:[#allocation39_spill] sm:$0xff] }
 0x20b   :  { %13140 = vst [vmem:[#allocation19_spill] sm:$0xff] %v6419_v15  ;;  %v6441_v50 = vmax.f32 %v13147_v24, %v946_v23  ;;  %v13153_v15 = vld [vmem:[#allocation42_spill] sm:$0xff]  ;;  %v967_v23 = vld [vmem:[%s11197_s0 + $0x3f4] sm:$0x1] }
 0x20c   :  { %v6436_v55 = vmax.f32 %v13143_v5, %v945_v1  ;;  %13152 = vst [vmem:[#allocation131_spill] sm:$0xff] %v6446_v4  ;;  %v13155_v45 = vmax.f32 %v13153_v15, %v13154_v60  ;;  %v965_v1 = vld [vmem:[%s11197_s0 + $0x3d4] sm:$0x1]  ;;  %v968_v62 = vld [vmem:[%s11197_s0 + $0x404] sm:$0x1]  ;;  %v13161_v60 = vld [vmem:[#allocation43_spill] sm:$0xff] }
 0x20d   :  { %13148 = vst [vmem:[#allocation16_spill] sm:$0xff] %v6441_v50  ;;  %v13158_v15 = vld [vmem:[#allocation154_spill] sm:$0xff]  ;;  %v13162_v5 = vld [vmem:[#allocation151_spill] sm:$0xff]  ;;  %v13165_v24 = vld [vmem:[#allocation40_spill] sm:$0xff] }
 0x20e   :  { %13144 = vst [vmem:[#allocation127_spill] sm:$0xff] %v6436_v55  ;;  %v6451_v39 = vmax.f32 %v13155_v45, %v948_v13  ;;  %v13159_v13 = vmax.f32 %v13157_v12, %v13158_v15  ;;  %v13163_v51 = vmax.f32 %v13161_v60, %v13162_v5  ;;  %v13167_v34 = vmax.f32 %v13165_v24, %v13166_v63  ;;  %v13170_v4 = vld [vmem:[#allocation152_spill] sm:$0xff]  ;;  %v970_v12 = vld [vmem:[%s11197_s0 + $0x424] sm:$0x1]  ;;  %v13173_v15 = vld [vmem:[#allocation41_spill] sm:$0xff] }
 0x20f   :  { %v13182_v24 = vld [vmem:[#allocation157_spill] sm:$0xff] }
 0x210   :  { %13156 = vst [vmem:[#allocation20_spill] sm:$0xff] %v6451_v39  ;;  %v6468_v45 = vmax.f32 %v13159_v13, %v949_v16  ;;  %v6473_v6 = vmax.f32 %v13163_v51, %v950_v21  ;;  %v6478_v22 = vmax.f32 %v13167_v34, %v951_v59  ;;  %v13169_v39 = vld [vmem:[#allocation44_spill] sm:$0xff]  ;;  %v972_v59 = vld [vmem:[%s11197_s0 + $0x444] sm:$0x1]  ;;  %v13178_v13 = vld [vmem:[#allocation153_spill] sm:$0xff] }
 0x211   :  { %v13171_v50 = vmax.f32 %v13169_v39, %v13170_v4  ;;  %v969_v16 = vld [vmem:[%s11197_s0 + $0x414] sm:$0x1]  ;;  %v13177_v4 = vld [vmem:[#allocation45_spill] sm:$0xff]  ;;  %v13181_v51 = vld [vmem:[#allocation46_spill] sm:$0xff] }
 0x212   :  { %13160 = vst [vmem:[#allocation128_spill] sm:$0xff] %v6468_v45  ;;  %v971_v21 = vld [vmem:[%s11197_s0 + $0x434] sm:$0x1]  ;;  %v13179_v60 = vmax.f32 %v13177_v4, %v13178_v13  ;;  %v13183_v63 = vmax.f32 %v13181_v51, %v13182_v24  ;;  %v13198_v51 = vld [vmem:[#allocation163_spill] sm:$0xff] }
 0x213   :  { %13164 = vst [vmem:[#allocation17_spill] sm:$0xff] %v6473_v6  ;;  %v6483_v55 = vmax.f32 %v13171_v50, %v952_v0  ;;  %v13174_v39 = vld [vmem:[#allocation156_spill] sm:$0xff] }
 0x214   :  { %13168 = vst [vmem:[#allocation132_spill] sm:$0xff] %v6478_v22  ;;  %v13175_v0 = vmax.f32 %v13173_v15, %v13174_v39  ;;  %v6505_v5 = vmax.f32 %v13179_v60, %v954_v61  ;;  %v6510_v34 = vmax.f32 %v13183_v63, %v955_v18  ;;  %v13186_v22 = vld [vmem:[#allocation158_spill] sm:$0xff]  ;;  %v975_v61 = vld [vmem:[%s11197_s0 + $0x474] sm:$0x1]  ;;  %v13189_v39 = vld [vmem:[#allocation47_spill] sm:$0xff] }
 0x215   :  { %13172 = vst [vmem:[#allocation21_spill] sm:$0xff] %v6483_v55  ;;  %v13185_v55 = vld [vmem:[#allocation50_spill] sm:$0xff]  ;;  %v13197_v60 = vld [vmem:[#allocation48_spill] sm:$0xff] }
 0x216   :  { %v6500_v50 = vmax.f32 %v13175_v0, %v953_v53  ;;  %13180 = vst [vmem:[#allocation22_spill] sm:$0xff] %v6505_v5  ;;  %v13187_v6 = vmax.f32 %v13185_v55, %v13186_v22  ;;  %v973_v53 = vld [vmem:[%s11197_s0 + $0x454] sm:$0x1]  ;;  %v974_v15 = vld [vmem:[%s11197_s0 + $0x464] sm:$0x1]  ;;  %v13193_v22 = vld [vmem:[#allocation51_spill] sm:$0xff]  ;;  %v13199_v24 = vmax.f32 %v13197_v60, %v13198_v51 }
 0x217   :  { %13184 = vst [vmem:[#allocation133_spill] sm:$0xff] %v6510_v34  ;;  %v976_v18 = vld [vmem:[%s11197_s0 + $0x484] sm:$0x1]  ;;  %v13194_v0 = vld [vmem:[#allocation159_spill] sm:$0xff]  ;;  %v13202_v34 = vld [vmem:[#allocation160_spill] sm:$0xff] }
 0x218   :  { %13176 = vst [vmem:[#allocation129_spill] sm:$0xff] %v6500_v50  ;;  %v6515_v45 = vmax.f32 %v13187_v6, %v956_v2  ;;  %v13190_v55 = vld [vmem:[#allocation162_spill] sm:$0xff]  ;;  %v13195_v4 = vmax.f32 %v13193_v22, %v13194_v0  ;;  %v6542_v63 = vmax.f32 %v13199_v24, %v959_v40  ;;  %v13214_v60 = vld [vmem:[#allocation165_spill] sm:$0xff] }
 0x219   :  { %v13191_v2 = vmax.f32 %v13189_v39, %v13190_v55  ;;  %v978_v39 = vld [vmem:[%s11197_s0 + $0x4a4] sm:$0x1]  ;;  %v13205_v55 = vld [vmem:[#allocation49_spill] sm:$0xff] }
 0x21a   :  { %13188 = vst [vmem:[#allocation26_spill] sm:$0xff] %v6515_v45  ;;  %v6537_v13 = vmax.f32 %v13195_v4, %v958_v44  ;;  %v13201_v45 = vld [vmem:[#allocation52_spill] sm:$0xff]  ;;  %v980_v40 = vld [vmem:[%s11197_s0 + $0x4c4] sm:$0x1] }
 0x21b   :  { %v6532_v6 = vmax.f32 %v13191_v2, %v957_v57  ;;  %13200 = vst [vmem:[#allocation138_spill] sm:$0xff] %v6542_v63  ;;  %v13203_v5 = vmax.f32 %v13201_v45, %v13202_v34  ;;  %v977_v57 = vld [vmem:[%s11197_s0 + $0x494] sm:$0x1]  ;;  %v13209_v34 = vld [vmem:[#allocation53_spill] sm:$0xff]  ;;  %v13213_v4 = vld [vmem:[#allocation54_spill] sm:$0xff] }
 0x21c   :  { %13196 = vst [vmem:[#allocation23_spill] sm:$0xff] %v6537_v13  ;;  %v979_v44 = vld [vmem:[%s11197_s0 + $0x4b4] sm:$0x1]  ;;  %v13210_v2 = vld [vmem:[#allocation161_spill] sm:$0xff]  ;;  %v13215_v51 = vmax.f32 %v13213_v4, %v13214_v60  ;;  %v13218_v63 = vld [vmem:[#allocation166_spill] sm:$0xff] }
 0x21d   :  { %13192 = vst [vmem:[#allocation134_spill] sm:$0xff] %v6532_v6  ;;  %v6547_v50 = vmax.f32 %v13203_v5, %v960_v47  ;;  %v13206_v45 = vld [vmem:[#allocation164_spill] sm:$0xff]  ;;  %v13211_v22 = vmax.f32 %v13209_v34, %v13210_v2  ;;  %v13230_v4 = vld [vmem:[#allocation171_spill] sm:$0xff] }
 0x21e   :  { %v13207_v47 = vmax.f32 %v13205_v55, %v13206_v45  ;;  %v6574_v24 = vmax.f32 %v13215_v51, %v963_v9  ;;  %v982_v55 = vld [vmem:[%s11197_s0 + $0x4e4] sm:$0x1]  ;;  %v13221_v45 = vld [vmem:[#allocation55_spill] sm:$0xff] }
 0x21f   :  { %13204 = vst [vmem:[#allocation27_spill] sm:$0xff] %v6547_v50  ;;  %v6569_v0 = vmax.f32 %v13211_v22, %v962_v30  ;;  %v13217_v50 = vld [vmem:[#allocation58_spill] sm:$0xff]  ;;  %v983_v30 = vld [vmem:[%s11197_s0 + $0x4f4] sm:$0x1] }
 0x220   :  { %v6564_v5 = vmax.f32 %v13207_v47, %v961_v10  ;;  %13216 = vst [vmem:[#allocation139_spill] sm:$0xff] %v6574_v24  ;;  %v13219_v13 = vmax.f32 %v13217_v50, %v13218_v63  ;;  %v981_v10 = vld [vmem:[%s11197_s0 + $0x4d4] sm:$0x1]  ;;  %v984_v9 = vld [vmem:[%s11197_s0 + $0x504] sm:$0x1]  ;;  %v13225_v63 = vld [vmem:[#allocation59_spill] sm:$0xff] }
 0x221   :  { %13212 = vst [vmem:[#allocation24_spill] sm:$0xff] %v6569_v0  ;;  %v13222_v50 = vld [vmem:[#allocation170_spill] sm:$0xff]  ;;  %v13226_v47 = vld [vmem:[#allocation167_spill] sm:$0xff]  ;;  %v13229_v22 = vld [vmem:[#allocation56_spill] sm:$0xff] }
 0x222   :  { %13208 = vst [vmem:[#allocation135_spill] sm:$0xff] %v6564_v5  ;;  %v6579_v6 = vmax.f32 %v13219_v13, %v964_v17  ;;  %v13223_v17 = vmax.f32 %v13221_v45, %v13222_v50  ;;  %v13227_v34 = vmax.f32 %v13225_v63, %v13226_v47  ;;  %v13231_v60 = vmax.f32 %v13229_v22, %v13230_v4  ;;  %v13234_v24 = vld [vmem:[#allocation168_spill] sm:$0xff]  ;;  %v986_v45 = vld [vmem:[%s11197_s0 + $0x524] sm:$0x1]  ;;  %v13237_v50 = vld [vmem:[#allocation57_spill] sm:$0xff] }
 0x223   :  { %v13246_v22 = vld [vmem:[#allocation173_spill] sm:$0xff] }
 0x224   :  { %13220 = vst [vmem:[#allocation28_spill] sm:$0xff] %v6579_v6  ;;  %v6596_v13 = vmax.f32 %v13223_v17, %v965_v1  ;;  %v6601_v2 = vmax.f32 %v13227_v34, %v966_v48  ;;  %v6606_v51 = vmax.f32 %v13231_v60, %v967_v23  ;;  %v13233_v6 = vld [vmem:[#allocation60_spill] sm:$0xff]  ;;  %v988_v23 = vld [vmem:[%s11197_s0 + $0x544] sm:$0x1]  ;;  %v13242_v17 = vld [vmem:[#allocation169_spill] sm:$0xff] }
 0x225   :  { %v13235_v0 = vmax.f32 %v13233_v6, %v13234_v24  ;;  %v985_v1 = vld [vmem:[%s11197_s0 + $0x514] sm:$0x1]  ;;  %v13241_v24 = vld [vmem:[#allocation61_spill] sm:$0xff]  ;;  %v13245_v34 = vld [vmem:[#allocation62_spill] sm:$0xff] }
 0x226   :  { %13224 = vst [vmem:[#allocation136_spill] sm:$0xff] %v6596_v13  ;;  %v987_v48 = vld [vmem:[%s11197_s0 + $0x534] sm:$0x1]  ;;  %v13243_v63 = vmax.f32 %v13241_v24, %v13242_v17  ;;  %v13247_v4 = vmax.f32 %v13245_v34, %v13246_v22  ;;  %v13262_v34 = vld [vmem:[#allocation179_spill] sm:$0xff] }
 0x227   :  { %13228 = vst [vmem:[#allocation25_spill] sm:$0xff] %v6601_v2  ;;  %v6611_v5 = vmax.f32 %v13235_v0, %v968_v62  ;;  %v13238_v6 = vld [vmem:[#allocation172_spill] sm:$0xff] }
 0x228   :  { %13232 = vst [vmem:[#allocation140_spill] sm:$0xff] %v6606_v51  ;;  %v13239_v62 = vmax.f32 %v13237_v50, %v13238_v6  ;;  %v6633_v47 = vmax.f32 %v13243_v63, %v970_v12  ;;  %v6638_v60 = vmax.f32 %v13247_v4, %v971_v21  ;;  %v13250_v51 = vld [vmem:[#allocation174_spill] sm:$0xff]  ;;  %v991_v12 = vld [vmem:[%s11197_s0 + $0x574] sm:$0x1]  ;;  %v13253_v6 = vld [vmem:[#allocation63_spill] sm:$0xff] }
 0x229   :  { %13236 = vst [vmem:[#allocation29_spill] sm:$0xff] %v6611_v5  ;;  %v13249_v5 = vld [vmem:[#allocation66_spill] sm:$0xff]  ;;  %v13261_v63 = vld [vmem:[#allocation64_spill] sm:$0xff] }
 0x22a   :  { %v6628_v0 = vmax.f32 %v13239_v62, %v969_v16  ;;  %13244 = vst [vmem:[#allocation30_spill] sm:$0xff] %v6633_v47  ;;  %v13251_v2 = vmax.f32 %v13249_v5, %v13250_v51  ;;  %v989_v16 = vld [vmem:[%s11197_s0 + $0x554] sm:$0x1]  ;;  %v990_v50 = vld [vmem:[%s11197_s0 + $0x564] sm:$0x1]  ;;  %v13257_v51 = vld [vmem:[#allocation67_spill] sm:$0xff]  ;;  %v13263_v22 = vmax.f32 %v13261_v63, %v13262_v34 }
 0x22b   :  { %13248 = vst [vmem:[#allocation141_spill] sm:$0xff] %v6638_v60  ;;  %v992_v21 = vld [vmem:[%s11197_s0 + $0x584] sm:$0x1]  ;;  %v13258_v62 = vld [vmem:[#allocation175_spill] sm:$0xff]  ;;  %v13266_v60 = vld [vmem:[#allocation176_spill] sm:$0xff] }
 0x22c   :  { %13240 = vst [vmem:[#allocation137_spill] sm:$0xff] %v6628_v0  ;;  %v6643_v13 = vmax.f32 %v13251_v2, %v972_v59  ;;  %v13254_v5 = vld [vmem:[#allocation178_spill] sm:$0xff]  ;;  %v13259_v24 = vmax.f32 %v13257_v51, %v13258_v62  ;;  %v6670_v4 = vmax.f32 %v13263_v22, %v975_v61  ;;  %v13278_v63 = vld [vmem:[#allocation181_spill] sm:$0xff] }
 0x22d   :  { %v13255_v59 = vmax.f32 %v13253_v6, %v13254_v5  ;;  %v994_v6 = vld [vmem:[%s11197_s0 + $0x5a4] sm:$0x1]  ;;  %v13269_v5 = vld [vmem:[#allocation65_spill] sm:$0xff] }
 0x22e   :  { %13252 = vst [vmem:[#allocation34_spill] sm:$0xff] %v6643_v13  ;;  %v6665_v17 = vmax.f32 %v13259_v24, %v974_v15  ;;  %v13265_v13 = vld [vmem:[#allocation68_spill] sm:$0xff]  ;;  %v996_v61 = vld [vmem:[%s11197_s0 + $0x5c4] sm:$0x1] }
 0x22f   :  { %v6660_v2 = vmax.f32 %v13255_v59, %v973_v53  ;;  %13264 = vst [vmem:[#allocation146_spill] sm:$0xff] %v6670_v4  ;;  %v13267_v47 = vmax.f32 %v13265_v13, %v13266_v60  ;;  %v993_v53 = vld [vmem:[%s11197_s0 + $0x594] sm:$0x1]  ;;  %v13273_v60 = vld [vmem:[#allocation69_spill] sm:$0xff]  ;;  %v13277_v24 = vld [vmem:[#allocation70_spill] sm:$0xff] }
 0x230   :  { %13260 = vst [vmem:[#allocation31_spill] sm:$0xff] %v6665_v17  ;;  %v995_v15 = vld [vmem:[%s11197_s0 + $0x5b4] sm:$0x1]  ;;  %v13274_v59 = vld [vmem:[#allocation177_spill] sm:$0xff]  ;;  %v13279_v34 = vmax.f32 %v13277_v24, %v13278_v63  ;;  %v13282_v4 = vld [vmem:[#allocation182_spill] sm:$0xff] }
 0x231   :  { %13256 = vst [vmem:[#allocation142_spill] sm:$0xff] %v6660_v2  ;;  %v6675_v0 = vmax.f32 %v13267_v47, %v976_v18  ;;  %v13270_v13 = vld [vmem:[#allocation180_spill] sm:$0xff]  ;;  %v13275_v51 = vmax.f32 %v13273_v60, %v13274_v59  ;;  %v13294_v24 = vld [vmem:[#allocation187_spill] sm:$0xff] }
 0x232   :  { %v13271_v18 = vmax.f32 %v13269_v5, %v13270_v13  ;;  %v6702_v22 = vmax.f32 %v13279_v34, %v979_v44  ;;  %v998_v5 = vld [vmem:[%s11197_s0 + $0x5e4] sm:$0x1]  ;;  %v13285_v13 = vld [vmem:[#allocation71_spill] sm:$0xff] }
 0x233   :  { %13268 = vst [vmem:[#allocation35_spill] sm:$0xff] %v6675_v0  ;;  %v6697_v62 = vmax.f32 %v13275_v51, %v978_v39  ;;  %v13281_v0 = vld [vmem:[#allocation74_spill] sm:$0xff]  ;;  %v999_v39 = vld [vmem:[%s11197_s0 + $0x5f4] sm:$0x1] }
 0x234   :  { %v6692_v47 = vmax.f32 %v13271_v18, %v977_v57  ;;  %13280 = vst [vmem:[#allocation147_spill] sm:$0xff] %v6702_v22  ;;  %v13283_v17 = vmax.f32 %v13281_v0, %v13282_v4  ;;  %v997_v57 = vld [vmem:[%s11197_s0 + $0x5d4] sm:$0x1]  ;;  %v1000_v44 = vld [vmem:[%s11197_s0 + $0x604] sm:$0x1]  ;;  %v13289_v4 = vld [vmem:[#allocation75_spill] sm:$0xff] }
 0x235   :  { %13276 = vst [vmem:[#allocation32_spill] sm:$0xff] %v6697_v62  ;;  %v13286_v0 = vld [vmem:[#allocation186_spill] sm:$0xff]  ;;  %v13290_v18 = vld [vmem:[#allocation183_spill] sm:$0xff]  ;;  %v13293_v51 = vld [vmem:[#allocation72_spill] sm:$0xff] }
 0x236   :  { %13272 = vst [vmem:[#allocation143_spill] sm:$0xff] %v6692_v47  ;;  %v6707_v2 = vmax.f32 %v13283_v17, %v980_v40  ;;  %v13287_v40 = vmax.f32 %v13285_v13, %v13286_v0  ;;  %v13291_v60 = vmax.f32 %v13289_v4, %v13290_v18  ;;  %v13295_v63 = vmax.f32 %v13293_v51, %v13294_v24  ;;  %v13298_v22 = vld [vmem:[#allocation184_spill] sm:$0xff]  ;;  %v1002_v13 = vld [vmem:[%s11197_s0 + $0x624] sm:$0x1]  ;;  %v13301_v0 = vld [vmem:[#allocation73_spill] sm:$0xff] }
 0x237   :  { %v13310_v51 = vld [vmem:[#allocation189_spill] sm:$0xff] }
 0x238   :  { %13284 = vst [vmem:[#allocation36_spill] sm:$0xff] %v6707_v2  ;;  %v6724_v17 = vmax.f32 %v13287_v40, %v981_v10  ;;  %v6729_v59 = vmax.f32 %v13291_v60, %v982_v55  ;;  %v6734_v34 = vmax.f32 %v13295_v63, %v983_v30  ;;  %v13297_v2 = vld [vmem:[#allocation76_spill] sm:$0xff]  ;;  %v1004_v30 = vld [vmem:[%s11197_s0 + $0x644] sm:$0x1]  ;;  %v13306_v40 = vld [vmem:[#allocation185_spill] sm:$0xff] }
 0x239   :  { %v13299_v62 = vmax.f32 %v13297_v2, %v13298_v22  ;;  %v1001_v10 = vld [vmem:[%s11197_s0 + $0x614] sm:$0x1]  ;;  %v13305_v22 = vld [vmem:[#allocation77_spill] sm:$0xff]  ;;  %v13309_v60 = vld [vmem:[#allocation78_spill] sm:$0xff] }
 0x23a   :  { %13288 = vst [vmem:[#allocation144_spill] sm:$0xff] %v6724_v17  ;;  %v1003_v55 = vld [vmem:[%s11197_s0 + $0x634] sm:$0x1]  ;;  %v13307_v4 = vmax.f32 %v13305_v22, %v13306_v40  ;;  %v13311_v24 = vmax.f32 %v13309_v60, %v13310_v51  ;;  %v13326_v60 = vld [vmem:[#allocation191_spill] sm:$0xff] }
 0x23b   :  { %13292 = vst [vmem:[#allocation33_spill] sm:$0xff] %v6729_v59  ;;  %v6739_v47 = vmax.f32 %v13299_v62, %v984_v9  ;;  %v13302_v2 = vld [vmem:[#allocation188_spill] sm:$0xff] }
 0x23c   :  { %13296 = vst [vmem:[#allocation148_spill] sm:$0xff] %v6734_v34  ;;  %v13303_v9 = vmax.f32 %v13301_v0, %v13302_v2  ;;  %v6761_v18 = vmax.f32 %v13307_v4, %v986_v45  ;;  %v6766_v63 = vmax.f32 %v13311_v24, %v987_v48  ;;  %v13314_v34 = vld [vmem:[#allocation193_spill] sm:$0xff]  ;;  %v1006_v0 = vld [vmem:[%s11197_s0 + $0x664] sm:$0x1]  ;;  %v1007_v45 = vld [vmem:[%s11197_s0 + $0x674] sm:$0x1] }
 0x23d   :  { %13300 = vst [vmem:[#allocation37_spill] sm:$0xff] %v6739_v47  ;;  %v13313_v47 = vld [vmem:[#allocation82_spill] sm:$0xff]  ;;  %v13317_v2 = vld [vmem:[#allocation79_spill] sm:$0xff]  ;;  %v13325_v4 = vld [vmem:[#allocation80_spill] sm:$0xff] }
 0x23e   :  { %v6756_v62 = vmax.f32 %v13303_v9, %v985_v1  ;;  %13308 = vst [vmem:[#allocation38_spill] sm:$0xff] %v6761_v18  ;;  %v13315_v59 = vmax.f32 %v13313_v47, %v13314_v34  ;;  %v1005_v1 = vld [vmem:[%s11197_s0 + $0x654] sm:$0x1]  ;;  %v1008_v48 = vld [vmem:[%s11197_s0 + $0x684] sm:$0x1]  ;;  %v13321_v34 = vld [vmem:[#allocation83_spill] sm:$0xff]  ;;  %v13327_v51 = vmax.f32 %v13325_v4, %v13326_v60 }
 0x23f   :  { %13312 = vst [vmem:[#allocation149_spill] sm:$0xff] %v6766_v63  ;;  %v13318_v47 = vld [vmem:[#allocation190_spill] sm:$0xff]  ;;  %v13330_v63 = vld [vmem:[#allocation195_spill] sm:$0xff]  ;;  %v13341_v4 = vld [vmem:[#allocation197_spill] sm:$0xff] }
 0x240   :  { %13304 = vst [vmem:[#allocation145_spill] sm:$0xff] %v6756_v62  ;;  %v6771_v17 = vmax.f32 %v13315_v59, %v988_v23  ;;  %v13319_v23 = vmax.f32 %v13317_v2, %v13318_v47  ;;  %v13322_v9 = vld [vmem:[#allocation194_spill] sm:$0xff]  ;;  %v6798_v24 = vmax.f32 %v13327_v51, %v991_v12  ;;  %v13333_v47 = vld [vmem:[#allocation81_spill] sm:$0xff] }
 0x241   :  { %v13323_v22 = vmax.f32 %v13321_v34, %v13322_v9  ;;  %v1010_v2 = vld [vmem:[%s11197_s0 + $0x6a4] sm:$0x1] }
 0x242   :  { %13316 = vst [vmem:[#allocation42_spill] sm:$0xff] %v6771_v17  ;;  %v6788_v59 = vmax.f32 %v13319_v23, %v989_v16  ;;  %v13329_v17 = vld [vmem:[#allocation84_spill] sm:$0xff]  ;;  %v1012_v12 = vld [vmem:[%s11197_s0 + $0x6c4] sm:$0x1] }
 0x243   :  { %v6793_v40 = vmax.f32 %v13323_v22, %v990_v50  ;;  %13328 = vst [vmem:[#allocation154_spill] sm:$0xff] %v6798_v24  ;;  %v13331_v18 = vmax.f32 %v13329_v17, %v13330_v63  ;;  %v1009_v16 = vld [vmem:[%s11197_s0 + $0x694] sm:$0x1]  ;;  %v13336_v63 = vld [vmem:[#allocation85_spill] sm:$0xff]  ;;  %v13340_v22 = vld [vmem:[#allocation86_spill] sm:$0xff] }
 0x244   :  { %13320 = vst [vmem:[#allocation150_spill] sm:$0xff] %v6788_v59  ;;  %v1011_v50 = vld [vmem:[%s11197_s0 + $0x6b4] sm:$0x1]  ;;  %v13342_v60 = vmax.f32 %v13340_v22, %v13341_v4  ;;  %v13345_v24 = vld [vmem:[#allocation199_spill] sm:$0xff] }
 0x245   :  { %13324 = vst [vmem:[#allocation39_spill] sm:$0xff] %v6793_v40  ;;  %v6803_v62 = vmax.f32 %v13331_v18, %v992_v21  ;;  %v13334_v17 = vld [vmem:[#allocation192_spill] sm:$0xff] }
 0x246   :  { %v13335_v21 = vmax.f32 %v13333_v47, %v13334_v17  ;;  %v13337_v23 = vld [vmem:[#allocation196_spill] sm:$0xff]  ;;  %v6830_v51 = vmax.f32 %v13342_v60, %v995_v15  ;;  %v1014_v47 = vld [vmem:[%s11197_s0 + $0x6e4] sm:$0x1] }
 0x247   :  { %13332 = vst [vmem:[#allocation43_spill] sm:$0xff] %v6803_v62  ;;  %v13338_v34 = vmax.f32 %v13336_v63, %v13337_v23  ;;  %v13344_v62 = vld [vmem:[#allocation90_spill] sm:$0xff]  ;;  %v13351_v17 = vld [vmem:[#allocation200_spill] sm:$0xff] }
 0x248   :  { %v6820_v18 = vmax.f32 %v13335_v21, %v993_v53  ;;  %13343 = vst [vmem:[#allocation40_spill] sm:$0xff] %v6830_v51  ;;  %v13346_v40 = vmax.f32 %v13344_v62, %v13345_v24  ;;  %v1013_v53 = vld [vmem:[%s11197_s0 + $0x6d4] sm:$0x1]  ;;  %v1016_v15 = vld [vmem:[%s11197_s0 + $0x704] sm:$0x1]  ;;  %v13350_v24 = vld [vmem:[#allocation91_spill] sm:$0xff] }
 0x249   :  { %v6825_v9 = vmax.f32 %v13338_v34, %v994_v6  ;;  %v1015_v6 = vld [vmem:[%s11197_s0 + $0x6f4] sm:$0x1]  ;;  %v13348_v62 = vld [vmem:[#allocation198_spill] sm:$0xff]  ;;  %v13352_v21 = vmax.f32 %v13350_v24, %v13351_v17  ;;  %v13354_v34 = vld [vmem:[#allocation201_spill] sm:$0xff] }
 0x24a   :  { %v6835_v59 = vmax.f32 %v13346_v40, %v996_v61  ;;  %v13349_v61 = vmax.f32 %v12965_v38, %v13348_v62  ;;  %v13353_v23 = vld [vmem:[#allocation88_spill] sm:$0xff]  ;;  %v13364_v24 = vld [vmem:[#allocation202_spill] sm:$0xff] }
 0x24b   :  { %13339 = vst [vmem:[#allocation151_spill] sm:$0xff] %v6825_v9  ;;  %v6857_v63 = vmax.f32 %v13352_v21, %v998_v5  ;;  %v13355_v22 = vmax.f32 %v13353_v23, %v13354_v34  ;;  %v13357_v60 = vld [vmem:[#allocation92_spill] sm:$0xff]  ;;  %v13367_v23 = vld [vmem:[#allocation94_spill] sm:$0xff] }
 0x24c   :  { %13347 = vst [vmem:[#allocation155_spill] sm:$0xff] %v6835_v59  ;;  %v6852_v40 = vmax.f32 %v13349_v61, %v997_v57  ;;  %v13358_v59 = vld [vmem:[#allocation203_spill] sm:$0xff]  ;;  %v1017_v38 = vld [vmem:[%s11197_s0 + $0x714] sm:$0x1]  ;;  %v1018_v57 = vld [vmem:[%s11197_s0 + $0x724] sm:$0x1] }
 0x24d   :  { %v6862_v4 = vmax.f32 %v13355_v22, %v999_v39  ;;  %v13359_v51 = vmax.f32 %v13357_v60, %v13358_v59  ;;  %v1019_v5 = vld [vmem:[%s11197_s0 + $0x734] sm:$0x1]  ;;  %v1020_v39 = vld [vmem:[%s11197_s0 + $0x744] sm:$0x1]  ;;  %v13363_v61 = vld [vmem:[#allocation93_spill] sm:$0xff] }
 0x24e   :  { %v13365_v17 = vmax.f32 %v13363_v61, %v13364_v24  ;;  %v13368_v34 = vld [vmem:[#allocation204_spill] sm:$0xff] }
 0x24f   :  { %13356 = vst [vmem:[#allocation44_spill] sm:$0xff] %v6862_v4  ;;  %v6867_v9 = vmax.f32 %v13359_v51, %v1000_v44  ;;  %v13361_v44 = vmax.f32 %v4964_v32, %v5799_v56  ;;  %v13362_v51 = vmax.f32 %v12972_v46, %v5804_v20  ;;  %v13369_v22 = vmax.f32 %v13367_v23, %v13368_v34  ;;  %v1021_v56 = vld [vmem:[%s11197_s0 + $0x754] sm:$0x1]  ;;  %v1022_v32 = vld [vmem:[%s11197_s0 + $0x764] sm:$0x1]  ;;  %v13378_v23 = vld [vmem:[#allocation207_spill] sm:$0xff] }
 0x250   :  { %v6894_v21 = vmax.f32 %v13365_v17, %v1003_v55  ;;  %v1023_v20 = vld [vmem:[%s11197_s0 + $0x774] sm:$0x1]  ;;  %v1024_v46 = vld [vmem:[%s11197_s0 + $0x784] sm:$0x1]  ;;  %v13372_v55 = vmax.f32 %v5001_v58, %v5832_v28  ;;  %v13377_v17 = vld [vmem:[#allocation95_spill] sm:$0xff] }
 0x251   :  { %13360 = vst [vmem:[#allocation152_spill] sm:$0xff] %v6867_v9  ;;  %v6884_v59 = vmax.f32 %v13361_v44, %v1001_v10  ;;  %v6889_v62 = vmax.f32 %v13362_v51, %v1002_v13  ;;  %v6899_v60 = vmax.f32 %v13369_v22, %v1004_v30  ;;  %v13371_v10 = vmax.f32 %v4996_v7, %v5827_v25  ;;  %v13373_v44 = vld [vmem:[#allocation98_spill] sm:$0xff]  ;;  %v13374_v51 = vld [vmem:[#allocation205_spill] sm:$0xff]  ;;  %v1025_v7 = vld [vmem:[%s11197_s0 + $0x794] sm:$0x1] }
 0x252   :  { %13366 = vst [vmem:[#allocation41_spill] sm:$0xff] %v6894_v21  ;;  %v6921_v30 = vmax.f32 %v13372_v55, %v1006_v0  ;;  %v13375_v61 = vmax.f32 %v13373_v44, %v13374_v51  ;;  %v13379_v34 = vmax.f32 %v13377_v17, %v13378_v23  ;;  %v1026_v58 = vld [vmem:[%s11197_s0 + $0x7a4] sm:$0x1]  ;;  %v1027_v25 = vld [vmem:[%s11197_s0 + $0x7b4] sm:$0x1] }
 0x253   :  { %13370 = vst [vmem:[#allocation156_spill] sm:$0xff] %v6899_v60  ;;  %v6916_v13 = vmax.f32 %v13371_v10, %v1005_v1  ;;  %v1028_v28 = vld [vmem:[%s11197_s0 + $0x7c4] sm:$0x1]  ;;  %v13381_v1 = vmax.f32 %v5028_v26, %v5855_v33  ;;  %v13383_v10 = vld [vmem:[#allocation99_spill] sm:$0xff]  ;;  %v13388_v17 = vld [vmem:[#allocation208_spill] sm:$0xff] }
 0x254   :  { %v6926_v24 = vmax.f32 %v13375_v61, %v1007_v45  ;;  %v6931_v22 = vmax.f32 %v13379_v34, %v1008_v48  ;;  %v13382_v45 = vmax.f32 %v5033_v19, %v5860_v52  ;;  %v13384_v55 = vld [vmem:[#allocation206_spill] sm:$0xff]  ;;  %v13387_v61 = vld [vmem:[#allocation96_spill] sm:$0xff] }
 0x255   :  { %v6948_v0 = vmax.f32 %v13381_v1, %v1009_v16  ;;  %v13385_v44 = vmax.f32 %v13383_v10, %v13384_v55  ;;  %v13389_v23 = vmax.f32 %v13387_v61, %v13388_v17  ;;  %v1029_v26 = vld [vmem:[%s11197_s0 + $0x7d4] sm:$0x1]  ;;  %v1030_v19 = vld [vmem:[%s11197_s0 + $0x7e4] sm:$0x1]  ;;  %v6977_v52 = vld [vmem:[%s11197_s0 + $0x5] sm:$0x1]  ;;  %v13391_v16 = vmax.f32 %v5062_v27, %v5883_v42 }
 0x256   :  { %13376 = vst [vmem:[#allocation45_spill] sm:$0xff] %v6926_v24  ;;  %v6953_v48 = vmax.f32 %v13382_v45, %v1010_v2  ;;  %v1031_v33 = vld [vmem:[%s11197_s0 + $0x7f4] sm:$0x1]  ;;  %v13394_v45 = vld [vmem:[#allocation209_spill] sm:$0xff]  ;;  %v13398_v61 = vld [vmem:[#allocation211_spill] sm:$0xff] }
 0x257   :  { %13380 = vst [vmem:[#allocation153_spill] sm:$0xff] %v6931_v22  ;;  %v6958_v51 = vmax.f32 %v13385_v44, %v1011_v50  ;;  %v6963_v34 = vmax.f32 %v13389_v23, %v1012_v12  ;;  %v6982_v2 = vmax.f32 %v13391_v16, %v1013_v53  ;;  %v13392_v50 = vmax.f32 %v5067_v29, %v5888_v54  ;;  %v13393_v1 = vld [vmem:[#allocation100_spill] sm:$0xff]  ;;  %v13397_v44 = vld [vmem:[#allocation97_spill] sm:$0xff]  ;;  %v7007_v29 = vld [vmem:[%s11197_s0 + $0x25] sm:$0x1] }
 0x258   :  { %v13395_v10 = vmax.f32 %v13393_v1, %v13394_v45  ;;  %v13399_v17 = vmax.f32 %v13397_v44, %v13398_v61  ;;  %v7002_v27 = vld [vmem:[%s11197_s0 + $0x15] sm:$0x1]  ;;  %13402 = vst [vmem:[#allocation162_spill] sm:$0xff] %v7007_v29  ;;  %v7017_v54 = vld [vmem:[%s11197_s0 + $0x45] sm:$0x1]  ;;  %v13405_v53 = vmax.f32 %v5102_v35, %v5911_v8  ;;  %v13412_v44 = vld [vmem:[#allocation103_spill] sm:$0xff] }
 0x259   :  { %13386 = vst [vmem:[#allocation46_spill] sm:$0xff] %v6958_v51  ;;  %v6987_v12 = vmax.f32 %v13392_v50, %v1014_v47  ;;  %v7012_v42 = vld [vmem:[%s11197_s0 + $0x35] sm:$0x1]  ;;  %v13408_v50 = vld [vmem:[#allocation106_spill] sm:$0xff]  ;;  %v13413_v61 = vld [vmem:[#allocation215_spill] sm:$0xff] }
 0x25a   :  { %13390 = vst [vmem:[#allocation157_spill] sm:$0xff] %v6963_v34  ;;  %v6992_v55 = vmax.f32 %v13395_v10, %v1015_v6  ;;  %v6997_v23 = vmax.f32 %v13399_v17, %v1016_v15  ;;  %v7022_v47 = vmax.f32 %v13405_v53, %v1017_v38  ;;  %v13406_v6 = vld [vmem:[#allocation210_spill] sm:$0xff]  ;;  %v13409_v1 = vld [vmem:[#allocation212_spill] sm:$0xff]  ;;  %v13414_v17 = vmax.f32 %v13412_v44, %v13413_v61 }
 0x25b   :  { %13401 = vst [vmem:[#allocation47_spill] sm:$0xff] %v7002_v27  ;;  %v13407_v15 = vmax.f32 %v5107_v37, %v13406_v6  ;;  %v13410_v45 = vmax.f32 %v13408_v50, %v13409_v1  ;;  %v7042_v35 = vld [vmem:[%s11197_s0 + $0x55] sm:$0x1]  ;;  %v7047_v37 = vld [vmem:[%s11197_s0 + $0x65] sm:$0x1]  ;;  %v13423_v6 = vld [vmem:[#allocation109_spill] sm:$0xff] }
 0x25c   :  { %13396 = vst [vmem:[#allocation50_spill] sm:$0xff] %v6992_v55  ;;  %v7052_v8 = vld [vmem:[%s11197_s0 + $0x75] sm:$0x1]  ;;  %v7057_v38 = vld [vmem:[%s11197_s0 + $0x85] sm:$0x1] }
 0x25d   :  { %13400 = vst [vmem:[#allocation158_spill] sm:$0xff] %v6997_v23  ;;  %v7027_v16 = vmax.f32 %v13407_v15, %v1018_v57  ;;  %v7032_v10 = vmax.f32 %v13410_v45, %v1019_v5  ;;  %v7037_v23 = vmax.f32 %v13414_v17, %v1020_v39  ;;  %v13420_v57 = vmax.f32 %v5142_v36, %v5939_v49  ;;  %v13424_v15 = vld [vmem:[#allocation213_spill] sm:$0xff]  ;;  %v13427_v45 = vld [vmem:[#allocation110_spill] sm:$0xff]  ;;  %v13428_v44 = vld [vmem:[#allocation216_spill] sm:$0xff] }
 0x25e   :  { %13403 = vst [vmem:[#allocation51_spill] sm:$0xff] %v7012_v42  ;;  %v13421_v39 = vmax.f32 %v5147_v41, %v5944_v11  ;;  %v13425_v50 = vmax.f32 %v13423_v6, %v13424_v15  ;;  %v13429_v61 = vmax.f32 %v13427_v45, %v13428_v44  ;;  %v7082_v49 = vld [vmem:[%s11197_s0 + $0x95] sm:$0x1]  ;;  %v7087_v36 = vld [vmem:[%s11197_s0 + $0xa5] sm:$0x1]  ;;  %v13441_v6 = vld [vmem:[#allocation217_spill] sm:$0xff] }
 0x25f   :  { %13404 = vst [vmem:[#allocation159_spill] sm:$0xff] %v7017_v54  ;;  %v7062_v5 = vmax.f32 %v13420_v57, %v1021_v56  ;;  %v7092_v41 = vld [vmem:[%s11197_s0 + $0xb5] sm:$0x1]  ;;  %v7097_v11 = vld [vmem:[%s11197_s0 + $0xc5] sm:$0x1]  ;;  %v13435_v56 = vmax.f32 %v5182_v3, %v5967_v31  ;;  %v13444_v45 = vld [vmem:[#allocation113_spill] sm:$0xff] }
 0x260   :  { %13411 = vst [vmem:[#allocation48_spill] sm:$0xff] %v7032_v10  ;;  %v7067_v53 = vmax.f32 %v13421_v39, %v1022_v32  ;;  %v7072_v1 = vmax.f32 %v13425_v50, %v1023_v20  ;;  %v7077_v17 = vmax.f32 %v13429_v61, %v1024_v46  ;;  %v13437_v20 = vld [vmem:[#allocation214_spill] sm:$0xff]  ;;  %v13440_v39 = vld [vmem:[#allocation116_spill] sm:$0xff] }
 0x261   :  { %13415 = vst [vmem:[#allocation163_spill] sm:$0xff] %v7037_v23  ;;  %v7102_v32 = vmax.f32 %v13435_v56, %v1025_v7  ;;  %v13438_v46 = vmax.f32 %v5187_v43, %v13437_v20  ;;  %v13442_v15 = vmax.f32 %v13440_v39, %v13441_v6  ;;  %v13445_v44 = vld [vmem:[#allocation218_spill] sm:$0xff]  ;;  %v7122_v31 = vld [vmem:[%s11197_s0 + $0xd5] sm:$0x1]  ;;  %v13455_v56 = vld [vmem:[#allocation123_spill] sm:$0xff] }
 0x262   :  { %13416 = vst [vmem:[#allocation52_spill] sm:$0xff] %v7042_v35  ;;  %v13446_v61 = vmax.f32 %v13444_v45, %v13445_v44  ;;  %v7127_v3 = vld [vmem:[%s11197_s0 + $0xe5] sm:$0x1]  ;;  %v7132_v43 = vld [vmem:[%s11197_s0 + $0xf5] sm:$0x1] }
 0x263   :  { %13417 = vst [vmem:[#allocation160_spill] sm:$0xff] %v7047_v37  ;;  %v7107_v57 = vmax.f32 %v13438_v46, %v1026_v58  ;;  %v7112_v50 = vmax.f32 %v13442_v15, %v1027_v25  ;;  %v7137_v7 = vld [vmem:[%s11197_s0 + $0x105] sm:$0x1]  ;;  %v13452_v58 = vld [vmem:[#allocation219_spill] sm:$0xff]  ;;  %v13456_v20 = vld [vmem:[#allocation220_spill] sm:$0xff] }
 0x264   :  { %13418 = vst [vmem:[#allocation49_spill] sm:$0xff] %v7052_v8  ;;  %v13453_v25 = vmax.f32 %v5222_v14, %v13452_v58  ;;  %v13457_v46 = vmax.f32 %v13455_v56, %v13456_v20  ;;  %v13459_v6 = vld [vmem:[#allocation120_spill] sm:$0xff]  ;;  %v13460_v15 = vld [vmem:[#allocation87_spill] sm:$0xff]  ;;  %v7164_v14 = vld [vmem:[%s11197_s0 + $0x125] sm:$0x1] }
 0x265   :  { %13419 = vst [vmem:[#allocation164_spill] sm:$0xff] %v7057_v38  ;;  %v13461_v45 = vmax.f32 %v13459_v6, %v13460_v15  ;;  %v7197_v56 = vld [vmem:[%s11197_s0 + $0x175] sm:$0x1]  ;;  %v7230_v20 = vld [vmem:[%s11197_s0 + $0x1c5] sm:$0x1]  ;;  %v13635_v58 = vld [vmem:[#allocation151_spill] sm:$0xff] }
 0x266   :  { %13422 = vst [vmem:[#allocation53_spill] sm:$0xff] %v7067_v53  ;;  %v7147_v39 = vmax.f32 %v13457_v46, %v1030_v19  ;;  %v7174_v19 = vld [vmem:[%s11197_s0 + $0x145] sm:$0x1]  ;;  %v7215_v27 = vld [vmem:[%s11197_s0 + $0x195] sm:$0x1] }
 0x267   :  { %13426 = vst [vmem:[#allocation161_spill] sm:$0xff] %v7072_v1  ;;  %v7152_v44 = vmax.f32 %v13461_v45, %v1031_v33  ;;  %v7187_v45 = vld [vmem:[%s11197_s0 + $0x155] sm:$0x1]  ;;  %v7202_v46 = vld [vmem:[%s11197_s0 + $0x185] sm:$0x1] }
 0x268   :  { %13430 = vst [vmem:[#allocation54_spill] sm:$0xff] %v7077_v17  ;;  %v7117_v17 = vmax.f32 %v13446_v61, %v1028_v28  ;;  %v7142_v28 = vmax.f32 %v13453_v25, %v1029_v26  ;;  %v13463_v61 = vld [vmem:[#allocation89_spill] sm:$0xff]  ;;  %v7169_v26 = vld [vmem:[%s11197_s0 + $0x135] sm:$0x1]  ;;  %v7220_v33 = vld [vmem:[%s11197_s0 + $0x1a5] sm:$0x1] }
 0x269   :  { %13431 = vst [vmem:[#allocation165_spill] sm:$0xff] %v7082_v49  ;;  %v7225_v6 = vld [vmem:[%s11197_s0 + $0x1b5] sm:$0x1]  ;;  %v7248_v15 = vld [vmem:[%s11197_s0 + $0x1e5] sm:$0x1] }
 0x26a   :  { %13432 = vst [vmem:[#allocation58_spill] sm:$0xff] %v7087_v36  ;;  %v7243_v35 = vld [vmem:[%s11197_s0 + $0x1d5] sm:$0x1]  ;;  %v7258_v42 = vld [vmem:[%s11197_s0 + $0x205] sm:$0x1] }
 0x26b   :  { %13433 = vst [vmem:[#allocation166_spill] sm:$0xff] %v7092_v41  ;;  %v7253_v29 = vld [vmem:[%s11197_s0 + $0x1f5] sm:$0x1]  ;;  %v7276_v25 = vld [vmem:[%s11197_s0 + $0x225] sm:$0x1] }
 0x26c   :  { %13434 = vst [vmem:[#allocation55_spill] sm:$0xff] %v7097_v11  ;;  %v7271_v49 = vld [vmem:[%s11197_s0 + $0x215] sm:$0x1]  ;;  %v7286_v8 = vld [vmem:[%s11197_s0 + $0x245] sm:$0x1] }
 0x26d   :  { %13436 = vst [vmem:[#allocation170_spill] sm:$0xff] %v7102_v32  ;;  %v7281_v37 = vld [vmem:[%s11197_s0 + $0x235] sm:$0x1]  ;;  %v7304_v54 = vld [vmem:[%s11197_s0 + $0x265] sm:$0x1] }
 0x26e   :  { %13439 = vst [vmem:[#allocation59_spill] sm:$0xff] %v7107_v57  ;;  %v7309_v36 = vld [vmem:[%s11197_s0 + $0x275] sm:$0x1]  ;;  %v7314_v41 = vld [vmem:[%s11197_s0 + $0x285] sm:$0x1]  ;;  %v13672_v57 = vld [vmem:[#allocation221_spill] sm:$0xff] }
 0x26f   :  { %13443 = vst [vmem:[#allocation167_spill] sm:$0xff] %v7112_v50  ;;  %v7159_v50 = vld [vmem:[%s11197_s0 + $0x115] sm:$0x1]  ;;  %v7332_v38 = vld [vmem:[%s11197_s0 + $0x2a5] sm:$0x1] }
 0x270   :  { %13447 = vst [vmem:[#allocation56_spill] sm:$0xff] %v7117_v17  ;;  %v7192_v17 = vld [vmem:[%s11197_s0 + $0x165] sm:$0x1]  ;;  %v7925_v9 = vld [vmem:[%s11197_s0 + $0x7f5] sm:$0x1] }
 0x271   :  { %13448 = vst [vmem:[#allocation171_spill] sm:$0xff] %v7122_v31  ;;  %v7299_v31 = vld [vmem:[%s11197_s0 + $0x255] sm:$0x1]  ;;  %v7360_v11 = vld [vmem:[%s11197_s0 + $0x2e5] sm:$0x1] }
 0x272   :  { %13449 = vst [vmem:[#allocation60_spill] sm:$0xff] %v7127_v3  ;;  %v7337_v3 = vld [vmem:[%s11197_s0 + $0x2b5] sm:$0x1]  ;;  %v7864_v4 = vld [vmem:[%s11197_s0 + $0x765] sm:$0x1] }
 0x273   :  { %13450 = vst [vmem:[#allocation168_spill] sm:$0xff] %v7132_v43  ;;  %v7342_v43 = vld [vmem:[%s11197_s0 + $0x2c5] sm:$0x1]  ;;  %v1417_v51 = vld [vmem:[%s11197_s0 + $0x16] sm:$0x1] }
 0x274   :  { %13451 = vst [vmem:[#allocation57_spill] sm:$0xff] %v7137_v7  ;;  %v7388_v7 = vld [vmem:[%s11197_s0 + $0x325] sm:$0x1]  ;;  %v1419_v22 = vld [vmem:[%s11197_s0 + $0x36] sm:$0x1] }
 0x275   :  { %13454 = vst [vmem:[#allocation172_spill] sm:$0xff] %v7142_v28  ;;  %v7892_v21 = vld [vmem:[%s11197_s0 + $0x7a5] sm:$0x1]  ;;  %v1420_v60 = vld [vmem:[%s11197_s0 + $0x46] sm:$0x1]  ;;  %v13660_v23 = vld [vmem:[#allocation224_spill] sm:$0xff] }
 0x276   :  { %13458 = vst [vmem:[#allocation61_spill] sm:$0xff] %v7147_v39  ;;  %v7920_v24 = vld [vmem:[%s11197_s0 + $0x7e5] sm:$0x1]  ;;  %v1422_v55 = vld [vmem:[%s11197_s0 + $0x66] sm:$0x1]  ;;  %v13669_v39 = vld [vmem:[#allocation51_spill] sm:$0xff] }
 0x277   :  { %13462 = vst [vmem:[#allocation169_spill] sm:$0xff] %v7152_v44  ;;  %v1425_v10 = vld [vmem:[%s11197_s0 + $0x96] sm:$0x1]  ;;  %v1428_v34 = vld [vmem:[%s11197_s0 + $0xc6] sm:$0x1] }
 0x278   :  { %13464 = vst [vmem:[#allocation62_spill] sm:$0xff] %v7159_v50  ;;  %v7327_v50 = vld [vmem:[%s11197_s0 + $0x295] sm:$0x1]  ;;  %v1430_v53 = vld [vmem:[%s11197_s0 + $0xe6] sm:$0x1] }
 0x279   :  { %13465 = vst [vmem:[#allocation173_spill] sm:$0xff] %v7164_v14  ;;  %v7365_v14 = vld [vmem:[%s11197_s0 + $0x2f5] sm:$0x1]  ;;  %v1435_v1 = vld [vmem:[%s11197_s0 + $0x136] sm:$0x1] }
 0x27a   :  { %13466 = vst [vmem:[#allocation66_spill] sm:$0xff] %v7169_v26  ;;  %v7370_v26 = vld [vmem:[%s11197_s0 + $0x305] sm:$0x1] }
 0x27b   :  { %13467 = vst [vmem:[#allocation174_spill] sm:$0xff] %v7174_v19  ;;  %v7416_v19 = vld [vmem:[%s11197_s0 + $0x365] sm:$0x1] }
 0x27c   :  { %13472 = vst [vmem:[#allocation63_spill] sm:$0xff] %v7187_v45  ;;  %v7355_v45 = vld [vmem:[%s11197_s0 + $0x2d5] sm:$0x1] }
 0x27d   :  { %13473 = vst [vmem:[#allocation178_spill] sm:$0xff] %v7192_v17  ;;  %v7393_v17 = vld [vmem:[%s11197_s0 + $0x335] sm:$0x1] }
 0x27e   :  { %13474 = vst [vmem:[#allocation67_spill] sm:$0xff] %v7197_v56  ;;  %v7398_v56 = vld [vmem:[%s11197_s0 + $0x345] sm:$0x1] }
 0x27f   :  { %13475 = vst [vmem:[#allocation175_spill] sm:$0xff] %v7202_v46  ;;  %v7444_v46 = vld [vmem:[%s11197_s0 + $0x3a5] sm:$0x1] }
 0x280   :  { %13480 = vst [vmem:[#allocation64_spill] sm:$0xff] %v7215_v27  ;;  %v7383_v27 = vld [vmem:[%s11197_s0 + $0x315] sm:$0x1] }
 0x281   :  { %13481 = vst [vmem:[#allocation179_spill] sm:$0xff] %v7220_v33  ;;  %v7421_v33 = vld [vmem:[%s11197_s0 + $0x375] sm:$0x1] }
 0x282   :  { %13482 = vst [vmem:[#allocation68_spill] sm:$0xff] %v7225_v6  ;;  %v7426_v6 = vld [vmem:[%s11197_s0 + $0x385] sm:$0x1] }
 0x283   :  { %13483 = vst [vmem:[#allocation176_spill] sm:$0xff] %v7230_v20  ;;  %v7472_v20 = vld [vmem:[%s11197_s0 + $0x3e5] sm:$0x1] }
 0x284   :  { %13488 = vst [vmem:[#allocation65_spill] sm:$0xff] %v7243_v35  ;;  %v7411_v35 = vld [vmem:[%s11197_s0 + $0x355] sm:$0x1] }
 0x285   :  { %13489 = vst [vmem:[#allocation180_spill] sm:$0xff] %v7248_v15  ;;  %v7449_v15 = vld [vmem:[%s11197_s0 + $0x3b5] sm:$0x1] }
 0x286   :  { %13490 = vst [vmem:[#allocation69_spill] sm:$0xff] %v7253_v29  ;;  %v7454_v29 = vld [vmem:[%s11197_s0 + $0x3c5] sm:$0x1] }
 0x287   :  { %13491 = vst [vmem:[#allocation177_spill] sm:$0xff] %v7258_v42  ;;  %v7500_v42 = vld [vmem:[%s11197_s0 + $0x425] sm:$0x1] }
 0x288   :  { %13496 = vst [vmem:[#allocation70_spill] sm:$0xff] %v7271_v49  ;;  %v7439_v49 = vld [vmem:[%s11197_s0 + $0x395] sm:$0x1] }
 0x289   :  { %13497 = vst [vmem:[#allocation181_spill] sm:$0xff] %v7276_v25  ;;  %v7477_v25 = vld [vmem:[%s11197_s0 + $0x3f5] sm:$0x1] }
 0x28a   :  { %13498 = vst [vmem:[#allocation74_spill] sm:$0xff] %v7281_v37  ;;  %v7482_v37 = vld [vmem:[%s11197_s0 + $0x405] sm:$0x1] }
 0x28b   :  { %13499 = vst [vmem:[#allocation182_spill] sm:$0xff] %v7286_v8  ;;  %v7528_v8 = vld [vmem:[%s11197_s0 + $0x465] sm:$0x1] }
 0x28c   :  { %13504 = vst [vmem:[#allocation71_spill] sm:$0xff] %v7299_v31  ;;  %v7467_v31 = vld [vmem:[%s11197_s0 + $0x3d5] sm:$0x1] }
 0x28d   :  { %13505 = vst [vmem:[#allocation186_spill] sm:$0xff] %v7304_v54  ;;  %v7505_v54 = vld [vmem:[%s11197_s0 + $0x435] sm:$0x1] }
 0x28e   :  { %13506 = vst [vmem:[#allocation75_spill] sm:$0xff] %v7309_v36  ;;  %v7510_v36 = vld [vmem:[%s11197_s0 + $0x445] sm:$0x1] }
 0x28f   :  { %13507 = vst [vmem:[#allocation183_spill] sm:$0xff] %v7314_v41  ;;  %v7556_v41 = vld [vmem:[%s11197_s0 + $0x4a5] sm:$0x1] }
 0x290   :  { %13512 = vst [vmem:[#allocation72_spill] sm:$0xff] %v7327_v50  ;;  %v7495_v50 = vld [vmem:[%s11197_s0 + $0x415] sm:$0x1] }
 0x291   :  { %13513 = vst [vmem:[#allocation187_spill] sm:$0xff] %v7332_v38  ;;  %v7533_v38 = vld [vmem:[%s11197_s0 + $0x475] sm:$0x1] }
 0x292   :  { %13514 = vst [vmem:[#allocation76_spill] sm:$0xff] %v7337_v3  ;;  %v7538_v3 = vld [vmem:[%s11197_s0 + $0x485] sm:$0x1] }
 0x293   :  { %13515 = vst [vmem:[#allocation184_spill] sm:$0xff] %v7342_v43  ;;  %v7584_v43 = vld [vmem:[%s11197_s0 + $0x4e5] sm:$0x1] }
 0x294   :  { %13520 = vst [vmem:[#allocation73_spill] sm:$0xff] %v7355_v45  ;;  %v7523_v45 = vld [vmem:[%s11197_s0 + $0x455] sm:$0x1] }
 0x295   :  { %13521 = vst [vmem:[#allocation188_spill] sm:$0xff] %v7360_v11  ;;  %v7561_v11 = vld [vmem:[%s11197_s0 + $0x4b5] sm:$0x1] }
 0x296   :  { %13522 = vst [vmem:[#allocation77_spill] sm:$0xff] %v7365_v14  ;;  %v7566_v14 = vld [vmem:[%s11197_s0 + $0x4c5] sm:$0x1] }
 0x297   :  { %13523 = vst [vmem:[#allocation185_spill] sm:$0xff] %v7370_v26  ;;  %v7612_v26 = vld [vmem:[%s11197_s0 + $0x525] sm:$0x1] }
 0x298   :  { %13528 = vst [vmem:[#allocation78_spill] sm:$0xff] %v7383_v27  ;;  %v7551_v27 = vld [vmem:[%s11197_s0 + $0x495] sm:$0x1] }
 0x299   :  { %13529 = vst [vmem:[#allocation189_spill] sm:$0xff] %v7388_v7  ;;  %v7589_v7 = vld [vmem:[%s11197_s0 + $0x4f5] sm:$0x1] }
 0x29a   :  { %13530 = vst [vmem:[#allocation82_spill] sm:$0xff] %v7393_v17  ;;  %v7594_v17 = vld [vmem:[%s11197_s0 + $0x505] sm:$0x1] }
 0x29b   :  { %13531 = vst [vmem:[#allocation193_spill] sm:$0xff] %v7398_v56  ;;  %v7640_v56 = vld [vmem:[%s11197_s0 + $0x565] sm:$0x1] }
 0x29c   :  { %13536 = vst [vmem:[#allocation79_spill] sm:$0xff] %v7411_v35  ;;  %v7579_v35 = vld [vmem:[%s11197_s0 + $0x4d5] sm:$0x1] }
 0x29d   :  { %13537 = vst [vmem:[#allocation190_spill] sm:$0xff] %v7416_v19  ;;  %v7617_v19 = vld [vmem:[%s11197_s0 + $0x535] sm:$0x1] }
 0x29e   :  { %13538 = vst [vmem:[#allocation83_spill] sm:$0xff] %v7421_v33  ;;  %v7622_v33 = vld [vmem:[%s11197_s0 + $0x545] sm:$0x1] }
 0x29f   :  { %13539 = vst [vmem:[#allocation194_spill] sm:$0xff] %v7426_v6  ;;  %v7668_v6 = vld [vmem:[%s11197_s0 + $0x5a5] sm:$0x1] }
 0x2a0   :  { %13544 = vst [vmem:[#allocation80_spill] sm:$0xff] %v7439_v49  ;;  %v7607_v49 = vld [vmem:[%s11197_s0 + $0x515] sm:$0x1] }
 0x2a1   :  { %13545 = vst [vmem:[#allocation191_spill] sm:$0xff] %v7444_v46  ;;  %v7645_v46 = vld [vmem:[%s11197_s0 + $0x575] sm:$0x1] }
 0x2a2   :  { %13546 = vst [vmem:[#allocation84_spill] sm:$0xff] %v7449_v15  ;;  %v7650_v15 = vld [vmem:[%s11197_s0 + $0x585] sm:$0x1] }
 0x2a3   :  { %13547 = vst [vmem:[#allocation195_spill] sm:$0xff] %v7454_v29  ;;  %v7696_v29 = vld [vmem:[%s11197_s0 + $0x5e5] sm:$0x1] }
 0x2a4   :  { %13552 = vst [vmem:[#allocation81_spill] sm:$0xff] %v7467_v31  ;;  %v7635_v31 = vld [vmem:[%s11197_s0 + $0x555] sm:$0x1] }
 0x2a5   :  { %13553 = vst [vmem:[#allocation192_spill] sm:$0xff] %v7472_v20  ;;  %v7673_v20 = vld [vmem:[%s11197_s0 + $0x5b5] sm:$0x1] }
 0x2a6   :  { %13554 = vst [vmem:[#allocation85_spill] sm:$0xff] %v7477_v25  ;;  %v7678_v25 = vld [vmem:[%s11197_s0 + $0x5c5] sm:$0x1] }
 0x2a7   :  { %13555 = vst [vmem:[#allocation196_spill] sm:$0xff] %v7482_v37  ;;  %v7724_v37 = vld [vmem:[%s11197_s0 + $0x625] sm:$0x1] }
 0x2a8   :  { %13560 = vst [vmem:[#allocation86_spill] sm:$0xff] %v7495_v50  ;;  %v7663_v50 = vld [vmem:[%s11197_s0 + $0x595] sm:$0x1] }
 0x2a9   :  { %13561 = vst [vmem:[#allocation197_spill] sm:$0xff] %v7500_v42  ;;  %v7701_v42 = vld [vmem:[%s11197_s0 + $0x5f5] sm:$0x1] }
 0x2aa   :  { %13562 = vst [vmem:[#allocation90_spill] sm:$0xff] %v7505_v54  ;;  %v7706_v54 = vld [vmem:[%s11197_s0 + $0x605] sm:$0x1] }
 0x2ab   :  { %13563 = vst [vmem:[#allocation199_spill] sm:$0xff] %v7510_v36  ;;  %v7752_v36 = vld [vmem:[%s11197_s0 + $0x665] sm:$0x1] }
 0x2ac   :  { %13568 = vst [vmem:[#allocation198_spill] sm:$0xff] %v7523_v45  ;;  %v7691_v45 = vld [vmem:[%s11197_s0 + $0x5d5] sm:$0x1] }
 0x2ad   :  { %13569 = vst [vmem:[#allocation91_spill] sm:$0xff] %v7528_v8  ;;  %v7729_v8 = vld [vmem:[%s11197_s0 + $0x635] sm:$0x1] }
 0x2ae   :  { %13570 = vst [vmem:[#allocation200_spill] sm:$0xff] %v7533_v38  ;;  %v7734_v38 = vld [vmem:[%s11197_s0 + $0x645] sm:$0x1] }
 0x2af   :  { %13571 = vst [vmem:[#allocation88_spill] sm:$0xff] %v7538_v3  ;;  %v7780_v3 = vld [vmem:[%s11197_s0 + $0x6a5] sm:$0x1] }
 0x2b0   :  { %13576 = vst [vmem:[#allocation201_spill] sm:$0xff] %v7551_v27  ;;  %v7719_v27 = vld [vmem:[%s11197_s0 + $0x615] sm:$0x1] }
 0x2b1   :  { %13577 = vst [vmem:[#allocation92_spill] sm:$0xff] %v7556_v41  ;;  %v7757_v41 = vld [vmem:[%s11197_s0 + $0x675] sm:$0x1] }
 0x2b2   :  { %13578 = vst [vmem:[#allocation203_spill] sm:$0xff] %v7561_v11  ;;  %v7762_v11 = vld [vmem:[%s11197_s0 + $0x685] sm:$0x1] }
 0x2b3   :  { %13579 = vst [vmem:[#allocation93_spill] sm:$0xff] %v7566_v14  ;;  %v13628_v14 = vld [vmem:[#allocation150_spill] sm:$0xff] }
 0x2b4   :  { %13584 = vst [vmem:[#allocation202_spill] sm:$0xff] %v7579_v35  ;;  %v7747_v35 = vld [vmem:[%s11197_s0 + $0x655] sm:$0x1] }
 0x2b5   :  { %13585 = vst [vmem:[#allocation94_spill] sm:$0xff] %v7584_v43  ;;  %v7785_v43 = vld [vmem:[%s11197_s0 + $0x6b5] sm:$0x1] }
 0x2b6   :  { %13586 = vst [vmem:[#allocation204_spill] sm:$0xff] %v7589_v7  ;;  %v7790_v7 = vld [vmem:[%s11197_s0 + $0x6c5] sm:$0x1] }
 0x2b7   :  { %13587 = vst [vmem:[#allocation98_spill] sm:$0xff] %v7594_v17  ;;  %v7841_v17 = vld [vmem:[%s11197_s0 + $0x735] sm:$0x1] }
 0x2b8   :  { %13592 = vst [vmem:[#allocation205_spill] sm:$0xff] %v7607_v49  ;;  %v7775_v49 = vld [vmem:[%s11197_s0 + $0x695] sm:$0x1] }
 0x2b9   :  { %13593 = vst [vmem:[#allocation95_spill] sm:$0xff] %v7612_v26  ;;  %v7836_v26 = vld [vmem:[%s11197_s0 + $0x725] sm:$0x1] }
 0x2ba   :  { %13594 = vst [vmem:[#allocation207_spill] sm:$0xff] %v7617_v19  ;;  %v7897_v19 = vld [vmem:[%s11197_s0 + $0x7b5] sm:$0x1] }
 0x2bb   :  { %13595 = vst [vmem:[#allocation99_spill] sm:$0xff] %v7622_v33  ;;  %v7803_v33 = vld [vmem:[%s11197_s0 + $0x6d5] sm:$0x1] }
 0x2bc   :  { %13600 = vst [vmem:[#allocation206_spill] sm:$0xff] %v7635_v31  ;;  %v7808_v31 = vld [vmem:[%s11197_s0 + $0x6e5] sm:$0x1] }
 0x2bd   :  { %13601 = vst [vmem:[#allocation96_spill] sm:$0xff] %v7640_v56  ;;  %v7869_v56 = vld [vmem:[%s11197_s0 + $0x775] sm:$0x1] }
 0x2be   :  { %13602 = vst [vmem:[#allocation208_spill] sm:$0xff] %v7645_v46  ;;  %v7818_v46 = vld [vmem:[%s11197_s0 + $0x705] sm:$0x1] }
 0x2bf   :  { %13603 = vst [vmem:[#allocation100_spill] sm:$0xff] %v7650_v15  ;;  %v7813_v15 = vld [vmem:[%s11197_s0 + $0x6f5] sm:$0x1] }
 0x2c0   :  { %13608 = vst [vmem:[#allocation209_spill] sm:$0xff] %v7673_v20  ;;  %v7831_v20 = vld [vmem:[%s11197_s0 + $0x715] sm:$0x1] }
 0x2c1   :  { %13609 = vst [vmem:[#allocation97_spill] sm:$0xff] %v7678_v25  ;;  %v7846_v25 = vld [vmem:[%s11197_s0 + $0x745] sm:$0x1] }
 0x2c2   :  { %13614 = vst [vmem:[#allocation211_spill] sm:$0xff] %v7701_v42  ;;  %v7859_v42 = vld [vmem:[%s11197_s0 + $0x755] sm:$0x1] }
 0x2c3   :  { %13615 = vst [vmem:[#allocation210_spill] sm:$0xff] %v7706_v54  ;;  %v7874_v54 = vld [vmem:[%s11197_s0 + $0x785] sm:$0x1] }
 0x2c4   :  { %13620 = vst [vmem:[#allocation106_spill] sm:$0xff] %v7729_v8  ;;  %v7887_v8 = vld [vmem:[%s11197_s0 + $0x795] sm:$0x1] }
 0x2c5   :  { %13621 = vst [vmem:[#allocation212_spill] sm:$0xff] %v7734_v38  ;;  %v7902_v38 = vld [vmem:[%s11197_s0 + $0x7c5] sm:$0x1] }
 0x2c6   :  { %13626 = vst [vmem:[#allocation103_spill] sm:$0xff] %v7757_v41  ;;  %v7915_v41 = vld [vmem:[%s11197_s0 + $0x7d5] sm:$0x1] }
 0x2c7   :  { %13627 = vst [vmem:[#allocation215_spill] sm:$0xff] %v7762_v11  ;;  %v1416_v11 = vld [vmem:[%s11197_s0 + $0x6] sm:$0x1] }
 0x2c8   :  { %13632 = vst [vmem:[#allocation109_spill] sm:$0xff] %v7780_v3  ;;  %v1418_v3 = vld [vmem:[%s11197_s0 + $0x26] sm:$0x1] }
 0x2c9   :  { %13633 = vst [vmem:[#allocation213_spill] sm:$0xff] %v7785_v43  ;;  %v1424_v43 = vld [vmem:[%s11197_s0 + $0x86] sm:$0x1] }
 0x2ca   :  { %13634 = vst [vmem:[#allocation110_spill] sm:$0xff] %v7790_v7  ;;  %v1423_v7 = vld [vmem:[%s11197_s0 + $0x76] sm:$0x1] }
 0x2cb   :  { %13638 = vst [vmem:[#allocation216_spill] sm:$0xff] %v7813_v15  ;;  %v1421_v15 = vld [vmem:[%s11197_s0 + $0x56] sm:$0x1] }
 0x2cc   :  { %13639 = vst [vmem:[#allocation214_spill] sm:$0xff] %v7818_v46  ;;  %v1427_v46 = vld [vmem:[%s11197_s0 + $0xb6] sm:$0x1] }
 0x2cd   :  { %13640 = vst [vmem:[#allocation116_spill] sm:$0xff] %v7836_v26  ;;  %v1426_v26 = vld [vmem:[%s11197_s0 + $0xa6] sm:$0x1] }
 0x2ce   :  { %13641 = vst [vmem:[#allocation217_spill] sm:$0xff] %v7841_v17  ;;  %v1432_v17 = vld [vmem:[%s11197_s0 + $0x106] sm:$0x1] }
 0x2cf   :  { %13642 = vst [vmem:[#allocation113_spill] sm:$0xff] %v7846_v25  ;;  %v1431_v25 = vld [vmem:[%s11197_s0 + $0xf6] sm:$0x1] }
 0x2d0   :  { %13643 = vst [vmem:[#allocation218_spill] sm:$0xff] %v7859_v42 }
 0x2d1   :  { %13644 = vst [vmem:[#allocation219_spill] sm:$0xff] %v7864_v4  ;;  %v1429_v4 = vld [vmem:[%s11197_s0 + $0xd6] sm:$0x1] }
 0x2d2   :  { %13645 = vst [vmem:[#allocation123_spill] sm:$0xff] %v7869_v56  ;;  %v13658_v56 = vmax.f32 %v13463_v61, %v6977_v52  ;;  %v13661_v52 = vld [vmem:[#allocation47_spill] sm:$0xff] }
 0x2d3   :  { %13646 = vst [vmem:[#allocation220_spill] sm:$0xff] %v7874_v54  ;;  %v1433_v54 = vld [vmem:[%s11197_s0 + $0x116] sm:$0x1] }
 0x2d4   :  { %13647 = vst [vmem:[#allocation120_spill] sm:$0xff] %v7887_v8  ;;  %v13673_v8 = vld [vmem:[#allocation159_spill] sm:$0xff] }
 0x2d5   :  { %13648 = vst [vmem:[#allocation87_spill] sm:$0xff] %v7892_v21  ;;  %v1434_v21 = vld [vmem:[%s11197_s0 + $0x126] sm:$0x1]  ;;  %v13674_v32 = vmax.f32 %v13672_v57, %v13673_v8  ;;  %v13677_v8 = vld [vmem:[#allocation52_spill] sm:$0xff] }
 0x2d6   :  { %13649 = vst [vmem:[#allocation89_spill] sm:$0xff] %v7897_v19  ;;  %v8019_v19 = vmax.f32 %v13658_v56, %v1416_v11  ;;  %v13662_v11 = vmax.f32 %v13660_v23, %v13661_v52  ;;  %v13664_v56 = vld [vmem:[#allocation225_spill] sm:$0xff]  ;;  %v1438_v23 = vld [vmem:[%s11197_s0 + $0x166] sm:$0x1]  ;;  %v13681_v57 = vld [vmem:[#allocation160_spill] sm:$0xff] }
 0x2d7   :  { %13650 = vst [vmem:[#allocation150_spill] sm:$0xff] %v7902_v38  ;;  %v1436_v38 = vld [vmem:[%s11197_s0 + $0x146] sm:$0x1]  ;;  %v8051_v42 = vmax.f32 %v13674_v32, %v1420_v60  ;;  %v13685_v52 = vld [vmem:[#allocation49_spill] sm:$0xff] }
 0x2d8   :  { %13651 = vst [vmem:[#allocation151_spill] sm:$0xff] %v7915_v41  ;;  %v8036_v61 = vmax.f32 %v13662_v11, %v1417_v51  ;;  %v1437_v51 = vld [vmem:[%s11197_s0 + $0x156] sm:$0x1]  ;;  %v13680_v32 = vld [vmem:[#allocation222_spill] sm:$0xff] }
 0x2d9   :  { %13652 = vst [vmem:[#allocation226_spill] sm:$0xff] %v7920_v24  ;;  %v13668_v24 = vld [vmem:[#allocation101_spill] sm:$0xff] }
 0x2da   :  { %13653 = vst [vmem:[#allocation227_spill] sm:$0xff] %v7925_v9  ;;  %v13670_v41 = vmax.f32 %v13668_v24, %v13669_v39  ;;  %v1440_v24 = vld [vmem:[%s11197_s0 + $0x186] sm:$0x1] }
 0x2db   :  { %13659 = vst [vmem:[#allocation228_spill] sm:$0xff] %v8019_v19  ;;  %v13665_v19 = vld [vmem:[#allocation162_spill] sm:$0xff] }
 0x2dc   :  { %13663 = vst [vmem:[#allocation224_spill] sm:$0xff] %v8036_v61  ;;  %v13666_v9 = vmax.f32 %v13664_v56, %v13665_v19  ;;  %v8046_v28 = vmax.f32 %v13670_v41, %v1419_v22  ;;  %v13676_v22 = vld [vmem:[#allocation102_spill] sm:$0xff]  ;;  %v13684_v19 = vld [vmem:[#allocation107_spill] sm:$0xff] }
 0x2dd   :  { %13675 = vst [vmem:[#allocation162_spill] sm:$0xff] %v8051_v42  ;;  %v13678_v60 = vmax.f32 %v13676_v22, %v13677_v8  ;;  %v13686_v11 = vmax.f32 %v13684_v19, %v13685_v52  ;;  %v13688_v42 = vld [vmem:[#allocation223_spill] sm:$0xff]  ;;  %v1442_v22 = vld [vmem:[%s11197_s0 + $0x1a6] sm:$0x1]  ;;  %v13692_v8 = vld [vmem:[#allocation104_spill] sm:$0xff] }
 0x2de   :  { %v8041_v44 = vmax.f32 %v13666_v9, %v1418_v3  ;;  %13671 = vst [vmem:[#allocation225_spill] sm:$0xff] %v8046_v28  ;;  %v1439_v9 = vld [vmem:[%s11197_s0 + $0x176] sm:$0x1]  ;;  %v13682_v3 = vmax.f32 %v13680_v32, %v13681_v57  ;;  %v13701_v19 = vld [vmem:[#allocation166_spill] sm:$0xff] }
 0x2df   :  { %v8068_v41 = vmax.f32 %v13678_v60, %v1421_v15  ;;  %v8078_v56 = vmax.f32 %v13686_v11, %v1423_v7  ;;  %v13689_v28 = vld [vmem:[#allocation164_spill] sm:$0xff]  ;;  %v1444_v7 = vld [vmem:[%s11197_s0 + $0x1c6] sm:$0x1] }
 0x2e0   :  { %13667 = vst [vmem:[#allocation47_spill] sm:$0xff] %v8041_v44  ;;  %v8073_v39 = vmax.f32 %v13682_v3, %v1422_v55  ;;  %v13690_v44 = vmax.f32 %v13688_v42, %v13689_v28  ;;  %v1441_v15 = vld [vmem:[%s11197_s0 + $0x196] sm:$0x1]  ;;  %v13693_v42 = vld [vmem:[#allocation165_spill] sm:$0xff]  ;;  %v13697_v60 = vld [vmem:[#allocation58_spill] sm:$0xff] }
 0x2e1   :  { %13679 = vst [vmem:[#allocation101_spill] sm:$0xff] %v8068_v41  ;;  %v1443_v55 = vld [vmem:[%s11197_s0 + $0x1b6] sm:$0x1] }
 0x2e2   :  { %13683 = vst [vmem:[#allocation51_spill] sm:$0xff] %v8073_v39  ;;  %v8083_v61 = vmax.f32 %v13690_v44, %v1424_v43  ;;  %v13694_v43 = vmax.f32 %v13692_v8, %v13693_v42  ;;  %v13696_v44 = vld [vmem:[#allocation2_spill] sm:$0xff]  ;;  %v13700_v3 = vld [vmem:[#allocation108_spill] sm:$0xff]  ;;  %v13708_v42 = vld [vmem:[#allocation105_spill] sm:$0xff] }
 0x2e3   :  { %13687 = vst [vmem:[#allocation221_spill] sm:$0xff] %v8078_v56  ;;  %v13698_v32 = vmax.f32 %v13696_v44, %v13697_v60  ;;  %v13702_v52 = vmax.f32 %v13700_v3, %v13701_v19  ;;  %v13705_v56 = vld [vmem:[#allocation55_spill] sm:$0xff]  ;;  %v1446_v8 = vld [vmem:[%s11197_s0 + $0x1e6] sm:$0x1]  ;;  %v13717_v3 = vld [vmem:[#allocation168_spill] sm:$0xff] }
 0x2e4   :  { %13691 = vst [vmem:[#allocation159_spill] sm:$0xff] %v8083_v61  ;;  %v8100_v28 = vmax.f32 %v13694_v43, %v1425_v10  ;;  %v13704_v61 = vld [vmem:[#allocation4_spill] sm:$0xff] }
 0x2e5   :  { %v8105_v57 = vmax.f32 %v13698_v32, %v1426_v26  ;;  %v8110_v11 = vmax.f32 %v13702_v52, %v1427_v46  ;;  %v13706_v39 = vmax.f32 %v13704_v61, %v13705_v56  ;;  %v1445_v10 = vld [vmem:[%s11197_s0 + $0x1d6] sm:$0x1]  ;;  %v1448_v46 = vld [vmem:[%s11197_s0 + $0x206] sm:$0x1]  ;;  %v13709_v61 = vld [vmem:[#allocation171_spill] sm:$0xff] }
 0x2e6   :  { %13695 = vst [vmem:[#allocation102_spill] sm:$0xff] %v8100_v28  ;;  %v1447_v26 = vld [vmem:[%s11197_s0 + $0x1f6] sm:$0x1]  ;;  %v13712_v56 = vld [vmem:[#allocation3_spill] sm:$0xff]  ;;  %v13716_v32 = vld [vmem:[#allocation114_spill] sm:$0xff] }
 0x2e7   :  { %13699 = vst [vmem:[#allocation52_spill] sm:$0xff] %v8105_v57  ;;  %v8115_v41 = vmax.f32 %v13706_v39, %v1428_v34  ;;  %v13710_v34 = vmax.f32 %v13708_v42, %v13709_v61  ;;  %v13713_v43 = vld [vmem:[#allocation60_spill] sm:$0xff]  ;;  %v13718_v19 = vmax.f32 %v13716_v32, %v13717_v3  ;;  %v1450_v42 = vld [vmem:[%s11197_s0 + $0x226] sm:$0x1]  ;;  %v13724_v61 = vld [vmem:[#allocation111_spill] sm:$0xff] }
 0x2e8   :  { %13703 = vst [vmem:[#allocation222_spill] sm:$0xff] %v8110_v11  ;;  %v13714_v44 = vmax.f32 %v13712_v56, %v13713_v43  ;;  %v13721_v11 = vld [vmem:[#allocation57_spill] sm:$0xff]  ;;  %v13733_v32 = vld [vmem:[#allocation66_spill] sm:$0xff] }
 0x2e9   :  { %13707 = vst [vmem:[#allocation160_spill] sm:$0xff] %v8115_v41  ;;  %v8132_v39 = vmax.f32 %v13710_v34, %v1429_v4  ;;  %v8142_v52 = vmax.f32 %v13718_v19, %v1431_v25  ;;  %v13720_v41 = vld [vmem:[#allocation5_spill] sm:$0xff]  ;;  %v1449_v4 = vld [vmem:[%s11197_s0 + $0x216] sm:$0x1]  ;;  %v1452_v25 = vld [vmem:[%s11197_s0 + $0x246] sm:$0x1] }
 0x2ea   :  { %v8137_v60 = vmax.f32 %v13714_v44, %v1430_v53  ;;  %v13722_v57 = vmax.f32 %v13720_v41, %v13721_v11  ;;  %v1451_v53 = vld [vmem:[%s11197_s0 + $0x236] sm:$0x1]  ;;  %v13725_v41 = vld [vmem:[#allocation62_spill] sm:$0xff]  ;;  %v13729_v34 = vld [vmem:[#allocation173_spill] sm:$0xff] }
 0x2eb   :  { %13711 = vst [vmem:[#allocation107_spill] sm:$0xff] %v8132_v39  ;;  %v13728_v11 = vld [vmem:[#allocation6_spill] sm:$0xff]  ;;  %v13732_v44 = vld [vmem:[#allocation115_spill] sm:$0xff] }
 0x2ec   :  { %13715 = vst [vmem:[#allocation49_spill] sm:$0xff] %v8137_v60  ;;  %v8147_v28 = vmax.f32 %v13722_v57, %v1432_v17  ;;  %v13726_v17 = vmax.f32 %v13724_v61, %v13725_v41  ;;  %v13730_v56 = vmax.f32 %v13728_v11, %v13729_v34  ;;  %v13734_v3 = vmax.f32 %v13732_v44, %v13733_v32  ;;  %v1454_v61 = vld [vmem:[%s11197_s0 + $0x266] sm:$0x1]  ;;  %v13740_v41 = vld [vmem:[#allocation112_spill] sm:$0xff]  ;;  %v13749_v44 = vld [vmem:[#allocation67_spill] sm:$0xff] }
 0x2ed   :  { %13719 = vst [vmem:[#allocation223_spill] sm:$0xff] %v8142_v52  ;;  %v13737_v52 = vld [vmem:[#allocation174_spill] sm:$0xff] }
 0x2ee   :  { %13723 = vst [vmem:[#allocation164_spill] sm:$0xff] %v8147_v28  ;;  %v8164_v57 = vmax.f32 %v13726_v17, %v1433_v54  ;;  %v8169_v43 = vmax.f32 %v13730_v56, %v1434_v21  ;;  %v8174_v19 = vmax.f32 %v13734_v3, %v1435_v1  ;;  %v13736_v28 = vld [vmem:[#allocation10_spill] sm:$0xff]  ;;  %v1453_v54 = vld [vmem:[%s11197_s0 + $0x256] sm:$0x1]  ;;  %v13748_v56 = vld [vmem:[#allocation117_spill] sm:$0xff] }
 0x2ef   :  { %v13738_v60 = vmax.f32 %v13736_v28, %v13737_v52  ;;  %v1455_v21 = vld [vmem:[%s11197_s0 + $0x276] sm:$0x1]  ;;  %v1456_v1 = vld [vmem:[%s11197_s0 + $0x286] sm:$0x1]  ;;  %v13741_v28 = vld [vmem:[#allocation63_spill] sm:$0xff]  ;;  %v13750_v32 = vmax.f32 %v13748_v56, %v13749_v44 }
 0x2f0   :  { %13727 = vst [vmem:[#allocation104_spill] sm:$0xff] %v8164_v57  ;;  %v13744_v52 = vld [vmem:[#allocation7_spill] sm:$0xff]  ;;  %v13745_v17 = vld [vmem:[#allocation178_spill] sm:$0xff]  ;;  %v13765_v56 = vld [vmem:[#allocation68_spill] sm:$0xff] }
 0x2f1   :  { %13731 = vst [vmem:[#allocation165_spill] sm:$0xff] %v8169_v43  ;;  %v8179_v39 = vmax.f32 %v13738_v60, %v1436_v38  ;;  %v13742_v38 = vmax.f32 %v13740_v41, %v13741_v28  ;;  %v13746_v11 = vmax.f32 %v13744_v52, %v13745_v17  ;;  %v8206_v3 = vmax.f32 %v13750_v32, %v1439_v9  ;;  %v1458_v41 = vld [vmem:[%s11197_s0 + $0x2a6] sm:$0x1] }
 0x2f2   :  { %13735 = vst [vmem:[#allocation2_spill] sm:$0xff] %v8174_v19  ;;  %v13753_v19 = vld [vmem:[#allocation175_spill] sm:$0xff]  ;;  %v1460_v9 = vld [vmem:[%s11197_s0 + $0x2c6] sm:$0x1] }
 0x2f3   :  { %13739 = vst [vmem:[#allocation58_spill] sm:$0xff] %v8179_v39  ;;  %v8196_v60 = vmax.f32 %v13742_v38, %v1437_v51  ;;  %v8201_v34 = vmax.f32 %v13746_v11, %v1438_v23  ;;  %v13752_v39 = vld [vmem:[#allocation11_spill] sm:$0xff]  ;;  %v1457_v51 = vld [vmem:[%s11197_s0 + $0x296] sm:$0x1]  ;;  %v13756_v28 = vld [vmem:[#allocation118_spill] sm:$0xff] }
 0x2f4   :  { %13751 = vst [vmem:[#allocation4_spill] sm:$0xff] %v8206_v3  ;;  %v13754_v43 = vmax.f32 %v13752_v39, %v13753_v19  ;;  %v1459_v23 = vld [vmem:[%s11197_s0 + $0x2b6] sm:$0x1]  ;;  %v13761_v38 = vld [vmem:[#allocation179_spill] sm:$0xff]  ;;  %v13764_v11 = vld [vmem:[#allocation122_spill] sm:$0xff] }
 0x2f5   :  { %13743 = vst [vmem:[#allocation108_spill] sm:$0xff] %v8196_v60  ;;  %v13757_v39 = vld [vmem:[#allocation64_spill] sm:$0xff]  ;;  %v13766_v44 = vmax.f32 %v13764_v11, %v13765_v56  ;;  %v13781_v11 = vld [vmem:[#allocation69_spill] sm:$0xff] }
 0x2f6   :  { %13747 = vst [vmem:[#allocation166_spill] sm:$0xff] %v8201_v34  ;;  %v8211_v57 = vmax.f32 %v13754_v43, %v1440_v24  ;;  %v13758_v24 = vmax.f32 %v13756_v28, %v13757_v39  ;;  %v13760_v19 = vld [vmem:[#allocation8_spill] sm:$0xff]  ;;  %v1462_v28 = vld [vmem:[%s11197_s0 + $0x2e6] sm:$0x1]  ;;  %v13772_v39 = vld [vmem:[#allocation119_spill] sm:$0xff] }
 0x2f7   :  { %v13762_v52 = vmax.f32 %v13760_v19, %v13761_v38  ;;  %v8238_v32 = vmax.f32 %v13766_v44, %v1443_v55  ;;  %v13769_v3 = vld [vmem:[#allocation176_spill] sm:$0xff]  ;;  %v1464_v55 = vld [vmem:[%s11197_s0 + $0x306] sm:$0x1] }
 0x2f8   :  { %13755 = vst [vmem:[#allocation55_spill] sm:$0xff] %v8211_v57  ;;  %v8228_v43 = vmax.f32 %v13758_v24, %v1441_v15  ;;  %v13768_v57 = vld [vmem:[#allocation12_spill] sm:$0xff] }
 0x2f9   :  { %v8233_v17 = vmax.f32 %v13762_v52, %v1442_v22  ;;  %13767 = vst [vmem:[#allocation3_spill] sm:$0xff] %v8238_v32  ;;  %v13770_v34 = vmax.f32 %v13768_v57, %v13769_v3  ;;  %v1461_v15 = vld [vmem:[%s11197_s0 + $0x2d6] sm:$0x1]  ;;  %v13773_v57 = vld [vmem:[#allocation65_spill] sm:$0xff] }
 0x2fa   :  { %13759 = vst [vmem:[#allocation105_spill] sm:$0xff] %v8228_v43  ;;  %v1463_v22 = vld [vmem:[%s11197_s0 + $0x2f6] sm:$0x1]  ;;  %v13776_v3 = vld [vmem:[#allocation9_spill] sm:$0xff] }
 0x2fb   :  { %13763 = vst [vmem:[#allocation171_spill] sm:$0xff] %v8233_v17  ;;  %v8243_v60 = vmax.f32 %v13770_v34, %v1444_v7  ;;  %v13774_v7 = vmax.f32 %v13772_v39, %v13773_v57  ;;  %v13777_v24 = vld [vmem:[#allocation180_spill] sm:$0xff]  ;;  %v13785_v32 = vld [vmem:[#allocation177_spill] sm:$0xff]  ;;  %v1466_v39 = vld [vmem:[%s11197_s0 + $0x326] sm:$0x1] }
 0x2fc   :  { %v13778_v19 = vmax.f32 %v13776_v3, %v13777_v24  ;;  %v13780_v52 = vld [vmem:[#allocation124_spill] sm:$0xff]  ;;  %v13788_v57 = vld [vmem:[#allocation121_spill] sm:$0xff] }
 0x2fd   :  { %13771 = vst [vmem:[#allocation60_spill] sm:$0xff] %v8243_v60  ;;  %v8260_v34 = vmax.f32 %v13774_v7, %v1445_v10  ;;  %v13782_v56 = vmax.f32 %v13780_v52, %v13781_v11  ;;  %v13784_v60 = vld [vmem:[#allocation13_spill] sm:$0xff]  ;;  %v1465_v10 = vld [vmem:[%s11197_s0 + $0x316] sm:$0x1]  ;;  %v13797_v52 = vld [vmem:[#allocation74_spill] sm:$0xff] }
 0x2fe   :  { %v8265_v38 = vmax.f32 %v13778_v19, %v1446_v8  ;;  %v13786_v17 = vmax.f32 %v13784_v60, %v13785_v32  ;;  %v1467_v8 = vld [vmem:[%s11197_s0 + $0x336] sm:$0x1]  ;;  %v13789_v60 = vld [vmem:[#allocation70_spill] sm:$0xff]  ;;  %v13793_v7 = vld [vmem:[#allocation181_spill] sm:$0xff] }
 0x2ff   :  { %13775 = vst [vmem:[#allocation114_spill] sm:$0xff] %v8260_v34  ;;  %v8270_v44 = vmax.f32 %v13782_v56, %v1447_v26  ;;  %v1468_v26 = vld [vmem:[%s11197_s0 + $0x346] sm:$0x1]  ;;  %v13796_v19 = vld [vmem:[#allocation125_spill] sm:$0xff] }
 0x300   :  { %13779 = vst [vmem:[#allocation168_spill] sm:$0xff] %v8265_v38  ;;  %v8275_v43 = vmax.f32 %v13786_v17, %v1448_v46  ;;  %v13790_v46 = vmax.f32 %v13788_v57, %v13789_v60  ;;  %v13792_v32 = vld [vmem:[#allocation14_spill] sm:$0xff]  ;;  %v13798_v11 = vmax.f32 %v13796_v19, %v13797_v52  ;;  %v13813_v19 = vld [vmem:[#allocation75_spill] sm:$0xff] }
 0x301   :  { %13783 = vst [vmem:[#allocation5_spill] sm:$0xff] %v8270_v44  ;;  %v13794_v3 = vmax.f32 %v13792_v32, %v13793_v7  ;;  %v13801_v44 = vld [vmem:[#allocation182_spill] sm:$0xff] }
 0x302   :  { %13787 = vst [vmem:[#allocation57_spill] sm:$0xff] %v8275_v43  ;;  %v8292_v17 = vmax.f32 %v13790_v46, %v1449_v4  ;;  %v8302_v56 = vmax.f32 %v13798_v11, %v1451_v53  ;;  %v13800_v43 = vld [vmem:[#allocation18_spill] sm:$0xff]  ;;  %v1469_v4 = vld [vmem:[%s11197_s0 + $0x356] sm:$0x1] }
 0x303   :  { %v8297_v24 = vmax.f32 %v13794_v3, %v1450_v42  ;;  %v13802_v38 = vmax.f32 %v13800_v43, %v13801_v44  ;;  %v1470_v57 = vld [vmem:[%s11197_s0 + $0x366] sm:$0x1]  ;;  %v1471_v42 = vld [vmem:[%s11197_s0 + $0x376] sm:$0x1]  ;;  %v13805_v43 = vld [vmem:[#allocation71_spill] sm:$0xff] }
 0x304   :  { %13791 = vst [vmem:[#allocation111_spill] sm:$0xff] %v8292_v17  ;;  %v1472_v53 = vld [vmem:[%s11197_s0 + $0x386] sm:$0x1]  ;;  %v13808_v44 = vld [vmem:[#allocation15_spill] sm:$0xff] }
 0x305   :  { %13795 = vst [vmem:[#allocation62_spill] sm:$0xff] %v8297_v24  ;;  %v8307_v34 = vmax.f32 %v13802_v38, %v1452_v25  ;;  %v13804_v60 = vld [vmem:[#allocation126_spill] sm:$0xff] }
 0x306   :  { %13799 = vst [vmem:[#allocation6_spill] sm:$0xff] %v8302_v56  ;;  %v13806_v25 = vmax.f32 %v13804_v60, %v13805_v43  ;;  %v13809_v46 = vld [vmem:[#allocation186_spill] sm:$0xff]  ;;  %v13817_v56 = vld [vmem:[#allocation183_spill] sm:$0xff] }
 0x307   :  { %13803 = vst [vmem:[#allocation173_spill] sm:$0xff] %v8307_v34  ;;  %v13810_v32 = vmax.f32 %v13808_v44, %v13809_v46  ;;  %v13812_v3 = vld [vmem:[#allocation130_spill] sm:$0xff]  ;;  %v13816_v34 = vld [vmem:[#allocation19_spill] sm:$0xff] }
 0x308   :  { %v8324_v38 = vmax.f32 %v13806_v25, %v1453_v54  ;;  %v13814_v52 = vmax.f32 %v13812_v3, %v13813_v19  ;;  %v13818_v24 = vmax.f32 %v13816_v34, %v13817_v56  ;;  %v1473_v54 = vld [vmem:[%s11197_s0 + $0x396] sm:$0x1]  ;;  %v1474_v60 = vld [vmem:[%s11197_s0 + $0x3a6] sm:$0x1]  ;;  %v13820_v43 = vld [vmem:[#allocation127_spill] sm:$0xff] }
 0x309   :  { %v8329_v7 = vmax.f32 %v13810_v32, %v1454_v61  ;;  %v1475_v61 = vld [vmem:[%s11197_s0 + $0x3b6] sm:$0x1]  ;;  %v13825_v25 = vld [vmem:[#allocation187_spill] sm:$0xff] }
 0x30a   :  { %13807 = vst [vmem:[#allocation115_spill] sm:$0xff] %v8324_v38  ;;  %v8334_v11 = vmax.f32 %v13814_v52, %v1455_v21  ;;  %v8339_v17 = vmax.f32 %v13818_v24, %v1456_v1  ;;  %v1476_v21 = vld [vmem:[%s11197_s0 + $0x3c6] sm:$0x1]  ;;  %v13821_v34 = vld [vmem:[#allocation72_spill] sm:$0xff]  ;;  %v13828_v32 = vld [vmem:[#allocation131_spill] sm:$0xff] }
 0x30b   :  { %13811 = vst [vmem:[#allocation66_spill] sm:$0xff] %v8329_v7  ;;  %v13822_v1 = vmax.f32 %v13820_v43, %v13821_v34  ;;  %v13824_v56 = vld [vmem:[#allocation16_spill] sm:$0xff]  ;;  %v1478_v43 = vld [vmem:[%s11197_s0 + $0x3e6] sm:$0x1] }
 0x30c   :  { %13815 = vst [vmem:[#allocation10_spill] sm:$0xff] %v8334_v11  ;;  %v13826_v44 = vmax.f32 %v13824_v56, %v13825_v25  ;;  %v13829_v3 = vld [vmem:[#allocation76_spill] sm:$0xff] }
 0x30d   :  { %13819 = vst [vmem:[#allocation174_spill] sm:$0xff] %v8339_v17  ;;  %v8356_v24 = vmax.f32 %v13822_v1, %v1457_v51  ;;  %v13830_v19 = vmax.f32 %v13828_v32, %v13829_v3  ;;  %v13832_v17 = vld [vmem:[#allocation20_spill] sm:$0xff]  ;;  %v13845_v32 = vld [vmem:[#allocation77_spill] sm:$0xff] }
 0x30e   :  { %v8361_v46 = vmax.f32 %v13826_v44, %v1458_v41  ;;  %v13833_v11 = vld [vmem:[#allocation184_spill] sm:$0xff] }
 0x30f   :  { %13823 = vst [vmem:[#allocation112_spill] sm:$0xff] %v8356_v24  ;;  %v8366_v52 = vmax.f32 %v13830_v19, %v1459_v23  ;;  %v13834_v7 = vmax.f32 %v13832_v17, %v13833_v11  ;;  %v1477_v51 = vld [vmem:[%s11197_s0 + $0x3d6] sm:$0x1]  ;;  %v1480_v23 = vld [vmem:[%s11197_s0 + $0x406] sm:$0x1]  ;;  %v13837_v17 = vld [vmem:[#allocation73_spill] sm:$0xff] }
 0x310   :  { %13827 = vst [vmem:[#allocation63_spill] sm:$0xff] %v8361_v46  ;;  %v1479_v41 = vld [vmem:[%s11197_s0 + $0x3f6] sm:$0x1]  ;;  %v13840_v11 = vld [vmem:[#allocation17_spill] sm:$0xff] }
 0x311   :  { %13831 = vst [vmem:[#allocation7_spill] sm:$0xff] %v8366_v52  ;;  %v8371_v38 = vmax.f32 %v13834_v7, %v1460_v9  ;;  %v13836_v34 = vld [vmem:[#allocation128_spill] sm:$0xff]  ;;  %v13849_v52 = vld [vmem:[#allocation185_spill] sm:$0xff] }
 0x312   :  { %v13838_v9 = vmax.f32 %v13836_v34, %v13837_v17  ;;  %v13841_v1 = vld [vmem:[#allocation188_spill] sm:$0xff]  ;;  %v1482_v34 = vld [vmem:[%s11197_s0 + $0x426] sm:$0x1]  ;;  %v13852_v17 = vld [vmem:[#allocation129_spill] sm:$0xff] }
 0x313   :  { %13835 = vst [vmem:[#allocation178_spill] sm:$0xff] %v8371_v38  ;;  %v13842_v56 = vmax.f32 %v13840_v11, %v13841_v1  ;;  %v13844_v44 = vld [vmem:[#allocation132_spill] sm:$0xff]  ;;  %v13848_v38 = vld [vmem:[#allocation21_spill] sm:$0xff] }
 0x314   :  { %v8388_v7 = vmax.f32 %v13838_v9, %v1461_v15  ;;  %v13846_v3 = vmax.f32 %v13844_v44, %v13845_v32  ;;  %v13850_v46 = vmax.f32 %v13848_v38, %v13849_v52  ;;  %v1481_v15 = vld [vmem:[%s11197_s0 + $0x416] sm:$0x1]  ;;  %v13853_v38 = vld [vmem:[#allocation78_spill] sm:$0xff]  ;;  %v13857_v9 = vld [vmem:[#allocation189_spill] sm:$0xff] }
 0x315   :  { %v8393_v25 = vmax.f32 %v13842_v56, %v1462_v28  ;;  %v1483_v28 = vld [vmem:[%s11197_s0 + $0x436] sm:$0x1]  ;;  %v13856_v52 = vld [vmem:[#allocation22_spill] sm:$0xff]  ;;  %v13860_v56 = vld [vmem:[#allocation133_spill] sm:$0xff] }
 0x316   :  { %13839 = vst [vmem:[#allocation117_spill] sm:$0xff] %v8388_v7  ;;  %v8398_v19 = vmax.f32 %v13846_v3, %v1463_v22  ;;  %v8403_v24 = vmax.f32 %v13850_v46, %v1464_v55  ;;  %v1484_v22 = vld [vmem:[%s11197_s0 + $0x446] sm:$0x1]  ;;  %v13854_v55 = vmax.f32 %v13852_v17, %v13853_v38  ;;  %v13858_v11 = vmax.f32 %v13856_v52, %v13857_v9 }
 0x317   :  { %13843 = vst [vmem:[#allocation67_spill] sm:$0xff] %v8393_v25  ;;  %v13861_v44 = vld [vmem:[#allocation82_spill] sm:$0xff] }
 0x318   :  { %13847 = vst [vmem:[#allocation11_spill] sm:$0xff] %v8398_v19  ;;  %v8420_v46 = vmax.f32 %v13854_v55, %v1465_v10  ;;  %v8425_v1 = vmax.f32 %v13858_v11, %v1466_v39  ;;  %v13862_v32 = vmax.f32 %v13860_v56, %v13861_v44  ;;  %v13865_v19 = vld [vmem:[#allocation193_spill] sm:$0xff]  ;;  %v1485_v10 = vld [vmem:[%s11197_s0 + $0x456] sm:$0x1]  ;;  %v1486_v17 = vld [vmem:[%s11197_s0 + $0x466] sm:$0x1] }
 0x319   :  { %13851 = vst [vmem:[#allocation175_spill] sm:$0xff] %v8403_v24  ;;  %v13864_v24 = vld [vmem:[#allocation26_spill] sm:$0xff]  ;;  %v1487_v39 = vld [vmem:[%s11197_s0 + $0x476] sm:$0x1]  ;;  %v13877_v56 = vld [vmem:[#allocation83_spill] sm:$0xff] }
 0x31a   :  { %13855 = vst [vmem:[#allocation118_spill] sm:$0xff] %v8420_v46  ;;  %v8430_v3 = vmax.f32 %v13862_v32, %v1467_v8  ;;  %v13866_v25 = vmax.f32 %v13864_v24, %v13865_v19  ;;  %v1488_v8 = vld [vmem:[%s11197_s0 + $0x486] sm:$0x1]  ;;  %v13869_v24 = vld [vmem:[#allocation79_spill] sm:$0xff] }
 0x31b   :  { %13859 = vst [vmem:[#allocation64_spill] sm:$0xff] %v8425_v1  ;;  %v13868_v38 = vld [vmem:[#allocation134_spill] sm:$0xff]  ;;  %v13872_v19 = vld [vmem:[#allocation23_spill] sm:$0xff] }
 0x31c   :  { %13863 = vst [vmem:[#allocation8_spill] sm:$0xff] %v8430_v3  ;;  %v8435_v7 = vmax.f32 %v13866_v25, %v1468_v26  ;;  %v13870_v26 = vmax.f32 %v13868_v38, %v13869_v24  ;;  %v13873_v55 = vld [vmem:[#allocation190_spill] sm:$0xff]  ;;  %v13884_v24 = vld [vmem:[#allocation135_spill] sm:$0xff] }
 0x31d   :  { %v13874_v52 = vmax.f32 %v13872_v19, %v13873_v55  ;;  %v13876_v11 = vld [vmem:[#allocation138_spill] sm:$0xff] }
 0x31e   :  { %13867 = vst [vmem:[#allocation179_spill] sm:$0xff] %v8435_v7  ;;  %v8452_v25 = vmax.f32 %v13870_v26, %v1469_v4  ;;  %v13878_v44 = vmax.f32 %v13876_v11, %v13877_v56  ;;  %v13880_v7 = vld [vmem:[#allocation27_spill] sm:$0xff]  ;;  %v13881_v3 = vld [vmem:[#allocation194_spill] sm:$0xff]  ;;  %v1489_v4 = vld [vmem:[%s11197_s0 + $0x496] sm:$0x1] }
 0x31f   :  { %v8457_v9 = vmax.f32 %v13874_v52, %v1470_v57  ;;  %v13882_v1 = vmax.f32 %v13880_v7, %v13881_v3  ;;  %v1490_v38 = vld [vmem:[%s11197_s0 + $0x4a6] sm:$0x1]  ;;  %v1491_v57 = vld [vmem:[%s11197_s0 + $0x4b6] sm:$0x1]  ;;  %v13889_v26 = vld [vmem:[#allocation191_spill] sm:$0xff] }
 0x320   :  { %13871 = vst [vmem:[#allocation122_spill] sm:$0xff] %v8452_v25  ;;  %v8462_v32 = vmax.f32 %v13878_v44, %v1471_v42  ;;  %v1492_v42 = vld [vmem:[%s11197_s0 + $0x4c6] sm:$0x1]  ;;  %v13885_v7 = vld [vmem:[#allocation80_spill] sm:$0xff]  ;;  %v13892_v52 = vld [vmem:[#allocation139_spill] sm:$0xff] }
 0x321   :  { %13875 = vst [vmem:[#allocation68_spill] sm:$0xff] %v8457_v9  ;;  %v8467_v46 = vmax.f32 %v13882_v1, %v1472_v53  ;;  %v13886_v53 = vmax.f32 %v13884_v24, %v13885_v7  ;;  %v13888_v3 = vld [vmem:[#allocation24_spill] sm:$0xff]  ;;  %v1494_v24 = vld [vmem:[%s11197_s0 + $0x4e6] sm:$0x1] }
 0x322   :  { %13879 = vst [vmem:[#allocation12_spill] sm:$0xff] %v8462_v32  ;;  %v13890_v19 = vmax.f32 %v13888_v3, %v13889_v26  ;;  %v13893_v11 = vld [vmem:[#allocation84_spill] sm:$0xff]  ;;  %v13897_v32 = vld [vmem:[#allocation195_spill] sm:$0xff] }
 0x323   :  { %13883 = vst [vmem:[#allocation176_spill] sm:$0xff] %v8467_v46  ;;  %v8484_v1 = vmax.f32 %v13886_v53, %v1473_v54  ;;  %v13894_v56 = vmax.f32 %v13892_v52, %v13893_v11  ;;  %v13896_v46 = vld [vmem:[#allocation28_spill] sm:$0xff]  ;;  %v13909_v52 = vld [vmem:[#allocation85_spill] sm:$0xff] }
 0x324   :  { %v8489_v55 = vmax.f32 %v13890_v19, %v1474_v60  ;;  %v13898_v9 = vmax.f32 %v13896_v46, %v13897_v32  ;;  %v1493_v54 = vld [vmem:[%s11197_s0 + $0x4d6] sm:$0x1]  ;;  %v13901_v46 = vld [vmem:[#allocation81_spill] sm:$0xff] }
 0x325   :  { %13887 = vst [vmem:[#allocation119_spill] sm:$0xff] %v8484_v1  ;;  %v8494_v44 = vmax.f32 %v13894_v56, %v1475_v61  ;;  %v1495_v60 = vld [vmem:[%s11197_s0 + $0x4f6] sm:$0x1]  ;;  %v1496_v61 = vld [vmem:[%s11197_s0 + $0x506] sm:$0x1]  ;;  %v13904_v32 = vld [vmem:[#allocation25_spill] sm:$0xff] }
 0x326   :  { %13891 = vst [vmem:[#allocation65_spill] sm:$0xff] %v8489_v55  ;;  %v8499_v25 = vmax.f32 %v13898_v9, %v1476_v21  ;;  %v13900_v7 = vld [vmem:[#allocation136_spill] sm:$0xff] }
 0x327   :  { %13895 = vst [vmem:[#allocation9_spill] sm:$0xff] %v8494_v44  ;;  %v13902_v21 = vmax.f32 %v13900_v7, %v13901_v46  ;;  %v13905_v53 = vld [vmem:[#allocation192_spill] sm:$0xff]  ;;  %v1498_v7 = vld [vmem:[%s11197_s0 + $0x526] sm:$0x1]  ;;  %v13916_v46 = vld [vmem:[#allocation137_spill] sm:$0xff] }
 0x328   :  { %13899 = vst [vmem:[#allocation180_spill] sm:$0xff] %v8499_v25  ;;  %v13906_v3 = vmax.f32 %v13904_v32, %v13905_v53  ;;  %v13908_v19 = vld [vmem:[#allocation140_spill] sm:$0xff]  ;;  %v13912_v25 = vld [vmem:[#allocation29_spill] sm:$0xff] }
 0x329   :  { %v8516_v9 = vmax.f32 %v13902_v21, %v1477_v51  ;;  %v13910_v11 = vmax.f32 %v13908_v19, %v13909_v52  ;;  %v13913_v44 = vld [vmem:[#allocation196_spill] sm:$0xff]  ;;  %v13921_v21 = vld [vmem:[#allocation197_spill] sm:$0xff]  ;;  %v13925_v19 = vld [vmem:[#allocation90_spill] sm:$0xff] }
 0x32a   :  { %v8521_v26 = vmax.f32 %v13906_v3, %v1478_v43  ;;  %v13914_v55 = vmax.f32 %v13912_v25, %v13913_v44  ;;  %v1497_v51 = vld [vmem:[%s11197_s0 + $0x516] sm:$0x1]  ;;  %v13917_v25 = vld [vmem:[#allocation86_spill] sm:$0xff]  ;;  %v13924_v3 = vld [vmem:[#allocation141_spill] sm:$0xff] }
 0x32b   :  { %13903 = vst [vmem:[#allocation124_spill] sm:$0xff] %v8516_v9  ;;  %v8526_v56 = vmax.f32 %v13910_v11, %v1479_v41  ;;  %v1499_v43 = vld [vmem:[%s11197_s0 + $0x536] sm:$0x1]  ;;  %v1500_v41 = vld [vmem:[%s11197_s0 + $0x546] sm:$0x1]  ;;  %v13926_v52 = vmax.f32 %v13924_v3, %v13925_v19 }
 0x32c   :  { %13907 = vst [vmem:[#allocation69_spill] sm:$0xff] %v8521_v26  ;;  %v8531_v1 = vmax.f32 %v13914_v55, %v1480_v23  ;;  %v13918_v23 = vmax.f32 %v13916_v46, %v13917_v25  ;;  %v13920_v44 = vld [vmem:[#allocation30_spill] sm:$0xff]  ;;  %v13941_v3 = vld [vmem:[#allocation200_spill] sm:$0xff] }
 0x32d   :  { %13911 = vst [vmem:[#allocation13_spill] sm:$0xff] %v8526_v56  ;;  %v13922_v32 = vmax.f32 %v13920_v44, %v13921_v21  ;;  %v8558_v11 = vmax.f32 %v13926_v52, %v1483_v28  ;;  %v13929_v56 = vld [vmem:[#allocation199_spill] sm:$0xff]  ;;  %v1502_v46 = vld [vmem:[%s11197_s0 + $0x566] sm:$0x1] }
 0x32e   :  { %13915 = vst [vmem:[#allocation177_spill] sm:$0xff] %v8531_v1  ;;  %v8548_v55 = vmax.f32 %v13918_v23, %v1481_v15  ;;  %v13928_v1 = vld [vmem:[#allocation34_spill] sm:$0xff]  ;;  %v1501_v15 = vld [vmem:[%s11197_s0 + $0x556] sm:$0x1]  ;;  %v13937_v23 = vld [vmem:[#allocation91_spill] sm:$0xff] }
 0x32f   :  { %v8553_v53 = vmax.f32 %v13922_v32, %v1482_v34  ;;  %13927 = vst [vmem:[#allocation14_spill] sm:$0xff] %v8558_v11  ;;  %v13930_v26 = vmax.f32 %v13928_v1, %v13929_v56  ;;  %v1503_v34 = vld [vmem:[%s11197_s0 + $0x576] sm:$0x1]  ;;  %v1504_v28 = vld [vmem:[%s11197_s0 + $0x586] sm:$0x1]  ;;  %v13936_v56 = vld [vmem:[#allocation31_spill] sm:$0xff] }
 0x330   :  { %13919 = vst [vmem:[#allocation121_spill] sm:$0xff] %v8548_v55  ;;  %v13932_v25 = vld [vmem:[#allocation142_spill] sm:$0xff]  ;;  %v13938_v44 = vmax.f32 %v13936_v56, %v13937_v23  ;;  %v13945_v11 = vld [vmem:[#allocation88_spill] sm:$0xff] }
 0x331   :  { %13923 = vst [vmem:[#allocation70_spill] sm:$0xff] %v8553_v53  ;;  %v8563_v9 = vmax.f32 %v13930_v26, %v1484_v22  ;;  %v13933_v1 = vld [vmem:[#allocation198_spill] sm:$0xff] }
 0x332   :  { %v13934_v22 = vmax.f32 %v13932_v25, %v13933_v1  ;;  %v8585_v21 = vmax.f32 %v13938_v44, %v1486_v17  ;;  %v13940_v32 = vld [vmem:[#allocation146_spill] sm:$0xff]  ;;  %v1507_v17 = vld [vmem:[%s11197_s0 + $0x5b6] sm:$0x1]  ;;  %v13948_v1 = vld [vmem:[#allocation143_spill] sm:$0xff] }
 0x333   :  { %13931 = vst [vmem:[#allocation181_spill] sm:$0xff] %v8563_v9  ;;  %v13942_v19 = vmax.f32 %v13940_v32, %v13941_v3  ;;  %v13944_v9 = vld [vmem:[#allocation35_spill] sm:$0xff]  ;;  %v1506_v25 = vld [vmem:[%s11197_s0 + $0x5a6] sm:$0x1] }
 0x334   :  { %v8580_v26 = vmax.f32 %v13934_v22, %v1485_v10  ;;  %13939 = vst [vmem:[#allocation74_spill] sm:$0xff] %v8585_v21  ;;  %v13946_v53 = vmax.f32 %v13944_v9, %v13945_v11  ;;  %v1505_v10 = vld [vmem:[%s11197_s0 + $0x596] sm:$0x1]  ;;  %v13949_v9 = vld [vmem:[#allocation201_spill] sm:$0xff]  ;;  %v13956_v44 = vld [vmem:[#allocation147_spill] sm:$0xff] }
 0x335   :  { %v8590_v52 = vmax.f32 %v13942_v19, %v1487_v39  ;;  %v1508_v39 = vld [vmem:[%s11197_s0 + $0x5c6] sm:$0x1]  ;;  %v13952_v11 = vld [vmem:[#allocation32_spill] sm:$0xff]  ;;  %v13957_v32 = vld [vmem:[#allocation203_spill] sm:$0xff] }
 0x336   :  { %13935 = vst [vmem:[#allocation125_spill] sm:$0xff] %v8580_v26  ;;  %v8595_v55 = vmax.f32 %v13946_v53, %v1488_v8  ;;  %v13950_v8 = vmax.f32 %v13948_v1, %v13949_v9  ;;  %v13953_v22 = vld [vmem:[#allocation92_spill] sm:$0xff]  ;;  %v13958_v3 = vmax.f32 %v13956_v44, %v13957_v32  ;;  %v1510_v1 = vld [vmem:[%s11197_s0 + $0x5e6] sm:$0x1] }
 0x337   :  { %13943 = vst [vmem:[#allocation18_spill] sm:$0xff] %v8590_v52  ;;  %v13954_v56 = vmax.f32 %v13952_v11, %v13953_v22  ;;  %v13961_v52 = vld [vmem:[#allocation93_spill] sm:$0xff]  ;;  %v13964_v9 = vld [vmem:[#allocation144_spill] sm:$0xff] }
 0x338   :  { %13947 = vst [vmem:[#allocation182_spill] sm:$0xff] %v8595_v55  ;;  %v8612_v53 = vmax.f32 %v13950_v8, %v1489_v4  ;;  %v8622_v19 = vmax.f32 %v13958_v3, %v1491_v57  ;;  %v13960_v55 = vld [vmem:[#allocation36_spill] sm:$0xff]  ;;  %v1512_v57 = vld [vmem:[%s11197_s0 + $0x606] sm:$0x1] }
 0x339   :  { %v8617_v23 = vmax.f32 %v13954_v56, %v1490_v38  ;;  %v13962_v21 = vmax.f32 %v13960_v55, %v13961_v52  ;;  %v1509_v4 = vld [vmem:[%s11197_s0 + $0x5d6] sm:$0x1]  ;;  %v13965_v55 = vld [vmem:[#allocation202_spill] sm:$0xff]  ;;  %v13968_v52 = vld [vmem:[#allocation33_spill] sm:$0xff] }
 0x33a   :  { %13951 = vst [vmem:[#allocation126_spill] sm:$0xff] %v8612_v53  ;;  %v1511_v38 = vld [vmem:[%s11197_s0 + $0x5f6] sm:$0x1]  ;;  %v13969_v8 = vld [vmem:[#allocation94_spill] sm:$0xff] }
 0x33b   :  { %13955 = vst [vmem:[#allocation71_spill] sm:$0xff] %v8617_v23  ;;  %v8627_v26 = vmax.f32 %v13962_v21, %v1492_v42  ;;  %v13966_v42 = vmax.f32 %v13964_v9, %v13965_v55  ;;  %v13970_v11 = vmax.f32 %v13968_v52, %v13969_v8  ;;  %v13972_v56 = vld [vmem:[#allocation148_spill] sm:$0xff]  ;;  %v1514_v9 = vld [vmem:[%s11197_s0 + $0x626] sm:$0x1]  ;;  %v13980_v55 = vld [vmem:[#allocation145_spill] sm:$0xff] }
 0x33c   :  { %13959 = vst [vmem:[#allocation15_spill] sm:$0xff] %v8622_v19  ;;  %v13973_v44 = vld [vmem:[#allocation204_spill] sm:$0xff]  ;;  %v13977_v19 = vld [vmem:[#allocation98_spill] sm:$0xff] }
 0x33d   :  { %13963 = vst [vmem:[#allocation186_spill] sm:$0xff] %v8627_v26  ;;  %v8644_v21 = vmax.f32 %v13966_v42, %v1493_v54  ;;  %v8649_v22 = vmax.f32 %v13970_v11, %v1494_v24  ;;  %v13974_v32 = vmax.f32 %v13972_v56, %v13973_v44  ;;  %v13976_v26 = vld [vmem:[#allocation37_spill] sm:$0xff]  ;;  %v1513_v54 = vld [vmem:[%s11197_s0 + $0x616] sm:$0x1]  ;;  %v13984_v42 = vld [vmem:[#allocation95_spill] sm:$0xff] }
 0x33e   :  { %v13978_v23 = vmax.f32 %v13976_v26, %v13977_v19  ;;  %v1515_v24 = vld [vmem:[%s11197_s0 + $0x636] sm:$0x1]  ;;  %v13981_v26 = vld [vmem:[#allocation205_spill] sm:$0xff]  ;;  %v13983_v19 = vld [vmem:[#allocation38_spill] sm:$0xff] }
 0x33f   :  { %13967 = vst [vmem:[#allocation130_spill] sm:$0xff] %v8644_v21  ;;  %v8654_v3 = vmax.f32 %v13974_v32, %v1495_v60  ;;  %v1516_v60 = vld [vmem:[%s11197_s0 + $0x646] sm:$0x1]  ;;  %v13985_v52 = vmax.f32 %v13983_v19, %v13984_v42  ;;  %v13987_v11 = vld [vmem:[#allocation149_spill] sm:$0xff]  ;;  %v13988_v56 = vld [vmem:[#allocation207_spill] sm:$0xff] }
 0x340   :  { %13971 = vst [vmem:[#allocation75_spill] sm:$0xff] %v8649_v22  ;;  %v8659_v53 = vmax.f32 %v13978_v23, %v1496_v61  ;;  %v13982_v61 = vmax.f32 %v13980_v55, %v13981_v26  ;;  %v13989_v44 = vmax.f32 %v13987_v11, %v13988_v56  ;;  %v1518_v55 = vld [vmem:[%s11197_s0 + $0x666] sm:$0x1]  ;;  %v13998_v26 = vld [vmem:[#allocation96_spill] sm:$0xff] }
 0x341   :  { %13975 = vst [vmem:[#allocation19_spill] sm:$0xff] %v8654_v3  ;;  %v8681_v8 = vmax.f32 %v13985_v52, %v1498_v7  ;;  %v13992_v3 = vld [vmem:[#allocation99_spill] sm:$0xff]  ;;  %v1519_v7 = vld [vmem:[%s11197_s0 + $0x676] sm:$0x1]  ;;  %v14000_v42 = vld [vmem:[#allocation154_spill] sm:$0xff] }
 0x342   :  { %13979 = vst [vmem:[#allocation183_spill] sm:$0xff] %v8659_v53  ;;  %v8676_v23 = vmax.f32 %v13982_v61, %v1497_v51  ;;  %v8686_v32 = vmax.f32 %v13989_v44, %v1499_v43  ;;  %v13991_v53 = vld [vmem:[#allocation42_spill] sm:$0xff]  ;;  %v1517_v51 = vld [vmem:[%s11197_s0 + $0x656] sm:$0x1]  ;;  %v14004_v44 = vld [vmem:[#allocation43_spill] sm:$0xff] }
 0x343   :  { %13986 = vst [vmem:[#allocation127_spill] sm:$0xff] %v8681_v8  ;;  %v13993_v22 = vmax.f32 %v13991_v53, %v13992_v3  ;;  %v1520_v43 = vld [vmem:[%s11197_s0 + $0x686] sm:$0x1]  ;;  %v13997_v3 = vld [vmem:[#allocation39_spill] sm:$0xff]  ;;  %v14001_v52 = vld [vmem:[#allocation208_spill] sm:$0xff] }
 0x344   :  { %13990 = vst [vmem:[#allocation72_spill] sm:$0xff] %v8686_v32  ;;  %v13995_v53 = vld [vmem:[#allocation206_spill] sm:$0xff]  ;;  %v13999_v61 = vmax.f32 %v13997_v3, %v13998_v26  ;;  %v14002_v11 = vmax.f32 %v14000_v42, %v14001_v52  ;;  %v14011_v3 = vld [vmem:[#allocation209_spill] sm:$0xff]  ;;  %v14014_v42 = vld [vmem:[#allocation155_spill] sm:$0xff] }
 0x345   :  { %v8691_v21 = vmax.f32 %v13993_v22, %v1500_v41  ;;  %v13996_v41 = vmax.f32 %v13628_v14, %v13995_v53  ;;  %v1521_v14 = vld [vmem:[%s11197_s0 + $0x696] sm:$0x1]  ;;  %v14015_v52 = vld [vmem:[#allocation97_spill] sm:$0xff] }
 0x346   :  { %v8713_v19 = vmax.f32 %v13999_v61, %v1502_v46  ;;  %v8718_v56 = vmax.f32 %v14002_v11, %v1503_v34  ;;  %v1523_v46 = vld [vmem:[%s11197_s0 + $0x6b6] sm:$0x1]  ;;  %v1524_v34 = vld [vmem:[%s11197_s0 + $0x6c6] sm:$0x1]  ;;  %v14016_v11 = vmax.f32 %v14014_v42, %v14015_v52 }
 0x347   :  { %13994 = vst [vmem:[#allocation16_spill] sm:$0xff] %v8691_v21  ;;  %v8708_v22 = vmax.f32 %v13996_v41, %v1501_v15  ;;  %v14005_v21 = vld [vmem:[#allocation100_spill] sm:$0xff]  ;;  %v1522_v15 = vld [vmem:[%s11197_s0 + $0x6a6] sm:$0x1] }
 0x348   :  { %14003 = vst [vmem:[#allocation187_spill] sm:$0xff] %v8718_v56  ;;  %v14006_v32 = vmax.f32 %v14004_v44, %v14005_v21  ;;  %v14010_v41 = vld [vmem:[#allocation40_spill] sm:$0xff]  ;;  %v8755_v44 = vmax.f32 %v14016_v11, %v1508_v39  ;;  %v14025_v42 = vld [vmem:[#allocation210_spill] sm:$0xff] }
 0x349   :  { %v14012_v26 = vmax.f32 %v14010_v41, %v14011_v3  ;;  %v9728_v56 = vld [vmem:[%s11197_s0 + $0x6e7] sm:$0x1] }
 0x34a   :  { %v8723_v8 = vmax.f32 %v14006_v32, %v1504_v28  ;;  %v14008_v28 = vmax.f32 %v6820_v18, %v7663_v50  ;;  %v14009_v32 = vmax.f32 %v13635_v58, %v7668_v6  ;;  %14017 = vst [vmem:[#allocation20_spill] sm:$0xff] %v8755_v44  ;;  %v1525_v18 = vld [vmem:[%s11197_s0 + $0x6d6] sm:$0x1]  ;;  %v1526_v50 = vld [vmem:[%s11197_s0 + $0x6e6] sm:$0x1] }
 0x34b   :  { %v8750_v61 = vmax.f32 %v14012_v26, %v1507_v17  ;;  %v1527_v58 = vld [vmem:[%s11197_s0 + $0x6f6] sm:$0x1]  ;;  %v1528_v6 = vld [vmem:[%s11197_s0 + $0x706] sm:$0x1]  ;;  %v14019_v17 = vmax.f32 %v6857_v63, %v7696_v29  ;;  %v9817_v44 = vld [vmem:[%s11197_s0 + $0x7b7] sm:$0x1] }
 0x34c   :  { %14007 = vst [vmem:[#allocation131_spill] sm:$0xff] %v8723_v8  ;;  %v8740_v21 = vmax.f32 %v14008_v28, %v1505_v10  ;;  %v8745_v53 = vmax.f32 %v14009_v32, %v1506_v25  ;;  %v14018_v10 = vmax.f32 %v6852_v40, %v7691_v45  ;;  %v14020_v28 = vld [vmem:[#allocation44_spill] sm:$0xff]  ;;  %v14021_v32 = vld [vmem:[#allocation211_spill] sm:$0xff]  ;;  %v1530_v63 = vld [vmem:[%s11197_s0 + $0x726] sm:$0x1] }
 0x34d   :  { %14013 = vst [vmem:[#allocation76_spill] sm:$0xff] %v8750_v61  ;;  %v8777_v39 = vmax.f32 %v14019_v17, %v1510_v1  ;;  %v14022_v41 = vmax.f32 %v14020_v28, %v14021_v32  ;;  %v14024_v26 = vld [vmem:[#allocation152_spill] sm:$0xff]  ;;  %v1532_v45 = vld [vmem:[%s11197_s0 + $0x746] sm:$0x1]  ;;  %v9756_v61 = vld [vmem:[%s11197_s0 + $0x727] sm:$0x1] }
 0x34e   :  { %v8772_v25 = vmax.f32 %v14018_v10, %v1509_v4  ;;  %v14026_v52 = vmax.f32 %v14024_v26, %v14025_v42  ;;  %v1529_v40 = vld [vmem:[%s11197_s0 + $0x716] sm:$0x1]  ;;  %v14028_v4 = vmax.f32 %v6884_v59, %v7719_v27  ;;  %v14030_v10 = vld [vmem:[#allocation41_spill] sm:$0xff]  ;;  %v14031_v17 = vld [vmem:[#allocation106_spill] sm:$0xff] }
 0x34f   :  { %v8782_v3 = vmax.f32 %v14022_v41, %v1511_v38  ;;  %v1531_v29 = vld [vmem:[%s11197_s0 + $0x736] sm:$0x1]  ;;  %v14029_v38 = vmax.f32 %v6889_v62, %v7724_v37  ;;  %v14032_v28 = vmax.f32 %v14030_v10, %v14031_v17  ;;  %v1534_v62 = vld [vmem:[%s11197_s0 + $0x766] sm:$0x1]  ;;  %v9789_v8 = vld [vmem:[%s11197_s0 + $0x777] sm:$0x1] }
 0x350   :  { %v8787_v11 = vmax.f32 %v14026_v52, %v1512_v57  ;;  %v8804_v1 = vmax.f32 %v14028_v4, %v1513_v54  ;;  %v14034_v41 = vld [vmem:[#allocation156_spill] sm:$0xff]  ;;  %v1536_v37 = vld [vmem:[%s11197_s0 + $0x786] sm:$0x1]  ;;  %v14038_v54 = vmax.f32 %v6916_v13, %v7747_v35  ;;  %v14040_v4 = vld [vmem:[#allocation45_spill] sm:$0xff] }
 0x351   :  { %14023 = vst [vmem:[#allocation184_spill] sm:$0xff] %v8782_v3  ;;  %v8809_v57 = vmax.f32 %v14029_v38, %v1514_v9  ;;  %v8814_v32 = vmax.f32 %v14032_v28, %v1515_v24  ;;  %v14035_v26 = vld [vmem:[#allocation212_spill] sm:$0xff]  ;;  %v14039_v24 = vmax.f32 %v6921_v30, %v7752_v36  ;;  %v14041_v38 = vld [vmem:[#allocation103_spill] sm:$0xff]  ;;  %v14044_v28 = vld [vmem:[#allocation153_spill] sm:$0xff] }
 0x352   :  { %14027 = vst [vmem:[#allocation128_spill] sm:$0xff] %v8787_v11  ;;  %v14036_v42 = vmax.f32 %v14034_v41, %v14035_v26  ;;  %v1533_v59 = vld [vmem:[%s11197_s0 + $0x756] sm:$0x1]  ;;  %v8836_v9 = vmax.f32 %v14038_v54, %v1517_v51  ;;  %v14042_v10 = vmax.f32 %v14040_v4, %v14041_v38  ;;  %v14045_v41 = vld [vmem:[#allocation215_spill] sm:$0xff]  ;;  %v1538_v30 = vld [vmem:[%s11197_s0 + $0x7a6] sm:$0x1]  ;;  %v14048_v51 = vmax.f32 %v6948_v0, %v7775_v49 }
 0x353   :  { %14033 = vst [vmem:[#allocation73_spill] sm:$0xff] %v8814_v32  ;;  %v1535_v27 = vld [vmem:[%s11197_s0 + $0x776] sm:$0x1]  ;;  %v14046_v26 = vmax.f32 %v14044_v28, %v14045_v41  ;;  %v1540_v36 = vld [vmem:[%s11197_s0 + $0x7c6] sm:$0x1]  ;;  %v14052_v4 = vld [vmem:[#allocation213_spill] sm:$0xff] }
 0x354   :  { %v8819_v52 = vmax.f32 %v14036_v42, %v1516_v60  ;;  %v8841_v60 = vmax.f32 %v14039_v24, %v1518_v55  ;;  %v8846_v17 = vmax.f32 %v14042_v10, %v1519_v7  ;;  %v1537_v13 = vld [vmem:[%s11197_s0 + $0x796] sm:$0x1]  ;;  %v8868_v55 = vmax.f32 %v14048_v51, %v1521_v14  ;;  %v14049_v7 = vld [vmem:[#allocation109_spill] sm:$0xff]  ;;  %v14051_v24 = vld [vmem:[#allocation46_spill] sm:$0xff] }
 0x355   :  { %v8851_v42 = vmax.f32 %v14046_v26, %v1520_v43  ;;  %v1539_v35 = vld [vmem:[%s11197_s0 + $0x7b6] sm:$0x1]  ;;  %v14050_v43 = vmax.f32 %v6953_v48, %v14049_v7  ;;  %v14053_v38 = vmax.f32 %v14051_v24, %v14052_v4  ;;  %v14055_v28 = vld [vmem:[#allocation157_spill] sm:$0xff]  ;;  %v14056_v41 = vld [vmem:[#allocation110_spill] sm:$0xff] }
 0x356   :  { %14037 = vst [vmem:[#allocation17_spill] sm:$0xff] %v8819_v52  ;;  %v14057_v26 = vmax.f32 %v14055_v28, %v14056_v41  ;;  %v1541_v0 = vld [vmem:[%s11197_s0 + $0x7d6] sm:$0x1]  ;;  %v1542_v48 = vld [vmem:[%s11197_s0 + $0x7e6] sm:$0x1] }
 0x357   :  { %14043 = vst [vmem:[#allocation188_spill] sm:$0xff] %v8846_v17  ;;  %v8873_v54 = vmax.f32 %v14050_v43, %v1522_v15  ;;  %v8878_v10 = vmax.f32 %v14053_v38, %v1523_v46  ;;  %v1543_v49 = vld [vmem:[%s11197_s0 + $0x7f6] sm:$0x1]  ;;  %v8897_v14 = vld [vmem:[%s11197_s0 + $0x7] sm:$0x1]  ;;  %v14059_v15 = vmax.f32 %v6982_v2, %v7803_v33 }
 0x358   :  { %14047 = vst [vmem:[#allocation132_spill] sm:$0xff] %v8851_v42  ;;  %v8883_v42 = vmax.f32 %v14057_v26, %v1524_v34  ;;  %v14060_v34 = vmax.f32 %v6987_v12, %v7808_v31  ;;  %v14062_v7 = vld [vmem:[#allocation50_spill] sm:$0xff]  ;;  %v14063_v43 = vld [vmem:[#allocation216_spill] sm:$0xff]  ;;  %v1931_v52 = vld [vmem:[%s11197_s0 + $0x38] sm:$0x1] }
 0x359   :  { %14054 = vst [vmem:[#allocation77_spill] sm:$0xff] %v8878_v10  ;;  %v8902_v46 = vmax.f32 %v14059_v15, %v1525_v18  ;;  %v14064_v24 = vmax.f32 %v14062_v7, %v14063_v43  ;;  %v14066_v38 = vld [vmem:[#allocation158_spill] sm:$0xff]  ;;  %v8922_v2 = vld [vmem:[%s11197_s0 + $0x17] sm:$0x1]  ;;  %v14074_v18 = vmax.f32 %v7022_v47, %v7831_v20  ;;  %v14080_v7 = vld [vmem:[#allocation217_spill] sm:$0xff] }
 0x35a   :  { %14058 = vst [vmem:[#allocation21_spill] sm:$0xff] %v8883_v42  ;;  %v8907_v51 = vmax.f32 %v14060_v34, %v1526_v50  ;;  %v14067_v28 = vld [vmem:[#allocation214_spill] sm:$0xff]  ;;  %v8932_v31 = vld [vmem:[%s11197_s0 + $0x37] sm:$0x1]  ;;  %v1929_v10 = vld [vmem:[%s11197_s0 + $0x18] sm:$0x1] }
 0x35b   :  { %v8912_v4 = vmax.f32 %v14064_v24, %v1527_v58  ;;  %v14068_v41 = vmax.f32 %v14066_v38, %v14067_v28  ;;  %14070 = vst [vmem:[#allocation22_spill] sm:$0xff] %v8922_v2  ;;  %v8927_v12 = vld [vmem:[%s11197_s0 + $0x27] sm:$0x1]  ;;  %v8942_v50 = vmax.f32 %v14074_v18, %v1529_v40  ;;  %v14076_v58 = vld [vmem:[#allocation116_spill] sm:$0xff]  ;;  %v14083_v38 = vld [vmem:[#allocation163_spill] sm:$0xff] }
 0x35c   :  { %14061 = vst [vmem:[#allocation185_spill] sm:$0xff] %v8907_v51  ;;  %v8937_v33 = vld [vmem:[%s11197_s0 + $0x47] sm:$0x1]  ;;  %v14079_v34 = vld [vmem:[#allocation48_spill] sm:$0xff]  ;;  %v14084_v28 = vld [vmem:[#allocation113_spill] sm:$0xff] }
 0x35d   :  { %14065 = vst [vmem:[#allocation129_spill] sm:$0xff] %v8912_v4  ;;  %v8917_v26 = vmax.f32 %v14068_v41, %v1528_v6  ;;  %v14077_v6 = vmax.f32 %v7027_v16, %v14076_v58  ;;  %v14081_v43 = vmax.f32 %v14079_v34, %v14080_v7  ;;  %v14085_v41 = vmax.f32 %v14083_v38, %v14084_v28  ;;  %v8962_v47 = vld [vmem:[%s11197_s0 + $0x57] sm:$0x1]  ;;  %v8967_v16 = vld [vmem:[%s11197_s0 + $0x67] sm:$0x1]  ;;  %v14094_v18 = vld [vmem:[#allocation53_spill] sm:$0xff] }
 0x35e   :  { %14071 = vst [vmem:[#allocation189_spill] sm:$0xff] %v8927_v12  ;;  %v8972_v20 = vld [vmem:[%s11197_s0 + $0x77] sm:$0x1]  ;;  %v8977_v40 = vld [vmem:[%s11197_s0 + $0x87] sm:$0x1]  ;;  %v14095_v58 = vld [vmem:[#allocation219_spill] sm:$0xff] }
 0x35f   :  { %14069 = vst [vmem:[#allocation78_spill] sm:$0xff] %v8917_v26  ;;  %v8947_v15 = vmax.f32 %v14077_v6, %v1530_v63  ;;  %v8952_v24 = vmax.f32 %v14081_v43, %v1531_v29  ;;  %v8957_v26 = vmax.f32 %v14085_v41, %v1532_v45  ;;  %v14091_v63 = vld [vmem:[#allocation218_spill] sm:$0xff]  ;;  %v14096_v6 = vmax.f32 %v14094_v18, %v14095_v58  ;;  %v14098_v7 = vld [vmem:[#allocation161_spill] sm:$0xff]  ;;  %v14099_v43 = vld [vmem:[#allocation123_spill] sm:$0xff] }
 0x360   :  { %14072 = vst [vmem:[#allocation133_spill] sm:$0xff] %v8932_v31  ;;  %v14092_v29 = vmax.f32 %v7062_v5, %v14091_v63  ;;  %v14100_v38 = vmax.f32 %v14098_v7, %v14099_v43  ;;  %v14102_v41 = vld [vmem:[#allocation54_spill] sm:$0xff]  ;;  %v9002_v5 = vld [vmem:[%s11197_s0 + $0x97] sm:$0x1]  ;;  %v14115_v18 = vld [vmem:[#allocation87_spill] sm:$0xff] }
 0x361   :  { %14073 = vst [vmem:[#allocation82_spill] sm:$0xff] %v8937_v33  ;;  %v8987_v34 = vmax.f32 %v14096_v6, %v1534_v62  ;;  %v9012_v62 = vld [vmem:[%s11197_s0 + $0xb7] sm:$0x1]  ;;  %v14118_v7 = vld [vmem:[#allocation167_spill] sm:$0xff]  ;;  %v14119_v43 = vld [vmem:[#allocation89_spill] sm:$0xff] }
 0x362   :  { %14075 = vst [vmem:[#allocation26_spill] sm:$0xff] %v8942_v50  ;;  %v8982_v45 = vmax.f32 %v14092_v29, %v1533_v59  ;;  %v8992_v28 = vmax.f32 %v14100_v38, %v1535_v27  ;;  %v9007_v59 = vld [vmem:[%s11197_s0 + $0xa7] sm:$0x1]  ;;  %v14114_v29 = vld [vmem:[#allocation59_spill] sm:$0xff]  ;;  %v14120_v38 = vmax.f32 %v14118_v7, %v14119_v43  ;;  %v9135_v2 = vld [vmem:[%s11197_s0 + $0x197] sm:$0x1] }
 0x363   :  { %14078 = vst [vmem:[#allocation193_spill] sm:$0xff] %v8947_v15  ;;  %v9017_v27 = vld [vmem:[%s11197_s0 + $0xc7] sm:$0x1]  ;;  %v14116_v58 = vmax.f32 %v14114_v29, %v14115_v18  ;;  %v14139_v7 = vld [vmem:[#allocation227_spill] sm:$0xff]  ;;  %v9173_v12 = vld [vmem:[%s11197_s0 + $0x1f7] sm:$0x1] }
 0x364   :  { %14082 = vst [vmem:[#allocation134_spill] sm:$0xff] %v8952_v24  ;;  %v9178_v31 = vld [vmem:[%s11197_s0 + $0x207] sm:$0x1]  ;;  %v9807_v32 = vld [vmem:[%s11197_s0 + $0x797] sm:$0x1] }
 0x365   :  { %14086 = vst [vmem:[#allocation79_spill] sm:$0xff] %v8957_v26  ;;  %v14103_v26 = vld [vmem:[#allocation220_spill] sm:$0xff]  ;;  %v9027_v6 = vmax.f32 %v14116_v58, %v1538_v30  ;;  %v9047_v30 = vld [vmem:[%s11197_s0 + $0xe7] sm:$0x1]  ;;  %v14138_v58 = vld [vmem:[#allocation169_spill] sm:$0xff] }
 0x366   :  { %14087 = vst [vmem:[#allocation23_spill] sm:$0xff] %v8962_v47  ;;  %v14104_v24 = vmax.f32 %v14102_v41, %v14103_v26  ;;  %v14111_v26 = vld [vmem:[#allocation120_spill] sm:$0xff]  ;;  %v9032_v41 = vmax.f32 %v14120_v38, %v1539_v35  ;;  %v14140_v43 = vmax.f32 %v14138_v58, %v14139_v7  ;;  %v9168_v7 = vld [vmem:[%s11197_s0 + $0x1e7] sm:$0x1]  ;;  %v1933_v51 = vld [vmem:[%s11197_s0 + $0x58] sm:$0x1] }
 0x367   :  { %14088 = vst [vmem:[#allocation190_spill] sm:$0xff] %v8967_v16  ;;  %v9052_v35 = vld [vmem:[%s11197_s0 + $0xf7] sm:$0x1]  ;;  %v9224_v33 = vld [vmem:[%s11197_s0 + $0x267] sm:$0x1] }
 0x368   :  { %14089 = vst [vmem:[#allocation138_spill] sm:$0xff] %v8972_v20  ;;  %v8997_v15 = vmax.f32 %v14104_v24, %v1536_v37  ;;  %v14110_v37 = vld [vmem:[#allocation170_spill] sm:$0xff]  ;;  %v9072_v38 = vmax.f32 %v14140_v43, %v1543_v49  ;;  %v9107_v43 = vld [vmem:[%s11197_s0 + $0x157] sm:$0x1]  ;;  %v1938_v50 = vld [vmem:[%s11197_s0 + $0xa8] sm:$0x1] }
 0x369   :  { %14090 = vst [vmem:[#allocation83_spill] sm:$0xff] %v8977_v40  ;;  %v14112_v24 = vmax.f32 %v14110_v37, %v14111_v26  ;;  %v14134_v26 = vld [vmem:[#allocation61_spill] sm:$0xff]  ;;  %v9094_v49 = vld [vmem:[%s11197_s0 + $0x147] sm:$0x1]  ;;  %v9145_v58 = vld [vmem:[%s11197_s0 + $0x1b7] sm:$0x1] }
 0x36a   :  { %14093 = vst [vmem:[#allocation27_spill] sm:$0xff] %v8982_v45  ;;  %v9163_v47 = vld [vmem:[%s11197_s0 + $0x1d7] sm:$0x1]  ;;  %v9206_v20 = vld [vmem:[%s11197_s0 + $0x247] sm:$0x1] }
 0x36b   :  { %14097 = vst [vmem:[#allocation194_spill] sm:$0xff] %v8987_v34  ;;  %v9022_v63 = vmax.f32 %v14112_v24, %v1537_v13  ;;  %v9042_v13 = vld [vmem:[%s11197_s0 + $0xd7] sm:$0x1]  ;;  %v14135_v24 = vld [vmem:[#allocation226_spill] sm:$0xff]  ;;  %v1943_v42 = vld [vmem:[%s11197_s0 + $0xf8] sm:$0x1] }
 0x36c   :  { %14101 = vst [vmem:[#allocation135_spill] sm:$0xff] %v8992_v28  ;;  %v14123_v28 = vld [vmem:[#allocation150_spill] sm:$0xff]  ;;  %v14136_v29 = vmax.f32 %v14134_v26, %v14135_v24  ;;  %v9117_v26 = vld [vmem:[%s11197_s0 + $0x177] sm:$0x1] }
 0x36d   :  { %14105 = vst [vmem:[#allocation80_spill] sm:$0xff] %v8997_v15  ;;  %v14122_v15 = vld [vmem:[#allocation56_spill] sm:$0xff]  ;;  %v9150_v24 = vld [vmem:[%s11197_s0 + $0x1c7] sm:$0x1] }
 0x36e   :  { %14106 = vst [vmem:[#allocation24_spill] sm:$0xff] %v9002_v5  ;;  %v14124_v34 = vmax.f32 %v14122_v15, %v14123_v28  ;;  %v14130_v15 = vld [vmem:[#allocation172_spill] sm:$0xff]  ;;  %v9067_v18 = vmax.f32 %v14136_v29, %v1542_v48  ;;  %v9122_v29 = vld [vmem:[%s11197_s0 + $0x187] sm:$0x1] }
 0x36f   :  { %14107 = vst [vmem:[#allocation191_spill] sm:$0xff] %v9007_v59  ;;  %v9089_v48 = vld [vmem:[%s11197_s0 + $0x137] sm:$0x1]  ;;  %v9252_v40 = vld [vmem:[%s11197_s0 + $0x2a7] sm:$0x1] }
 0x370   :  { %14108 = vst [vmem:[#allocation139_spill] sm:$0xff] %v9012_v62  ;;  %v9037_v45 = vmax.f32 %v14124_v34, %v1540_v36  ;;  %v9057_v36 = vld [vmem:[%s11197_s0 + $0x107] sm:$0x1]  ;;  %v14131_v34 = vld [vmem:[#allocation151_spill] sm:$0xff]  ;;  %v9191_v5 = vld [vmem:[%s11197_s0 + $0x217] sm:$0x1] }
 0x371   :  { %14109 = vst [vmem:[#allocation84_spill] sm:$0xff] %v9017_v27  ;;  %v14132_v28 = vmax.f32 %v14130_v15, %v14131_v34  ;;  %v9140_v15 = vld [vmem:[%s11197_s0 + $0x1a7] sm:$0x1]  ;;  %v9201_v16 = vld [vmem:[%s11197_s0 + $0x237] sm:$0x1]  ;;  %v14298_v34 = vld [vmem:[#allocation127_spill] sm:$0xff] }
 0x372   :  { %14113 = vst [vmem:[#allocation28_spill] sm:$0xff] %v9022_v63  ;;  %v9229_v59 = vld [vmem:[%s11197_s0 + $0x277] sm:$0x1]  ;;  %v9234_v62 = vld [vmem:[%s11197_s0 + $0x287] sm:$0x1] }
 0x373   :  { %14117 = vst [vmem:[#allocation195_spill] sm:$0xff] %v9027_v6  ;;  %v9062_v37 = vmax.f32 %v14132_v28, %v1541_v0  ;;  %v9079_v6 = vld [vmem:[%s11197_s0 + $0x117] sm:$0x1]  ;;  %v9084_v0 = vld [vmem:[%s11197_s0 + $0x127] sm:$0x1] }
 0x374   :  { %14121 = vst [vmem:[#allocation136_spill] sm:$0xff] %v9032_v41  ;;  %v9112_v41 = vld [vmem:[%s11197_s0 + $0x167] sm:$0x1]  ;;  %v9845_v11 = vld [vmem:[%s11197_s0 + $0x7f7] sm:$0x1] }
 0x375   :  { %14125 = vst [vmem:[#allocation81_spill] sm:$0xff] %v9037_v45  ;;  %v14142_v45 = vld [vmem:[#allocation228_spill] sm:$0xff]  ;;  %v9196_v28 = vld [vmem:[%s11197_s0 + $0x227] sm:$0x1] }
 0x376   :  { %14126 = vst [vmem:[#allocation25_spill] sm:$0xff] %v9042_v13  ;;  %v9219_v13 = vld [vmem:[%s11197_s0 + $0x257] sm:$0x1]  ;;  %v9280_v27 = vld [vmem:[%s11197_s0 + $0x2e7] sm:$0x1]  ;;  %v14337_v4 = vmax.f32 %v14142_v45, %v8897_v14 }
 0x377   :  { %14127 = vst [vmem:[#allocation192_spill] sm:$0xff] %v9047_v30  ;;  %v9257_v30 = vld [vmem:[%s11197_s0 + $0x2b7] sm:$0x1]  ;;  %v9784_v3 = vld [vmem:[%s11197_s0 + $0x767] sm:$0x1] }
 0x378   :  { %14128 = vst [vmem:[#allocation140_spill] sm:$0xff] %v9052_v35  ;;  %v9262_v35 = vld [vmem:[%s11197_s0 + $0x2c7] sm:$0x1] }
 0x379   :  { %14129 = vst [vmem:[#allocation85_spill] sm:$0xff] %v9057_v36  ;;  %v9308_v36 = vld [vmem:[%s11197_s0 + $0x327] sm:$0x1] }
 0x37a   :  { %14133 = vst [vmem:[#allocation29_spill] sm:$0xff] %v9062_v37  ;;  %v9840_v17 = vld [vmem:[%s11197_s0 + $0x7e7] sm:$0x1] }
 0x37b   :  { %14137 = vst [vmem:[#allocation196_spill] sm:$0xff] %v9067_v18  ;;  %v14340_v14 = vld [vmem:[#allocation22_spill] sm:$0xff]  ;;  %v14348_v18 = vld [vmem:[#allocation133_spill] sm:$0xff] }
 0x37c   :  { %14141 = vst [vmem:[#allocation137_spill] sm:$0xff] %v9072_v38 }
 0x37d   :  { %14143 = vst [vmem:[#allocation86_spill] sm:$0xff] %v9079_v6  ;;  %v9247_v6 = vld [vmem:[%s11197_s0 + $0x297] sm:$0x1] }
 0x37e   :  { %14144 = vst [vmem:[#allocation30_spill] sm:$0xff] %v9084_v0  ;;  %v9285_v0 = vld [vmem:[%s11197_s0 + $0x2f7] sm:$0x1] }
 0x37f   :  { %14145 = vst [vmem:[#allocation197_spill] sm:$0xff] %v9089_v48  ;;  %v9290_v48 = vld [vmem:[%s11197_s0 + $0x307] sm:$0x1] }
 0x380   :  { %14146 = vst [vmem:[#allocation141_spill] sm:$0xff] %v9094_v49  ;;  %v9336_v49 = vld [vmem:[%s11197_s0 + $0x367] sm:$0x1] }
 0x381   :  { %14151 = vst [vmem:[#allocation90_spill] sm:$0xff] %v9107_v43  ;;  %v9275_v43 = vld [vmem:[%s11197_s0 + $0x2d7] sm:$0x1] }
 0x382   :  { %14152 = vst [vmem:[#allocation34_spill] sm:$0xff] %v9112_v41  ;;  %v9313_v41 = vld [vmem:[%s11197_s0 + $0x337] sm:$0x1] }
 0x383   :  { %14153 = vst [vmem:[#allocation199_spill] sm:$0xff] %v9117_v26  ;;  %v9318_v26 = vld [vmem:[%s11197_s0 + $0x347] sm:$0x1] }
 0x384   :  { %14154 = vst [vmem:[#allocation142_spill] sm:$0xff] %v9122_v29  ;;  %v9364_v29 = vld [vmem:[%s11197_s0 + $0x3a7] sm:$0x1] }
 0x385   :  { %14159 = vst [vmem:[#allocation198_spill] sm:$0xff] %v9135_v2  ;;  %v9303_v2 = vld [vmem:[%s11197_s0 + $0x317] sm:$0x1] }
 0x386   :  { %14160 = vst [vmem:[#allocation31_spill] sm:$0xff] %v9140_v15  ;;  %v9341_v15 = vld [vmem:[%s11197_s0 + $0x377] sm:$0x1] }
 0x387   :  { %14161 = vst [vmem:[#allocation91_spill] sm:$0xff] %v9145_v58  ;;  %v9346_v58 = vld [vmem:[%s11197_s0 + $0x387] sm:$0x1] }
 0x388   :  { %14162 = vst [vmem:[#allocation146_spill] sm:$0xff] %v9150_v24  ;;  %v9392_v24 = vld [vmem:[%s11197_s0 + $0x3e7] sm:$0x1] }
 0x389   :  { %14167 = vst [vmem:[#allocation200_spill] sm:$0xff] %v9163_v47  ;;  %v9331_v47 = vld [vmem:[%s11197_s0 + $0x357] sm:$0x1] }
 0x38a   :  { %14168 = vst [vmem:[#allocation35_spill] sm:$0xff] %v9168_v7  ;;  %v9369_v7 = vld [vmem:[%s11197_s0 + $0x3b7] sm:$0x1] }
 0x38b   :  { %14169 = vst [vmem:[#allocation88_spill] sm:$0xff] %v9173_v12  ;;  %v9374_v12 = vld [vmem:[%s11197_s0 + $0x3c7] sm:$0x1] }
 0x38c   :  { %14170 = vst [vmem:[#allocation143_spill] sm:$0xff] %v9178_v31  ;;  %v9420_v31 = vld [vmem:[%s11197_s0 + $0x427] sm:$0x1] }
 0x38d   :  { %14175 = vst [vmem:[#allocation201_spill] sm:$0xff] %v9191_v5  ;;  %v9359_v5 = vld [vmem:[%s11197_s0 + $0x397] sm:$0x1] }
 0x38e   :  { %14176 = vst [vmem:[#allocation32_spill] sm:$0xff] %v9196_v28  ;;  %v9397_v28 = vld [vmem:[%s11197_s0 + $0x3f7] sm:$0x1] }
 0x38f   :  { %14177 = vst [vmem:[#allocation92_spill] sm:$0xff] %v9201_v16  ;;  %v9402_v16 = vld [vmem:[%s11197_s0 + $0x407] sm:$0x1] }
 0x390   :  { %14178 = vst [vmem:[#allocation147_spill] sm:$0xff] %v9206_v20  ;;  %v9448_v20 = vld [vmem:[%s11197_s0 + $0x467] sm:$0x1] }
 0x391   :  { %14183 = vst [vmem:[#allocation203_spill] sm:$0xff] %v9219_v13  ;;  %v9387_v13 = vld [vmem:[%s11197_s0 + $0x3d7] sm:$0x1] }
 0x392   :  { %14184 = vst [vmem:[#allocation36_spill] sm:$0xff] %v9224_v33  ;;  %v9425_v33 = vld [vmem:[%s11197_s0 + $0x437] sm:$0x1] }
 0x393   :  { %14185 = vst [vmem:[#allocation93_spill] sm:$0xff] %v9229_v59  ;;  %v9430_v59 = vld [vmem:[%s11197_s0 + $0x447] sm:$0x1] }
 0x394   :  { %14186 = vst [vmem:[#allocation144_spill] sm:$0xff] %v9234_v62  ;;  %v9476_v62 = vld [vmem:[%s11197_s0 + $0x4a7] sm:$0x1] }
 0x395   :  { %14191 = vst [vmem:[#allocation202_spill] sm:$0xff] %v9247_v6  ;;  %v9415_v6 = vld [vmem:[%s11197_s0 + $0x417] sm:$0x1] }
 0x396   :  { %14192 = vst [vmem:[#allocation33_spill] sm:$0xff] %v9252_v40  ;;  %v9453_v40 = vld [vmem:[%s11197_s0 + $0x477] sm:$0x1] }
 0x397   :  { %14193 = vst [vmem:[#allocation94_spill] sm:$0xff] %v9257_v30  ;;  %v9458_v30 = vld [vmem:[%s11197_s0 + $0x487] sm:$0x1] }
 0x398   :  { %14194 = vst [vmem:[#allocation148_spill] sm:$0xff] %v9262_v35  ;;  %v9504_v35 = vld [vmem:[%s11197_s0 + $0x4e7] sm:$0x1] }
 0x399   :  { %14199 = vst [vmem:[#allocation204_spill] sm:$0xff] %v9275_v43  ;;  %v9443_v43 = vld [vmem:[%s11197_s0 + $0x457] sm:$0x1] }
 0x39a   :  { %14200 = vst [vmem:[#allocation37_spill] sm:$0xff] %v9280_v27  ;;  %v9481_v27 = vld [vmem:[%s11197_s0 + $0x4b7] sm:$0x1] }
 0x39b   :  { %14201 = vst [vmem:[#allocation98_spill] sm:$0xff] %v9285_v0  ;;  %v9486_v0 = vld [vmem:[%s11197_s0 + $0x4c7] sm:$0x1] }
 0x39c   :  { %14202 = vst [vmem:[#allocation145_spill] sm:$0xff] %v9290_v48  ;;  %v9532_v48 = vld [vmem:[%s11197_s0 + $0x527] sm:$0x1] }
 0x39d   :  { %14207 = vst [vmem:[#allocation205_spill] sm:$0xff] %v9303_v2  ;;  %v9471_v2 = vld [vmem:[%s11197_s0 + $0x497] sm:$0x1] }
 0x39e   :  { %14208 = vst [vmem:[#allocation38_spill] sm:$0xff] %v9308_v36  ;;  %v9509_v36 = vld [vmem:[%s11197_s0 + $0x4f7] sm:$0x1] }
 0x39f   :  { %14209 = vst [vmem:[#allocation95_spill] sm:$0xff] %v9313_v41  ;;  %v9514_v41 = vld [vmem:[%s11197_s0 + $0x507] sm:$0x1] }
 0x3a0   :  { %14210 = vst [vmem:[#allocation149_spill] sm:$0xff] %v9318_v26  ;;  %v9560_v26 = vld [vmem:[%s11197_s0 + $0x567] sm:$0x1] }
 0x3a1   :  { %14215 = vst [vmem:[#allocation207_spill] sm:$0xff] %v9331_v47  ;;  %v9499_v47 = vld [vmem:[%s11197_s0 + $0x4d7] sm:$0x1] }
 0x3a2   :  { %14216 = vst [vmem:[#allocation42_spill] sm:$0xff] %v9336_v49  ;;  %v9537_v49 = vld [vmem:[%s11197_s0 + $0x537] sm:$0x1] }
 0x3a3   :  { %14217 = vst [vmem:[#allocation99_spill] sm:$0xff] %v9341_v15  ;;  %v9542_v15 = vld [vmem:[%s11197_s0 + $0x547] sm:$0x1] }
 0x3a4   :  { %14218 = vst [vmem:[#allocation206_spill] sm:$0xff] %v9346_v58  ;;  %v9588_v58 = vld [vmem:[%s11197_s0 + $0x5a7] sm:$0x1] }
 0x3a5   :  { %14223 = vst [vmem:[#allocation39_spill] sm:$0xff] %v9359_v5  ;;  %v9527_v5 = vld [vmem:[%s11197_s0 + $0x517] sm:$0x1] }
 0x3a6   :  { %14224 = vst [vmem:[#allocation96_spill] sm:$0xff] %v9364_v29  ;;  %v9565_v29 = vld [vmem:[%s11197_s0 + $0x577] sm:$0x1] }
 0x3a7   :  { %14225 = vst [vmem:[#allocation154_spill] sm:$0xff] %v9369_v7  ;;  %v9570_v7 = vld [vmem:[%s11197_s0 + $0x587] sm:$0x1] }
 0x3a8   :  { %14226 = vst [vmem:[#allocation208_spill] sm:$0xff] %v9374_v12  ;;  %v9616_v12 = vld [vmem:[%s11197_s0 + $0x5e7] sm:$0x1] }
 0x3a9   :  { %14231 = vst [vmem:[#allocation43_spill] sm:$0xff] %v9387_v13  ;;  %v9555_v13 = vld [vmem:[%s11197_s0 + $0x557] sm:$0x1] }
 0x3aa   :  { %14232 = vst [vmem:[#allocation100_spill] sm:$0xff] %v9392_v24  ;;  %v9593_v24 = vld [vmem:[%s11197_s0 + $0x5b7] sm:$0x1] }
 0x3ab   :  { %14233 = vst [vmem:[#allocation40_spill] sm:$0xff] %v9397_v28  ;;  %v9598_v28 = vld [vmem:[%s11197_s0 + $0x5c7] sm:$0x1] }
 0x3ac   :  { %14234 = vst [vmem:[#allocation209_spill] sm:$0xff] %v9402_v16  ;;  %v9644_v16 = vld [vmem:[%s11197_s0 + $0x627] sm:$0x1] }
 0x3ad   :  { %14239 = vst [vmem:[#allocation155_spill] sm:$0xff] %v9415_v6  ;;  %v9583_v6 = vld [vmem:[%s11197_s0 + $0x597] sm:$0x1] }
 0x3ae   :  { %14240 = vst [vmem:[#allocation97_spill] sm:$0xff] %v9420_v31  ;;  %v9621_v31 = vld [vmem:[%s11197_s0 + $0x5f7] sm:$0x1] }
 0x3af   :  { %14241 = vst [vmem:[#allocation44_spill] sm:$0xff] %v9425_v33  ;;  %v9626_v33 = vld [vmem:[%s11197_s0 + $0x607] sm:$0x1] }
 0x3b0   :  { %14242 = vst [vmem:[#allocation211_spill] sm:$0xff] %v9430_v59  ;;  %v14291_v59 = vld [vmem:[#allocation130_spill] sm:$0xff] }
 0x3b1   :  { %14247 = vst [vmem:[#allocation152_spill] sm:$0xff] %v9443_v43  ;;  %v9611_v43 = vld [vmem:[%s11197_s0 + $0x5d7] sm:$0x1] }
 0x3b2   :  { %14248 = vst [vmem:[#allocation210_spill] sm:$0xff] %v9448_v20  ;;  %v9649_v20 = vld [vmem:[%s11197_s0 + $0x637] sm:$0x1] }
 0x3b3   :  { %14249 = vst [vmem:[#allocation41_spill] sm:$0xff] %v9453_v40  ;;  %v9654_v40 = vld [vmem:[%s11197_s0 + $0x647] sm:$0x1] }
 0x3b4   :  { %14250 = vst [vmem:[#allocation106_spill] sm:$0xff] %v9458_v30  ;;  %v9705_v30 = vld [vmem:[%s11197_s0 + $0x6b7] sm:$0x1] }
 0x3b5   :  { %14255 = vst [vmem:[#allocation156_spill] sm:$0xff] %v9471_v2  ;;  %v9639_v2 = vld [vmem:[%s11197_s0 + $0x617] sm:$0x1] }
 0x3b6   :  { %14256 = vst [vmem:[#allocation212_spill] sm:$0xff] %v9476_v62  ;;  %v9700_v62 = vld [vmem:[%s11197_s0 + $0x6a7] sm:$0x1] }
 0x3b7   :  { %14257 = vst [vmem:[#allocation45_spill] sm:$0xff] %v9481_v27  ;;  %v9761_v27 = vld [vmem:[%s11197_s0 + $0x737] sm:$0x1] }
 0x3b8   :  { %14258 = vst [vmem:[#allocation103_spill] sm:$0xff] %v9486_v0  ;;  %v9667_v0 = vld [vmem:[%s11197_s0 + $0x657] sm:$0x1] }
 0x3b9   :  { %14263 = vst [vmem:[#allocation153_spill] sm:$0xff] %v9499_v47  ;;  %v9672_v47 = vld [vmem:[%s11197_s0 + $0x667] sm:$0x1] }
 0x3ba   :  { %14264 = vst [vmem:[#allocation215_spill] sm:$0xff] %v9504_v35  ;;  %v9733_v35 = vld [vmem:[%s11197_s0 + $0x6f7] sm:$0x1] }
 0x3bb   :  { %14265 = vst [vmem:[#allocation109_spill] sm:$0xff] %v9509_v36  ;;  %v9682_v36 = vld [vmem:[%s11197_s0 + $0x687] sm:$0x1] }
 0x3bc   :  { %14266 = vst [vmem:[#allocation46_spill] sm:$0xff] %v9514_v41  ;;  %v9677_v41 = vld [vmem:[%s11197_s0 + $0x677] sm:$0x1] }
 0x3bd   :  { %14271 = vst [vmem:[#allocation213_spill] sm:$0xff] %v9537_v49  ;;  %v9695_v49 = vld [vmem:[%s11197_s0 + $0x697] sm:$0x1] }
 0x3be   :  { %14272 = vst [vmem:[#allocation157_spill] sm:$0xff] %v9542_v15  ;;  %v9710_v15 = vld [vmem:[%s11197_s0 + $0x6c7] sm:$0x1] }
 0x3bf   :  { %14277 = vst [vmem:[#allocation110_spill] sm:$0xff] %v9565_v29  ;;  %v9723_v29 = vld [vmem:[%s11197_s0 + $0x6d7] sm:$0x1] }
 0x3c0   :  { %14278 = vst [vmem:[#allocation50_spill] sm:$0xff] %v9570_v7  ;;  %v9738_v7 = vld [vmem:[%s11197_s0 + $0x707] sm:$0x1] }
 0x3c1   :  { %14283 = vst [vmem:[#allocation216_spill] sm:$0xff] %v9593_v24  ;;  %v9751_v24 = vld [vmem:[%s11197_s0 + $0x717] sm:$0x1] }
 0x3c2   :  { %14284 = vst [vmem:[#allocation158_spill] sm:$0xff] %v9598_v28  ;;  %v9766_v28 = vld [vmem:[%s11197_s0 + $0x747] sm:$0x1] }
 0x3c3   :  { %14289 = vst [vmem:[#allocation214_spill] sm:$0xff] %v9621_v31  ;;  %v9779_v31 = vld [vmem:[%s11197_s0 + $0x757] sm:$0x1] }
 0x3c4   :  { %14290 = vst [vmem:[#allocation116_spill] sm:$0xff] %v9626_v33  ;;  %v9794_v33 = vld [vmem:[%s11197_s0 + $0x787] sm:$0x1] }
 0x3c5   :  { %14295 = vst [vmem:[#allocation48_spill] sm:$0xff] %v9644_v16  ;;  %v9812_v16 = vld [vmem:[%s11197_s0 + $0x7a7] sm:$0x1] }
 0x3c6   :  { %14296 = vst [vmem:[#allocation217_spill] sm:$0xff] %v9649_v20  ;;  %v1932_v20 = vld [vmem:[%s11197_s0 + $0x48] sm:$0x1] }
 0x3c7   :  { %14297 = vst [vmem:[#allocation163_spill] sm:$0xff] %v9654_v40  ;;  %v9822_v40 = vld [vmem:[%s11197_s0 + $0x7c7] sm:$0x1] }
 0x3c8   :  { %14301 = vst [vmem:[#allocation113_spill] sm:$0xff] %v9677_v41  ;;  %v9835_v41 = vld [vmem:[%s11197_s0 + $0x7d7] sm:$0x1] }
 0x3c9   :  { %14302 = vst [vmem:[#allocation218_spill] sm:$0xff] %v9682_v36  ;;  %v1928_v36 = vld [vmem:[%s11197_s0 + $0x8] sm:$0x1] }
 0x3ca   :  { %14303 = vst [vmem:[#allocation53_spill] sm:$0xff] %v9700_v62  ;;  %v1930_v62 = vld [vmem:[%s11197_s0 + $0x28] sm:$0x1] }
 0x3cb   :  { %14304 = vst [vmem:[#allocation219_spill] sm:$0xff] %v9705_v30  ;;  %v14351_v30 = vld [vmem:[#allocation162_spill] sm:$0xff] }
 0x3cc   :  { %14305 = vst [vmem:[#allocation161_spill] sm:$0xff] %v9710_v15  ;;  %v1935_v15 = vld [vmem:[%s11197_s0 + $0x78] sm:$0x1] }
 0x3cd   :  { %14306 = vst [vmem:[#allocation123_spill] sm:$0xff] %v9723_v29  ;;  %v1934_v29 = vld [vmem:[%s11197_s0 + $0x68] sm:$0x1] }
 0x3ce   :  { %14307 = vst [vmem:[#allocation54_spill] sm:$0xff] %v9728_v56  ;;  %v1941_v56 = vld [vmem:[%s11197_s0 + $0xd8] sm:$0x1] }
 0x3cf   :  { %14308 = vst [vmem:[#allocation220_spill] sm:$0xff] %v9733_v35 }
 0x3d0   :  { %14309 = vst [vmem:[#allocation170_spill] sm:$0xff] %v9738_v7  ;;  %v1936_v7 = vld [vmem:[%s11197_s0 + $0x88] sm:$0x1] }
 0x3d1   :  { %14310 = vst [vmem:[#allocation120_spill] sm:$0xff] %v9751_v24  ;;  %v1937_v24 = vld [vmem:[%s11197_s0 + $0x98] sm:$0x1] }
 0x3d2   :  { %14311 = vst [vmem:[#allocation59_spill] sm:$0xff] %v9756_v61  ;;  %v1945_v61 = vld [vmem:[%s11197_s0 + $0x118] sm:$0x1] }
 0x3d3   :  { %14312 = vst [vmem:[#allocation87_spill] sm:$0xff] %v9761_v27  ;;  %v1939_v27 = vld [vmem:[%s11197_s0 + $0xb8] sm:$0x1] }
 0x3d4   :  { %14313 = vst [vmem:[#allocation167_spill] sm:$0xff] %v9766_v28  ;;  %v1940_v28 = vld [vmem:[%s11197_s0 + $0xc8] sm:$0x1] }
 0x3d5   :  { %14314 = vst [vmem:[#allocation89_spill] sm:$0xff] %v9779_v31  ;;  %v1942_v31 = vld [vmem:[%s11197_s0 + $0xe8] sm:$0x1] }
 0x3d6   :  { %14315 = vst [vmem:[#allocation56_spill] sm:$0xff] %v9784_v3  ;;  %v1947_v3 = vld [vmem:[%s11197_s0 + $0x138] sm:$0x1] }
 0x3d7   :  { %14316 = vst [vmem:[#allocation150_spill] sm:$0xff] %v9789_v8  ;;  %v14339_v8 = vld [vmem:[#allocation224_spill] sm:$0xff] }
 0x3d8   :  { %14317 = vst [vmem:[#allocation172_spill] sm:$0xff] %v9794_v33  ;;  %v1944_v33 = vld [vmem:[%s11197_s0 + $0x108] sm:$0x1] }
 0x3d9   :  { %14319 = vst [vmem:[#allocation151_spill] sm:$0xff] %v9807_v32  ;;  %v14352_v32 = vld [vmem:[#allocation82_spill] sm:$0xff] }
 0x3da   :  { %14320 = vst [vmem:[#allocation61_spill] sm:$0xff] %v9812_v16  ;;  %v1946_v16 = vld [vmem:[%s11197_s0 + $0x128] sm:$0x1]  ;;  %v14353_v63 = vmax.f32 %v14351_v30, %v14352_v32 }
 0x3db   :  { %14321 = vst [vmem:[#allocation226_spill] sm:$0xff] %v9817_v44  ;;  %v9939_v44 = vmax.f32 %v14337_v4, %v1928_v36  ;;  %v14341_v4 = vmax.f32 %v14339_v8, %v14340_v14  ;;  %v14343_v36 = vld [vmem:[#allocation47_spill] sm:$0xff]  ;;  %v1949_v8 = vld [vmem:[%s11197_s0 + $0x158] sm:$0x1]  ;;  %v14364_v14 = vld [vmem:[#allocation138_spill] sm:$0xff] }
 0x3dc   :  { %14322 = vst [vmem:[#allocation169_spill] sm:$0xff] %v9822_v40  ;;  %v1948_v40 = vld [vmem:[%s11197_s0 + $0x148] sm:$0x1]  ;;  %v9971_v35 = vmax.f32 %v14353_v63, %v1932_v20  ;;  %v14360_v63 = vld [vmem:[#allocation190_spill] sm:$0xff] }
 0x3dd   :  { %14323 = vst [vmem:[#allocation227_spill] sm:$0xff] %v9835_v41  ;;  %v9956_v45 = vmax.f32 %v14341_v4, %v1929_v10  ;;  %v14356_v32 = vld [vmem:[#allocation23_spill] sm:$0xff] }
 0x3de   :  { %14324 = vst [vmem:[#allocation228_spill] sm:$0xff] %v9840_v17  ;;  %v14347_v17 = vld [vmem:[#allocation225_spill] sm:$0xff] }
 0x3df   :  { %14325 = vst [vmem:[#allocation130_spill] sm:$0xff] %v9845_v11  ;;  %v14349_v41 = vmax.f32 %v14347_v17, %v14348_v18  ;;  %v14355_v17 = vld [vmem:[#allocation101_spill] sm:$0xff] }
 0x3e0   :  { %14338 = vst [vmem:[#allocation127_spill] sm:$0xff] %v9939_v44  ;;  %v14344_v44 = vld [vmem:[#allocation189_spill] sm:$0xff]  ;;  %v14357_v10 = vmax.f32 %v14355_v17, %v14356_v32  ;;  %v1954_v17 = vld [vmem:[%s11197_s0 + $0x1a8] sm:$0x1]  ;;  %v14371_v32 = vld [vmem:[#allocation102_spill] sm:$0xff] }
 0x3e1   :  { %14342 = vst [vmem:[#allocation224_spill] sm:$0xff] %v9956_v45  ;;  %v14345_v11 = vmax.f32 %v14343_v36, %v14344_v44  ;;  %v9966_v37 = vmax.f32 %v14349_v41, %v1931_v52  ;;  %v1950_v44 = vld [vmem:[%s11197_s0 + $0x168] sm:$0x1]  ;;  %v14363_v18 = vld [vmem:[#allocation221_spill] sm:$0xff] }
 0x3e2   :  { %14354 = vst [vmem:[#allocation189_spill] sm:$0xff] %v9971_v35  ;;  %v1952_v52 = vld [vmem:[%s11197_s0 + $0x188] sm:$0x1]  ;;  %v9988_v20 = vmax.f32 %v14357_v10, %v1933_v51  ;;  %v14365_v4 = vmax.f32 %v14363_v18, %v14364_v14  ;;  %v1953_v51 = vld [vmem:[%s11197_s0 + $0x198] sm:$0x1] }
 0x3e3   :  { %v9961_v38 = vmax.f32 %v14345_v11, %v1930_v62  ;;  %14350 = vst [vmem:[#allocation47_spill] sm:$0xff] %v9966_v37  ;;  %v1951_v11 = vld [vmem:[%s11197_s0 + $0x178] sm:$0x1]  ;;  %v14359_v62 = vld [vmem:[#allocation51_spill] sm:$0xff] }
 0x3e4   :  { %14358 = vst [vmem:[#allocation225_spill] sm:$0xff] %v9988_v20  ;;  %v14361_v41 = vmax.f32 %v14359_v62, %v14360_v63  ;;  %v9998_v36 = vmax.f32 %v14365_v4, %v1935_v15  ;;  %v14367_v35 = vld [vmem:[#allocation159_spill] sm:$0xff] }
 0x3e5   :  { %14346 = vst [vmem:[#allocation22_spill] sm:$0xff] %v9961_v38  ;;  %v14368_v37 = vld [vmem:[#allocation83_spill] sm:$0xff] }
 0x3e6   :  { %v9993_v30 = vmax.f32 %v14361_v41, %v1934_v29  ;;  %14366 = vst [vmem:[#allocation162_spill] sm:$0xff] %v9998_v36  ;;  %v14369_v38 = vmax.f32 %v14367_v35, %v14368_v37  ;;  %v1955_v29 = vld [vmem:[%s11197_s0 + $0x1b8] sm:$0x1]  ;;  %v1956_v15 = vld [vmem:[%s11197_s0 + $0x1c8] sm:$0x1]  ;;  %v14372_v35 = vld [vmem:[#allocation24_spill] sm:$0xff] }
 0x3e7   :  { %v14373_v37 = vmax.f32 %v14371_v32, %v14372_v35  ;;  %v14376_v10 = vld [vmem:[#allocation191_spill] sm:$0xff]  ;;  %v14379_v41 = vld [vmem:[#allocation222_spill] sm:$0xff]  ;;  %v14384_v36 = vld [vmem:[#allocation84_spill] sm:$0xff] }
 0x3e8   :  { %14362 = vst [vmem:[#allocation133_spill] sm:$0xff] %v9993_v30  ;;  %v10003_v45 = vmax.f32 %v14369_v38, %v1936_v7  ;;  %v14375_v7 = vld [vmem:[#allocation52_spill] sm:$0xff]  ;;  %v14380_v18 = vld [vmem:[#allocation139_spill] sm:$0xff] }
 0x3e9   :  { %v10020_v38 = vmax.f32 %v14373_v37, %v1937_v24  ;;  %v14377_v62 = vmax.f32 %v14375_v7, %v14376_v10  ;;  %v14381_v14 = vmax.f32 %v14379_v41, %v14380_v18  ;;  %v1957_v24 = vld [vmem:[%s11197_s0 + $0x1d8] sm:$0x1]  ;;  %v1958_v32 = vld [vmem:[%s11197_s0 + $0x1e8] sm:$0x1]  ;;  %v14392_v37 = vld [vmem:[#allocation192_spill] sm:$0xff] }
 0x3ea   :  { %14370 = vst [vmem:[#allocation82_spill] sm:$0xff] %v10003_v45  ;;  %v14383_v45 = vld [vmem:[#allocation160_spill] sm:$0xff]  ;;  %v14387_v35 = vld [vmem:[#allocation107_spill] sm:$0xff] }
 0x3eb   :  { %14374 = vst [vmem:[#allocation101_spill] sm:$0xff] %v10020_v38  ;;  %v10025_v63 = vmax.f32 %v14377_v62, %v1938_v50  ;;  %v10030_v4 = vmax.f32 %v14381_v14, %v1939_v27  ;;  %v14385_v30 = vmax.f32 %v14383_v45, %v14384_v36  ;;  %v1959_v50 = vld [vmem:[%s11197_s0 + $0x1f8] sm:$0x1]  ;;  %v1960_v27 = vld [vmem:[%s11197_s0 + $0x208] sm:$0x1]  ;;  %v14396_v41 = vld [vmem:[#allocation140_spill] sm:$0xff] }
 0x3ec   :  { %v14388_v45 = vld [vmem:[#allocation25_spill] sm:$0xff]  ;;  %v14395_v62 = vld [vmem:[#allocation223_spill] sm:$0xff] }
 0x3ed   :  { %14378 = vst [vmem:[#allocation23_spill] sm:$0xff] %v10025_v63  ;;  %v10035_v20 = vmax.f32 %v14385_v30, %v1940_v28  ;;  %v14389_v28 = vmax.f32 %v14387_v35, %v14388_v45  ;;  %v14391_v36 = vld [vmem:[#allocation49_spill] sm:$0xff]  ;;  %v14397_v18 = vmax.f32 %v14395_v62, %v14396_v41  ;;  %v1962_v35 = vld [vmem:[%s11197_s0 + $0x228] sm:$0x1]  ;;  %v14403_v45 = vld [vmem:[#allocation104_spill] sm:$0xff] }
 0x3ee   :  { %14382 = vst [vmem:[#allocation51_spill] sm:$0xff] %v10030_v4  ;;  %v14393_v7 = vmax.f32 %v14391_v36, %v14392_v37  ;;  %v14400_v4 = vld [vmem:[#allocation85_spill] sm:$0xff] }
 0x3ef   :  { %14386 = vst [vmem:[#allocation190_spill] sm:$0xff] %v10035_v20  ;;  %v10052_v30 = vmax.f32 %v14389_v28, %v1941_v56  ;;  %v10062_v14 = vmax.f32 %v14397_v18, %v1943_v42  ;;  %v14399_v20 = vld [vmem:[#allocation164_spill] sm:$0xff]  ;;  %v1961_v56 = vld [vmem:[%s11197_s0 + $0x218] sm:$0x1]  ;;  %v1964_v42 = vld [vmem:[%s11197_s0 + $0x248] sm:$0x1] }
 0x3f0   :  { %v10057_v10 = vmax.f32 %v14393_v7, %v1942_v31  ;;  %v14401_v63 = vmax.f32 %v14399_v20, %v14400_v4  ;;  %v1963_v31 = vld [vmem:[%s11197_s0 + $0x238] sm:$0x1]  ;;  %v14404_v20 = vld [vmem:[#allocation86_spill] sm:$0xff] }
 0x3f1   :  { %14390 = vst [vmem:[#allocation221_spill] sm:$0xff] %v10052_v30  ;;  %v14407_v4 = vld [vmem:[#allocation165_spill] sm:$0xff]  ;;  %v14408_v28 = vld [vmem:[#allocation30_spill] sm:$0xff] }
 0x3f2   :  { %14394 = vst [vmem:[#allocation138_spill] sm:$0xff] %v10057_v10  ;;  %v10067_v38 = vmax.f32 %v14401_v63, %v1944_v33  ;;  %v14405_v33 = vmax.f32 %v14403_v45, %v14404_v20  ;;  %v14409_v36 = vmax.f32 %v14407_v4, %v14408_v28  ;;  %v14411_v7 = vld [vmem:[#allocation2_spill] sm:$0xff]  ;;  %v14412_v62 = vld [vmem:[#allocation197_spill] sm:$0xff]  ;;  %v1966_v45 = vld [vmem:[%s11197_s0 + $0x268] sm:$0x1] }
 0x3f3   :  { %14398 = vst [vmem:[#allocation159_spill] sm:$0xff] %v10062_v14  ;;  %v14413_v41 = vmax.f32 %v14411_v7, %v14412_v62  ;;  %v14416_v14 = vld [vmem:[#allocation141_spill] sm:$0xff]  ;;  %v14419_v20 = vld [vmem:[#allocation108_spill] sm:$0xff]  ;;  %v14428_v7 = vld [vmem:[#allocation199_spill] sm:$0xff] }
 0x3f4   :  { %14402 = vst [vmem:[#allocation83_spill] sm:$0xff] %v10067_v38  ;;  %v10084_v63 = vmax.f32 %v14405_v33, %v1945_v61  ;;  %v10089_v37 = vmax.f32 %v14409_v36, %v1946_v16  ;;  %v14415_v38 = vld [vmem:[#allocation58_spill] sm:$0xff]  ;;  %v1965_v61 = vld [vmem:[%s11197_s0 + $0x258] sm:$0x1]  ;;  %v14427_v36 = vld [vmem:[#allocation4_spill] sm:$0xff] }
 0x3f5   :  { %v10094_v18 = vmax.f32 %v14413_v41, %v1947_v3  ;;  %v14417_v10 = vmax.f32 %v14415_v38, %v14416_v14  ;;  %v1967_v16 = vld [vmem:[%s11197_s0 + $0x278] sm:$0x1]  ;;  %v1968_v3 = vld [vmem:[%s11197_s0 + $0x288] sm:$0x1]  ;;  %v14420_v38 = vld [vmem:[#allocation90_spill] sm:$0xff]  ;;  %v14429_v62 = vmax.f32 %v14427_v36, %v14428_v7 }
 0x3f6   :  { %14406 = vst [vmem:[#allocation102_spill] sm:$0xff] %v10084_v63  ;;  %v14423_v14 = vld [vmem:[#allocation166_spill] sm:$0xff]  ;;  %v14444_v36 = vld [vmem:[#allocation91_spill] sm:$0xff] }
 0x3f7   :  { %14410 = vst [vmem:[#allocation24_spill] sm:$0xff] %v10089_v37  ;;  %v10099_v30 = vmax.f32 %v14417_v10, %v1948_v40  ;;  %v14421_v40 = vmax.f32 %v14419_v20, %v14420_v38  ;;  %v14424_v33 = vld [vmem:[#allocation34_spill] sm:$0xff]  ;;  %v10126_v41 = vmax.f32 %v14429_v62, %v1951_v11  ;;  %v1970_v20 = vld [vmem:[%s11197_s0 + $0x2a8] sm:$0x1]  ;;  %v14435_v38 = vld [vmem:[#allocation105_spill] sm:$0xff] }
 0x3f8   :  { %14414 = vst [vmem:[#allocation52_spill] sm:$0xff] %v10094_v18  ;;  %v14425_v4 = vmax.f32 %v14423_v14, %v14424_v33  ;;  %v14432_v18 = vld [vmem:[#allocation142_spill] sm:$0xff]  ;;  %v1972_v11 = vld [vmem:[%s11197_s0 + $0x2c8] sm:$0x1] }
 0x3f9   :  { %14418 = vst [vmem:[#allocation191_spill] sm:$0xff] %v10099_v30  ;;  %v10116_v10 = vmax.f32 %v14421_v40, %v1949_v8  ;;  %v14431_v30 = vld [vmem:[#allocation55_spill] sm:$0xff]  ;;  %v1969_v8 = vld [vmem:[%s11197_s0 + $0x298] sm:$0x1] }
 0x3fa   :  { %v10121_v28 = vmax.f32 %v14425_v4, %v1950_v44  ;;  %14430 = vst [vmem:[#allocation160_spill] sm:$0xff] %v10126_v41  ;;  %v14433_v37 = vmax.f32 %v14431_v30, %v14432_v18  ;;  %v1971_v44 = vld [vmem:[%s11197_s0 + $0x2b8] sm:$0x1]  ;;  %v14436_v30 = vld [vmem:[#allocation198_spill] sm:$0xff]  ;;  %v14439_v18 = vld [vmem:[#allocation171_spill] sm:$0xff] }
 0x3fb   :  { %14422 = vst [vmem:[#allocation222_spill] sm:$0xff] %v10116_v10  ;;  %v14440_v40 = vld [vmem:[#allocation31_spill] sm:$0xff]  ;;  %v14448_v41 = vld [vmem:[#allocation146_spill] sm:$0xff] }
 0x3fc   :  { %14426 = vst [vmem:[#allocation139_spill] sm:$0xff] %v10121_v28  ;;  %v10131_v63 = vmax.f32 %v14433_v37, %v1952_v52  ;;  %v14437_v52 = vmax.f32 %v14435_v38, %v14436_v30  ;;  %v14441_v14 = vmax.f32 %v14439_v18, %v14440_v40  ;;  %v14443_v4 = vld [vmem:[#allocation3_spill] sm:$0xff]  ;;  %v14451_v30 = vld [vmem:[#allocation114_spill] sm:$0xff] }
 0x3fd   :  { %v14445_v7 = vmax.f32 %v14443_v4, %v14444_v36  ;;  %v1974_v38 = vld [vmem:[%s11197_s0 + $0x2e8] sm:$0x1]  ;;  %v14460_v4 = vld [vmem:[#allocation88_spill] sm:$0xff] }
 0x3fe   :  { %14434 = vst [vmem:[#allocation84_spill] sm:$0xff] %v10131_v63  ;;  %v10148_v37 = vmax.f32 %v14437_v52, %v1953_v51  ;;  %v10153_v33 = vmax.f32 %v14441_v14, %v1954_v17  ;;  %v14447_v63 = vld [vmem:[#allocation60_spill] sm:$0xff]  ;;  %v1973_v51 = vld [vmem:[%s11197_s0 + $0x2d8] sm:$0x1]  ;;  %v14456_v52 = vld [vmem:[#allocation35_spill] sm:$0xff] }
 0x3ff   :  { %v10158_v62 = vmax.f32 %v14445_v7, %v1955_v29  ;;  %v14449_v28 = vmax.f32 %v14447_v63, %v14448_v41  ;;  %v1975_v17 = vld [vmem:[%s11197_s0 + $0x2f8] sm:$0x1]  ;;  %v1976_v29 = vld [vmem:[%s11197_s0 + $0x308] sm:$0x1]  ;;  %v14452_v63 = vld [vmem:[#allocation200_spill] sm:$0xff] }
 0x400   :  { %14438 = vst [vmem:[#allocation107_spill] sm:$0xff] %v10148_v37  ;;  %v14455_v41 = vld [vmem:[#allocation168_spill] sm:$0xff]  ;;  %v14459_v14 = vld [vmem:[#allocation5_spill] sm:$0xff] }
 0x401   :  { %14442 = vst [vmem:[#allocation25_spill] sm:$0xff] %v10153_v33  ;;  %v10163_v10 = vmax.f32 %v14449_v28, %v1956_v15  ;;  %v14453_v15 = vmax.f32 %v14451_v30, %v14452_v63  ;;  %v14457_v18 = vmax.f32 %v14455_v41, %v14456_v52  ;;  %v14461_v36 = vmax.f32 %v14459_v14, %v14460_v4  ;;  %v1978_v30 = vld [vmem:[%s11197_s0 + $0x328] sm:$0x1]  ;;  %v14476_v14 = vld [vmem:[#allocation92_spill] sm:$0xff] }
 0x402   :  { %14446 = vst [vmem:[#allocation49_spill] sm:$0xff] %v10158_v62  ;;  %v14464_v62 = vld [vmem:[#allocation143_spill] sm:$0xff] }
 0x403   :  { %14450 = vst [vmem:[#allocation192_spill] sm:$0xff] %v10163_v10  ;;  %v10180_v28 = vmax.f32 %v14453_v15, %v1957_v24  ;;  %v10185_v40 = vmax.f32 %v14457_v18, %v1958_v32  ;;  %v10190_v7 = vmax.f32 %v14461_v36, %v1959_v50  ;;  %v14463_v10 = vld [vmem:[#allocation57_spill] sm:$0xff]  ;;  %v1980_v50 = vld [vmem:[%s11197_s0 + $0x348] sm:$0x1]  ;;  %v14472_v15 = vld [vmem:[#allocation32_spill] sm:$0xff] }
 0x404   :  { %v14465_v33 = vmax.f32 %v14463_v10, %v14464_v62  ;;  %v1977_v24 = vld [vmem:[%s11197_s0 + $0x318] sm:$0x1]  ;;  %v14467_v63 = vld [vmem:[#allocation111_spill] sm:$0xff]  ;;  %v14471_v62 = vld [vmem:[#allocation62_spill] sm:$0xff] }
 0x405   :  { %14454 = vst [vmem:[#allocation223_spill] sm:$0xff] %v10180_v28  ;;  %v1979_v32 = vld [vmem:[%s11197_s0 + $0x338] sm:$0x1]  ;;  %v14473_v41 = vmax.f32 %v14471_v62, %v14472_v15  ;;  %v14475_v18 = vld [vmem:[#allocation6_spill] sm:$0xff] }
 0x406   :  { %14458 = vst [vmem:[#allocation140_spill] sm:$0xff] %v10185_v40  ;;  %v10195_v37 = vmax.f32 %v14465_v33, %v1960_v27  ;;  %v14468_v10 = vld [vmem:[#allocation201_spill] sm:$0xff]  ;;  %v14477_v4 = vmax.f32 %v14475_v18, %v14476_v14 }
 0x407   :  { %14462 = vst [vmem:[#allocation164_spill] sm:$0xff] %v10190_v7  ;;  %v14469_v27 = vmax.f32 %v14467_v63, %v14468_v10  ;;  %v10217_v52 = vmax.f32 %v14473_v41, %v1962_v35  ;;  %v14480_v7 = vld [vmem:[#allocation147_spill] sm:$0xff]  ;;  %v1983_v35 = vld [vmem:[%s11197_s0 + $0x378] sm:$0x1]  ;;  %v14491_v41 = vld [vmem:[#allocation10_spill] sm:$0xff] }
 0x408   :  { %14466 = vst [vmem:[#allocation85_spill] sm:$0xff] %v10195_v37  ;;  %v10222_v36 = vmax.f32 %v14477_v4, %v1963_v31  ;;  %v14479_v37 = vld [vmem:[#allocation173_spill] sm:$0xff]  ;;  %v1982_v63 = vld [vmem:[%s11197_s0 + $0x368] sm:$0x1] }
 0x409   :  { %v10212_v33 = vmax.f32 %v14469_v27, %v1961_v56  ;;  %14474 = vst [vmem:[#allocation86_spill] sm:$0xff] %v10217_v52  ;;  %v14481_v40 = vmax.f32 %v14479_v37, %v14480_v7  ;;  %v1981_v56 = vld [vmem:[%s11197_s0 + $0x358] sm:$0x1]  ;;  %v1984_v31 = vld [vmem:[%s11197_s0 + $0x388] sm:$0x1]  ;;  %v14487_v7 = vld [vmem:[#allocation66_spill] sm:$0xff] }
 0x40a   :  { %14478 = vst [vmem:[#allocation165_spill] sm:$0xff] %v10222_v36  ;;  %v14483_v10 = vld [vmem:[#allocation115_spill] sm:$0xff]  ;;  %v14488_v27 = vld [vmem:[#allocation36_spill] sm:$0xff]  ;;  %v14492_v18 = vld [vmem:[#allocation93_spill] sm:$0xff] }
 0x40b   :  { %14470 = vst [vmem:[#allocation104_spill] sm:$0xff] %v10212_v33  ;;  %v10227_v28 = vmax.f32 %v14481_v40, %v1964_v42  ;;  %v14484_v37 = vld [vmem:[#allocation203_spill] sm:$0xff]  ;;  %v14489_v62 = vmax.f32 %v14487_v7, %v14488_v27  ;;  %v14493_v14 = vmax.f32 %v14491_v41, %v14492_v18  ;;  %v14496_v36 = vld [vmem:[#allocation144_spill] sm:$0xff]  ;;  %v14508_v41 = vld [vmem:[#allocation94_spill] sm:$0xff] }
 0x40c   :  { %v14485_v42 = vmax.f32 %v14483_v10, %v14484_v37  ;;  %v1986_v10 = vld [vmem:[%s11197_s0 + $0x3a8] sm:$0x1]  ;;  %v14499_v37 = vld [vmem:[#allocation112_spill] sm:$0xff] }
 0x40d   :  { %14482 = vst [vmem:[#allocation30_spill] sm:$0xff] %v10227_v28  ;;  %v10249_v15 = vmax.f32 %v14489_v62, %v1966_v45  ;;  %v10254_v4 = vmax.f32 %v14493_v14, %v1967_v16  ;;  %v14495_v28 = vld [vmem:[#allocation174_spill] sm:$0xff]  ;;  %v1987_v45 = vld [vmem:[%s11197_s0 + $0x3b8] sm:$0x1]  ;;  %v1988_v16 = vld [vmem:[%s11197_s0 + $0x3c8] sm:$0x1] }
 0x40e   :  { %v10244_v40 = vmax.f32 %v14485_v42, %v1965_v61  ;;  %v14497_v52 = vmax.f32 %v14495_v28, %v14496_v36  ;;  %v1985_v61 = vld [vmem:[%s11197_s0 + $0x398] sm:$0x1]  ;;  %v14500_v28 = vld [vmem:[#allocation202_spill] sm:$0xff]  ;;  %v14503_v36 = vld [vmem:[#allocation63_spill] sm:$0xff] }
 0x40f   :  { %14490 = vst [vmem:[#allocation197_spill] sm:$0xff] %v10249_v15  ;;  %v14504_v42 = vld [vmem:[#allocation33_spill] sm:$0xff]  ;;  %v14507_v62 = vld [vmem:[#allocation7_spill] sm:$0xff] }
 0x410   :  { %14486 = vst [vmem:[#allocation2_spill] sm:$0xff] %v10244_v40  ;;  %v10259_v33 = vmax.f32 %v14497_v52, %v1968_v3  ;;  %v14501_v3 = vmax.f32 %v14499_v37, %v14500_v28  ;;  %v14505_v7 = vmax.f32 %v14503_v36, %v14504_v42  ;;  %v14509_v18 = vmax.f32 %v14507_v62, %v14508_v41  ;;  %v1990_v37 = vld [vmem:[%s11197_s0 + $0x3e8] sm:$0x1]  ;;  %v14515_v28 = vld [vmem:[#allocation117_spill] sm:$0xff]  ;;  %v14524_v62 = vld [vmem:[#allocation98_spill] sm:$0xff] }
 0x411   :  { %14494 = vst [vmem:[#allocation58_spill] sm:$0xff] %v10254_v4  ;;  %v14512_v4 = vld [vmem:[#allocation148_spill] sm:$0xff] }
 0x412   :  { %14498 = vst [vmem:[#allocation141_spill] sm:$0xff] %v10259_v33  ;;  %v10276_v52 = vmax.f32 %v14501_v3, %v1969_v8  ;;  %v10281_v27 = vmax.f32 %v14505_v7, %v1970_v20  ;;  %v10286_v14 = vmax.f32 %v14509_v18, %v1971_v44  ;;  %v14511_v33 = vld [vmem:[#allocation178_spill] sm:$0xff]  ;;  %v1989_v8 = vld [vmem:[%s11197_s0 + $0x3d8] sm:$0x1]  ;;  %v1992_v44 = vld [vmem:[%s11197_s0 + $0x408] sm:$0x1] }
 0x413   :  { %v14513_v15 = vmax.f32 %v14511_v33, %v14512_v4  ;;  %v1991_v20 = vld [vmem:[%s11197_s0 + $0x3f8] sm:$0x1]  ;;  %v14516_v33 = vld [vmem:[#allocation204_spill] sm:$0xff]  ;;  %v14519_v4 = vld [vmem:[#allocation67_spill] sm:$0xff] }
 0x414   :  { %14502 = vst [vmem:[#allocation108_spill] sm:$0xff] %v10276_v52  ;;  %v14520_v3 = vld [vmem:[#allocation37_spill] sm:$0xff]  ;;  %v14523_v7 = vld [vmem:[#allocation11_spill] sm:$0xff] }
 0x415   :  { %14506 = vst [vmem:[#allocation90_spill] sm:$0xff] %v10281_v27  ;;  %v10291_v40 = vmax.f32 %v14513_v15, %v1972_v11  ;;  %v14517_v11 = vmax.f32 %v14515_v28, %v14516_v33  ;;  %v14521_v36 = vmax.f32 %v14519_v4, %v14520_v3  ;;  %v14525_v41 = vmax.f32 %v14523_v7, %v14524_v62  ;;  %v1994_v28 = vld [vmem:[%s11197_s0 + $0x428] sm:$0x1]  ;;  %v14531_v33 = vld [vmem:[#allocation118_spill] sm:$0xff] }
 0x416   :  { %14510 = vst [vmem:[#allocation166_spill] sm:$0xff] %v10286_v14  ;;  %v14528_v14 = vld [vmem:[#allocation145_spill] sm:$0xff]  ;;  %v14540_v7 = vld [vmem:[#allocation95_spill] sm:$0xff] }
 0x417   :  { %14514 = vst [vmem:[#allocation34_spill] sm:$0xff] %v10291_v40  ;;  %v10308_v15 = vmax.f32 %v14517_v11, %v1973_v51  ;;  %v10313_v42 = vmax.f32 %v14521_v36, %v1974_v38  ;;  %v10318_v18 = vmax.f32 %v14525_v41, %v1975_v17  ;;  %v14527_v40 = vld [vmem:[#allocation175_spill] sm:$0xff]  ;;  %v1993_v51 = vld [vmem:[%s11197_s0 + $0x418] sm:$0x1]  ;;  %v14536_v11 = vld [vmem:[#allocation38_spill] sm:$0xff] }
 0x418   :  { %v14529_v27 = vmax.f32 %v14527_v40, %v14528_v14  ;;  %v1995_v38 = vld [vmem:[%s11197_s0 + $0x438] sm:$0x1]  ;;  %v1996_v17 = vld [vmem:[%s11197_s0 + $0x448] sm:$0x1]  ;;  %v14535_v14 = vld [vmem:[#allocation64_spill] sm:$0xff] }
 0x419   :  { %14518 = vst [vmem:[#allocation4_spill] sm:$0xff] %v10308_v15  ;;  %v14532_v40 = vld [vmem:[#allocation205_spill] sm:$0xff]  ;;  %v14537_v4 = vmax.f32 %v14535_v14, %v14536_v11  ;;  %v14539_v36 = vld [vmem:[#allocation8_spill] sm:$0xff] }
 0x41a   :  { %14522 = vst [vmem:[#allocation199_spill] sm:$0xff] %v10313_v42  ;;  %v10323_v52 = vmax.f32 %v14529_v27, %v1976_v29  ;;  %v14533_v29 = vmax.f32 %v14531_v33, %v14532_v40  ;;  %v14541_v62 = vmax.f32 %v14539_v36, %v14540_v7  ;;  %v1998_v33 = vld [vmem:[%s11197_s0 + $0x468] sm:$0x1]  ;;  %v14547_v40 = vld [vmem:[#allocation122_spill] sm:$0xff] }
 0x41b   :  { %14526 = vst [vmem:[#allocation55_spill] sm:$0xff] %v10318_v18  ;;  %v10345_v3 = vmax.f32 %v14537_v4, %v1978_v30  ;;  %v14544_v18 = vld [vmem:[#allocation149_spill] sm:$0xff]  ;;  %v14555_v4 = vld [vmem:[#allocation12_spill] sm:$0xff]  ;;  %v14556_v36 = vld [vmem:[#allocation99_spill] sm:$0xff] }
 0x41c   :  { %14530 = vst [vmem:[#allocation142_spill] sm:$0xff] %v10323_v52  ;;  %v10340_v27 = vmax.f32 %v14533_v29, %v1977_v24  ;;  %v10350_v41 = vmax.f32 %v14541_v62, %v1979_v32  ;;  %v14543_v52 = vld [vmem:[#allocation179_spill] sm:$0xff]  ;;  %v1997_v24 = vld [vmem:[%s11197_s0 + $0x458] sm:$0x1]  ;;  %v14552_v29 = vld [vmem:[#allocation42_spill] sm:$0xff]  ;;  %v14557_v7 = vmax.f32 %v14555_v4, %v14556_v36 }
 0x41d   :  { %14538 = vst [vmem:[#allocation198_spill] sm:$0xff] %v10345_v3  ;;  %v14545_v42 = vmax.f32 %v14543_v52, %v14544_v18  ;;  %v1999_v30 = vld [vmem:[%s11197_s0 + $0x478] sm:$0x1]  ;;  %v2000_v32 = vld [vmem:[%s11197_s0 + $0x488] sm:$0x1]  ;;  %v14551_v18 = vld [vmem:[#allocation68_spill] sm:$0xff] }
 0x41e   :  { %14534 = vst [vmem:[#allocation105_spill] sm:$0xff] %v10340_v27  ;;  %v14548_v52 = vld [vmem:[#allocation207_spill] sm:$0xff]  ;;  %v14553_v14 = vmax.f32 %v14551_v18, %v14552_v29  ;;  %v10382_v62 = vmax.f32 %v14557_v7, %v1983_v35  ;;  %v14571_v4 = vld [vmem:[#allocation154_spill] sm:$0xff] }
 0x41f   :  { %14542 = vst [vmem:[#allocation171_spill] sm:$0xff] %v10350_v41  ;;  %v10355_v15 = vmax.f32 %v14545_v42, %v1980_v50  ;;  %v14549_v50 = vmax.f32 %v14547_v40, %v14548_v52  ;;  %v14560_v41 = vld [vmem:[#allocation206_spill] sm:$0xff]  ;;  %v2002_v40 = vld [vmem:[%s11197_s0 + $0x4a8] sm:$0x1] }
 0x420   :  { %v10377_v11 = vmax.f32 %v14553_v14, %v1982_v63  ;;  %14558 = vst [vmem:[#allocation60_spill] sm:$0xff] %v10382_v62  ;;  %v2003_v63 = vld [vmem:[%s11197_s0 + $0x4b8] sm:$0x1]  ;;  %v2004_v35 = vld [vmem:[%s11197_s0 + $0x4c8] sm:$0x1]  ;;  %v14575_v62 = vld [vmem:[#allocation208_spill] sm:$0xff] }
 0x421   :  { %14546 = vst [vmem:[#allocation31_spill] sm:$0xff] %v10355_v15  ;;  %v10372_v42 = vmax.f32 %v14549_v50, %v1981_v56  ;;  %v14559_v15 = vld [vmem:[#allocation176_spill] sm:$0xff]  ;;  %v2001_v56 = vld [vmem:[%s11197_s0 + $0x498] sm:$0x1]  ;;  %v14563_v52 = vld [vmem:[#allocation119_spill] sm:$0xff] }
 0x422   :  { %14554 = vst [vmem:[#allocation91_spill] sm:$0xff] %v10377_v11  ;;  %v14561_v3 = vmax.f32 %v14559_v15, %v14560_v41  ;;  %v14564_v15 = vld [vmem:[#allocation39_spill] sm:$0xff]  ;;  %v14566_v41 = vld [vmem:[#allocation65_spill] sm:$0xff]  ;;  %v14567_v50 = vld [vmem:[#allocation96_spill] sm:$0xff] }
 0x423   :  { %14550 = vst [vmem:[#allocation3_spill] sm:$0xff] %v10372_v42  ;;  %v14568_v18 = vmax.f32 %v14566_v41, %v14567_v50  ;;  %v14570_v14 = vld [vmem:[#allocation9_spill] sm:$0xff] }
 0x424   :  { %v10387_v27 = vmax.f32 %v14561_v3, %v1984_v31  ;;  %v14565_v31 = vmax.f32 %v14563_v52, %v14564_v15  ;;  %v14572_v36 = vmax.f32 %v14570_v14, %v14571_v4  ;;  %v2006_v52 = vld [vmem:[%s11197_s0 + $0x4e8] sm:$0x1]  ;;  %v14578_v15 = vld [vmem:[#allocation124_spill] sm:$0xff]  ;;  %v14585_v50 = vld [vmem:[#allocation13_spill] sm:$0xff] }
 0x425   :  { %v10409_v29 = vmax.f32 %v14568_v18, %v1986_v10  ;;  %v2007_v10 = vld [vmem:[%s11197_s0 + $0x4f8] sm:$0x1]  ;;  %v14586_v18 = vld [vmem:[#allocation40_spill] sm:$0xff] }
 0x426   :  { %14562 = vst [vmem:[#allocation146_spill] sm:$0xff] %v10387_v27  ;;  %v10404_v3 = vmax.f32 %v14565_v31, %v1985_v61  ;;  %v10414_v7 = vmax.f32 %v14572_v36, %v1987_v45  ;;  %v14574_v27 = vld [vmem:[#allocation180_spill] sm:$0xff]  ;;  %v2005_v61 = vld [vmem:[%s11197_s0 + $0x4d8] sm:$0x1]  ;;  %v14579_v45 = vld [vmem:[#allocation43_spill] sm:$0xff]  ;;  %v14587_v14 = vmax.f32 %v14585_v50, %v14586_v18 }
 0x427   :  { %14569 = vst [vmem:[#allocation114_spill] sm:$0xff] %v10409_v29  ;;  %v14576_v11 = vmax.f32 %v14574_v27, %v14575_v62  ;;  %v14580_v31 = vmax.f32 %v14578_v15, %v14579_v45  ;;  %v14581_v27 = vld [vmem:[#allocation69_spill] sm:$0xff]  ;;  %v14601_v50 = vld [vmem:[#allocation44_spill] sm:$0xff] }
 0x428   :  { %14573 = vst [vmem:[#allocation200_spill] sm:$0xff] %v10414_v7  ;;  %v10443_v4 = vmax.f32 %v14587_v14, %v1991_v20  ;;  %v14589_v36 = vld [vmem:[#allocation177_spill] sm:$0xff]  ;;  %v14594_v20 = vld [vmem:[#allocation155_spill] sm:$0xff] }
 0x429   :  { %v10419_v42 = vmax.f32 %v14576_v11, %v1988_v16  ;;  %v10433_v41 = vmax.f32 %v14580_v31, %v1989_v8  ;;  %v14582_v16 = vld [vmem:[#allocation100_spill] sm:$0xff]  ;;  %v2008_v8 = vld [vmem:[%s11197_s0 + $0x508] sm:$0x1]  ;;  %v2009_v15 = vld [vmem:[%s11197_s0 + $0x518] sm:$0x1] }
 0x42a   :  { %v14583_v11 = vmax.f32 %v14581_v27, %v14582_v16  ;;  %14588 = vst [vmem:[#allocation5_spill] sm:$0xff] %v10443_v4  ;;  %v14593_v45 = vld [vmem:[#allocation121_spill] sm:$0xff] }
 0x42b   :  { %14577 = vst [vmem:[#allocation168_spill] sm:$0xff] %v10419_v42  ;;  %v14590_v42 = vld [vmem:[#allocation209_spill] sm:$0xff]  ;;  %v14595_v31 = vmax.f32 %v14593_v45, %v14594_v20  ;;  %v2012_v45 = vld [vmem:[%s11197_s0 + $0x548] sm:$0x1] }
 0x42c   :  { %v10438_v62 = vmax.f32 %v14583_v11, %v1990_v37  ;;  %v14591_v7 = vmax.f32 %v14589_v36, %v14590_v42  ;;  %v2010_v37 = vld [vmem:[%s11197_s0 + $0x528] sm:$0x1]  ;;  %v14596_v42 = vld [vmem:[#allocation70_spill] sm:$0xff]  ;;  %v14604_v36 = vld [vmem:[#allocation181_spill] sm:$0xff] }
 0x42d   :  { %v10462_v27 = vmax.f32 %v14595_v31, %v1993_v51  ;;  %v14600_v11 = vld [vmem:[#allocation14_spill] sm:$0xff]  ;;  %v2011_v51 = vld [vmem:[%s11197_s0 + $0x538] sm:$0x1] }
 0x42e   :  { %14584 = vst [vmem:[#allocation35_spill] sm:$0xff] %v10438_v62  ;;  %v10448_v29 = vmax.f32 %v14591_v7, %v1992_v44  ;;  %v14597_v44 = vld [vmem:[#allocation97_spill] sm:$0xff]  ;;  %v14602_v18 = vmax.f32 %v14600_v11, %v14601_v50 }
 0x42f   :  { %v14598_v7 = vmax.f32 %v14596_v42, %v14597_v44  ;;  %v14608_v20 = vld [vmem:[#allocation125_spill] sm:$0xff] }
 0x430   :  { %14592 = vst [vmem:[#allocation88_spill] sm:$0xff] %v10448_v29  ;;  %v10472_v14 = vmax.f32 %v14602_v18, %v1995_v38  ;;  %v14605_v29 = vld [vmem:[#allocation211_spill] sm:$0xff]  ;;  %v14609_v38 = vld [vmem:[#allocation152_spill] sm:$0xff]  ;;  %v14616_v11 = vld [vmem:[#allocation41_spill] sm:$0xff] }
 0x431   :  { %v10467_v16 = vmax.f32 %v14598_v7, %v1994_v28  ;;  %v14606_v4 = vmax.f32 %v14604_v36, %v14605_v29  ;;  %v2013_v28 = vld [vmem:[%s11197_s0 + $0x558] sm:$0x1]  ;;  %v14610_v31 = vmax.f32 %v14608_v20, %v14609_v38  ;;  %v14611_v29 = vld [vmem:[#allocation74_spill] sm:$0xff] }
 0x432   :  { %14603 = vst [vmem:[#allocation143_spill] sm:$0xff] %v10472_v14  ;;  %v14615_v7 = vld [vmem:[#allocation18_spill] sm:$0xff]  ;;  %v2015_v20 = vld [vmem:[%s11197_s0 + $0x578] sm:$0x1] }
 0x433   :  { %14599 = vst [vmem:[#allocation57_spill] sm:$0xff] %v10467_v16  ;;  %v10477_v62 = vmax.f32 %v14606_v4, %v1996_v17  ;;  %v10491_v42 = vmax.f32 %v14610_v31, %v1997_v24  ;;  %v14612_v17 = vld [vmem:[#allocation210_spill] sm:$0xff]  ;;  %v14617_v50 = vmax.f32 %v14615_v7, %v14616_v11  ;;  %v2014_v24 = vld [vmem:[%s11197_s0 + $0x568] sm:$0x1]  ;;  %v14630_v7 = vld [vmem:[#allocation45_spill] sm:$0xff] }
 0x434   :  { %v14613_v4 = vmax.f32 %v14611_v29, %v14612_v17  ;;  %v14619_v36 = vld [vmem:[#allocation182_spill] sm:$0xff] }
 0x435   :  { %14607 = vst [vmem:[#allocation111_spill] sm:$0xff] %v10477_v62  ;;  %v10501_v18 = vmax.f32 %v14617_v50, %v1999_v30  ;;  %v14620_v62 = vld [vmem:[#allocation106_spill] sm:$0xff]  ;;  %v14624_v30 = vld [vmem:[#allocation156_spill] sm:$0xff] }
 0x436   :  { %v10496_v44 = vmax.f32 %v14613_v4, %v1998_v33  ;;  %v14621_v14 = vmax.f32 %v14619_v36, %v14620_v62  ;;  %v2016_v33 = vld [vmem:[%s11197_s0 + $0x588] sm:$0x1]  ;;  %v14623_v38 = vld [vmem:[#allocation126_spill] sm:$0xff] }
 0x437   :  { %14618 = vst [vmem:[#allocation62_spill] sm:$0xff] %v10501_v18  ;;  %v14625_v31 = vmax.f32 %v14623_v38, %v14624_v30  ;;  %v14626_v62 = vld [vmem:[#allocation71_spill] sm:$0xff]  ;;  %v14633_v36 = vld [vmem:[#allocation186_spill] sm:$0xff] }
 0x438   :  { %14614 = vst [vmem:[#allocation201_spill] sm:$0xff] %v10496_v44  ;;  %v10506_v16 = vmax.f32 %v14621_v14, %v2000_v32  ;;  %v14627_v32 = vld [vmem:[#allocation212_spill] sm:$0xff]  ;;  %v14629_v4 = vld [vmem:[#allocation15_spill] sm:$0xff] }
 0x439   :  { %v10520_v29 = vmax.f32 %v14625_v31, %v2001_v56  ;;  %v14628_v14 = vmax.f32 %v14626_v62, %v14627_v32  ;;  %v14631_v11 = vmax.f32 %v14629_v4, %v14630_v7  ;;  %v2017_v56 = vld [vmem:[%s11197_s0 + $0x598] sm:$0x1]  ;;  %v2018_v38 = vld [vmem:[%s11197_s0 + $0x5a8] sm:$0x1] }
 0x43a   :  { %14622 = vst [vmem:[#allocation32_spill] sm:$0xff] %v10506_v16  ;;  %v14634_v16 = vld [vmem:[#allocation103_spill] sm:$0xff] }
 0x43b   :  { %v10525_v17 = vmax.f32 %v14628_v14, %v2002_v40  ;;  %v10530_v50 = vmax.f32 %v14631_v11, %v2003_v63  ;;  %v14635_v18 = vmax.f32 %v14633_v36, %v14634_v16  ;;  %v2019_v40 = vld [vmem:[%s11197_s0 + $0x5b8] sm:$0x1]  ;;  %v14639_v16 = vld [vmem:[#allocation75_spill] sm:$0xff]  ;;  %v14646_v36 = vld [vmem:[#allocation46_spill] sm:$0xff] }
 0x43c   :  { %v14637_v63 = vld [vmem:[#allocation153_spill] sm:$0xff]  ;;  %v14642_v32 = vld [vmem:[#allocation19_spill] sm:$0xff] }
 0x43d   :  { %14632 = vst [vmem:[#allocation6_spill] sm:$0xff] %v10530_v50  ;;  %v10535_v44 = vmax.f32 %v14635_v18, %v2004_v35  ;;  %v14638_v30 = vmax.f32 %v14291_v59, %v14637_v63  ;;  %v14640_v35 = vld [vmem:[#allocation215_spill] sm:$0xff]  ;;  %v14643_v14 = vld [vmem:[#allocation109_spill] sm:$0xff] }
 0x43e   :  { %v14641_v18 = vmax.f32 %v14639_v16, %v14640_v35  ;;  %v14644_v4 = vmax.f32 %v14642_v32, %v14643_v14  ;;  %v14645_v11 = vld [vmem:[#allocation183_spill] sm:$0xff]  ;;  %v14651_v16 = vld [vmem:[#allocation213_spill] sm:$0xff]  ;;  %v14653_v32 = vld [vmem:[#allocation16_spill] sm:$0xff] }
 0x43f   :  { %14636 = vst [vmem:[#allocation92_spill] sm:$0xff] %v10535_v44  ;;  %v10549_v31 = vmax.f32 %v14638_v30, %v2005_v61  ;;  %v14647_v44 = vmax.f32 %v14645_v11, %v14646_v36  ;;  %v2020_v59 = vld [vmem:[%s11197_s0 + $0x5c8] sm:$0x1]  ;;  %v2021_v61 = vld [vmem:[%s11197_s0 + $0x5d8] sm:$0x1]  ;;  %v14650_v30 = vld [vmem:[#allocation72_spill] sm:$0xff] }
 0x440   :  { %v10554_v62 = vmax.f32 %v14641_v18, %v2006_v52  ;;  %v10559_v7 = vmax.f32 %v14644_v4, %v2007_v10  ;;  %v2022_v52 = vld [vmem:[%s11197_s0 + $0x5e8] sm:$0x1]  ;;  %v14648_v10 = vmax.f32 %v8676_v23, %v9527_v5  ;;  %v14652_v35 = vmax.f32 %v14650_v30, %v14651_v16  ;;  %v14654_v14 = vld [vmem:[#allocation157_spill] sm:$0xff]  ;;  %v14659_v36 = vld [vmem:[#allocation110_spill] sm:$0xff] }
 0x441   :  { %v10564_v50 = vmax.f32 %v14647_v44, %v2008_v8  ;;  %v14649_v8 = vmax.f32 %v14298_v34, %v9532_v48  ;;  %v14655_v4 = vmax.f32 %v14653_v32, %v14654_v14  ;;  %v2023_v23 = vld [vmem:[%s11197_s0 + $0x5f8] sm:$0x1]  ;;  %v2024_v5 = vld [vmem:[%s11197_s0 + $0x608] sm:$0x1]  ;;  %v14656_v34 = vmax.f32 %v8708_v22, %v9555_v13  ;;  %v14662_v16 = vld [vmem:[#allocation50_spill] sm:$0xff] }
 0x442   :  { %v10578_v63 = vmax.f32 %v14648_v10, %v2009_v15  ;;  %v10588_v18 = vmax.f32 %v14652_v35, %v2011_v51  ;;  %v2025_v48 = vld [vmem:[%s11197_s0 + $0x618] sm:$0x1]  ;;  %v14661_v30 = vld [vmem:[#allocation131_spill] sm:$0xff]  ;;  %v14667_v14 = vld [vmem:[#allocation216_spill] sm:$0xff] }
 0x443   :  { %v10583_v44 = vmax.f32 %v14649_v8, %v2010_v37  ;;  %v10593_v11 = vmax.f32 %v14655_v4, %v2012_v45  ;;  %v10607_v15 = vmax.f32 %v14656_v34, %v2013_v28  ;;  %v14657_v37 = vmax.f32 %v8713_v19, %v9560_v26  ;;  %v14658_v45 = vld [vmem:[#allocation187_spill] sm:$0xff]  ;;  %v2027_v19 = vld [vmem:[%s11197_s0 + $0x638] sm:$0x1] }
 0x444   :  { %v14660_v10 = vmax.f32 %v14658_v45, %v14659_v36  ;;  %v14663_v35 = vmax.f32 %v14661_v30, %v14662_v16  ;;  %v2026_v22 = vld [vmem:[%s11197_s0 + $0x628] sm:$0x1]  ;;  %v14664_v26 = vmax.f32 %v8740_v21, %v9583_v6  ;;  %v14670_v45 = vld [vmem:[#allocation158_spill] sm:$0xff]  ;;  %v2029_v21 = vld [vmem:[%s11197_s0 + $0x658] sm:$0x1] }
 0x445   :  { %v10612_v51 = vmax.f32 %v14657_v37, %v2014_v24  ;;  %v2028_v13 = vld [vmem:[%s11197_s0 + $0x648] sm:$0x1]  ;;  %v14665_v24 = vmax.f32 %v8745_v53, %v9588_v58  ;;  %v14669_v37 = vld [vmem:[#allocation20_spill] sm:$0xff]  ;;  %v2031_v6 = vld [vmem:[%s11197_s0 + $0x678] sm:$0x1]  ;;  %v14672_v58 = vmax.f32 %v8772_v25, %v9611_v43  ;;  %v14680_v43 = vmax.f32 %v8804_v1, %v9639_v2 }
 0x446   :  { %v10617_v8 = vmax.f32 %v14660_v10, %v2015_v20  ;;  %v10622_v32 = vmax.f32 %v14663_v35, %v2016_v33  ;;  %v10636_v28 = vmax.f32 %v14664_v26, %v2017_v56  ;;  %v14666_v33 = vld [vmem:[#allocation76_spill] sm:$0xff]  ;;  %v14671_v36 = vmax.f32 %v14669_v37, %v14670_v45  ;;  %v2030_v53 = vld [vmem:[%s11197_s0 + $0x668] sm:$0x1]  ;;  %v14675_v30 = vld [vmem:[#allocation214_spill] sm:$0xff] }
 0x447   :  { %v10641_v20 = vmax.f32 %v14665_v24, %v2018_v38  ;;  %v14668_v4 = vmax.f32 %v14666_v33, %v14667_v14  ;;  %v10665_v56 = vmax.f32 %v14672_v58, %v2021_v61  ;;  %v14673_v38 = vmax.f32 %v8777_v39, %v9616_v12  ;;  %v14677_v26 = vld [vmem:[#allocation128_spill] sm:$0xff]  ;;  %v2032_v25 = vld [vmem:[%s11197_s0 + $0x688] sm:$0x1]  ;;  %v2033_v39 = vld [vmem:[%s11197_s0 + $0x698] sm:$0x1] }
 0x448   :  { %v10651_v10 = vmax.f32 %v14671_v36, %v2020_v59  ;;  %v14674_v59 = vld [vmem:[#allocation184_spill] sm:$0xff]  ;;  %v2034_v12 = vld [vmem:[%s11197_s0 + $0x6a8] sm:$0x1]  ;;  %v10694_v61 = vmax.f32 %v14680_v43, %v2025_v48  ;;  %v14684_v37 = vld [vmem:[#allocation217_spill] sm:$0xff]  ;;  %v14689_v48 = vmax.f32 %v8836_v9, %v9667_v0  ;;  %v14697_v0 = vmax.f32 %v8868_v55, %v9695_v49 }
 0x449   :  { %v10646_v34 = vmax.f32 %v14668_v4, %v2019_v40  ;;  %v10670_v40 = vmax.f32 %v14673_v38, %v2022_v52  ;;  %v14676_v16 = vmax.f32 %v14674_v59, %v14675_v30  ;;  %v14678_v24 = vld [vmem:[#allocation116_spill] sm:$0xff]  ;;  %v14683_v4 = vld [vmem:[#allocation73_spill] sm:$0xff]  ;;  %v14687_v38 = vld [vmem:[#allocation163_spill] sm:$0xff] }
 0x44a   :  { %v14679_v33 = vmax.f32 %v14677_v26, %v14678_v24  ;;  %v14681_v52 = vld [vmem:[#allocation48_spill] sm:$0xff]  ;;  %v14685_v45 = vmax.f32 %v14683_v4, %v14684_v37  ;;  %v14686_v58 = vld [vmem:[#allocation17_spill] sm:$0xff]  ;;  %v2038_v9 = vld [vmem:[%s11197_s0 + $0x6e8] sm:$0x1] }
 0x44b   :  { %v10675_v35 = vmax.f32 %v14676_v16, %v2023_v23  ;;  %v14682_v23 = vmax.f32 %v8809_v57, %v14681_v52  ;;  %v14688_v59 = vmax.f32 %v14686_v58, %v14687_v38  ;;  %v2035_v1 = vld [vmem:[%s11197_s0 + $0x6b8] sm:$0x1]  ;;  %v2036_v57 = vld [vmem:[%s11197_s0 + $0x6c8] sm:$0x1]  ;;  %v14691_v16 = vld [vmem:[#allocation188_spill] sm:$0xff] }
 0x44c   :  { %v10680_v14 = vmax.f32 %v14679_v33, %v2024_v5  ;;  %v10704_v36 = vmax.f32 %v14685_v45, %v2027_v19  ;;  %v2037_v2 = vld [vmem:[%s11197_s0 + $0x6d8] sm:$0x1]  ;;  %v14690_v19 = vmax.f32 %v8841_v60, %v9672_v47  ;;  %v14694_v43 = vld [vmem:[#allocation132_spill] sm:$0xff]  ;;  %v14695_v52 = vld [vmem:[#allocation218_spill] sm:$0xff] }
 0x44d   :  { %v10699_v5 = vmax.f32 %v14682_v23, %v2026_v22  ;;  %v10709_v30 = vmax.f32 %v14688_v59, %v2028_v13  ;;  %v10723_v22 = vmax.f32 %v14689_v48, %v2029_v21  ;;  %v14692_v26 = vld [vmem:[#allocation113_spill] sm:$0xff]  ;;  %v14696_v23 = vmax.f32 %v14694_v43, %v14695_v52  ;;  %v2040_v47 = vld [vmem:[%s11197_s0 + $0x708] sm:$0x1] }
 0x44e   :  { %v10728_v13 = vmax.f32 %v14690_v19, %v2030_v53  ;;  %v14693_v24 = vmax.f32 %v14691_v16, %v14692_v26  ;;  %v2039_v60 = vld [vmem:[%s11197_s0 + $0x6f8] sm:$0x1]  ;;  %v10752_v21 = vmax.f32 %v14697_v0, %v2033_v39  ;;  %v14701_v45 = vld [vmem:[#allocation219_spill] sm:$0xff] }
 0x44f   :  { %v10738_v4 = vmax.f32 %v14696_v23, %v2032_v25  ;;  %v14698_v53 = vld [vmem:[#allocation53_spill] sm:$0xff]  ;;  %v14706_v39 = vld [vmem:[#allocation123_spill] sm:$0xff]  ;;  %v14713_v23 = vld [vmem:[#allocation220_spill] sm:$0xff] }
 0x450   :  { %v10733_v33 = vmax.f32 %v14693_v24, %v2031_v6  ;;  %v14699_v6 = vmax.f32 %v8873_v54, %v14698_v53  ;;  %v14700_v37 = vld [vmem:[#allocation77_spill] sm:$0xff]  ;;  %v2042_v54 = vld [vmem:[%s11197_s0 + $0x728] sm:$0x1] }
 0x451   :  { %v14702_v58 = vmax.f32 %v14700_v37, %v14701_v45  ;;  %v14703_v59 = vld [vmem:[#allocation21_spill] sm:$0xff]  ;;  %v14717_v37 = vld [vmem:[#allocation170_spill] sm:$0xff] }
 0x452   :  { %v10757_v25 = vmax.f32 %v14699_v6, %v2034_v12  ;;  %v14704_v48 = vld [vmem:[#allocation161_spill] sm:$0xff]  ;;  %v14707_v12 = vmax.f32 %v8902_v46, %v14706_v39  ;;  %v14716_v6 = vld [vmem:[#allocation78_spill] sm:$0xff]  ;;  %v2044_v46 = vld [vmem:[%s11197_s0 + $0x748] sm:$0x1] }
 0x453   :  { %v10762_v38 = vmax.f32 %v14702_v58, %v2035_v1  ;;  %v14705_v19 = vmax.f32 %v14703_v59, %v14704_v48  ;;  %v2041_v55 = vld [vmem:[%s11197_s0 + $0x718] sm:$0x1]  ;;  %v14718_v45 = vmax.f32 %v14716_v6, %v14717_v37  ;;  %v14720_v59 = vld [vmem:[#allocation26_spill] sm:$0xff]  ;;  %v14733_v6 = vld [vmem:[#allocation167_spill] sm:$0xff] }
 0x454   :  { %v2043_v49 = vld [vmem:[%s11197_s0 + $0x738] sm:$0x1]  ;;  %v10781_v1 = vmax.f32 %v14707_v12, %v2037_v2 }
 0x455   :  { %v10767_v16 = vmax.f32 %v14705_v19, %v2036_v57  ;;  %v14708_v26 = vld [vmem:[#allocation185_spill] sm:$0xff]  ;;  %v14709_v57 = vld [vmem:[#allocation54_spill] sm:$0xff]  ;;  %v10796_v58 = vmax.f32 %v14718_v45, %v2040_v47  ;;  %v14725_v47 = vld [vmem:[#allocation59_spill] sm:$0xff] }
 0x456   :  { %v14710_v24 = vmax.f32 %v14708_v26, %v14709_v57  ;;  %v14712_v52 = vld [vmem:[#allocation129_spill] sm:$0xff]  ;;  %v14728_v57 = vld [vmem:[#allocation134_spill] sm:$0xff] }
 0x457   :  { %v14714_v0 = vmax.f32 %v14712_v52, %v14713_v23  ;;  %14719 = vst [vmem:[#allocation115_spill] sm:$0xff] %v10796_v58  ;;  %v2045_v2 = vld [vmem:[%s11197_s0 + $0x758] sm:$0x1] }
 0x458   :  { %v10786_v43 = vmax.f32 %v14710_v24, %v2038_v9  ;;  %v2046_v9 = vld [vmem:[%s11197_s0 + $0x768] sm:$0x1]  ;;  %v14724_v39 = vld [vmem:[#allocation193_spill] sm:$0xff] }
 0x459   :  { %v10791_v53 = vmax.f32 %v14714_v0, %v2039_v60  ;;  %v14721_v60 = vld [vmem:[#allocation120_spill] sm:$0xff]  ;;  %v14726_v12 = vmax.f32 %v14724_v39, %v14725_v47  ;;  %v14729_v24 = vld [vmem:[#allocation87_spill] sm:$0xff]  ;;  %v14740_v47 = vld [vmem:[#allocation194_spill] sm:$0xff] }
 0x45a   :  { %14711 = vst [vmem:[#allocation173_spill] sm:$0xff] %v10786_v43  ;;  %v14722_v48 = vmax.f32 %v14720_v59, %v14721_v60  ;;  %v14730_v52 = vmax.f32 %v14728_v57, %v14729_v24  ;;  %v14732_v0 = vld [vmem:[#allocation79_spill] sm:$0xff] }
 0x45b   :  { %14715 = vst [vmem:[#allocation147_spill] sm:$0xff] %v10791_v53  ;;  %v10815_v26 = vmax.f32 %v14726_v12, %v2042_v54  ;;  %v14734_v37 = vmax.f32 %v14732_v0, %v14733_v6  ;;  %v2048_v59 = vld [vmem:[%s11197_s0 + $0x788] sm:$0x1]  ;;  %v2049_v54 = vld [vmem:[%s11197_s0 + $0x798] sm:$0x1] }
 0x45c   :  { %v10810_v19 = vmax.f32 %v14722_v48, %v2041_v55  ;;  %v10820_v23 = vmax.f32 %v14730_v52, %v2043_v49  ;;  %v2047_v55 = vld [vmem:[%s11197_s0 + $0x778] sm:$0x1]  ;;  %v14736_v60 = vld [vmem:[#allocation27_spill] sm:$0xff]  ;;  %v14745_v52 = vld [vmem:[#allocation150_spill] sm:$0xff] }
 0x45d   :  { %14727 = vst [vmem:[#allocation66_spill] sm:$0xff] %v10815_v26  ;;  %v10825_v45 = vmax.f32 %v14734_v37, %v2044_v46  ;;  %v14737_v49 = vld [vmem:[#allocation89_spill] sm:$0xff]  ;;  %v14741_v46 = vld [vmem:[#allocation56_spill] sm:$0xff]  ;;  %v14744_v24 = vld [vmem:[#allocation135_spill] sm:$0xff] }
 0x45e   :  { %14723 = vst [vmem:[#allocation203_spill] sm:$0xff] %v10810_v19  ;;  %v14738_v48 = vmax.f32 %v14736_v60, %v14737_v49  ;;  %v14742_v12 = vmax.f32 %v14740_v47, %v14741_v46  ;;  %v14746_v0 = vmax.f32 %v14744_v24, %v14745_v52  ;;  %v14748_v37 = vld [vmem:[#allocation80_spill] sm:$0xff]  ;;  %v2051_v60 = vld [vmem:[%s11197_s0 + $0x7b8] sm:$0x1]  ;;  %v14761_v24 = vld [vmem:[#allocation226_spill] sm:$0xff] }
 0x45f   :  { %14731 = vst [vmem:[#allocation36_spill] sm:$0xff] %v10820_v23  ;;  %v14752_v49 = vld [vmem:[#allocation28_spill] sm:$0xff] }
 0x460   :  { %14735 = vst [vmem:[#allocation10_spill] sm:$0xff] %v10825_v45  ;;  %v10839_v39 = vmax.f32 %v14738_v48, %v2045_v2  ;;  %v10844_v57 = vmax.f32 %v14742_v12, %v2046_v9  ;;  %v10849_v6 = vmax.f32 %v14746_v0, %v2047_v55  ;;  %v14749_v45 = vld [vmem:[#allocation172_spill] sm:$0xff]  ;;  %v2050_v2 = vld [vmem:[%s11197_s0 + $0x7a8] sm:$0x1] }
 0x461   :  { %v14750_v58 = vmax.f32 %v14748_v37, %v14749_v45  ;;  %v2052_v9 = vld [vmem:[%s11197_s0 + $0x7c8] sm:$0x1]  ;;  %v14760_v12 = vld [vmem:[#allocation136_spill] sm:$0xff]  ;;  %v14764_v37 = vld [vmem:[#allocation81_spill] sm:$0xff] }
 0x462   :  { %14739 = vst [vmem:[#allocation93_spill] sm:$0xff] %v10839_v39  ;;  %v14753_v55 = vld [vmem:[#allocation151_spill] sm:$0xff]  ;;  %v14762_v52 = vmax.f32 %v14760_v12, %v14761_v24  ;;  %v14777_v12 = vld [vmem:[#allocation130_spill] sm:$0xff] }
 0x463   :  { %14743 = vst [vmem:[#allocation174_spill] sm:$0xff] %v10844_v57  ;;  %v10854_v23 = vmax.f32 %v14750_v58, %v2048_v59  ;;  %v14754_v48 = vmax.f32 %v14752_v49, %v14753_v55  ;;  %v14756_v45 = vld [vmem:[#allocation195_spill] sm:$0xff]  ;;  %v14757_v58 = vld [vmem:[#allocation61_spill] sm:$0xff]  ;;  %v14793_v39 = vld [vmem:[#allocation138_spill] sm:$0xff] }
 0x464   :  { %14747 = vst [vmem:[#allocation144_spill] sm:$0xff] %v10849_v6  ;;  %v14758_v59 = vmax.f32 %v14756_v45, %v14757_v58  ;;  %v10878_v0 = vmax.f32 %v14762_v52, %v2051_v60  ;;  %v2054_v49 = vld [vmem:[%s11197_s0 + $0x7e8] sm:$0x1]  ;;  %v14768_v55 = vld [vmem:[#allocation29_spill] sm:$0xff] }
 0x465   :  { %14751 = vst [vmem:[#allocation112_spill] sm:$0xff] %v10854_v23  ;;  %v10868_v47 = vmax.f32 %v14754_v48, %v2049_v54  ;;  %v14765_v23 = vld [vmem:[#allocation169_spill] sm:$0xff]  ;;  %v14769_v60 = vld [vmem:[#allocation227_spill] sm:$0xff] }
 0x466   :  { %v10873_v46 = vmax.f32 %v14758_v59, %v2050_v2  ;;  %14763 = vst [vmem:[#allocation33_spill] sm:$0xff] %v10878_v0  ;;  %v14766_v6 = vmax.f32 %v14764_v37, %v14765_v23  ;;  %v2053_v54 = vld [vmem:[%s11197_s0 + $0x7d8] sm:$0x1]  ;;  %v14770_v48 = vmax.f32 %v14768_v55, %v14769_v60  ;;  %v14772_v23 = vld [vmem:[#allocation196_spill] sm:$0xff]  ;;  %v14781_v0 = vld [vmem:[#allocation22_spill] sm:$0xff] }
 0x467   :  { %14755 = vst [vmem:[#allocation202_spill] sm:$0xff] %v10868_v47  ;;  %v2055_v2 = vld [vmem:[%s11197_s0 + $0x7f8] sm:$0x1]  ;;  %v14780_v37 = vld [vmem:[#allocation224_spill] sm:$0xff]  ;;  %v14782_v47 = vld [vmem:[#allocation47_spill] sm:$0xff] }
 0x468   :  { %14759 = vst [vmem:[#allocation63_spill] sm:$0xff] %v10873_v46  ;;  %v10883_v57 = vmax.f32 %v14766_v6, %v2052_v9  ;;  %v10897_v45 = vmax.f32 %v14770_v48, %v2053_v54  ;;  %v14773_v6 = vld [vmem:[#allocation228_spill] sm:$0xff]  ;;  %v14776_v59 = vld [vmem:[#allocation137_spill] sm:$0xff]  ;;  %v2315_v46 = vrot.slane %v14781_v0, 6  ;;  %v2318_v55 = vrot.slane %v14782_v47, 5  ;;  %v14783_v54 = vld [vmem:[#allocation127_spill] sm:$0xff] }
 0x469   :  { %v14774_v9 = vmax.f32 %v14772_v23, %v14773_v6  ;;  %v14778_v24 = vmax.f32 %v14776_v59, %v14777_v12  ;;  %v14784_v48 = vld [vmem:[#allocation189_spill] sm:$0xff]  ;;  %v14787_v0 = vld [vmem:[#allocation162_spill] sm:$0xff] }
 0x46a   :  { %14767 = vst [vmem:[#allocation7_spill] sm:$0xff] %v10883_v57  ;;  %v2312_v57 = vrot.slane %v14780_v37, 7  ;;  %v14785_v6 = vld [vmem:[#allocation225_spill] sm:$0xff] }
 0x46b   :  { %14771 = vst [vmem:[#allocation94_spill] sm:$0xff] %v10897_v45  ;;  %v10902_v58 = vmax.f32 %v14774_v9, %v2054_v49  ;;  %v10907_v52 = vmax.f32 %v14778_v24, %v2055_v2  ;;  %v2321_v49 = vrot.slane %v14784_v48, 4  ;;  %v2324_v2 = vrot.slane %v14785_v6, 3  ;;  %v14786_v9 = vld [vmem:[#allocation133_spill] sm:$0xff] }
 0x46c   :  { %v2314_v60 = vsel %vm2313_vm0, %v2312_v57, %v14783_v54  ;;  %v2327_v59 = vrot.slane %v14786_v9, 2  ;;  %v2330_v24 = vrot.slane %v14787_v0, 1  ;;  %v14788_v57 = vld [vmem:[#allocation101_spill] sm:$0xff]  ;;  %v14789_v54 = vld [vmem:[#allocation23_spill] sm:$0xff]  ;;  %v14794_v0 = vld [vmem:[#allocation82_spill] sm:$0xff] }
 0x46d   :  { %14775 = vst [vmem:[#allocation178_spill] sm:$0xff] %v10902_v58  ;;  %v2317_v23 = vsel %vm2316_vm1, %v2315_v46, %v2314_v60  ;;  %v2333_v37 = vrot.slane %v14788_v57, 7  ;;  %v2335_v48 = vrot.slane %v14789_v54, 6  ;;  %v14791_v60 = vld [vmem:[#allocation190_spill] sm:$0xff]  ;;  %v14792_v45 = vld [vmem:[#allocation221_spill] sm:$0xff] }
 0x46e   :  { %14779 = vst [vmem:[#allocation148_spill] sm:$0xff] %v10907_v52  ;;  %v2320_v12 = vsel %vm2319_vm2, %v2318_v55, %v2317_v23  ;;  %v14790_v52 = vld [vmem:[#allocation51_spill] sm:$0xff]  ;;  %v2339_v6 = vrot.slane %v14791_v60, 4  ;;  %v2341_v9 = vrot.slane %v14792_v45, 3  ;;  %v2343_v55 = vrot.slane %v14793_v39, 2  ;;  %v14796_v57 = vld [vmem:[#allocation102_spill] sm:$0xff] }
 0x46f   :  { %v2323_v47 = vsel %vm2322_vm3, %v2321_v49, %v2320_v12  ;;  %v2337_v58 = vrot.slane %v14790_v52, 5  ;;  %v2334_v26 = vsel %vm2313_vm0, %v2333_v37, %v14794_v0  ;;  %v14795_v49 = vld [vmem:[#allocation159_spill] sm:$0xff]  ;;  %v2347_v19 = vrot.slane %v14796_v57, 7  ;;  %v14798_v60 = vld [vmem:[#allocation52_spill] sm:$0xff]  ;;  %v14801_v37 = vld [vmem:[#allocation222_spill] sm:$0xff] }
 0x470   :  { %v2326_v46 = vsel %vm2325_vm4, %v2324_v2, %v2323_v47  ;;  %v2345_v12 = vrot.slane %v14795_v49, 1  ;;  %v2336_v52 = vsel %vm2316_vm1, %v2335_v48, %v2334_v26  ;;  %v14797_v2 = vld [vmem:[#allocation24_spill] sm:$0xff]  ;;  %v2351_v53 = vrot.slane %v14798_v60, 5  ;;  %v14799_v39 = vld [vmem:[#allocation83_spill] sm:$0xff]  ;;  %v14805_v60 = vld [vmem:[#allocation25_spill] sm:$0xff] }
 0x471   :  { %v2329_v23 = vsel %vm2328_vm5, %v2327_v59, %v2326_v46  ;;  %v2349_v47 = vrot.slane %v14797_v2, 6  ;;  %v2338_v45 = vsel %vm2319_vm2, %v2337_v58, %v2336_v52  ;;  %v2348_v59 = vsel %vm2313_vm0, %v2347_v19, %v14799_v39  ;;  %v14800_v46 = vld [vmem:[#allocation191_spill] sm:$0xff]  ;;  %v14803_v49 = vld [vmem:[#allocation160_spill] sm:$0xff] }
 0x472   :  { %v2332_v54 = vsel %vm2331_vm6, %v2330_v24, %v2329_v23  ;;  %v2353_v43 = vrot.slane %v14800_v46, 4  ;;  %v2355_v0 = vrot.slane %v14801_v37, 3  ;;  %v2340_v24 = vsel %vm2322_vm3, %v2339_v6, %v2338_v45  ;;  %v14802_v48 = vld [vmem:[#allocation139_spill] sm:$0xff]  ;;  %v14806_v37 = vld [vmem:[#allocation49_spill] sm:$0xff]  ;;  %v14807_v45 = vld [vmem:[#allocation192_spill] sm:$0xff] }
 0x473   :  { %2559 = vst [vmem:[%s11198_s1] sm:$0xff] %v2332_v54  ;;  %v2350_v26 = vsel %vm2316_vm1, %v2349_v47, %v2348_v59  ;;  %v2357_v23 = vrot.slane %v14802_v48, 2  ;;  %v2359_v57 = vrot.slane %v14803_v49, 1  ;;  %v2342_v58 = vsel %vm2325_vm4, %v2341_v9, %v2340_v24  ;;  %v14804_v52 = vld [vmem:[#allocation107_spill] sm:$0xff]  ;;  %v14808_v49 = vld [vmem:[#allocation84_spill] sm:$0xff] }
 0x474   :  { %v2352_v19 = vsel %vm2319_vm2, %v2351_v53, %v2350_v26  ;;  %v2361_v2 = vrot.slane %v14804_v52, 7  ;;  %v2363_v39 = vrot.slane %v14805_v60, 6  ;;  %v2344_v46 = vsel %vm2328_vm5, %v2343_v55, %v2342_v58  ;;  %v14809_v53 = vld [vmem:[#allocation223_spill] sm:$0xff]  ;;  %v14810_v55 = vld [vmem:[#allocation140_spill] sm:$0xff] }
 0x475   :  { %v2354_v54 = vsel %vm2322_vm3, %v2353_v43, %v2352_v19  ;;  %v2365_v6 = vrot.slane %v14806_v37, 5  ;;  %v2367_v47 = vrot.slane %v14807_v45, 4  ;;  %v2346_v59 = vsel %vm2331_vm6, %v2345_v12, %v2344_v46  ;;  %v14811_v43 = vld [vmem:[#allocation164_spill] sm:$0xff]  ;;  %v14813_v46 = vld [vmem:[#allocation86_spill] sm:$0xff]  ;;  %v14814_v37 = vld [vmem:[#allocation165_spill] sm:$0xff] }
 0x476   :  { %v2356_v48 = vsel %vm2325_vm4, %v2355_v0, %v2354_v54  ;;  %v2362_v9 = vsel %vm2313_vm0, %v2361_v2, %v14808_v49  ;;  %v2369_v24 = vrot.slane %v14809_v53, 3  ;;  %v2371_v58 = vrot.slane %v14810_v55, 2  ;;  %2560 = vst [vmem:[%s11198_s1 + $0x8] sm:$0xff] %v2346_v59  ;;  %v14812_v60 = vld [vmem:[#allocation104_spill] sm:$0xff]  ;;  %v14815_v45 = vld [vmem:[#allocation30_spill] sm:$0xff]  ;;  %v14817_v59 = vld [vmem:[#allocation85_spill] sm:$0xff] }
 0x477   :  { %v2358_v26 = vsel %vm2328_vm5, %v2357_v23, %v2356_v48  ;;  %v2364_v52 = vsel %vm2316_vm1, %v2363_v39, %v2362_v9  ;;  %v2373_v19 = vrot.slane %v14811_v43, 1  ;;  %v2375_v2 = vrot.slane %v14812_v60, 7  ;;  %v14816_v49 = vld [vmem:[#allocation2_spill] sm:$0xff]  ;;  %v14818_v53 = vld [vmem:[#allocation197_spill] sm:$0xff] }
 0x478   :  { %v2360_v12 = vsel %vm2331_vm6, %v2359_v57, %v2358_v26  ;;  %v2366_v0 = vsel %vm2319_vm2, %v2365_v6, %v2364_v52  ;;  %v2377_v54 = vrot.slane %v14813_v46, 6  ;;  %v2379_v39 = vrot.slane %v14814_v37, 5  ;;  %v14819_v52 = vld [vmem:[#allocation58_spill] sm:$0xff] }
 0x479   :  { %v2368_v23 = vsel %vm2322_vm3, %v2367_v47, %v2366_v0  ;;  %v2381_v48 = vrot.slane %v14815_v45, 4  ;;  %v2383_v9 = vrot.slane %v14816_v49, 3  ;;  %2561 = vst [vmem:[%s11198_s1 + $0x10] sm:$0xff] %v2360_v12  ;;  %v2376_v6 = vsel %vm2313_vm0, %v2375_v2, %v14817_v59  ;;  %v14820_v0 = vld [vmem:[#allocation108_spill] sm:$0xff]  ;;  %v14821_v46 = vld [vmem:[#allocation90_spill] sm:$0xff] }
 0x47a   :  { %v2370_v57 = vsel %vm2325_vm4, %v2369_v24, %v2368_v23  ;;  %v2385_v26 = vrot.slane %v14818_v53, 2  ;;  %v2387_v55 = vrot.slane %v14819_v52, 1  ;;  %v2378_v43 = vsel %vm2316_vm1, %v2377_v54, %v2376_v6  ;;  %v14822_v24 = vld [vmem:[#allocation166_spill] sm:$0xff]  ;;  %v14824_v53 = vld [vmem:[#allocation141_spill] sm:$0xff]  ;;  %v14826_v54 = vld [vmem:[#allocation199_spill] sm:$0xff] }
 0x47b   :  { %v2372_v47 = vsel %vm2328_vm5, %v2371_v58, %v2370_v57  ;;  %v2389_v60 = vrot.slane %v14820_v0, 7  ;;  %v2391_v37 = vrot.slane %v14821_v46, 6  ;;  %v2380_v12 = vsel %vm2319_vm2, %v2379_v39, %v2378_v43  ;;  %v14823_v49 = vld [vmem:[#allocation34_spill] sm:$0xff]  ;;  %v14825_v58 = vld [vmem:[#allocation4_spill] sm:$0xff]  ;;  %v14828_v0 = vld [vmem:[#allocation105_spill] sm:$0xff] }
 0x47c   :  { %v2374_v45 = vsel %vm2331_vm6, %v2373_v19, %v2372_v47  ;;  %v2393_v23 = vrot.slane %v14822_v24, 5  ;;  %v2395_v2 = vrot.slane %v14823_v49, 4  ;;  %v2382_v59 = vsel %vm2322_vm3, %v2381_v48, %v2380_v12  ;;  %v14827_v47 = vld [vmem:[#allocation55_spill] sm:$0xff]  ;;  %v14829_v12 = vld [vmem:[#allocation198_spill] sm:$0xff] }
 0x47d   :  { %v2390_v52 = vsel %vm2313_vm0, %v2389_v60, %v14824_v53  ;;  %v2397_v57 = vrot.slane %v14825_v58, 3  ;;  %v2399_v6 = vrot.slane %v14826_v54, 2  ;;  %2562 = vst [vmem:[%s11198_s1 + $0x18] sm:$0xff] %v2374_v45  ;;  %v2384_v19 = vsel %vm2325_vm4, %v2383_v9, %v2382_v59  ;;  %v14830_v49 = vld [vmem:[#allocation171_spill] sm:$0xff]  ;;  %v14831_v54 = vld [vmem:[#allocation142_spill] sm:$0xff] }
 0x47e   :  { %v2392_v39 = vsel %vm2316_vm1, %v2391_v37, %v2390_v52  ;;  %v2401_v43 = vrot.slane %v14827_v47, 1  ;;  %v2403_v46 = vrot.slane %v14828_v0, 7  ;;  %v2386_v48 = vsel %vm2328_vm5, %v2385_v26, %v2384_v19  ;;  %v14832_v37 = vld [vmem:[#allocation31_spill] sm:$0xff]  ;;  %v14835_v0 = vld [vmem:[#allocation60_spill] sm:$0xff] }
 0x47f   :  { %v2394_v60 = vsel %vm2319_vm2, %v2393_v23, %v2392_v39  ;;  %v2405_v24 = vrot.slane %v14829_v12, 6  ;;  %v2407_v53 = vrot.slane %v14830_v49, 5  ;;  %v2388_v58 = vsel %vm2331_vm6, %v2387_v55, %v2386_v48  ;;  %v14833_v26 = vld [vmem:[#allocation3_spill] sm:$0xff]  ;;  %v14836_v12 = vld [vmem:[#allocation114_spill] sm:$0xff]  ;;  %v14837_v49 = vld [vmem:[#allocation200_spill] sm:$0xff] }
 0x480   :  { %v2396_v45 = vsel %vm2322_vm3, %v2395_v2, %v2394_v60  ;;  %v2404_v9 = vsel %vm2313_vm0, %v2403_v46, %v14831_v54  ;;  %v2409_v59 = vrot.slane %v14832_v37, 4  ;;  %v2411_v19 = vrot.slane %v14833_v26, 3  ;;  %v14834_v23 = vld [vmem:[#allocation91_spill] sm:$0xff]  ;;  %2563 = vst [vmem:[%s11198_s1 + $0x20] sm:$0xff] %v2388_v58 }
 0x481   :  { %v2398_v52 = vsel %vm2325_vm4, %v2397_v57, %v2396_v45  ;;  %v2406_v47 = vsel %vm2316_vm1, %v2405_v24, %v2404_v9  ;;  %v2413_v39 = vrot.slane %v14834_v23, 2  ;;  %v2415_v46 = vrot.slane %v14835_v0, 1  ;;  %v14838_v9 = vld [vmem:[#allocation146_spill] sm:$0xff] }
 0x482   :  { %v2400_v55 = vsel %vm2328_vm5, %v2399_v6, %v2398_v52  ;;  %v2408_v2 = vsel %vm2319_vm2, %v2407_v53, %v2406_v47  ;;  %v2417_v48 = vrot.slane %v10404_v3, 7  ;;  %v2419_v24 = vrot.slane %v14836_v12, 6  ;;  %v14839_v6 = vld [vmem:[#allocation168_spill] sm:$0xff]  ;;  %v14841_v47 = vld [vmem:[#allocation5_spill] sm:$0xff] }
 0x483   :  { %v2402_v57 = vsel %vm2331_vm6, %v2401_v43, %v2400_v55  ;;  %v2410_v60 = vsel %vm2322_vm3, %v2409_v59, %v2408_v2  ;;  %v2421_v45 = vrot.slane %v14837_v49, 5  ;;  %v2423_v37 = vrot.slane %v14839_v6, 4  ;;  %v14840_v59 = vld [vmem:[#allocation35_spill] sm:$0xff]  ;;  %v14842_v2 = vld [vmem:[#allocation57_spill] sm:$0xff] }
 0x484   :  { %v2412_v54 = vsel %vm2325_vm4, %v2411_v19, %v2410_v60  ;;  %v2418_v58 = vsel %vm2313_vm0, %v2417_v48, %v14838_v9  ;;  %v2425_v53 = vrot.slane %v10433_v41, 3  ;;  %2564 = vst [vmem:[%s11198_s1 + $0x28] sm:$0xff] %v2402_v57  ;;  %v2427_v52 = vrot.slane %v14840_v59, 2  ;;  %v14843_v48 = vld [vmem:[#allocation143_spill] sm:$0xff] }
 0x485   :  { %v2414_v3 = vsel %vm2328_vm5, %v2413_v39, %v2412_v54  ;;  %v2420_v43 = vsel %vm2316_vm1, %v2419_v24, %v2418_v58  ;;  %v2429_v26 = vrot.slane %v14841_v47, 1  ;;  %v2431_v55 = vrot.slane %v10462_v27, 7  ;;  %v14844_v60 = vld [vmem:[#allocation111_spill] sm:$0xff]  ;;  %v14845_v24 = vld [vmem:[#allocation88_spill] sm:$0xff]  ;;  %v14846_v27 = vld [vmem:[#allocation201_spill] sm:$0xff] }
 0x486   :  { %v2416_v19 = vsel %vm2331_vm6, %v2415_v46, %v2414_v3  ;;  %v2422_v23 = vsel %vm2319_vm2, %v2421_v45, %v2420_v43  ;;  %v2433_v41 = vrot.slane %v14842_v2, 6  ;;  %v2435_v57 = vrot.slane %v14843_v48, 5  ;;  %v14847_v54 = vld [vmem:[#allocation62_spill] sm:$0xff]  ;;  %v14849_v47 = vld [vmem:[#allocation92_spill] sm:$0xff] }
 0x487   :  { %v2424_v0 = vsel %vm2322_vm3, %v2423_v37, %v2422_v23  ;;  %v2437_v39 = vrot.slane %v14844_v60, 4  ;;  %v2439_v12 = vrot.slane %v10491_v42, 3  ;;  %2565 = vst [vmem:[%s11198_s1 + $0x30] sm:$0xff] %v2416_v19  ;;  %v2432_v49 = vsel %vm2313_vm0, %v2431_v55, %v14845_v24  ;;  %v14850_v55 = vld [vmem:[#allocation32_spill] sm:$0xff] }
 0x488   :  { %v2426_v46 = vsel %vm2325_vm4, %v2425_v53, %v2424_v0  ;;  %v2441_v45 = vrot.slane %v14846_v27, 2  ;;  %v2443_v9 = vrot.slane %v14847_v54, 1  ;;  %v2434_v6 = vsel %vm2316_vm1, %v2433_v41, %v2432_v49  ;;  %v14848_v53 = vld [vmem:[#allocation6_spill] sm:$0xff] }
 0x489   :  { %v2428_v58 = vsel %vm2328_vm5, %v2427_v52, %v2426_v46  ;;  %v2445_v37 = vrot.slane %v10520_v29, 7  ;;  %v2447_v42 = vrot.slane %v10525_v17, 6  ;;  %v2436_v43 = vsel %vm2319_vm2, %v2435_v57, %v2434_v6 }
 0x48a   :  { %v2430_v3 = vsel %vm2331_vm6, %v2429_v26, %v2428_v58  ;;  %v2449_v59 = vrot.slane %v14848_v53, 5  ;;  %v2451_v19 = vrot.slane %v14849_v47, 4  ;;  %v2438_v23 = vsel %vm2322_vm3, %v2437_v39, %v2436_v43 }
 0x48b   :  { %v2446_v2 = vsel %vm2313_vm0, %v2445_v37, %v14850_v55  ;;  %v2453_v52 = vrot.slane %v10549_v31, 3  ;;  %v2455_v41 = vrot.slane %v10554_v62, 2  ;;  %2566 = vst [vmem:[%s11198_s1 + $0x38] sm:$0xff] %v2430_v3  ;;  %v2440_v29 = vsel %vm2325_vm4, %v2439_v12, %v2438_v23 }
 0x48c   :  { %v2448_v17 = vsel %vm2316_vm1, %v2447_v42, %v2446_v2  ;;  %v2457_v26 = vrot.slane %v10559_v7, 1  ;;  %v2459_v0 = vrot.slane %v10578_v63, 7  ;;  %v2442_v48 = vsel %vm2328_vm5, %v2441_v45, %v2440_v29  ;;  %v14851_v2 = vld [vmem:[#allocation173_spill] sm:$0xff] }
 0x48d   :  { %v2450_v57 = vsel %vm2319_vm2, %v2449_v59, %v2448_v17  ;;  %v2461_v31 = vrot.slane %v10583_v44, 6  ;;  %v2463_v62 = vrot.slane %v10588_v18, 5  ;;  %v2444_v60 = vsel %vm2331_vm6, %v2443_v9, %v2442_v48 }
 0x48e   :  { %v2452_v39 = vsel %vm2322_vm3, %v2451_v19, %v2450_v57  ;;  %v2460_v12 = vsel %vm2313_vm0, %v2459_v0, %v10564_v50  ;;  %v2465_v46 = vrot.slane %v10593_v11, 4  ;;  %v2467_v24 = vrot.slane %v10607_v15, 3  ;;  %2567 = vst [vmem:[%s11198_s1 + $0x40] sm:$0xff] %v2444_v60  ;;  %v14855_v0 = vld [vmem:[#allocation36_spill] sm:$0xff] }
 0x48f   :  { %v2454_v7 = vsel %vm2325_vm4, %v2453_v52, %v2452_v39  ;;  %v2462_v63 = vsel %vm2316_vm1, %v2461_v31, %v2460_v12  ;;  %v2469_v49 = vrot.slane %v10612_v51, 2  ;;  %v2471_v50 = vrot.slane %v10617_v8, 1  ;;  %v14857_v39 = vld [vmem:[#allocation10_spill] sm:$0xff] }
 0x490   :  { %v2456_v44 = vsel %vm2328_vm5, %v2455_v41, %v2454_v7  ;;  %v2464_v18 = vsel %vm2319_vm2, %v2463_v62, %v2462_v63  ;;  %v2473_v11 = vrot.slane %v10636_v28, 7  ;;  %v2475_v15 = vrot.slane %v10641_v20, 6  ;;  %v14856_v62 = vld [vmem:[#allocation115_spill] sm:$0xff]  ;;  %v14858_v63 = vld [vmem:[#allocation93_spill] sm:$0xff] }
 0x491   :  { %v2458_v27 = vsel %vm2331_vm6, %v2457_v26, %v2456_v44  ;;  %v2466_v45 = vsel %vm2322_vm3, %v2465_v46, %v2464_v18  ;;  %v2477_v51 = vrot.slane %v10646_v34, 5  ;;  %v2479_v58 = vrot.slane %v10651_v10, 4  ;;  %v14854_v26 = vld [vmem:[#allocation66_spill] sm:$0xff] }
 0x492   :  { %v2468_v54 = vsel %vm2325_vm4, %v2467_v24, %v2466_v45  ;;  %v2474_v9 = vsel %vm2313_vm0, %v2473_v11, %v10622_v32  ;;  %v2481_v6 = vrot.slane %v10665_v56, 3  ;;  %2568 = vst [vmem:[%s11198_s1 + $0x48] sm:$0xff] %v2458_v27  ;;  %v2483_v20 = vrot.slane %v10670_v40, 2  ;;  %v14860_v11 = vld [vmem:[#allocation144_spill] sm:$0xff]  ;;  %v14861_v45 = vld [vmem:[#allocation202_spill] sm:$0xff] }
 0x493   :  { %v2470_v8 = vsel %vm2328_vm5, %v2469_v49, %v2468_v54  ;;  %v2476_v28 = vsel %vm2316_vm1, %v2475_v15, %v2474_v9  ;;  %v2485_v34 = vrot.slane %v10675_v35, 1  ;;  %v2487_v10 = vrot.slane %v10694_v61, 7  ;;  %v14859_v49 = vld [vmem:[#allocation174_spill] sm:$0xff]  ;;  %v14862_v9 = vld [vmem:[#allocation63_spill] sm:$0xff] }
 0x494   :  { %v2472_v37 = vsel %vm2331_vm6, %v2471_v50, %v2470_v8  ;;  %v2478_v32 = vsel %vm2319_vm2, %v2477_v51, %v2476_v28  ;;  %v2489_v56 = vrot.slane %v10699_v5, 6  ;;  %v2491_v3 = vrot.slane %v10704_v36, 5 }
 0x495   :  { %v2480_v42 = vsel %vm2322_vm3, %v2479_v58, %v2478_v32  ;;  %v2493_v43 = vrot.slane %v10709_v30, 4  ;;  %v2495_v53 = vrot.slane %v10723_v22, 3  ;;  %2569 = vst [vmem:[%s11198_s1 + $0x50] sm:$0xff] %v2472_v37  ;;  %v2488_v35 = vsel %vm2313_vm0, %v2487_v10, %v10680_v14  ;;  %v14865_v37 = vld [vmem:[#allocation7_spill] sm:$0xff]  ;;  %v14866_v10 = vld [vmem:[#allocation94_spill] sm:$0xff] }
 0x496   :  { %v2482_v40 = vsel %vm2325_vm4, %v2481_v6, %v2480_v42  ;;  %v2497_v61 = vrot.slane %v10728_v13, 2  ;;  %v2499_v5 = vrot.slane %v10733_v33, 1  ;;  %v2490_v36 = vsel %vm2316_vm1, %v2489_v56, %v2488_v35  ;;  %v14863_v6 = vld [vmem:[#allocation33_spill] sm:$0xff] }
 0x497   :  { %v2484_v59 = vsel %vm2328_vm5, %v2483_v20, %v2482_v40  ;;  %v2501_v30 = vrot.slane %v10752_v21, 7  ;;  %v2503_v22 = vrot.slane %v10757_v25, 6  ;;  %v2492_v19 = vsel %vm2319_vm2, %v2491_v3, %v2490_v36  ;;  %v14864_v20 = vld [vmem:[#allocation112_spill] sm:$0xff] }
 0x498   :  { %v2486_v47 = vsel %vm2331_vm6, %v2485_v34, %v2484_v59  ;;  %v2505_v23 = vrot.slane %v10762_v38, 5  ;;  %v2507_v14 = vrot.slane %v10767_v16, 4  ;;  %v2494_v13 = vsel %vm2322_vm3, %v2493_v43, %v2492_v19  ;;  %v14852_v38 = vld [vmem:[#allocation147_spill] sm:$0xff]  ;;  %v14867_v43 = vld [vmem:[#allocation178_spill] sm:$0xff] }
 0x499   :  { %v2502_v33 = vsel %vm2313_vm0, %v2501_v30, %v10738_v4  ;;  %v2509_v55 = vrot.slane %v10781_v1, 3  ;;  %v2511_v52 = vrot.slane %v14851_v2, 2  ;;  %2570 = vst [vmem:[%s11198_s1 + $0x58] sm:$0xff] %v2486_v47  ;;  %v2496_v21 = vsel %vm2325_vm4, %v2495_v53, %v2494_v13  ;;  %v14853_v16 = vld [vmem:[#allocation203_spill] sm:$0xff] }
 0x49a   :  { %v2504_v25 = vsel %vm2316_vm1, %v2503_v22, %v2502_v33  ;;  %v2513_v41 = vrot.slane %v14852_v38, 1  ;;  %v2515_v29 = vrot.slane %v14853_v16, 7  ;;  %v2498_v17 = vsel %vm2328_vm5, %v2497_v61, %v2496_v21  ;;  %v14868_v61 = vld [vmem:[#allocation148_spill] sm:$0xff] }
 0x49b   :  { %v2506_v4 = vsel %vm2319_vm2, %v2505_v23, %v2504_v25  ;;  %v2517_v1 = vrot.slane %v14854_v26, 6  ;;  %v2519_v48 = vrot.slane %v14855_v0, 5  ;;  %v2500_v57 = vsel %vm2331_vm6, %v2499_v5, %v2498_v17 }
 0x49c   :  { %v2508_v31 = vsel %vm2322_vm3, %v2507_v14, %v2506_v4  ;;  %v2516_v60 = vsel %vm2313_vm0, %v2515_v29, %v14856_v62  ;;  %v2521_v12 = vrot.slane %v14857_v39, 4  ;;  %v2523_v24 = vrot.slane %v14858_v63, 3  ;;  %2571 = vst [vmem:[%s11198_s1 + $0x60] sm:$0xff] %v2500_v57 }
 0x49d   :  { %v2510_v46 = vsel %vm2325_vm4, %v2509_v55, %v2508_v31  ;;  %v2518_v7 = vsel %vm2316_vm1, %v2517_v1, %v2516_v60  ;;  %v2525_v44 = vrot.slane %v14859_v49, 2  ;;  %v2527_v27 = vrot.slane %v14860_v11, 1 }
 0x49e   :  { %v2512_v18 = vsel %vm2328_vm5, %v2511_v52, %v2510_v46  ;;  %v2520_v50 = vsel %vm2319_vm2, %v2519_v48, %v2518_v7  ;;  %v2529_v15 = vrot.slane %v14861_v45, 7  ;;  %v2531_v58 = vrot.slane %v14862_v9, 6 }
 0x49f   :  { %v2514_v51 = vsel %vm2331_vm6, %v2513_v41, %v2512_v18  ;;  %v2522_v54 = vsel %vm2322_vm3, %v2521_v12, %v2520_v50  ;;  %v2533_v8 = vrot.slane %v14863_v6, 5  ;;  %v2535_v32 = vrot.slane %v14865_v37, 4 }
 0x4a0   :  { %v2524_v28 = vsel %vm2325_vm4, %v2523_v24, %v2522_v54  ;;  %v2530_v34 = vsel %vm2313_vm0, %v2529_v15, %v14864_v20  ;;  %v2537_v56 = vrot.slane %v14866_v10, 3  ;;  %2572 = vst [vmem:[%s11198_s1 + $0x68] sm:$0xff] %v2514_v51  ;;  %v2539_v53 = vrot.slane %v14867_v43, 2 }
 0x4a1   :  { %v2526_v42 = vsel %vm2328_vm5, %v2525_v44, %v2524_v28  ;;  %v2532_v3 = vsel %vm2316_vm1, %v2531_v58, %v2530_v34  ;;  %v2541_v5 = vrot.slane %v14868_v61, 1 }
 0x4a2   :  { %v2528_v40 = vsel %vm2331_vm6, %v2527_v27, %v2526_v42  ;;  %v2534_v35 = vsel %vm2319_vm2, %v2533_v8, %v2532_v3 }
 0x4a3   :  { %v2536_v59 = vsel %vm2322_vm3, %v2535_v32, %v2534_v35  ;;  %2573 = vst [vmem:[%s11198_s1 + $0x70] sm:$0xff] %v2528_v40 }
 0x4a4   :  { %v2538_v36 = vsel %vm2325_vm4, %v2537_v56, %v2536_v59 }
 0x4a5   :  { %v2540_v30 = vsel %vm2328_vm5, %v2539_v53, %v2538_v36 }
 0x4a6   :  { %v2542_v22 = vsel %vm2331_vm6, %v2541_v5, %v2540_v30 }
 0x4a7   :  { %2574 = vst [vmem:[%s11198_s1 + $0x78] sm:$0xff] %v2542_v22 }

// kernel: _lambda_.32
= control target key start
LH: loop header
LB: loop body
LE: loop exit
PB: predicated region body
PF: predicated region fallthrough
CT: control target
= control target key end

     0   :  { %s989_s15 = smov 0   ;;  %s991_s16 = smov 0   ;;  %s1208_s0 = inlined_call_operand.vmem [shape: f32[1,1152], index: 0, kind: input, shape index: {}]   ;;  %s1209_s1 = inlined_call_operand.vmem [shape: f32[1,1152], index: 1, kind: input, shape index: {}]   ;;  %s1210_s2 = inlined_call_operand.vmem [shape: f32[128,1152], index: 2, kind: input, shape index: {}]   ;;  %s1211_s3 = inlined_call_operand.vmem [shape: bf16[1152,128], index: 3, kind: input, shape index: {}]   ;;  %s1212_s4 = inlined_call_operand.vmem [shape: f32[128,128], index: 4, kind: output, shape index: {}]  }
   0x1   :  { %s993_s17 = smov 0   ;;  %s995_s18 = smov 0  }
   0x2   :  { %s997_s19 = smov 0  }
   0x3 LB: > { %s26_s20 = sadd.s32 1, %s957_s18  ;;  %p101_p1 = scmp.ne.s32.totalorder %s949_s16, %s945_s15  ;;  %s961_s19 = sphi %s997_s19, %s14_s19   ;;  %s957_s18 = sphi %s995_s18, %s1216_s18   ;;  %s953_s17 = sphi %s993_s17, %s1215_s17   ;;  %s949_s16 = sphi %s991_s16, %s1214_s16   ;;  %s945_s15 = sphi %s989_s15, %s1213_s15  }
   0x4   : > { %p27_p0 = scmp.ge.s32.totalorder %s26_s20, 9  ;;  %p102_p2 = scmp.eq.s32.totalorder %s961_s19, 0 }
   0x5   : > { %s94_s22 = sadd.s32 1, %s949_s16  ;;  %p803_p5 = scmp.ge.s32.totalorder %s961_s19, 9 }
   0x6   : > { %s1218_s20 = smov (%p27_p0, %s26_s20), 0  ;;  %p103_p3 = por %p102_p2, %p101_p1 }
   0x7   : > { %s90_s21 = ssub.s32 %s957_s18, %s1218_s20  ;;  %183 = sbr.rel (%p803_p5) target bundleno = 32 (0x20), region = 16 }
   0x8   : > { %p92_p4 = scmp.eq.s32.totalorder %s90_s21, 0 }
   0xa   : > { %s1024_s23 = scalar_select %p92_p4, %s949_s16, %s94_s22  }
   0xc   : > { %198 = sbr.rel (!%p103_p3) target bundleno = 32 (0x20), region = 28  ;;  %s200_s24 = sand.u32 (%p103_p3), 1, %s949_s16  }
   0xd   : > { %s805_s25 = sshll.u32 (%p103_p3), %s957_s18, 3  ;;  %s804_s26 = sshll.u32 (%p103_p3), %s200_s24, 7 }
   0xe   : > { %s1032_s29 = scalar_lea.vmem (%p103_p3), %s1210_s2, %s805_s25  ;;  %s202_s30 = scalar_lea.vmem (%p103_p3), [#allocation3], %s804_s26 }
   0xf   : > { %v266_v0 = vld [vmem:[%s1032_s29] sm:$0xff] (%p103_p3)  ;;  %v268_v1 = vld [vmem:[%s1032_s29 + $0x48] sm:$0xff] (%p103_p3)  ;;  %v270_v2 = vld [vmem:[%s1032_s29 + $0x90] sm:$0xff] (%p103_p3) }
  0x10   : > { %267 = vst [vmem:[%s202_s30] sm:$0xff] (%p103_p3), %v266_v0  ;;  %v272_v3 = vld [vmem:[%s1032_s29 + $0xd8] sm:$0xff] (%p103_p3)  ;;  %v274_v4 = vld [vmem:[%s1032_s29 + $0x120] sm:$0xff] (%p103_p3)  ;;  %v276_v5 = vld [vmem:[%s1032_s29 + $0x168] sm:$0xff] (%p103_p3) }
  0x11   : > { %269 = vst [vmem:[%s202_s30 + $0x8] sm:$0xff] %v268_v1  ;;  %v278_v6 = vld [vmem:[%s1032_s29 + $0x1b0] sm:$0xff]  ;;  %v280_v7 = vld [vmem:[%s1032_s29 + $0x1f8] sm:$0xff]  ;;  %v282_v8 = vld [vmem:[%s1032_s29 + $0x240] sm:$0xff] }
  0x12   : > { %271 = vst [vmem:[%s202_s30 + $0x10] sm:$0xff] %v270_v2  ;;  %v284_v9 = vld [vmem:[%s1032_s29 + $0x288] sm:$0xff]  ;;  %v286_v10 = vld [vmem:[%s1032_s29 + $0x2d0] sm:$0xff]  ;;  %v288_v11 = vld [vmem:[%s1032_s29 + $0x318] sm:$0xff] }
  0x13   : > { %273 = vst [vmem:[%s202_s30 + $0x18] sm:$0xff] %v272_v3  ;;  %v290_v12 = vld [vmem:[%s1032_s29 + $0x360] sm:$0xff]  ;;  %v292_v13 = vld [vmem:[%s1032_s29 + $0x3a8] sm:$0xff]  ;;  %v294_v14 = vld [vmem:[%s1032_s29 + $0x3f0] sm:$0xff] }
  0x14   : > { %275 = vst [vmem:[%s202_s30 + $0x20] sm:$0xff] %v274_v4  ;;  %v296_v15 = vld [vmem:[%s1032_s29 + $0x438] sm:$0xff] }
  0x15   : > { %277 = vst [vmem:[%s202_s30 + $0x28] sm:$0xff] %v276_v5 }
  0x16   : > { %279 = vst [vmem:[%s202_s30 + $0x30] sm:$0xff] %v278_v6 }
  0x17   : > { %281 = vst [vmem:[%s202_s30 + $0x38] sm:$0xff] %v280_v7 }
  0x18   : > { %283 = vst [vmem:[%s202_s30 + $0x40] sm:$0xff] %v282_v8 }
  0x19   : > { %285 = vst [vmem:[%s202_s30 + $0x48] sm:$0xff] %v284_v9 }
  0x1a   : > { %287 = vst [vmem:[%s202_s30 + $0x50] sm:$0xff] %v286_v10 }
  0x1b   : > { %289 = vst [vmem:[%s202_s30 + $0x58] sm:$0xff] %v288_v11 }
  0x1c   : > { %291 = vst [vmem:[%s202_s30 + $0x60] sm:$0xff] %v290_v12 }
  0x1d   : > { %293 = vst [vmem:[%s202_s30 + $0x68] sm:$0xff] %v292_v13 }
  0x1e   : > { %295 = vst [vmem:[%s202_s30 + $0x70] sm:$0xff] %v294_v14 }
  0x1f   : > { %297 = vst [vmem:[%s202_s30 + $0x78] sm:$0xff] %v296_v15 }
  0x20 PF: > { %p806_p6 = scmp.ge.s32.totalorder %s961_s19, 1  ;;  %p314_p7 = scmp.lt.s32.totalorder %s961_s19, 10 }
  0x22   : > { %p315_p8 = pnand %p806_p6, %p314_p7 }
  0x23   : > { %s321_s5 = sand.u32 (!%p315_p8), 1, %s945_s15   ;;  %p363_p9 = scmp.lt.s32.totalorder (!%p315_p8), %s953_s17, 8 }
  0x24   : > { %318 = sbr.rel (%p315_p8) target bundleno = 274 (0x112), region = 70  ;;  %s807_s6 = sshll.u32 (!%p315_p8), %s321_s5, 7 }
  0x25   : > { %s808_s7 = sshll.u32 (!%p315_p8), %s953_s17, 4  ;;  %s1071_s25 = scalar_lea.vmem (!%p315_p8), [#allocation3], %s807_s6 }
  0x26   : > { %p371_p10 = scmp.lt.s32.totalorder (!%p315_p8), %s808_s7, 143  ;;  %p810_p11 = scmp.ne.s32.totalorder (!%p315_p8), %s953_s17, 0 }
  0x29   : > { %s1056_s8 = scalar_select %p363_p9, %s953_s17, 8 }
  0x2a   : > { %s1220_s7 = smov (!%p371_p10, %s808_s7), 143  ;;  %391 = sbr.rel (%p810_p11) target bundleno = 64 (0x40), region = 78 }
  0x2b   : > { %s365_s11 = scalar_lea.vmem %s1208_s0, %s1056_s8  ;;  %s368_s14 = scalar_lea.vmem %s1209_s1, %s1056_s8 }
  0x2c   : > { %s809_s21 = sshll.u32 %s1220_s7, 2 }
  0x2d   : > { %s1069_s24 = scalar_lea.vmem %s1211_s3, %s809_s21 }
  0x2f   : > { %v963_v16 = vmov 0.0  }
  0x30   : > { %392 = vst [vmem:[#allocation2 + $0x30] sm:$0xff] %v963_v16 }
  0x31   : > { %393 = vst [vmem:[#allocation2] sm:$0xff] %v963_v16 }
  0x32   : > { %394 = vst [vmem:[#allocation2 + $0x58] sm:$0xff] %v963_v16 }
  0x33   : > { %395 = vst [vmem:[#allocation2 + $0x18] sm:$0xff] %v963_v16 }
  0x34   : > { %396 = vst [vmem:[#allocation2 + $0x50] sm:$0xff] %v963_v16 }
  0x35   : > { %397 = vst [vmem:[#allocation2 + $0x68] sm:$0xff] %v963_v16 }
  0x36   : > { %398 = vst [vmem:[#allocation2 + $0x8] sm:$0xff] %v963_v16 }
  0x37   : > { %399 = vst [vmem:[#allocation2 + $0x48] sm:$0xff] %v963_v16 }
  0x38   : > { %400 = vst [vmem:[#allocation2 + $0x40] sm:$0xff] %v963_v16 }
  0x39   : > { %401 = vst [vmem:[#allocation2 + $0x20] sm:$0xff] %v963_v16 }
  0x3a   : > { %402 = vst [vmem:[#allocation2 + $0x10] sm:$0xff] %v963_v16 }
  0x3b   : > { %403 = vst [vmem:[#allocation2 + $0x38] sm:$0xff] %v963_v16 }
  0x3c   : > { %404 = vst [vmem:[#allocation2 + $0x60] sm:$0xff] %v963_v16 }
  0x3d   : > { %405 = vst [vmem:[#allocation2 + $0x70] sm:$0xff] %v963_v16 }
  0x3e   : > { %406 = vst [vmem:[#allocation2 + $0x78] sm:$0xff] %v963_v16 }
  0x3f   : > { %407 = vst [vmem:[#allocation2 + $0x28] sm:$0xff] %v963_v16 }
  0x40 PF: > { %v855_v17 = vld [vmem:[%s1069_s24 + $0x38] sm:$0xff]  ;;  %v854_v18 = vld [vmem:[%s1069_s24 + $0x30] sm:$0xff]  ;;  %v853_v19 = vld [vmem:[%s1069_s24 + $0x28] sm:$0xff]  ;;  %p843_p12 = scmp.ne.s32.totalorder %s953_s17, 8 }
  0x41   : > { %568 = vmatpush.bf16.msra.mxu0 %v855_v17  ;;  %856 = vmatpush.bf16.msra.mxu1 %v855_v17  ;;  %v852_v20 = vld [vmem:[%s1069_s24 + $0x20] sm:$0xff]  ;;  %v851_v22 = vld [vmem:[%s1069_s24 + $0x18] sm:$0xff]  ;;  %v409_v24 = vld [vmem:[%s1071_s25 + $0x8] sm:$0xff] }
  0x42   : > { %857 = vmatpush.bf16.msra.mxu2 %v855_v17  ;;  %858 = vmatpush.bf16.msra.mxu3 %v855_v17  ;;  %v1083_v21 = vld [vmem:[%s365_s11] ss:$0 sm:$0xff]  ;;  %v413_v26 = vld [vmem:[%s1071_s25 + $0x28] sm:$0xff]  ;;  %v850_v37 = vld [vmem:[%s1069_s24 + $0x10] sm:$0xff] }
  0x43   : > { %v408_v23 = vld [vmem:[%s1071_s25] sm:$0xff]  ;;  %v417_v28 = vld [vmem:[%s1071_s25 + $0x48] sm:$0xff]  ;;  %v429_v33 = vmul.f32 %v1083_v21, %v409_v24  ;;  %v433_v35 = vmul.f32 %v1083_v21, %v413_v26  ;;  %v410_v61 = vld [vmem:[%s1071_s25 + $0x10] sm:$0xff] }
  0x44   : > { %v412_v25 = vld [vmem:[%s1071_s25 + $0x20] sm:$0xff]  ;;  %v421_v30 = vld [vmem:[%s1071_s25 + $0x68] sm:$0xff]  ;;  %v428_v31 = vmul.f32 %v1083_v21, %v408_v23  ;;  %v437_v38 = vmul.f32 %v1083_v21, %v417_v28  ;;  %v411_v62 = vld [vmem:[%s1071_s25 + $0x18] sm:$0xff]  ;;  %v430_v7 = vmul.f32 %v1083_v21, %v410_v61 }
  0x45   : > { %569 = vmatpush.bf16.msra.mxu0 %v854_v18  ;;  %859 = vmatpush.bf16.msra.mxu1 %v854_v18  ;;  %v416_v27 = vld [vmem:[%s1071_s25 + $0x40] sm:$0xff]  ;;  %v432_v34 = vmul.f32 %v1083_v21, %v412_v25  ;;  %v441_v40 = vmul.f32 %v1083_v21, %v421_v30  ;;  %v849_v46 = vld [vmem:[%s1069_s24 + $0x8] sm:$0xff]  ;;  %v414_v1 = vld [vmem:[%s1071_s25 + $0x30] sm:$0xff]  ;;  %v431_v8 = vmul.f32 %v1083_v21, %v411_v62 }
  0x46   : > { %860 = vmatpush.bf16.msra.mxu2 %v854_v18  ;;  %861 = vmatpush.bf16.msra.mxu3 %v854_v18  ;;  %v420_v29 = vld [vmem:[%s1071_s25 + $0x60] sm:$0xff]  ;;  %v436_v36 = vmul.f32 %v1083_v21, %v416_v27  ;;  %v415_v2 = vld [vmem:[%s1071_s25 + $0x38] sm:$0xff]  ;;  %v418_v3 = vld [vmem:[%s1071_s25 + $0x50] sm:$0xff]  ;;  %v434_v9 = vmul.f32 %v1083_v21, %v414_v1 }
  0x47   : > { %v1100_v32 = vld [vmem:[%s368_s14] ss:$0 sm:$0xff]  ;;  %v440_v39 = vmul.f32 %v1083_v21, %v420_v29  ;;  %v419_v4 = vld [vmem:[%s1071_s25 + $0x58] sm:$0xff]  ;;  %v422_v5 = vld [vmem:[%s1071_s25 + $0x70] sm:$0xff]  ;;  %v435_v10 = vmul.f32 %v1083_v21, %v415_v2  ;;  %v438_v11 = vmul.f32 %v1083_v21, %v418_v3 }
  0x48   : > { %v448_v41 = vadd.f32 %v1100_v32, %v428_v31  ;;  %v449_v42 = vadd.f32 %v1100_v32, %v429_v33  ;;  %v452_v43 = vadd.f32 %v1100_v32, %v432_v34  ;;  %v453_v44 = vadd.f32 %v1100_v32, %v433_v35  ;;  %v848_v54 = vld [vmem:[%s1069_s24] sm:$0xff]  ;;  %v423_v6 = vld [vmem:[%s1071_s25 + $0x78] sm:$0xff]  ;;  %v490_v1 = vld [vmem:[#allocation2 + $0x10] sm:$0xff] }
  0x49   : > { %570 = vmatpush.bf16.msra.mxu0 %v853_v19  ;;  %862 = vmatpush.bf16.msra.mxu1 %v853_v19  ;;  %v456_v45 = vadd.f32 %v1100_v32, %v436_v36  ;;  %v457_v47 = vadd.f32 %v1100_v32, %v437_v38  ;;  %v460_v48 = vadd.f32 %v1100_v32, %v440_v39  ;;  %v480_v36 = vld [vmem:[#allocation2 + $0x30] sm:$0xff]  ;;  %v494_v2 = vld [vmem:[#allocation2 + $0x78] sm:$0xff] }
  0x4a   : > { %863 = vmatpush.bf16.msra.mxu2 %v853_v19  ;;  %864 = vmatpush.bf16.msra.mxu3 %v853_v19  ;;  %v461_v49 = vadd.f32 %v1100_v32, %v441_v40  ;;  %v464_v50 = vmax.f32 %v448_v41, 0.0  ;;  %v465_v51 = vmax.f32 %v449_v42, 0.0  ;;  %v468_v52 = vmax.f32 %v452_v43, 0.0  ;;  %v488_v41 = vld [vmem:[#allocation2 + $0x40] sm:$0xff]  ;;  %v483_v3 = vld [vmem:[#allocation2 + $0x18] sm:$0xff] }
  0x4b   : > { %v469_v53 = vmax.f32 %v453_v44, 0.0  ;;  %v472_v55 = vmax.f32 %v456_v45, 0.0  ;;  %v473_v56 = vmax.f32 %v457_v47, 0.0  ;;  %v476_v57 = vmax.f32 %v460_v48, 0.0  ;;  %v492_v42 = vld [vmem:[#allocation2 + $0x60] sm:$0xff]  ;;  %v485_v44 = vld [vmem:[#allocation2 + $0x68] sm:$0xff] }
  0x4c   : > { %v477_v58 = vmax.f32 %v461_v49, 0.0  ;;  %v496_v59 = vpack.c.bf16 %v465_v51, %v464_v50  ;;  %v439_v12 = vmul.f32 %v1083_v21, %v419_v4  ;;  %v442_v13 = vmul.f32 %v1083_v21, %v422_v5  ;;  %v481_v43 = vld [vmem:[#allocation2] sm:$0xff]  ;;  %v487_v4 = vld [vmem:[#allocation2 + $0x48] sm:$0xff] }
  0x4d   : > { %571 = vmatpush.bf16.msra.mxu0 %v852_v20  ;;  %865 = vmatpush.bf16.msra.mxu1 %v852_v20  ;;  %v498_v60 = vpack.c.bf16 %v469_v53, %v468_v52  ;;  %v500_v63 = vpack.c.bf16 %v473_v56, %v472_v55  ;;  %v443_v14 = vmul.f32 %v1083_v21, %v423_v6  ;;  %v489_v53 = vld [vmem:[#allocation2 + $0x20] sm:$0xff]  ;;  %v482_v55 = vld [vmem:[#allocation2 + $0x58] sm:$0xff]  ;;  %v486_v56 = vld [vmem:[#allocation2 + $0x8] sm:$0xff] }
  0x4e   : > { %866 = vmatpush.bf16.msra.mxu2 %v852_v20  ;;  %867 = vmatpush.bf16.msra.mxu3 %v852_v20  ;;  %v502_v0 = vpack.c.bf16 %v477_v58, %v476_v57  ;;  %v450_v15 = vadd.f32 %v1100_v32, %v430_v7  ;;  %v451_v16 = vadd.f32 %v1100_v32, %v431_v8 }
  0x4f   : > { %v454_v17 = vadd.f32 %v1100_v32, %v434_v9  ;;  %v455_v18 = vadd.f32 %v1100_v32, %v435_v10  ;;  %v458_v19 = vadd.f32 %v1100_v32, %v438_v11  ;;  %v459_v20 = vadd.f32 %v1100_v32, %v439_v12 }
  0x50   : > { %v463_v23 = vadd.f32 %v1100_v32, %v443_v14  ;;  %v466_v24 = vmax.f32 %v450_v15, 0.0  ;;  %v467_v25 = vmax.f32 %v451_v16, 0.0  ;;  %v495_v14 = vld [vmem:[#allocation2 + $0x28] sm:$0xff] }
  0x51   : > { %572 = vmatpush.bf16.msra.mxu0 %v851_v22  ;;  %868 = vmatpush.bf16.msra.mxu1 %v851_v22  ;;  %v470_v26 = vmax.f32 %v454_v17, 0.0  ;;  %v471_v21 = vmax.f32 %v455_v18, 0.0  ;;  %v474_v27 = vmax.f32 %v458_v19, 0.0  ;;  %v475_v28 = vmax.f32 %v459_v20, 0.0 }
  0x52   : > { %869 = vmatpush.bf16.msra.mxu2 %v851_v22  ;;  %870 = vmatpush.bf16.msra.mxu3 %v851_v22  ;;  %v462_v22 = vadd.f32 %v1100_v32, %v442_v13  ;;  %v479_v30 = vmax.f32 %v463_v23, 0.0  ;;  %v497_v31 = vpack.c.bf16 %v467_v25, %v466_v24  ;;  %v491_v13 = vld [vmem:[#allocation2 + $0x38] sm:$0xff] }
  0x53   : > { %v499_v33 = vpack.c.bf16 %v471_v21, %v470_v26  ;;  %v501_v34 = vpack.c.bf16 %v475_v28, %v474_v27 }
  0x54   : > { %v478_v29 = vmax.f32 %v462_v22, 0.0 }
  0x55   : > { %573 = vmatpush.bf16.msra.mxu0 %v850_v37  ;;  %871 = vmatpush.bf16.msra.mxu1 %v850_v37 }
  0x56   : > { %872 = vmatpush.bf16.msra.mxu2 %v850_v37  ;;  %873 = vmatpush.bf16.msra.mxu3 %v850_v37  ;;  %v503_v35 = vpack.c.bf16 %v479_v30, %v478_v29  ;;  %v484_v37 = vld [vmem:[#allocation2 + $0x50] sm:$0xff] }
  0x59   : > { %574 = vmatpush.bf16.msra.mxu0 %v849_v46  ;;  %874 = vmatpush.bf16.msra.mxu1 %v849_v46 }
  0x5a   : > { %875 = vmatpush.bf16.msra.mxu2 %v849_v46  ;;  %876 = vmatpush.bf16.msra.mxu3 %v849_v46 }
  0x5d   : > { %575 = vmatpush.bf16.msra.mxu0 %v848_v54  ;;  %877 = vmatpush.bf16.msra.mxu1 %v848_v54 }
  0x5e   : > { %878 = vmatpush.bf16.msra.mxu2 %v848_v54  ;;  %879 = vmatpush.bf16.msra.mxu3 %v848_v54  ;;  %v493_v54 = vld [vmem:[#allocation2 + $0x70] sm:$0xff] }
  0x60   : > { %576 = vmatmul.bf16.vlgmr.msra.gmra.mxu0 %v496_v59  ;;  %586 = vmatmul.bf16.vlgmr.msra.gmra.mxu1 %v498_v60 }
  0x61   : > { %596 = vmatmul.bf16.vlgmr.msra.gmra.mxu2 %v500_v63  ;;  %606 = vmatmul.bf16.vlgmr.msra.gmra.mxu3 %v502_v0 }
  0x70   : > { %581 = vmatmul.bf16.gmra.mxu0 %v497_v31  ;;  %591 = vmatmul.bf16.gmra.mxu1 %v499_v33 }
  0x71   : > { %601 = vmatmul.bf16.gmra.mxu2 %v501_v34  ;;  %611 = vmatmul.bf16.gmra.mxu3 %v503_v35 }
  0xdd   : > { %v577_v38 = vpop.f32.mrf.mxu0  ;;  %v587_v32 = vpop.f32.mrf.mxu1 }
  0xde   : > { %v617_v39 = vadd.f32 %v577_v38, %v480_v36  ;;  %v621_v40 = vadd.f32 %v587_v32, %v484_v37 }
  0xe0   : > { %633 = vst [vmem:[#allocation2 + $0x30] sm:$0xff] %v617_v39 }
  0xe1   : > { %637 = vst [vmem:[#allocation2 + $0x50] sm:$0xff] %v621_v40 }
  0xe4   : > { %v597_v45 = vpop.f32.mrf.mxu2  ;;  %v607_v46 = vpop.f32.mrf.mxu3 }
  0xe5   : > { %v625_v47 = vadd.f32 %v597_v45, %v488_v41  ;;  %v629_v48 = vadd.f32 %v607_v46, %v492_v42  ;;  %v579_v49 = vpop.f32.mrf.mxu0  ;;  %v589_v50 = vpop.f32.mrf.mxu1 }
  0xe6   : > { %v618_v51 = vadd.f32 %v579_v49, %v481_v43  ;;  %v622_v52 = vadd.f32 %v589_v50, %v485_v44 }
  0xe7   : > { %641 = vst [vmem:[#allocation2 + $0x40] sm:$0xff] %v625_v47 }
  0xe8   : > { %645 = vst [vmem:[#allocation2 + $0x60] sm:$0xff] %v629_v48 }
  0xe9   : > { %634 = vst [vmem:[#allocation2] sm:$0xff] %v618_v51 }
  0xea   : > { %638 = vst [vmem:[#allocation2 + $0x68] sm:$0xff] %v622_v52 }
  0xec   : > { %v599_v57 = vpop.f32.mrf.mxu2  ;;  %v609_v58 = vpop.f32.mrf.mxu3 }
  0xed   : > { %v626_v59 = vadd.f32 %v599_v57, %v489_v53  ;;  %v630_v60 = vadd.f32 %v609_v58, %v493_v54  ;;  %v582_v61 = vpop.f32.mrf.mxu0  ;;  %v592_v62 = vpop.f32.mrf.mxu1 }
  0xee   : > { %v619_v63 = vadd.f32 %v582_v61, %v482_v55  ;;  %v623_v0 = vadd.f32 %v592_v62, %v486_v56 }
  0xef   : > { %642 = vst [vmem:[#allocation2 + $0x20] sm:$0xff] %v626_v59 }
  0xf0   : > { %646 = vst [vmem:[#allocation2 + $0x70] sm:$0xff] %v630_v60 }
  0xf1   : > { %635 = vst [vmem:[#allocation2 + $0x58] sm:$0xff] %v619_v63 }
  0xf2   : > { %639 = vst [vmem:[#allocation2 + $0x8] sm:$0xff] %v623_v0 }
  0xf4   : > { %v602_v5 = vpop.f32.mrf.mxu2  ;;  %v612_v6 = vpop.f32.mrf.mxu3 }
  0xf5   : > { %v627_v7 = vadd.f32 %v602_v5, %v490_v1  ;;  %v631_v8 = vadd.f32 %v612_v6, %v494_v2  ;;  %v584_v9 = vpop.f32.mrf.mxu0  ;;  %v594_v10 = vpop.f32.mrf.mxu1 }
  0xf6   : > { %v620_v11 = vadd.f32 %v584_v9, %v483_v3  ;;  %v624_v12 = vadd.f32 %v594_v10, %v487_v4 }
  0xf7   : > { %643 = vst [vmem:[#allocation2 + $0x10] sm:$0xff] %v627_v7 }
  0xf8   : > { %647 = vst [vmem:[#allocation2 + $0x78] sm:$0xff] %v631_v8 }
  0xf9   : > { %636 = vst [vmem:[#allocation2 + $0x18] sm:$0xff] %v620_v11 }
  0xfa   : > { %640 = vst [vmem:[#allocation2 + $0x48] sm:$0xff] %v624_v12 }
  0xfc   : > { %v604_v15 = vpop.f32.mrf.mxu2  ;;  %v614_v16 = vpop.f32.mrf.mxu3  ;;  %652 = sbr.rel (%p843_p12) target bundleno = 274 (0x112), region = 82 }
  0xfd   : > { %v628_v17 = vadd.f32 %v604_v15, %v491_v13  ;;  %v632_v18 = vadd.f32 %v614_v16, %v495_v14 }
  0xff   : > { %644 = vst [vmem:[#allocation2 + $0x38] sm:$0xff] %v628_v17 }
 0x100   : > { %648 = vst [vmem:[#allocation2 + $0x28] sm:$0xff] %v632_v18 }
 0x101   : > { %v653_v19 = vld [vmem:[#allocation2 + $0x30] sm:$0xff]  ;;  %v654_v20 = vld [vmem:[#allocation2] sm:$0xff]  ;;  %v655_v22 = vld [vmem:[#allocation2 + $0x58] sm:$0xff] }
 0x102   : > { %669 = vst [vmem:[%s1212_s4] sm:$0xff] %v653_v19  ;;  %v656_v23 = vld [vmem:[#allocation2 + $0x18] sm:$0xff]  ;;  %v657_v24 = vld [vmem:[#allocation2 + $0x50] sm:$0xff]  ;;  %v658_v25 = vld [vmem:[#allocation2 + $0x68] sm:$0xff] }
 0x103   : > { %670 = vst [vmem:[%s1212_s4 + $0x8] sm:$0xff] %v654_v20  ;;  %v659_v26 = vld [vmem:[#allocation2 + $0x8] sm:$0xff]  ;;  %v661_v27 = vld [vmem:[#allocation2 + $0x40] sm:$0xff]  ;;  %v663_v29 = vld [vmem:[#allocation2 + $0x10] sm:$0xff] }
 0x104   : > { %671 = vst [vmem:[%s1212_s4 + $0x10] sm:$0xff] %v655_v22  ;;  %v660_v21 = vld [vmem:[#allocation2 + $0x48] sm:$0xff]  ;;  %v662_v28 = vld [vmem:[#allocation2 + $0x20] sm:$0xff]  ;;  %v666_v33 = vld [vmem:[#allocation2 + $0x70] sm:$0xff] }
 0x105   : > { %672 = vst [vmem:[%s1212_s4 + $0x18] sm:$0xff] %v656_v23  ;;  %v665_v31 = vld [vmem:[#allocation2 + $0x60] sm:$0xff]  ;;  %v667_v34 = vld [vmem:[#allocation2 + $0x78] sm:$0xff] }
 0x106   : > { %673 = vst [vmem:[%s1212_s4 + $0x20] sm:$0xff] %v657_v24  ;;  %v664_v30 = vld [vmem:[#allocation2 + $0x38] sm:$0xff] }
 0x107   : > { %674 = vst [vmem:[%s1212_s4 + $0x28] sm:$0xff] %v658_v25  ;;  %v668_v35 = vld [vmem:[#allocation2 + $0x28] sm:$0xff] }
 0x108   : > { %675 = vst [vmem:[%s1212_s4 + $0x30] sm:$0xff] %v659_v26 }
 0x109   : > { %676 = vst [vmem:[%s1212_s4 + $0x38] sm:$0xff] %v660_v21 }
 0x10a   : > { %677 = vst [vmem:[%s1212_s4 + $0x40] sm:$0xff] %v661_v27 }
 0x10b   : > { %678 = vst [vmem:[%s1212_s4 + $0x48] sm:$0xff] %v662_v28 }
 0x10c   : > { %679 = vst [vmem:[%s1212_s4 + $0x50] sm:$0xff] %v663_v29 }
 0x10d   : > { %680 = vst [vmem:[%s1212_s4 + $0x58] sm:$0xff] %v664_v30 }
 0x10e   : > { %681 = vst [vmem:[%s1212_s4 + $0x60] sm:$0xff] %v665_v31 }
 0x10f   : > { %682 = vst [vmem:[%s1212_s4 + $0x68] sm:$0xff] %v666_v33 }
 0x110   : > { %683 = vst [vmem:[%s1212_s4 + $0x70] sm:$0xff] %v667_v34 }
 0x111   : > { %684 = vst [vmem:[%s1212_s4 + $0x78] sm:$0xff] %v668_v35 }
 0x112 PF: > { %s14_s19 = sadd.s32 1, %s961_s19   ;;  %s1213_s15 = smov %s949_s16 }
 0x113   : > { %p11_p13 = scmp.ge.s32.totalorder %s14_s19, 11   ;;  %s1214_s16 = smov %s1024_s23 }
 0x114   : > { %s1215_s17 = smov %s957_s18  ;;  %s1216_s18 = smov %s1218_s20 }
 0x115   :  { %13 = sbr.rel (!%p11_p13) target bundleno = 3 (0x3), region = 126 }

// kernel: _lambda_.40
= control target key start
LH: loop header
LB: loop body
LE: loop exit
PB: predicated region body
PF: predicated region fallthrough
CT: control target
= control target key end

     0   :  { %v57_v0 = vmov 0.0   ;;  %s103_s1 = inlined_call_operand.vmem [shape: f32[1,128], index: 1, kind: output, shape index: {0}]   ;;  %s104_s2 = inlined_call_operand.vmem [shape: f32[1,128], index: 2, kind: output, shape index: {1}]   ;;  %s105_s0 = inlined_call_operand.vmem [shape: f32[32,128], index: 0, kind: input, shape index: {}]  }
   0x1   :  { %14 = vst [vmem:[%s103_s1] sm:$0x1] %v57_v0  ;;  %v16_v1 = vld [vmem:[%s105_s0] sm:$0xff]  ;;  %v17_v2 = vld [vmem:[%s105_s0 + $0x8] sm:$0xff]  ;;  %v18_v3 = vld [vmem:[%s105_s0 + $0x10] sm:$0xff] }
   0x2   :  { %15 = vst [vmem:[%s104_s2] sm:$0x1] %v57_v0  ;;  %v19_v4 = vld [vmem:[%s105_s0 + $0x18] sm:$0xff]  ;;  %v21_v5 = vadd.f32 %v17_v2, %v16_v1  ;;  %v33_v6 = vmul.f32 %v16_v1, %v16_v1  ;;  %v34_v7 = vmul.f32 %v17_v2, %v17_v2  ;;  %v35_v8 = vmul.f32 %v18_v3, %v18_v3 }
   0x3   :  { %v36_v10 = vmul.f32 %v19_v4, %v19_v4 }
   0x4   :  { %v22_v9 = vadd.f32 %v21_v5, %v18_v3  ;;  %v37_v11 = vadd.f32 %v34_v7, %v33_v6 }
   0x6   :  { %v23_v12 = vadd.f32 %v22_v9, %v19_v4  ;;  %v38_v13 = vadd.f32 %v37_v11, %v35_v8 }
   0x8   :  { %v24_v14 = vrot.slane %v23_v12, 4  ;;  %v39_v15 = vadd.f32 %v38_v13, %v36_v10  ;;  %v20_v24 = vld [vmem:[%s103_s1] sm:$0x1] }
   0x9   :  { %v32_v27 = vld [vmem:[%s104_s2] sm:$0x1] }
   0xa   :  { %v25_v16 = vadd.f32 %v24_v14, %v23_v12  ;;  %v40_v17 = vrot.slane %v39_v15, 4 }
   0xc   :  { %v26_v18 = vrot.slane %v25_v16, 2  ;;  %v41_v19 = vadd.f32 %v40_v17, %v39_v15 }
   0xe   :  { %v27_v20 = vadd.f32 %v26_v18, %v25_v16  ;;  %v42_v21 = vrot.slane %v41_v19, 2 }
  0x10   :  { %v28_v22 = vrot.slane %v27_v20, 1  ;;  %v43_v23 = vadd.f32 %v42_v21, %v41_v19 }
  0x12   :  { %v29_v25 = vadd.f32 %v28_v22, %v27_v20  ;;  %v44_v26 = vrot.slane %v43_v23, 1 }
  0x14   :  { %v30_v28 = vadd.f32 %v29_v25, %v20_v24  ;;  %v45_v29 = vadd.f32 %v44_v26, %v43_v23 }
  0x16   :  { %31 = vst [vmem:[%s103_s1] sm:$0x1] %v30_v28  ;;  %v46_v30 = vadd.f32 %v45_v29, %v32_v27 }
  0x18   :  { %47 = vst [vmem:[%s104_s2] sm:$0x1] %v46_v30 }

// kernel: _lambda_.39
= control target key start
LH: loop header
LB: loop body
LE: loop exit
PB: predicated region body
PF: predicated region fallthrough
CT: control target
= control target key end

     0   :  { %vm297_vm0 = vcmask 1041409   ;;  %vm300_vm1 = vcmask 1042434   ;;  %vm303_vm2 = vcmask 1043459   ;;  %vm306_vm3 = vcmask 1044484   ;;  %s859_s0 = inlined_call_operand.vmem [shape: f32[32,4,128], index: 0, kind: input, shape index: {}]   ;;  %s860_s1 = inlined_call_operand.vmem [shape: f32[32,128], index: 1, kind: output, shape index: {}]  }
   0x1   :  { %v8_v0 = vld [vmem:[%s859_s0] sm:$0x1]  ;;  %v9_v1 = vld [vmem:[%s859_s0 + $0x4] sm:$0x1]  ;;  %v10_v2 = vld [vmem:[%s859_s0 + $0x8] sm:$0x1] }
   0x2   :  { %v40_v3 = vld [vmem:[%s859_s0 + $0x1] sm:$0x1]  ;;  %v41_v4 = vld [vmem:[%s859_s0 + $0x5] sm:$0x1]  ;;  %v42_v5 = vld [vmem:[%s859_s0 + $0x9] sm:$0x1] }
   0x3   :  { %v11_v6 = vld [vmem:[%s859_s0 + $0xc] sm:$0x1]  ;;  %v12_v7 = vld [vmem:[%s859_s0 + $0x10] sm:$0x1]  ;;  %v13_v8 = vld [vmem:[%s859_s0 + $0x14] sm:$0x1]  ;;  %v519_v46 = vadd.f32 %v40_v3, %v8_v0  ;;  %v521_v47 = vadd.f32 %v41_v4, %v9_v1  ;;  %v523_v48 = vadd.f32 %v42_v5, %v10_v2 }
   0x4   :  { %v14_v9 = vld [vmem:[%s859_s0 + $0x18] sm:$0x1]  ;;  %v43_v10 = vld [vmem:[%s859_s0 + $0xd] sm:$0x1]  ;;  %v44_v11 = vld [vmem:[%s859_s0 + $0x11] sm:$0x1] }
   0x5   :  { %v45_v12 = vld [vmem:[%s859_s0 + $0x15] sm:$0x1]  ;;  %v46_v13 = vld [vmem:[%s859_s0 + $0x19] sm:$0x1]  ;;  %v15_v14 = vld [vmem:[%s859_s0 + $0x1c] sm:$0x1]  ;;  %v549_v57 = vadd.f32 %v43_v10, %v11_v6  ;;  %v551_v58 = vadd.f32 %v44_v11, %v12_v7 }
   0x6   :  { %v16_v15 = vld [vmem:[%s859_s0 + $0x20] sm:$0x1]  ;;  %v17_v16 = vld [vmem:[%s859_s0 + $0x24] sm:$0x1]  ;;  %v18_v17 = vld [vmem:[%s859_s0 + $0x28] sm:$0x1]  ;;  %v553_v59 = vadd.f32 %v45_v12, %v13_v8  ;;  %v555_v60 = vadd.f32 %v46_v13, %v14_v9 }
   0x7   :  { %v47_v18 = vld [vmem:[%s859_s0 + $0x1d] sm:$0x1]  ;;  %v48_v19 = vld [vmem:[%s859_s0 + $0x21] sm:$0x1]  ;;  %v49_v20 = vld [vmem:[%s859_s0 + $0x25] sm:$0x1] }
   0x8   :  { %v50_v21 = vld [vmem:[%s859_s0 + $0x29] sm:$0x1]  ;;  %v19_v22 = vld [vmem:[%s859_s0 + $0x2c] sm:$0x1]  ;;  %v20_v23 = vld [vmem:[%s859_s0 + $0x30] sm:$0x1]  ;;  %v79_v5 = vadd.f32 %v47_v18, %v15_v14  ;;  %v80_v6 = vadd.f32 %v48_v19, %v16_v15  ;;  %v81_v7 = vadd.f32 %v49_v20, %v17_v16 }
   0x9   :  { %v21_v24 = vld [vmem:[%s859_s0 + $0x34] sm:$0x1]  ;;  %v22_v25 = vld [vmem:[%s859_s0 + $0x38] sm:$0x1]  ;;  %v51_v26 = vld [vmem:[%s859_s0 + $0x2d] sm:$0x1]  ;;  %v82_v8 = vadd.f32 %v50_v21, %v18_v17 }
   0xa   :  { %v52_v27 = vld [vmem:[%s859_s0 + $0x31] sm:$0x1]  ;;  %v53_v28 = vld [vmem:[%s859_s0 + $0x35] sm:$0x1]  ;;  %v54_v29 = vld [vmem:[%s859_s0 + $0x39] sm:$0x1]  ;;  %v83_v11 = vadd.f32 %v51_v26, %v19_v22 }
   0xb   :  { %v23_v30 = vld [vmem:[%s859_s0 + $0x3c] sm:$0x1]  ;;  %v24_v31 = vld [vmem:[%s859_s0 + $0x40] sm:$0x1]  ;;  %v25_v32 = vld [vmem:[%s859_s0 + $0x44] sm:$0x1]  ;;  %v84_v12 = vadd.f32 %v52_v27, %v20_v23  ;;  %v85_v13 = vadd.f32 %v53_v28, %v21_v24 }
   0xc   :  { %v26_v33 = vld [vmem:[%s859_s0 + $0x48] sm:$0x1]  ;;  %v55_v34 = vld [vmem:[%s859_s0 + $0x3d] sm:$0x1]  ;;  %v56_v35 = vld [vmem:[%s859_s0 + $0x41] sm:$0x1] }
   0xd   :  { %v57_v36 = vld [vmem:[%s859_s0 + $0x45] sm:$0x1]  ;;  %v58_v37 = vld [vmem:[%s859_s0 + $0x49] sm:$0x1]  ;;  %v27_v38 = vld [vmem:[%s859_s0 + $0x4c] sm:$0x1]  ;;  %v87_v16 = vadd.f32 %v55_v34, %v23_v30  ;;  %v88_v17 = vadd.f32 %v56_v35, %v24_v31 }
   0xe   :  { %v28_v39 = vld [vmem:[%s859_s0 + $0x50] sm:$0x1]  ;;  %v29_v40 = vld [vmem:[%s859_s0 + $0x54] sm:$0x1]  ;;  %v30_v41 = vld [vmem:[%s859_s0 + $0x58] sm:$0x1]  ;;  %v89_v18 = vadd.f32 %v57_v36, %v25_v32  ;;  %v90_v19 = vadd.f32 %v58_v37, %v26_v33 }
   0xf   :  { %v59_v42 = vld [vmem:[%s859_s0 + $0x4d] sm:$0x1]  ;;  %v60_v43 = vld [vmem:[%s859_s0 + $0x51] sm:$0x1]  ;;  %v61_v44 = vld [vmem:[%s859_s0 + $0x55] sm:$0x1] }
  0x10   :  { %v62_v45 = vld [vmem:[%s859_s0 + $0x59] sm:$0x1]  ;;  %v31_v49 = vld [vmem:[%s859_s0 + $0x5c] sm:$0x1]  ;;  %v32_v50 = vld [vmem:[%s859_s0 + $0x60] sm:$0x1]  ;;  %v91_v24 = vadd.f32 %v59_v42, %v27_v38  ;;  %v93_v26 = vadd.f32 %v61_v44, %v29_v40 }
  0x11   :  { %v33_v51 = vld [vmem:[%s859_s0 + $0x64] sm:$0x1]  ;;  %v34_v52 = vld [vmem:[%s859_s0 + $0x68] sm:$0x1]  ;;  %v63_v53 = vld [vmem:[%s859_s0 + $0x5d] sm:$0x1]  ;;  %v94_v27 = vadd.f32 %v62_v45, %v30_v41 }
  0x12   :  { %v64_v54 = vld [vmem:[%s859_s0 + $0x61] sm:$0x1]  ;;  %v65_v55 = vld [vmem:[%s859_s0 + $0x65] sm:$0x1]  ;;  %v66_v56 = vld [vmem:[%s859_s0 + $0x69] sm:$0x1]  ;;  %v95_v32 = vadd.f32 %v63_v53, %v31_v49 }
  0x13   :  { %861 = vst [vmem:[#allocation2_spill] sm:$0xff] %v553_v59  ;;  %v35_v61 = vld [vmem:[%s859_s0 + $0x6c] sm:$0x1]  ;;  %v36_v62 = vld [vmem:[%s859_s0 + $0x70] sm:$0x1]  ;;  %v96_v33 = vadd.f32 %v64_v54, %v32_v50  ;;  %v97_v34 = vadd.f32 %v65_v55, %v33_v51  ;;  %v98_v35 = vadd.f32 %v66_v56, %v34_v52  ;;  %vm309_vm4 = vcmask 1045509  }
  0x14   :  { %862 = vst [vmem:[#allocation3_spill] sm:$0xff] %v555_v60  ;;  %v37_v63 = vld [vmem:[%s859_s0 + $0x74] sm:$0x1]  ;;  %v38_v0 = vld [vmem:[%s859_s0 + $0x78] sm:$0x1]  ;;  %v86_v60 = vadd.f32 %v54_v29, %v22_v25  ;;  %v92_v25 = vadd.f32 %v60_v43, %v28_v39  ;;  %vm312_vm5 = vcmask 1046534  }
  0x15   :  { %v67_v1 = vld [vmem:[%s859_s0 + $0x6d] sm:$0x1]  ;;  %v68_v2 = vld [vmem:[%s859_s0 + $0x71] sm:$0x1]  ;;  %v69_v3 = vld [vmem:[%s859_s0 + $0x75] sm:$0x1] }
  0x16   :  { %v70_v4 = vld [vmem:[%s859_s0 + $0x79] sm:$0x1]  ;;  %v39_v9 = vld [vmem:[%s859_s0 + $0x7c] sm:$0x1]  ;;  %v71_v10 = vld [vmem:[%s859_s0 + $0x7d] sm:$0x1]  ;;  %v99_v39 = vadd.f32 %v67_v1, %v35_v61  ;;  %v100_v40 = vadd.f32 %v68_v2, %v36_v62  ;;  %v101_v41 = vadd.f32 %v69_v3, %v37_v63 }
  0x17   :  { %v104_v59 = vld [vmem:[%s859_s0 + $0x2] sm:$0x1]  ;;  %v105_v14 = vld [vmem:[%s859_s0 + $0x6] sm:$0x1]  ;;  %v106_v15 = vld [vmem:[%s859_s0 + $0xa] sm:$0x1]  ;;  %v102_v42 = vadd.f32 %v70_v4, %v38_v0  ;;  %v103_v49 = vadd.f32 %v71_v10, %v39_v9 }
  0x18   :  { %v107_v20 = vld [vmem:[%s859_s0 + $0xe] sm:$0x1]  ;;  %v108_v21 = vld [vmem:[%s859_s0 + $0x12] sm:$0x1]  ;;  %v109_v22 = vld [vmem:[%s859_s0 + $0x16] sm:$0x1]  ;;  %v136_v53 = vadd.f32 %v104_v59, %v519_v46  ;;  %v137_v54 = vadd.f32 %v105_v14, %v521_v47  ;;  %v138_v55 = vadd.f32 %v106_v15, %v523_v48 }
  0x19   :  { %v110_v23 = vld [vmem:[%s859_s0 + $0x1a] sm:$0x1]  ;;  %v111_v28 = vld [vmem:[%s859_s0 + $0x1e] sm:$0x1]  ;;  %v112_v29 = vld [vmem:[%s859_s0 + $0x22] sm:$0x1]  ;;  %v139_v63 = vadd.f32 %v107_v20, %v549_v57  ;;  %v140_v46 = vadd.f32 %v108_v21, %v551_v58 }
  0x1a   :  { %v113_v30 = vld [vmem:[%s859_s0 + $0x26] sm:$0x1]  ;;  %v114_v31 = vld [vmem:[%s859_s0 + $0x2a] sm:$0x1]  ;;  %v115_v36 = vld [vmem:[%s859_s0 + $0x2e] sm:$0x1]  ;;  %v143_v4 = vadd.f32 %v111_v28, %v79_v5  ;;  %v144_v57 = vadd.f32 %v112_v29, %v80_v6 }
  0x1b   :  { %v116_v37 = vld [vmem:[%s859_s0 + $0x32] sm:$0x1]  ;;  %v117_v38 = vld [vmem:[%s859_s0 + $0x36] sm:$0x1]  ;;  %v118_v43 = vld [vmem:[%s859_s0 + $0x3a] sm:$0x1]  ;;  %v145_v9 = vadd.f32 %v113_v30, %v81_v7  ;;  %v146_v58 = vadd.f32 %v114_v31, %v82_v8  ;;  %v147_v20 = vadd.f32 %v115_v36, %v83_v11 }
  0x1c   :  { %v119_v44 = vld [vmem:[%s859_s0 + $0x3e] sm:$0x1]  ;;  %v120_v45 = vld [vmem:[%s859_s0 + $0x42] sm:$0x1]  ;;  %v121_v50 = vld [vmem:[%s859_s0 + $0x46] sm:$0x1]  ;;  %v148_v21 = vadd.f32 %v116_v37, %v84_v12 }
  0x1d   :  { %v122_v51 = vld [vmem:[%s859_s0 + $0x4a] sm:$0x1]  ;;  %v123_v52 = vld [vmem:[%s859_s0 + $0x4e] sm:$0x1]  ;;  %v124_v56 = vld [vmem:[%s859_s0 + $0x52] sm:$0x1]  ;;  %v151_v8 = vadd.f32 %v119_v44, %v87_v16  ;;  %v152_v28 = vadd.f32 %v120_v45, %v88_v17  ;;  %v153_v29 = vadd.f32 %v121_v50, %v89_v18 }
  0x1e   :  { %v125_v61 = vld [vmem:[%s859_s0 + $0x56] sm:$0x1]  ;;  %v126_v62 = vld [vmem:[%s859_s0 + $0x5a] sm:$0x1]  ;;  %v863_v59 = vld [vmem:[#allocation2_spill] sm:$0xff]  ;;  %v154_v30 = vadd.f32 %v122_v51, %v90_v19  ;;  %v155_v11 = vadd.f32 %v123_v52, %v91_v24  ;;  %v156_v12 = vadd.f32 %v124_v56, %v92_v25  ;;  %vm315_vm6 = vcmask 1047559  }
  0x1f   :  { %v141_v47 = vadd.f32 %v109_v22, %v863_v59  ;;  %v864_v0 = vld [vmem:[#allocation3_spill] sm:$0xff]  ;;  %v127_v1 = vld [vmem:[%s859_s0 + $0x5e] sm:$0x1]  ;;  %v128_v2 = vld [vmem:[%s859_s0 + $0x62] sm:$0x1]  ;;  %v149_v22 = vadd.f32 %v117_v38, %v85_v13  ;;  %v157_v13 = vadd.f32 %v125_v61, %v93_v26 }
  0x20   :  { %v142_v48 = vadd.f32 %v110_v23, %v864_v0  ;;  %v129_v3 = vld [vmem:[%s859_s0 + $0x66] sm:$0x1]  ;;  %v130_v10 = vld [vmem:[%s859_s0 + $0x6a] sm:$0x1]  ;;  %v131_v14 = vld [vmem:[%s859_s0 + $0x6e] sm:$0x1]  ;;  %v150_v23 = vadd.f32 %v118_v43, %v86_v60  ;;  %v158_v60 = vadd.f32 %v126_v62, %v94_v27  ;;  %v159_v16 = vadd.f32 %v127_v1, %v95_v32 }
  0x21   :  { %v132_v15 = vld [vmem:[%s859_s0 + $0x72] sm:$0x1]  ;;  %v133_v5 = vld [vmem:[%s859_s0 + $0x76] sm:$0x1]  ;;  %v134_v6 = vld [vmem:[%s859_s0 + $0x7a] sm:$0x1]  ;;  %v160_v17 = vadd.f32 %v128_v2, %v96_v33  ;;  %v161_v18 = vadd.f32 %v129_v3, %v97_v34  ;;  %v162_v19 = vadd.f32 %v130_v10, %v98_v35  ;;  %v163_v27 = vadd.f32 %v131_v14, %v99_v39 }
  0x22   :  { %v135_v7 = vld [vmem:[%s859_s0 + $0x7e] sm:$0x1]  ;;  %v168_v31 = vld [vmem:[%s859_s0 + $0x3] sm:$0x1]  ;;  %v169_v36 = vld [vmem:[%s859_s0 + $0x7] sm:$0x1]  ;;  %v164_v38 = vadd.f32 %v132_v15, %v100_v40  ;;  %v165_v43 = vadd.f32 %v133_v5, %v101_v41  ;;  %v166_v44 = vadd.f32 %v134_v6, %v102_v42 }
  0x23   :  { %v170_v37 = vld [vmem:[%s859_s0 + $0xb] sm:$0x1]  ;;  %v171_v24 = vld [vmem:[%s859_s0 + $0xf] sm:$0x1]  ;;  %v172_v25 = vld [vmem:[%s859_s0 + $0x13] sm:$0x1]  ;;  %v167_v35 = vadd.f32 %v135_v7, %v103_v49  ;;  %v200_v42 = vadd.f32 %v168_v31, %v136_v53  ;;  %v201_v45 = vadd.f32 %v169_v36, %v137_v54 }
  0x24   :  { %v173_v26 = vld [vmem:[%s859_s0 + $0x17] sm:$0x1]  ;;  %v174_v32 = vld [vmem:[%s859_s0 + $0x1b] sm:$0x1]  ;;  %v175_v33 = vld [vmem:[%s859_s0 + $0x1f] sm:$0x1]  ;;  %v202_v50 = vadd.f32 %v170_v37, %v138_v55  ;;  %v203_v56 = vadd.f32 %v171_v24, %v139_v63  ;;  %v204_v61 = vadd.f32 %v172_v25, %v140_v46 }
  0x25   :  { %v176_v34 = vld [vmem:[%s859_s0 + $0x23] sm:$0x1]  ;;  %v177_v39 = vld [vmem:[%s859_s0 + $0x27] sm:$0x1]  ;;  %v178_v40 = vld [vmem:[%s859_s0 + $0x2b] sm:$0x1]  ;;  %v205_v62 = vadd.f32 %v173_v26, %v141_v47  ;;  %v206_v59 = vadd.f32 %v174_v32, %v142_v48  ;;  %v207_v0 = vadd.f32 %v175_v33, %v143_v4 }
  0x26   :  { %v179_v41 = vld [vmem:[%s859_s0 + $0x2f] sm:$0x1]  ;;  %v180_v51 = vld [vmem:[%s859_s0 + $0x33] sm:$0x1]  ;;  %v181_v49 = vld [vmem:[%s859_s0 + $0x37] sm:$0x1]  ;;  %v208_v1 = vadd.f32 %v176_v34, %v144_v57  ;;  %v209_v2 = vadd.f32 %v177_v39, %v145_v9  ;;  %v210_v3 = vadd.f32 %v178_v40, %v146_v58 }
  0x27   :  { %v182_v52 = vld [vmem:[%s859_s0 + $0x3b] sm:$0x1]  ;;  %v183_v53 = vld [vmem:[%s859_s0 + $0x3f] sm:$0x1]  ;;  %v184_v54 = vld [vmem:[%s859_s0 + $0x43] sm:$0x1]  ;;  %v211_v48 = vadd.f32 %v179_v41, %v147_v20  ;;  %v212_v10 = vadd.f32 %v180_v51, %v148_v21  ;;  %v213_v14 = vadd.f32 %v181_v49, %v149_v22 }
  0x28   :  { %v185_v55 = vld [vmem:[%s859_s0 + $0x47] sm:$0x1]  ;;  %v186_v63 = vld [vmem:[%s859_s0 + $0x4b] sm:$0x1]  ;;  %v187_v46 = vld [vmem:[%s859_s0 + $0x4f] sm:$0x1]  ;;  %v214_v15 = vadd.f32 %v182_v52, %v150_v23  ;;  %v215_v58 = vadd.f32 %v183_v53, %v151_v8  ;;  %v216_v5 = vadd.f32 %v184_v54, %v152_v28 }
  0x29   :  { %v188_v47 = vld [vmem:[%s859_s0 + $0x53] sm:$0x1]  ;;  %v189_v4 = vld [vmem:[%s859_s0 + $0x57] sm:$0x1]  ;;  %v190_v57 = vld [vmem:[%s859_s0 + $0x5b] sm:$0x1]  ;;  %v217_v6 = vadd.f32 %v185_v55, %v153_v29  ;;  %v218_v7 = vadd.f32 %v186_v63, %v154_v30  ;;  %v219_v23 = vadd.f32 %v187_v46, %v155_v11 }
  0x2a   :  { %v191_v9 = vld [vmem:[%s859_s0 + $0x5f] sm:$0x1]  ;;  %v192_v20 = vld [vmem:[%s859_s0 + $0x63] sm:$0x1]  ;;  %v193_v21 = vld [vmem:[%s859_s0 + $0x67] sm:$0x1]  ;;  %v220_v31 = vadd.f32 %v188_v47, %v156_v12  ;;  %v221_v36 = vadd.f32 %v189_v4, %v157_v13  ;;  %v222_v37 = vadd.f32 %v190_v57, %v158_v60 }
  0x2b   :  { %v194_v22 = vld [vmem:[%s859_s0 + $0x6b] sm:$0x1]  ;;  %v195_v8 = vld [vmem:[%s859_s0 + $0x6f] sm:$0x1]  ;;  %v196_v28 = vld [vmem:[%s859_s0 + $0x73] sm:$0x1]  ;;  %v223_v30 = vadd.f32 %v191_v9, %v159_v16  ;;  %v224_v24 = vadd.f32 %v192_v20, %v160_v17  ;;  %v225_v25 = vadd.f32 %v193_v21, %v161_v18 }
  0x2c   :  { %v197_v29 = vld [vmem:[%s859_s0 + $0x77] sm:$0x1]  ;;  %v226_v26 = vadd.f32 %v194_v22, %v162_v19  ;;  %v198_v11 = vld [vmem:[%s859_s0 + $0x7b] sm:$0x1]  ;;  %v199_v12 = vld [vmem:[%s859_s0 + $0x7f] sm:$0x1]  ;;  %v227_v13 = vadd.f32 %v195_v8, %v163_v27  ;;  %v228_v60 = vadd.f32 %v196_v28, %v164_v38 }
  0x2d   :  { %v229_v32 = vadd.f32 %v197_v29, %v165_v43  ;;  %v232_v33 = vmul.f32 0.25, %v200_v42  ;;  %v230_v34 = vadd.f32 %v198_v11, %v166_v44  ;;  %v231_v39 = vadd.f32 %v199_v12, %v167_v35 }
  0x2e   :  { %v233_v40 = vmul.f32 0.25, %v201_v45  ;;  %v234_v41 = vmul.f32 0.25, %v202_v50  ;;  %v235_v16 = vmul.f32 0.25, %v203_v56  ;;  %v236_v17 = vmul.f32 0.25, %v204_v61 }
  0x2f   :  { %v237_v18 = vmul.f32 0.25, %v205_v62  ;;  %v238_v19 = vmul.f32 0.25, %v206_v59  ;;  %v239_v51 = vmul.f32 0.25, %v207_v0  ;;  %v240_v49 = vmul.f32 0.25, %v208_v1 }
  0x30   :  { %v241_v52 = vmul.f32 0.25, %v209_v2  ;;  %v242_v53 = vmul.f32 0.25, %v210_v3  ;;  %v243_v54 = vmul.f32 0.25, %v211_v48  ;;  %v244_v55 = vmul.f32 0.25, %v212_v10 }
  0x31   :  { %v245_v63 = vmul.f32 0.25, %v213_v14  ;;  %v786_v46 = vmul.f32 0.25, %v214_v15  ;;  %v788_v27 = vmul.f32 0.25, %v215_v58  ;;  %v248_v38 = vmul.f32 0.25, %v216_v5 }
  0x32   :  { %v249_v43 = vmul.f32 0.25, %v217_v6  ;;  %v250_v44 = vmul.f32 0.25, %v218_v7  ;;  %v251_v35 = vmul.f32 0.25, %v219_v23  ;;  %v790_v42 = vmul.f32 0.25, %v220_v31 }
  0x33   :  { %v792_v45 = vmul.f32 0.25, %v221_v36  ;;  %v794_v50 = vmul.f32 0.25, %v222_v37  ;;  %v796_v56 = vmul.f32 0.25, %v223_v30  ;;  %v256_v61 = vmul.f32 0.25, %v224_v24 }
  0x34   :  { %v257_v62 = vmul.f32 0.25, %v225_v25  ;;  %v258_v59 = vmul.f32 0.25, %v226_v26  ;;  %v798_v0 = vmul.f32 0.25, %v227_v13  ;;  %v800_v1 = vmul.f32 0.25, %v228_v60 }
  0x35   :  { %v802_v2 = vmul.f32 0.25, %v229_v32  ;;  %v804_v3 = vmul.f32 0.25, %v230_v34  ;;  %v806_v47 = vmul.f32 0.25, %v231_v39  ;;  %v296_v48 = vrot.slane %v233_v40, 7 }
  0x36   :  { %v299_v10 = vrot.slane %v234_v41, 6  ;;  %v302_v14 = vrot.slane %v235_v16, 5  ;;  %v305_v15 = vrot.slane %v236_v17, 4  ;;  %v308_v57 = vrot.slane %v237_v18, 3 }
  0x37   :  { %v298_v4 = vsel %vm297_vm0, %v296_v48, %v232_v33  ;;  %v311_v58 = vrot.slane %v238_v19, 2  ;;  %v314_v5 = vrot.slane %v239_v51, 1  ;;  %v317_v7 = vrot.slane %v241_v52, 7 }
  0x38   :  { %v301_v9 = vsel %vm300_vm1, %v299_v10, %v298_v4  ;;  %v319_v20 = vrot.slane %v242_v53, 6  ;;  %v321_v22 = vrot.slane %v243_v54, 5  ;;  %v323_v23 = vrot.slane %v244_v55, 4 }
  0x39   :  { %v304_v6 = vsel %vm303_vm2, %v302_v14, %v301_v9  ;;  %v325_v31 = vrot.slane %v245_v63, 3  ;;  %v318_v37 = vsel %vm297_vm0, %v317_v7, %v240_v49  ;;  %v327_v8 = vrot.slane %v786_v46, 2 }
  0x3a   :  { %v307_v21 = vsel %vm306_vm3, %v305_v15, %v304_v6  ;;  %v329_v28 = vrot.slane %v788_v27, 1  ;;  %v320_v30 = vsel %vm300_vm1, %v319_v20, %v318_v37  ;;  %v331_v24 = vrot.slane %v249_v43, 7 }
  0x3b   :  { %v310_v36 = vsel %vm309_vm4, %v308_v57, %v307_v21  ;;  %v333_v25 = vrot.slane %v250_v44, 6  ;;  %v322_v11 = vsel %vm303_vm2, %v321_v22, %v320_v30  ;;  %v335_v12 = vrot.slane %v251_v35, 5 }
  0x3c   :  { %v313_v29 = vsel %vm312_vm5, %v311_v58, %v310_v36  ;;  %v337_v13 = vrot.slane %v790_v42, 4  ;;  %v324_v60 = vsel %vm306_vm3, %v323_v23, %v322_v11  ;;  %v332_v32 = vsel %vm297_vm0, %v331_v24, %v248_v38 }
  0x3d   :  { %v316_v26 = vsel %vm315_vm6, %v314_v5, %v313_v29  ;;  %v339_v33 = vrot.slane %v792_v45, 3  ;;  %v341_v34 = vrot.slane %v794_v50, 2  ;;  %v326_v39 = vsel %vm309_vm4, %v325_v31, %v324_v60 }
  0x3e   :  { %363 = vst [vmem:[%s860_s1] sm:$0xff] %v316_v26  ;;  %v334_v40 = vsel %vm300_vm1, %v333_v25, %v332_v32  ;;  %v343_v41 = vrot.slane %v796_v56, 1  ;;  %v345_v16 = vrot.slane %v257_v62, 7  ;;  %v328_v17 = vsel %vm312_vm5, %v327_v8, %v326_v39 }
  0x3f   :  { %v336_v18 = vsel %vm303_vm2, %v335_v12, %v334_v40  ;;  %v347_v19 = vrot.slane %v258_v59, 6  ;;  %v349_v51 = vrot.slane %v798_v0, 5  ;;  %v330_v49 = vsel %vm315_vm6, %v329_v28, %v328_v17 }
  0x40   :  { %v338_v52 = vsel %vm306_vm3, %v337_v13, %v336_v18  ;;  %v346_v53 = vsel %vm297_vm0, %v345_v16, %v256_v61  ;;  %v351_v54 = vrot.slane %v800_v1, 4  ;;  %v353_v46 = vrot.slane %v802_v2, 3  ;;  %364 = vst [vmem:[%s860_s1 + $0x8] sm:$0xff] %v330_v49 }
  0x41   :  { %v340_v55 = vsel %vm309_vm4, %v339_v33, %v338_v52  ;;  %v348_v63 = vsel %vm300_vm1, %v347_v19, %v346_v53  ;;  %v355_v27 = vrot.slane %v804_v3, 2  ;;  %v357_v44 = vrot.slane %v806_v47, 1 }
  0x42   :  { %v342_v38 = vsel %vm312_vm5, %v341_v34, %v340_v55  ;;  %v350_v43 = vsel %vm303_vm2, %v349_v51, %v348_v63 }
  0x43   :  { %v344_v35 = vsel %vm315_vm6, %v343_v41, %v342_v38  ;;  %v352_v42 = vsel %vm306_vm3, %v351_v54, %v350_v43 }
  0x44   :  { %v354_v45 = vsel %vm309_vm4, %v353_v46, %v352_v42  ;;  %365 = vst [vmem:[%s860_s1 + $0x10] sm:$0xff] %v344_v35 }
  0x45   :  { %v356_v50 = vsel %vm312_vm5, %v355_v27, %v354_v45 }
  0x46   :  { %v358_v56 = vsel %vm315_vm6, %v357_v44, %v356_v50 }
  0x47   :  { %366 = vst [vmem:[%s860_s1 + $0x18] sm:$0xff] %v358_v56 }

// kernel: _lambda_.41
= control target key start
LH: loop header
LB: loop body
LE: loop exit
PB: predicated region body
PF: predicated region fallthrough
CT: control target
= control target key end

     0   :  { %s290_s3 = inlined_call_operand.vmem [shape: bf16[128,128], index: 3, kind: input, shape index: {}]   ;;  %s291_s0 = inlined_call_operand.vmem [shape: f32[1,128], index: 0, kind: input, shape index: {}]   ;;  %s292_s1 = inlined_call_operand.vmem [shape: f32[1,128], index: 1, kind: input, shape index: {}]   ;;  %s293_s2 = inlined_call_operand.vmem [shape: f32[32,128], index: 2, kind: input, shape index: {}]   ;;  %s294_s4 = inlined_call_operand.vmem [shape: f32[32,128], index: 4, kind: output, shape index: {}]  }
   0x1   :  { %v200_v0 = vld [vmem:[%s290_s3 + $0x38] sm:$0xff]  ;;  %v199_v1 = vld [vmem:[%s290_s3 + $0x30] sm:$0xff]  ;;  %v198_v2 = vld [vmem:[%s290_s3 + $0x28] sm:$0xff] }
   0x2   :  { %119 = vmatpush.bf16.msra.mxu0 %v200_v0  ;;  %201 = vmatpush.bf16.msra.mxu1 %v200_v0  ;;  %v197_v3 = vld [vmem:[%s290_s3 + $0x20] sm:$0xff]  ;;  %v196_v4 = vld [vmem:[%s290_s3 + $0x18] sm:$0xff]  ;;  %v26_v7 = vld [vmem:[%s293_s2 + $0x8] sm:$0xff] }
   0x3   :  { %v25_v5 = vld [vmem:[%s293_s2] sm:$0xff]  ;;  %v27_v8 = vld [vmem:[%s293_s2 + $0x10] sm:$0xff]  ;;  %v28_v9 = vld [vmem:[%s293_s2 + $0x18] sm:$0xff] }
   0x4   :  { %v209_v6 = vld [vmem:[%s291_s0] ss:$0 sm:$0xff]  ;;  %v195_v15 = vld [vmem:[%s290_s3 + $0x10] sm:$0xff]  ;;  %v194_v20 = vld [vmem:[%s290_s3 + $0x8] sm:$0xff] }
   0x5   :  { %v33_v10 = vmul.f32 %v209_v6, %v25_v5  ;;  %v34_v11 = vmul.f32 %v209_v6, %v26_v7  ;;  %v210_v12 = vld [vmem:[%s292_s1] ss:$0 sm:$0xff]  ;;  %v35_v13 = vmul.f32 %v209_v6, %v27_v8  ;;  %v36_v14 = vmul.f32 %v209_v6, %v28_v9 }
   0x6   :  { %120 = vmatpush.bf16.msra.mxu0 %v199_v1  ;;  %202 = vmatpush.bf16.msra.mxu1 %v199_v1  ;;  %v193_v25 = vld [vmem:[%s290_s3] sm:$0xff] }
   0x7   :  { %v41_v16 = vadd.f32 %v210_v12, %v33_v10  ;;  %v42_v17 = vadd.f32 %v210_v12, %v34_v11  ;;  %v43_v18 = vadd.f32 %v210_v12, %v35_v13  ;;  %v44_v19 = vadd.f32 %v210_v12, %v36_v14 }
   0x9   :  { %v45_v21 = vmax.f32 %v41_v16, 0.0  ;;  %v46_v22 = vmax.f32 %v42_v17, 0.0  ;;  %v47_v23 = vmax.f32 %v43_v18, 0.0  ;;  %v48_v24 = vmax.f32 %v44_v19, 0.0 }
   0xa   :  { %121 = vmatpush.bf16.msra.mxu0 %v198_v2  ;;  %203 = vmatpush.bf16.msra.mxu1 %v198_v2 }
   0xb   :  { %v53_v26 = vpack.c.bf16 %v46_v22, %v45_v21  ;;  %v54_v27 = vpack.c.bf16 %v48_v24, %v47_v23 }
   0xe   :  { %122 = vmatpush.bf16.msra.mxu0 %v197_v3  ;;  %204 = vmatpush.bf16.msra.mxu1 %v197_v3 }
  0x12   :  { %123 = vmatpush.bf16.msra.mxu0 %v196_v4  ;;  %205 = vmatpush.bf16.msra.mxu1 %v196_v4 }
  0x16   :  { %124 = vmatpush.bf16.msra.mxu0 %v195_v15  ;;  %206 = vmatpush.bf16.msra.mxu1 %v195_v15 }
  0x1a   :  { %125 = vmatpush.bf16.msra.mxu0 %v194_v20  ;;  %207 = vmatpush.bf16.msra.mxu1 %v194_v20 }
  0x1e   :  { %126 = vmatpush.bf16.msra.mxu0 %v193_v25  ;;  %208 = vmatpush.bf16.msra.mxu1 %v193_v25 }
  0x21   :  { %127 = vmatmul.bf16.vlgmr.msra.gmra.mxu0 %v53_v26  ;;  %132 = vmatmul.bf16.vlgmr.msra.gmra.mxu1 %v54_v27 }
  0x9e   :  { %v128_v28 = vpop.f32.mrf.mxu0  ;;  %v133_v29 = vpop.f32.mrf.mxu1 }
  0x9f   :  { %153 = vst [vmem:[%s294_s4] sm:$0xff] %v128_v28 }
  0xa0   :  { %155 = vst [vmem:[%s294_s4 + $0x10] sm:$0xff] %v133_v29 }
  0xa6   :  { %v130_v30 = vpop.f32.mrf.mxu0  ;;  %v135_v31 = vpop.f32.mrf.mxu1 }
  0xa7   :  { %154 = vst [vmem:[%s294_s4 + $0x8] sm:$0xff] %v130_v30 }
  0xa8   :  { %156 = vst [vmem:[%s294_s4 + $0x18] sm:$0xff] %v135_v31 }

// kernel: _lambda_.43
= control target key start
LH: loop header
LB: loop body
LE: loop exit
PB: predicated region body
PF: predicated region fallthrough
CT: control target
= control target key end

     0   :  { %s769_s15 = smov 0   ;;  %s771_s16 = smov 0   ;;  %s875_s0 = inlined_call_operand.vmem [shape: f32[1,1152], index: 0, kind: input, shape index: {}]   ;;  %s876_s1 = inlined_call_operand.vmem [shape: f32[1,1152], index: 1, kind: input, shape index: {}]   ;;  %s877_s2 = inlined_call_operand.vmem [shape: f32[32,1152], index: 2, kind: input, shape index: {}]   ;;  %s878_s3 = inlined_call_operand.vmem [shape: bf16[1152,128], index: 3, kind: input, shape index: {}]   ;;  %s879_s4 = inlined_call_operand.vmem [shape: f32[32,128], index: 4, kind: output, shape index: {}]  }
   0x1   :  { %s773_s17 = smov 0   ;;  %s775_s18 = smov 0  }
   0x2   :  { %s777_s19 = smov 0  }
   0x3 LB: > { %s26_s20 = sadd.s32 1, %s737_s18  ;;  %p101_p1 = scmp.ne.s32.totalorder %s729_s16, %s725_s15  ;;  %s741_s19 = sphi %s777_s19, %s14_s19   ;;  %s737_s18 = sphi %s775_s18, %s883_s18   ;;  %s733_s17 = sphi %s773_s17, %s882_s17   ;;  %s729_s16 = sphi %s771_s16, %s881_s16   ;;  %s725_s15 = sphi %s769_s15, %s880_s15  }
   0x4   : > { %p27_p0 = scmp.ge.s32.totalorder %s26_s20, 9  ;;  %p102_p2 = scmp.eq.s32.totalorder %s741_s19, 0 }
   0x5   : > { %s94_s22 = sadd.s32 1, %s729_s16  ;;  %p599_p5 = scmp.ge.s32.totalorder %s741_s19, 9 }
   0x6   : > { %s885_s20 = smov (%p27_p0, %s26_s20), 0  ;;  %p103_p3 = por %p102_p2, %p101_p1 }
   0x7   : > { %s90_s21 = ssub.s32 %s737_s18, %s885_s20  ;;  %183 = sbr.rel (%p599_p5) target bundleno = 20 (0x14), region = 16 }
   0x8   : > { %p92_p4 = scmp.eq.s32.totalorder %s90_s21, 0 }
   0xa   : > { %s804_s23 = scalar_select %p92_p4, %s729_s16, %s94_s22  }
   0xc   : > { %198 = sbr.rel (!%p103_p3) target bundleno = 20 (0x14), region = 28  ;;  %s200_s24 = sand.u32 (%p103_p3), 1, %s729_s16  }
   0xd   : > { %s601_s25 = sshll.u32 (%p103_p3), %s737_s18, 3  ;;  %s600_s26 = sshll.u32 (%p103_p3), %s200_s24, 5 }
   0xe   : > { %s207_s29 = scalar_lea.vmem (%p103_p3), %s877_s2, %s601_s25  ;;  %s202_s30 = scalar_lea.vmem (%p103_p3), [#allocation3], %s600_s26 }
   0xf   : > { %v242_v0 = vld [vmem:[%s207_s29] sm:$0xff] (%p103_p3)  ;;  %v244_v1 = vld [vmem:[%s207_s29 + $0x48] sm:$0xff] (%p103_p3)  ;;  %v246_v2 = vld [vmem:[%s207_s29 + $0x90] sm:$0xff] (%p103_p3) }
  0x10   : > { %243 = vst [vmem:[%s202_s30] sm:$0xff] (%p103_p3), %v242_v0  ;;  %v248_v3 = vld [vmem:[%s207_s29 + $0xd8] sm:$0xff] (%p103_p3) }
  0x11   : > { %245 = vst [vmem:[%s202_s30 + $0x8] sm:$0xff] %v244_v1 }
  0x12   : > { %247 = vst [vmem:[%s202_s30 + $0x10] sm:$0xff] %v246_v2 }
  0x13   : > { %249 = vst [vmem:[%s202_s30 + $0x18] sm:$0xff] %v248_v3 }
  0x14 PF: > { %p602_p6 = scmp.ge.s32.totalorder %s741_s19, 1  ;;  %p266_p7 = scmp.lt.s32.totalorder %s741_s19, 10 }
  0x16   : > { %p267_p8 = pnand %p602_p6, %p266_p7 }
  0x17   : > { %s273_s5 = sand.u32 (!%p267_p8), 1, %s725_s15   ;;  %p315_p9 = scmp.lt.s32.totalorder (!%p267_p8), %s733_s17, 8 }
  0x18   : > { %270 = sbr.rel (%p267_p8) target bundleno = 218 (0xda), region = 70  ;;  %s603_s6 = sshll.u32 (!%p267_p8), %s273_s5, 5 }
  0x19   : > { %s604_s7 = sshll.u32 (!%p267_p8), %s733_s17, 4  ;;  %s275_s25 = scalar_lea.vmem (!%p267_p8), [#allocation3], %s603_s6 }
  0x1a   : > { %p323_p10 = scmp.lt.s32.totalorder (!%p267_p8), %s604_s7, 143  ;;  %p606_p11 = scmp.ne.s32.totalorder (!%p267_p8), %s733_s17, 0 }
  0x1d   : > { %s818_s8 = scalar_select %p315_p9, %s733_s17, 8 }
  0x1e   : > { %s887_s7 = smov (!%p323_p10, %s604_s7), 143  ;;  %343 = sbr.rel (%p606_p11) target bundleno = 40 (0x28), region = 78 }
  0x1f   : > { %s317_s11 = scalar_lea.vmem %s875_s0, %s818_s8  ;;  %s320_s14 = scalar_lea.vmem %s876_s1, %s818_s8 }
  0x20   : > { %s605_s21 = sshll.u32 %s887_s7, 2 }
  0x21   : > { %s831_s24 = scalar_lea.vmem %s878_s3, %s605_s21 }
  0x23   : > { %v743_v4 = vmov 0.0  }
  0x24   : > { %344 = vst [vmem:[#allocation2 + $0x10] sm:$0xff] %v743_v4 }
  0x25   : > { %345 = vst [vmem:[#allocation2] sm:$0xff] %v743_v4 }
  0x26   : > { %346 = vst [vmem:[#allocation2 + $0x18] sm:$0xff] %v743_v4 }
  0x27   : > { %347 = vst [vmem:[#allocation2 + $0x8] sm:$0xff] %v743_v4 }
  0x28 PF: > { %v651_v5 = vld [vmem:[%s831_s24 + $0x38] sm:$0xff]  ;;  %v650_v6 = vld [vmem:[%s831_s24 + $0x30] sm:$0xff]  ;;  %v649_v7 = vld [vmem:[%s831_s24 + $0x28] sm:$0xff]  ;;  %p639_p12 = scmp.ne.s32.totalorder %s733_s17, 8 }
  0x29   : > { %442 = vmatpush.bf16.msra.mxu0 %v651_v5  ;;  %652 = vmatpush.bf16.msra.mxu1 %v651_v5  ;;  %v648_v8 = vld [vmem:[%s831_s24 + $0x20] sm:$0xff]  ;;  %v647_v9 = vld [vmem:[%s831_s24 + $0x18] sm:$0xff]  ;;  %v349_v12 = vld [vmem:[%s275_s25 + $0x8] sm:$0xff] }
  0x2a   : > { %v348_v10 = vld [vmem:[%s275_s25] sm:$0xff]  ;;  %v350_v13 = vld [vmem:[%s275_s25 + $0x10] sm:$0xff]  ;;  %v351_v14 = vld [vmem:[%s275_s25 + $0x18] sm:$0xff] }
  0x2b   : > { %v701_v11 = vld [vmem:[%s317_s11] ss:$0 sm:$0xff]  ;;  %v646_v20 = vld [vmem:[%s831_s24 + $0x10] sm:$0xff]  ;;  %v645_v25 = vld [vmem:[%s831_s24 + $0x8] sm:$0xff] }
  0x2c   : > { %v356_v15 = vmul.f32 %v701_v11, %v348_v10  ;;  %v357_v16 = vmul.f32 %v701_v11, %v349_v12  ;;  %v702_v17 = vld [vmem:[%s320_s14] ss:$0 sm:$0xff]  ;;  %v358_v18 = vmul.f32 %v701_v11, %v350_v13  ;;  %v359_v19 = vmul.f32 %v701_v11, %v351_v14  ;;  %v372_v33 = vld [vmem:[#allocation2 + $0x10] sm:$0xff] }
  0x2d   : > { %443 = vmatpush.bf16.msra.mxu0 %v650_v6  ;;  %653 = vmatpush.bf16.msra.mxu1 %v650_v6  ;;  %v644_v30 = vld [vmem:[%s831_s24] sm:$0xff]  ;;  %v374_v34 = vld [vmem:[#allocation2 + $0x18] sm:$0xff] }
  0x2e   : > { %v364_v21 = vadd.f32 %v702_v17, %v356_v15  ;;  %v365_v22 = vadd.f32 %v702_v17, %v357_v16  ;;  %v366_v23 = vadd.f32 %v702_v17, %v358_v18  ;;  %v367_v24 = vadd.f32 %v702_v17, %v359_v19  ;;  %v373_v39 = vld [vmem:[#allocation2] sm:$0xff]  ;;  %v375_v40 = vld [vmem:[#allocation2 + $0x8] sm:$0xff] }
  0x30   : > { %v368_v26 = vmax.f32 %v364_v21, 0.0  ;;  %v369_v27 = vmax.f32 %v365_v22, 0.0  ;;  %v370_v28 = vmax.f32 %v366_v23, 0.0  ;;  %v371_v29 = vmax.f32 %v367_v24, 0.0 }
  0x31   : > { %444 = vmatpush.bf16.msra.mxu0 %v649_v7  ;;  %654 = vmatpush.bf16.msra.mxu1 %v649_v7 }
  0x32   : > { %v376_v31 = vpack.c.bf16 %v369_v27, %v368_v26  ;;  %v377_v32 = vpack.c.bf16 %v371_v29, %v370_v28 }
  0x35   : > { %445 = vmatpush.bf16.msra.mxu0 %v648_v8  ;;  %655 = vmatpush.bf16.msra.mxu1 %v648_v8 }
  0x39   : > { %446 = vmatpush.bf16.msra.mxu0 %v647_v9  ;;  %656 = vmatpush.bf16.msra.mxu1 %v647_v9 }
  0x3d   : > { %447 = vmatpush.bf16.msra.mxu0 %v646_v20  ;;  %657 = vmatpush.bf16.msra.mxu1 %v646_v20 }
  0x41   : > { %448 = vmatpush.bf16.msra.mxu0 %v645_v25  ;;  %658 = vmatpush.bf16.msra.mxu1 %v645_v25 }
  0x45   : > { %449 = vmatpush.bf16.msra.mxu0 %v644_v30  ;;  %659 = vmatpush.bf16.msra.mxu1 %v644_v30 }
  0x48   : > { %450 = vmatmul.bf16.vlgmr.msra.gmra.mxu0 %v376_v31  ;;  %455 = vmatmul.bf16.vlgmr.msra.gmra.mxu1 %v377_v32 }
  0xc5   : > { %v451_v35 = vpop.f32.mrf.mxu0  ;;  %v456_v36 = vpop.f32.mrf.mxu1 }
  0xc6   : > { %v461_v37 = vadd.f32 %v451_v35, %v372_v33  ;;  %v463_v38 = vadd.f32 %v456_v36, %v374_v34 }
  0xc8   : > { %465 = vst [vmem:[#allocation2 + $0x10] sm:$0xff] %v461_v37 }
  0xc9   : > { %467 = vst [vmem:[#allocation2 + $0x18] sm:$0xff] %v463_v38 }
  0xcd   : > { %v453_v41 = vpop.f32.mrf.mxu0  ;;  %v458_v42 = vpop.f32.mrf.mxu1  ;;  %472 = sbr.rel (%p639_p12) target bundleno = 218 (0xda), region = 82 }
  0xce   : > { %v462_v43 = vadd.f32 %v453_v41, %v373_v39  ;;  %v464_v44 = vadd.f32 %v458_v42, %v375_v40 }
  0xd0   : > { %466 = vst [vmem:[#allocation2] sm:$0xff] %v462_v43 }
  0xd1   : > { %468 = vst [vmem:[#allocation2 + $0x8] sm:$0xff] %v464_v44 }
  0xd2   : > { %v473_v45 = vld [vmem:[#allocation2 + $0x10] sm:$0xff]  ;;  %v475_v47 = vld [vmem:[#allocation2 + $0x18] sm:$0xff] }
  0xd3   : > { %477 = vst [vmem:[%s879_s4] sm:$0xff] %v473_v45 }
  0xd4   : > { %479 = vst [vmem:[%s879_s4 + $0x10] sm:$0xff] %v475_v47 }
  0xd7   : > { %v474_v46 = vld [vmem:[#allocation2] sm:$0xff] }
  0xd8   : > { %v476_v48 = vld [vmem:[#allocation2 + $0x8] sm:$0xff]  ;;  %478 = vst [vmem:[%s879_s4 + $0x8] sm:$0xff] %v474_v46 }
  0xd9   : > { %480 = vst [vmem:[%s879_s4 + $0x18] sm:$0xff] %v476_v48 }
  0xda PF: > { %s14_s19 = sadd.s32 1, %s741_s19   ;;  %s880_s15 = smov %s729_s16 }
  0xdb   : > { %p11_p13 = scmp.ge.s32.totalorder %s14_s19, 11   ;;  %s881_s16 = smov %s804_s23 }
  0xdc   : > { %s882_s17 = smov %s737_s18  ;;  %s883_s18 = smov %s885_s20 }
  0xdd   :  { %13 = sbr.rel (!%p11_p13) target bundleno = 3 (0x3), region = 126 }

// kernel: _lambda_.49
= control target key start
LH: loop header
LB: loop body
LE: loop exit
PB: predicated region body
PF: predicated region fallthrough
CT: control target
= control target key end

     0   :  { %s98_s0 = inlined_call_operand.vmem [shape: f32[32,128], index: 0, kind: input, shape index: {}]   ;;  %s99_s1 = inlined_call_operand.vmem [shape: f32[1,128], index: 1, kind: input, shape index: {}]   ;;  %s100_s2 = inlined_call_operand.vmem [shape: f32[1,128], index: 2, kind: input, shape index: {}]   ;;  %s101_s3 = inlined_call_operand.vmem [shape: f32[32,128], index: 3, kind: output, shape index: {}]  }
   0x1   :  { %v14_v0 = vld [vmem:[%s98_s0] sm:$0xff]  ;;  %v15_v3 = vld [vmem:[%s98_s0 + $0x8] sm:$0xff]  ;;  %v16_v6 = vld [vmem:[%s98_s0 + $0x10] sm:$0xff] }
   0x2   :  { %v46_v1 = vld [vmem:[%s99_s1] ss:$0 sm:$0xff]  ;;  %v17_v7 = vld [vmem:[%s98_s0 + $0x18] sm:$0xff] }
   0x3   :  { %v47_v2 = vld [vmem:[%s100_s2] ss:$0 sm:$0xff]  ;;  %v22_v4 = vmul.f32 %v46_v1, %v14_v0  ;;  %v23_v5 = vmul.f32 %v46_v1, %v15_v3  ;;  %v24_v8 = vmul.f32 %v46_v1, %v16_v6  ;;  %v25_v9 = vmul.f32 %v46_v1, %v17_v7 }
   0x5   :  { %v30_v10 = vadd.f32 %v47_v2, %v22_v4  ;;  %v31_v11 = vadd.f32 %v47_v2, %v23_v5  ;;  %v32_v12 = vadd.f32 %v47_v2, %v24_v8  ;;  %v33_v13 = vadd.f32 %v47_v2, %v25_v9 }
   0x7   :  { %v34_v14 = vmax.f32 %v30_v10, 0.0  ;;  %v35_v15 = vmax.f32 %v31_v11, 0.0  ;;  %v36_v16 = vmax.f32 %v32_v12, 0.0  ;;  %v37_v17 = vmax.f32 %v33_v13, 0.0 }
   0x9   :  { %38 = vst [vmem:[%s101_s3] sm:$0xff] %v34_v14 }
   0xa   :  { %39 = vst [vmem:[%s101_s3 + $0x8] sm:$0xff] %v35_v15 }
   0xb   :  { %40 = vst [vmem:[%s101_s3 + $0x10] sm:$0xff] %v36_v16 }
   0xc   :  { %41 = vst [vmem:[%s101_s3 + $0x18] sm:$0xff] %v37_v17 }

</bundles_post_ra>
